<compile_context>
chip_gen: v7x
topology: tpu7x:2x2x1
jax: 0.10.0
libtpu: 0.0.40
codegen_flags: <defaults>
</compile_context>

<pallas_src>
import functools
import math

import jax
import jax.numpy as jnp
from jax.experimental import pallas as pl
from jax.experimental.pallas import tpu as pltpu


def _mha_kernel(x_ref, wqkv_ref, bqkv_ref, wo_ref, bo_ref, gamma_ref, beta_ref,
                o_ref, *, num_head, dim_head, ln_eps, exp_in_bf16):
    """One grid step = one batch element (all heads, full sequence)."""
    x = x_ref[0].astype(jnp.float32)                        # (S, E) f32 (residual path)
    S, E = x.shape
    xb = x.astype(jnp.bfloat16)

    # --- fused Q/K/V projection (bf16 MXU, f32 accumulate, f32 bias add) ---
    # 1/sqrt(dim_head) is already folded into the Q columns / bias in prepare_params.
    qkv = jnp.dot(xb, wqkv_ref[...],
                  preferred_element_type=jnp.float32) + bqkv_ref[...]   # (S, 3E) f32

    # --- quirky row-major head view, exactly matching torch .view(B*H, -1, dh):
    # per batch element the flat (S*E,) buffer reinterprets as (H, S, dh).
    q3 = qkv[:, :E].reshape(num_head, S, dim_head).astype(jnp.bfloat16)
    k3 = qkv[:, E:2 * E].reshape(num_head, S, dim_head).astype(jnp.bfloat16)
    v3 = qkv[:, 2 * E:].reshape(num_head, S, dim_head).astype(jnp.bfloat16)

    # --- scaled dot-product attention over all heads (scale folded into q) ---
    s = jnp.einsum('hqd,hkd->hqk', q3, k3,
                   preferred_element_type=jnp.float32)       # (H, S, S) f32
    s = s - jnp.max(s, axis=-1, keepdims=True)
    if exp_in_bf16:
        # v6e/v7x only: bf16 EUP has ~2x exp throughput; statistics stay f32.
        p = jnp.exp(s.astype(jnp.bfloat16))
        l = jnp.sum(p, axis=-1, keepdims=True, dtype=jnp.float32)
    else:
        p = jnp.exp(s)
        l = jnp.sum(p, axis=-1, keepdims=True)               # (H, S, 1) f32
    ctx = jnp.einsum('hqk,hkd->hqd', p.astype(jnp.bfloat16), v3,
                     preferred_element_type=jnp.float32)     # (H, S, dh) f32
    ctx = ctx * (1.0 / l)          # exact normalization, applied post-PV (S*dh, not S*S)

    # --- merge heads back (inverse row-major view), output proj, residual, LN ---
    ctx = ctx.reshape(S, E)
    out = jnp.dot(ctx.astype(jnp.bfloat16), wo_ref[...],
                  preferred_element_type=jnp.float32) + bo_ref[...]
    out = out + x                  # TODO(synk): dropout = identity (eval-mode semantics)

    mean = jnp.mean(out, axis=-1, keepdims=True)
    var = jnp.mean(jnp.square(out - mean), axis=-1, keepdims=True)
    out = (out - mean) * jax.lax.rsqrt(var + ln_eps)
    out = out * gamma_ref[...] + beta_ref[...]

    o_ref[0] = out.astype(o_ref.dtype)


def _build_call(kernel, B, S, E, dtype, vmem_limit, cost, resident_weights):
    """Build the pallas_call.  resident_weights=True keeps the constant operands
    fully in VMEM (single DMA, no per-step double-buffering)."""
    x_spec = pl.BlockSpec((1, S, E), lambda b: (b, 0, 0))
    if resident_weights:
        wspec = lambda shape: pl.BlockSpec(memory_space=pltpu.MemorySpace.VMEM)
    else:
        # Fallback: full-array blocks with a constant index_map (still DMA'd only
        # once because the block index never changes, but double-buffered).
        wspec = lambda shape: pl.BlockSpec(shape, lambda b: (0, 0))
    in_specs = [
        x_spec,
        wspec((E, 3 * E)),   # w_qkv (bf16)
        wspec((1, 3 * E)),   # b_qkv (f32, Q part pre-scaled)
        wspec((E, E)),       # wo (bf16)
        wspec((1, E)),       # bo
        wspec((1, E)),       # gamma
        wspec((1, E)),       # beta
    ]
    return pl.pallas_call(
        kernel,
        out_shape=jax.ShapeDtypeStruct((B, S, E), dtype),
        grid=(B,),
        in_specs=in_specs,
        # E is a multiple of 128 in the intended configs -> lane-dense stores.
        out_specs=pl.BlockSpec((1, S, E), lambda b: (b, 0, 0)),
        compiler_params=pltpu.CompilerParams(
            dimension_semantics=("parallel",),     # flat axis -> balanced across v7x TCs
            vmem_limit_bytes=vmem_limit),
        cost_estimate=cost,
    )


def multi_head_attention(x, fused, *, num_head, exp_in_bf16=False):
    """x: (B, S, E) float32.  fused: output of prepare_params() (hoisted weight prep)."""
    B, S, E = x.shape
    assert E % num_head == 0
    dim_head = E // num_head

    kernel = functools.partial(_mha_kernel, num_head=num_head, dim_head=dim_head,
                               ln_eps=1e-5, exp_in_bf16=exp_in_bf16)

    # Advisory cost estimate so XLA schedules neighbours around the custom call.
    flops = B * (2 * S * E * 3 * E + 4 * S * S * E + 2 * S * E * E)
    transcendentals = B * num_head * S * S
    bytes_w = int(fused['w_qkv'].nbytes + fused['wo'].nbytes + fused['b_qkv'].nbytes
                  + fused['bo'].nbytes + fused['gamma'].nbytes + fused['beta'].nbytes)
    cost = pl.CostEstimate(flops=int(flops),
                           transcendentals=int(transcendentals),
                           bytes_accessed=int(2 * x.nbytes + bytes_w))

    # VMEM limit derived from the actual resident footprint (x2 headroom), clamped
    # to [32 MiB, 64 MiB] so it stays valid on v7x's 64 MiB physical VMEM.
    bytes_io = 2 * 2 * S * E * 4                               # double-buffered x / out blocks
    bytes_tmp = (S * 3 * E * 4 + 3 * S * E * 2                 # qkv f32, q3/k3/v3 bf16
                 + num_head * S * S * 6                        # scores f32 + p bf16
                 + 3 * S * E * 4)                              # ctx / out f32 slack
    footprint = 2 * bytes_w + bytes_io + bytes_tmp
    vmem_limit = int(min(64 * 2 ** 20, max(32 * 2 ** 20, 2 * footprint)))

    args = (x, fused['w_qkv'], fused['b_qkv'], fused['wo'], fused['bo'],
            fused['gamma'], fused['beta'])
    try:
        return _build_call(kernel, B, S, E, x.dtype, vmem_limit, cost, True)(*args)
    except Exception:
        # Portability fallback if unblocked VMEM-resident operands are rejected by
        # the installed Pallas version.
        return _build_call(kernel, B, S, E, x.dtype, vmem_limit, cost, False)(*args)


def prepare_params(params, *, num_head):
    """One-time weight preparation, hoisted out of the forward path:
    transpose Linear weights (out,in)->(in,out), fold 1/sqrt(dim_head) into Q,
    fuse Q|K|V, cast matmul weights to bf16 (biases / LN params stay f32)."""
    E = params['wq'].shape[0]
    dim_head = E // num_head
    scale = 1.0 / math.sqrt(dim_head)
    w_qkv = jnp.concatenate([params['wq'].T * scale, params['wk'].T, params['wv'].T],
                            axis=1).astype(jnp.bfloat16)                   # (E, 3E)
    b_qkv = jnp.concatenate([params['bq'] * scale, params['bk'], params['bv']]
                            ).reshape(1, 3 * E).astype(jnp.float32)
    return {
        'w_qkv': w_qkv,
        'b_qkv': b_qkv,
        'wo': params['wo'].T.astype(jnp.bfloat16),                         # (E, E)
        'bo': params['bo'].reshape(1, E).astype(jnp.float32),
        'gamma': params['ln_gamma'].reshape(1, E).astype(jnp.float32),
        'beta': params['ln_beta'].reshape(1, E).astype(jnp.float32),
    }


def _reference(x, params, *, num_head):
    """Pure-JAX f32 reference mirroring the PyTorch forward (eval-mode dropout)."""
    B, S, E = x.shape
    dh = E // num_head
    q = x @ params['wq'].T + params['bq']
    k = x @ params['wk'].T + params['bk']
    v = x @ params['wv'].T + params['bv']
    q = q.reshape(B * num_head, -1, dh)
    k = k.reshape(B * num_head, -1, dh)
    v = v.reshape(B * num_head, -1, dh)
    scores = jnp.einsum('bqd,bkd->bqk', q, k) / math.sqrt(dh)
    attn = jax.nn.softmax(scores, axis=-1)
    ctx = jnp.einsum('bqk,bkd->bqd', attn, v).reshape(B, -1, E)
    out = ctx @ params['wo'].T + params['bo']
    out = out + x
    mean = jnp.mean(out, axis=-1, keepdims=True)
    var = jnp.mean((out - mean) ** 2, axis=-1, keepdims=True)
    return (out - mean) * jax.lax.rsqrt(var + 1e-5) * params['ln_gamma'] + params['ln_beta']


def init_params(key, embed_dim):
    """Deterministic init matching PyTorch Linear default bounds; LN = ones/zeros."""
    ks = jax.random.split(key, 8)
    bound = 1.0 / math.sqrt(embed_dim)
    u = lambda k, shape: jax.random.uniform(k, shape, jnp.float32, -bound, bound)
    return {
        'wq': u(ks[0], (embed_dim, embed_dim)), 'bq': u(ks[1], (embed_dim,)),
        'wk': u(ks[2], (embed_dim, embed_dim)), 'bk': u(ks[3], (embed_dim,)),
        'wv': u(ks[4], (embed_dim, embed_dim)), 'bv': u(ks[5], (embed_dim,)),
        'wo': u(ks[6], (embed_dim, embed_dim)), 'bo': u(ks[7], (embed_dim,)),
        'ln_gamma': jnp.ones((embed_dim,), jnp.float32),
        'ln_beta': jnp.zeros((embed_dim,), jnp.float32),
    }


if __name__ == "__main__":
    # Small but TPU-friendly config: dim_head = 128 (lane-aligned head split/merge),
    # E % 128 == 0 (lane-dense output stores).
    num_head = 4
    embed_dim = 512
    batch, seq = 2, 16

    key = jax.random.PRNGKey(0)
    kx, kp = jax.random.split(key)
    x = jax.random.normal(kx, (batch, seq, embed_dim), jnp.float32)
    params = init_params(kp, embed_dim)
    fused = prepare_params(params, num_head=num_head)   # hoisted out of the forward path

    out = multi_head_attention(x, fused, num_head=num_head)
    out = jax.block_until_ready(out)

    ref = _reference(x, params, num_head=num_head)
    assert out.shape == (batch, seq, embed_dim)
    # bf16 MXU inputs -> loosened tolerance vs the pure-f32 reference.
    err = float(jnp.max(jnp.abs(out - ref)))
    assert jnp.allclose(out, ref, atol=2e-2, rtol=2e-2), f"mismatch vs f32 reference (max abs err {err})"

    print("KERNEL_OK")
</pallas_src>

<mosaic_0001>
module attributes {stable_mosaic.version = 11 : i64} {
  func.func @_mha_kernel(%arg0: i32, %arg1: memref<1x16x512xf32, #tpu.memory_space<vmem>>, %arg2: memref<512x1536xbf16, #tpu.memory_space<vmem>>, %arg3: memref<1x1536xf32, #tpu.memory_space<vmem>>, %arg4: memref<512x512xbf16, #tpu.memory_space<vmem>>, %arg5: memref<1x512xf32, #tpu.memory_space<vmem>>, %arg6: memref<1x512xf32, #tpu.memory_space<vmem>>, %arg7: memref<1x512xf32, #tpu.memory_space<vmem>>, %arg8: memref<1x16x512xf32, #tpu.memory_space<vmem>>) attributes {dimension_semantics = [#tpu.dimension_semantics<parallel>], iteration_bounds = array<i64: 2>, scalar_prefetch = 0 : i64, scratch_operands = 0 : i64, tpu.core_type = #tpu.core_type<tc>, window_params = [{transform_indices = @transform_0, window_bounds = array<i64: 1, 16, 512>}, {pipeline_mode = #tpu.pipeline_mode<synchronous>, transform_indices = @transform_1, window_bounds = array<i64: 512, 1536>}, {pipeline_mode = #tpu.pipeline_mode<synchronous>, transform_indices = @transform_2, window_bounds = array<i64: 1, 1536>}, {pipeline_mode = #tpu.pipeline_mode<synchronous>, transform_indices = @transform_3, window_bounds = array<i64: 512, 512>}, {pipeline_mode = #tpu.pipeline_mode<synchronous>, transform_indices = @transform_4, window_bounds = array<i64: 1, 512>}, {pipeline_mode = #tpu.pipeline_mode<synchronous>, transform_indices = @transform_5, window_bounds = array<i64: 1, 512>}, {pipeline_mode = #tpu.pipeline_mode<synchronous>, transform_indices = @transform_6, window_bounds = array<i64: 1, 512>}, {transform_indices = @transform_7, window_bounds = array<i64: 1, 16, 512>}]} {
    %c0 = arith.constant 0 : index
    %c0_0 = arith.constant 0 : index
    %c0_1 = arith.constant 0 : index
    %0 = vector.load %arg1[%c0, %c0_0, %c0_1] : memref<1x16x512xf32, #tpu.memory_space<vmem>>, vector<1x16x512xf32>
    %1 = vector.shape_cast %0 : vector<1x16x512xf32> to vector<16x512xf32>
    %2 = arith.truncf %1 : vector<16x512xf32> to vector<16x512xbf16>
    %c0_2 = arith.constant 0 : index
    %c0_3 = arith.constant 0 : index
    %3 = vector.load %arg2[%c0_2, %c0_3] : memref<512x1536xbf16, #tpu.memory_space<vmem>>, vector<512x1536xbf16>
    %cst = arith.constant dense<0.000000e+00> : vector<16x1536xf32>
    %4 = tpu.matmul %2, %3, %cst {dimension_numbers = #tpu.dot_dimension_numbers<[1], [0], [0], [1], [0, 0, 1, 1], [], []>} : vector<16x512xbf16>, vector<512x1536xbf16>, vector<16x1536xf32> -> vector<16x1536xf32>
    %c0_4 = arith.constant 0 : index
    %c0_5 = arith.constant 0 : index
    %5 = vector.load %arg3[%c0_4, %c0_5] : memref<1x1536xf32, #tpu.memory_space<vmem>>, vector<1x1536xf32>
    %6 = vector.broadcast %5 : vector<1x1536xf32> to vector<16x1536xf32>
    %7 = arith.addf %4, %6 : vector<16x1536xf32>
    %8 = vector.extract_strided_slice %7 {offsets = [0, 0], sizes = [16, 512], strides = [1, 1]} : vector<16x1536xf32> to vector<16x512xf32>
    %9 = vector.shape_cast %8 : vector<16x512xf32> to vector<4x16x128xf32>
    %10 = arith.truncf %9 : vector<4x16x128xf32> to vector<4x16x128xbf16>
    %11 = vector.extract_strided_slice %7 {offsets = [0, 512], sizes = [16, 512], strides = [1, 1]} : vector<16x1536xf32> to vector<16x512xf32>
    %12 = vector.shape_cast %11 : vector<16x512xf32> to vector<4x16x128xf32>
    %13 = arith.truncf %12 : vector<4x16x128xf32> to vector<4x16x128xbf16>
    %14 = vector.extract_strided_slice %7 {offsets = [0, 1024], sizes = [16, 512], strides = [1, 1]} : vector<16x1536xf32> to vector<16x512xf32>
    %15 = vector.shape_cast %14 : vector<16x512xf32> to vector<4x16x128xf32>
    %16 = arith.truncf %15 : vector<4x16x128xf32> to vector<4x16x128xbf16>
    "tpu.trace_start"() <{level = 10 : i32, message = "hqd,hkd->hqk"}> : () -> ()
    %cst_6 = arith.constant dense<0.000000e+00> : vector<4x16x16xf32>
    %17 = tpu.matmul %10, %13, %cst_6 {dimension_numbers = #tpu.dot_dimension_numbers<[2], [2], [1], [1], [0, 0, 0, 1, 1, 1], [0], [0]>} : vector<4x16x128xbf16>, vector<4x16x128xbf16>, vector<4x16x16xf32> -> vector<4x16x16xf32>
    "tpu.trace_stop"() : () -> ()
    %cst_7 = arith.constant dense<0xFF800000> : vector<4x16xf32>
    %18 = vector.multi_reduction <maximumf>, %17, %cst_7 [2] : vector<4x16x16xf32> to vector<4x16xf32>
    %19 = vector.shape_cast %18 : vector<4x16xf32> to vector<4x16x1xf32>
    %20 = vector.broadcast %19 : vector<4x16x1xf32> to vector<4x16x16xf32>
    %21 = arith.subf %17, %20 : vector<4x16x16xf32>
    %22 = math.exp %21 : vector<4x16x16xf32>
    %cst_8 = arith.constant dense<0.000000e+00> : vector<4x16xf32>
    %23 = vector.multi_reduction <add>, %22, %cst_8 [2] : vector<4x16x16xf32> to vector<4x16xf32>
    %24 = vector.shape_cast %23 : vector<4x16xf32> to vector<4x16x1xf32>
    %25 = arith.truncf %22 : vector<4x16x16xf32> to vector<4x16x16xbf16>
    "tpu.trace_start"() <{level = 10 : i32, message = "hqk,hkd->hqd"}> : () -> ()
    %cst_9 = arith.constant dense<0.000000e+00> : vector<4x16x128xf32>
    %26 = tpu.matmul %25, %16, %cst_9 {dimension_numbers = #tpu.dot_dimension_numbers<[2], [1], [1], [2], [0, 0, 0, 1, 1, 2], [0], [0]>} : vector<4x16x16xbf16>, vector<4x16x128xbf16>, vector<4x16x128xf32> -> vector<4x16x128xf32>
    "tpu.trace_stop"() : () -> ()
    %cst_10 = arith.constant 1.000000e+00 : f32
    %27 = vector.broadcast %cst_10 : f32 to vector<4x16x1xf32>
    %28 = arith.divf %27, %24 : vector<4x16x1xf32>
    %29 = vector.broadcast %28 : vector<4x16x1xf32> to vector<4x16x128xf32>
    %30 = arith.mulf %26, %29 : vector<4x16x128xf32>
    %31 = vector.shape_cast %30 : vector<4x16x128xf32> to vector<16x512xf32>
    %32 = arith.truncf %31 : vector<16x512xf32> to vector<16x512xbf16>
    %c0_11 = arith.constant 0 : index
    %c0_12 = arith.constant 0 : index
    %33 = vector.load %arg4[%c0_11, %c0_12] : memref<512x512xbf16, #tpu.memory_space<vmem>>, vector<512x512xbf16>
    %cst_13 = arith.constant dense<0.000000e+00> : vector<16x512xf32>
    %34 = tpu.matmul %32, %33, %cst_13 {dimension_numbers = #tpu.dot_dimension_numbers<[1], [0], [0], [1], [0, 0, 1, 1], [], []>} : vector<16x512xbf16>, vector<512x512xbf16>, vector<16x512xf32> -> vector<16x512xf32>
    %c0_14 = arith.constant 0 : index
    %c0_15 = arith.constant 0 : index
    %35 = vector.load %arg5[%c0_14, %c0_15] : memref<1x512xf32, #tpu.memory_space<vmem>>, vector<1x512xf32>
    %36 = vector.broadcast %35 : vector<1x512xf32> to vector<16x512xf32>
    %37 = arith.addf %34, %36 : vector<16x512xf32>
    %38 = arith.addf %37, %1 : vector<16x512xf32>
    %cst_16 = arith.constant dense<0.000000e+00> : vector<16xf32>
    %39 = vector.multi_reduction <add>, %38, %cst_16 [1] : vector<16x512xf32> to vector<16xf32>
    %40 = vector.shape_cast %39 : vector<16xf32> to vector<16x1xf32>
    %cst_17 = arith.constant 5.120000e+02 : f32
    %41 = vector.broadcast %cst_17 : f32 to vector<16x1xf32>
    %42 = arith.divf %40, %41 : vector<16x1xf32>
    %43 = vector.broadcast %42 : vector<16x1xf32> to vector<16x512xf32>
    %44 = arith.subf %38, %43 : vector<16x512xf32>
    %45 = arith.mulf %44, %44 : vector<16x512xf32>
    %cst_18 = arith.constant dense<0.000000e+00> : vector<16xf32>
    %46 = vector.multi_reduction <add>, %45, %cst_18 [1] : vector<16x512xf32> to vector<16xf32>
    %47 = vector.shape_cast %46 : vector<16xf32> to vector<16x1xf32>
    %cst_19 = arith.constant 5.120000e+02 : f32
    %48 = vector.broadcast %cst_19 : f32 to vector<16x1xf32>
    %49 = arith.divf %47, %48 : vector<16x1xf32>
    %50 = vector.broadcast %42 : vector<16x1xf32> to vector<16x512xf32>
    %51 = arith.subf %38, %50 : vector<16x512xf32>
    %cst_20 = arith.constant 9.99999974E-6 : f32
    %52 = vector.broadcast %cst_20 : f32 to vector<16x1xf32>
    %53 = arith.addf %49, %52 : vector<16x1xf32>
    %54 = math.rsqrt %53 : vector<16x1xf32>
    %55 = vector.broadcast %54 : vector<16x1xf32> to vector<16x512xf32>
    %56 = arith.mulf %51, %55 : vector<16x512xf32>
    %c0_21 = arith.constant 0 : index
    %c0_22 = arith.constant 0 : index
    %57 = vector.load %arg6[%c0_21, %c0_22] : memref<1x512xf32, #tpu.memory_space<vmem>>, vector<1x512xf32>
    %58 = vector.broadcast %57 : vector<1x512xf32> to vector<16x512xf32>
    %59 = arith.mulf %56, %58 : vector<16x512xf32>
    %c0_23 = arith.constant 0 : index
    %c0_24 = arith.constant 0 : index
    %60 = vector.load %arg7[%c0_23, %c0_24] : memref<1x512xf32, #tpu.memory_space<vmem>>, vector<1x512xf32>
    %61 = vector.broadcast %60 : vector<1x512xf32> to vector<16x512xf32>
    %62 = arith.addf %59, %61 : vector<16x512xf32>
    %c0_25 = arith.constant 0 : index
    %c0_26 = arith.constant 0 : index
    %c0_27 = arith.constant 0 : index
    %63 = vector.load %arg8[%c0_25, %c0_26, %c0_27] : memref<1x16x512xf32, #tpu.memory_space<vmem>>, vector<1x16x512xf32>
    %64 = vector.shape_cast %63 : vector<1x16x512xf32> to vector<16x512xf32>
    %65 = vector.shape_cast %62 : vector<16x512xf32> to vector<1x16x512xf32>
    tpu.vector_store %arg8[%c0_25, %c0_26, %c0_27], %65 {strides = array<i32>} : memref<1x16x512xf32, #tpu.memory_space<vmem>>, vector<1x16x512xf32>,
    return
  }
  func.func @transform_0(%arg0: i32) -> (i32, i32, i32) {
    %c0_i32 = arith.constant 0 : i32
    %c0_i32_0 = arith.constant 0 : i32
    %c0_i32_1 = arith.constant 0 : i32
    return %arg0, %c0_i32, %c0_i32_0 : i32, i32, i32
  }
  func.func @transform_1(%arg0: i32) -> (i32, i32) {
    %c0_i32 = arith.constant 0 : i32
    %c0_i32_0 = arith.constant 0 : i32
    %c0_i32_1 = arith.constant 0 : i32
    return %c0_i32, %c0_i32_0 : i32, i32
  }
  func.func @transform_2(%arg0: i32) -> (i32, i32) {
    %c0_i32 = arith.constant 0 : i32
    %c0_i32_0 = arith.constant 0 : i32
    %c0_i32_1 = arith.constant 0 : i32
    return %c0_i32, %c0_i32_0 : i32, i32
  }
  func.func @transform_3(%arg0: i32) -> (i32, i32) {
    %c0_i32 = arith.constant 0 : i32
    %c0_i32_0 = arith.constant 0 : i32
    %c0_i32_1 = arith.constant 0 : i32
    return %c0_i32, %c0_i32_0 : i32, i32
  }
  func.func @transform_4(%arg0: i32) -> (i32, i32) {
    %c0_i32 = arith.constant 0 : i32
    %c0_i32_0 = arith.constant 0 : i32
    %c0_i32_1 = arith.constant 0 : i32
    return %c0_i32, %c0_i32_0 : i32, i32
  }
  func.func @transform_5(%arg0: i32) -> (i32, i32) {
    %c0_i32 = arith.constant 0 : i32
    %c0_i32_0 = arith.constant 0 : i32
    %c0_i32_1 = arith.constant 0 : i32
    return %c0_i32, %c0_i32_0 : i32, i32
  }
  func.func @transform_6(%arg0: i32) -> (i32, i32) {
    %c0_i32 = arith.constant 0 : i32
    %c0_i32_0 = arith.constant 0 : i32
    %c0_i32_1 = arith.constant 0 : i32
    return %c0_i32, %c0_i32_0 : i32, i32
  }
  func.func @transform_7(%arg0: i32) -> (i32, i32, i32) {
    %c0_i32 = arith.constant 0 : i32
    %c0_i32_0 = arith.constant 0 : i32
    %c0_i32_1 = arith.constant 0 : i32
    return %arg0, %c0_i32, %c0_i32_0 : i32, i32, i32
  }
}

module attributes {stable_mosaic.version = 11 : i64} {
  func.func @_mha_kernel(%arg0: i32, %arg1: memref<1x16x512xf32, #tpu.memory_space<vmem>>, %arg2: memref<512x1536xbf16, #tpu.memory_space<vmem>>, %arg3: memref<1x1536xf32, #tpu.memory_space<vmem>>, %arg4: memref<512x512xbf16, #tpu.memory_space<vmem>>, %arg5: memref<1x512xf32, #tpu.memory_space<vmem>>, %arg6: memref<1x512xf32, #tpu.memory_space<vmem>>, %arg7: memref<1x512xf32, #tpu.memory_space<vmem>>, %arg8: memref<1x16x512xf32, #tpu.memory_space<vmem>>) attributes {dimension_semantics = [#tpu.dimension_semantics<parallel>], iteration_bounds = array<i64: 2>, scalar_prefetch = 0 : i64, scratch_operands = 0 : i64, tpu.core_type = #tpu.core_type<tc>, window_params = [{transform_indices = @transform_0, window_bounds = array<i64: 1, 16, 512>}, {pipeline_mode = #tpu.pipeline_mode<synchronous>, transform_indices = @transform_1, window_bounds = array<i64: 512, 1536>}, {pipeline_mode = #tpu.pipeline_mode<synchronous>, transform_indices = @transform_2, window_bounds = array<i64: 1, 1536>}, {pipeline_mode = #tpu.pipeline_mode<synchronous>, transform_indices = @transform_3, window_bounds = array<i64: 512, 512>}, {pipeline_mode = #tpu.pipeline_mode<synchronous>, transform_indices = @transform_4, window_bounds = array<i64: 1, 512>}, {pipeline_mode = #tpu.pipeline_mode<synchronous>, transform_indices = @transform_5, window_bounds = array<i64: 1, 512>}, {pipeline_mode = #tpu.pipeline_mode<synchronous>, transform_indices = @transform_6, window_bounds = array<i64: 1, 512>}, {transform_indices = @transform_7, window_bounds = array<i64: 1, 16, 512>}]} {
    %c0 = arith.constant 0 : index
    %c0_0 = arith.constant 0 : index
    %c0_1 = arith.constant 0 : index
    %0 = vector.load %arg1[%c0, %c0_0, %c0_1] : memref<1x16x512xf32, #tpu.memory_space<vmem>>, vector<1x16x512xf32>
    %1 = vector.shape_cast %0 : vector<1x16x512xf32> to vector<16x512xf32>
    %2 = arith.truncf %1 : vector<16x512xf32> to vector<16x512xbf16>
    %c0_2 = arith.constant 0 : index
    %c0_3 = arith.constant 0 : index
    %3 = vector.load %arg2[%c0_2, %c0_3] : memref<512x1536xbf16, #tpu.memory_space<vmem>>, vector<512x1536xbf16>
    %cst = arith.constant dense<0.000000e+00> : vector<16x1536xf32>
    %4 = tpu.matmul %2, %3, %cst {dimension_numbers = #tpu.dot_dimension_numbers<[1], [0], [0], [1], [0, 0, 1, 1], [], []>} : vector<16x512xbf16>, vector<512x1536xbf16>, vector<16x1536xf32> -> vector<16x1536xf32>
    %c0_4 = arith.constant 0 : index
    %c0_5 = arith.constant 0 : index
    %5 = vector.load %arg3[%c0_4, %c0_5] : memref<1x1536xf32, #tpu.memory_space<vmem>>, vector<1x1536xf32>
    %6 = vector.broadcast %5 : vector<1x1536xf32> to vector<16x1536xf32>
    %7 = arith.addf %4, %6 : vector<16x1536xf32>
    %8 = vector.extract_strided_slice %7 {offsets = [0, 0], sizes = [16, 512], strides = [1, 1]} : vector<16x1536xf32> to vector<16x512xf32>
    %9 = vector.shape_cast %8 : vector<16x512xf32> to vector<4x16x128xf32>
    %10 = arith.truncf %9 : vector<4x16x128xf32> to vector<4x16x128xbf16>
    %11 = vector.extract_strided_slice %7 {offsets = [0, 512], sizes = [16, 512], strides = [1, 1]} : vector<16x1536xf32> to vector<16x512xf32>
    %12 = vector.shape_cast %11 : vector<16x512xf32> to vector<4x16x128xf32>
    %13 = arith.truncf %12 : vector<4x16x128xf32> to vector<4x16x128xbf16>
    %14 = vector.extract_strided_slice %7 {offsets = [0, 1024], sizes = [16, 512], strides = [1, 1]} : vector<16x1536xf32> to vector<16x512xf32>
    %15 = vector.shape_cast %14 : vector<16x512xf32> to vector<4x16x128xf32>
    %16 = arith.truncf %15 : vector<4x16x128xf32> to vector<4x16x128xbf16>
    "tpu.trace_start"() <{level = 10 : i32, message = "hqd,hkd->hqk"}> : () -> ()
    %cst_6 = arith.constant dense<0.000000e+00> : vector<4x16x16xf32>
    %17 = tpu.matmul %10, %13, %cst_6 {dimension_numbers = #tpu.dot_dimension_numbers<[2], [2], [1], [1], [0, 0, 0, 1, 1, 1], [0], [0]>} : vector<4x16x128xbf16>, vector<4x16x128xbf16>, vector<4x16x16xf32> -> vector<4x16x16xf32>
    "tpu.trace_stop"() : () -> ()
    %cst_7 = arith.constant dense<0xFF800000> : vector<4x16xf32>
    %18 = vector.multi_reduction <maximumf>, %17, %cst_7 [2] : vector<4x16x16xf32> to vector<4x16xf32>
    %19 = vector.shape_cast %18 : vector<4x16xf32> to vector<4x16x1xf32>
    %20 = vector.broadcast %19 : vector<4x16x1xf32> to vector<4x16x16xf32>
    %21 = arith.subf %17, %20 : vector<4x16x16xf32>
    %22 = math.exp %21 : vector<4x16x16xf32>
    %cst_8 = arith.constant dense<0.000000e+00> : vector<4x16xf32>
    %23 = vector.multi_reduction <add>, %22, %cst_8 [2] : vector<4x16x16xf32> to vector<4x16xf32>
    %24 = vector.shape_cast %23 : vector<4x16xf32> to vector<4x16x1xf32>
    %25 = arith.truncf %22 : vector<4x16x16xf32> to vector<4x16x16xbf16>
    "tpu.trace_start"() <{level = 10 : i32, message = "hqk,hkd->hqd"}> : () -> ()
    %cst_9 = arith.constant dense<0.000000e+00> : vector<4x16x128xf32>
    %26 = tpu.matmul %25, %16, %cst_9 {dimension_numbers = #tpu.dot_dimension_numbers<[2], [1], [1], [2], [0, 0, 0, 1, 1, 2], [0], [0]>} : vector<4x16x16xbf16>, vector<4x16x128xbf16>, vector<4x16x128xf32> -> vector<4x16x128xf32>
    "tpu.trace_stop"() : () -> ()
    %cst_10 = arith.constant 1.000000e+00 : f32
    %27 = vector.broadcast %cst_10 : f32 to vector<4x16x1xf32>
    %28 = arith.divf %27, %24 : vector<4x16x1xf32>
    %29 = vector.broadcast %28 : vector<4x16x1xf32> to vector<4x16x128xf32>
    %30 = arith.mulf %26, %29 : vector<4x16x128xf32>
    %31 = vector.shape_cast %30 : vector<4x16x128xf32> to vector<16x512xf32>
    %32 = arith.truncf %31 : vector<16x512xf32> to vector<16x512xbf16>
    %c0_11 = arith.constant 0 : index
    %c0_12 = arith.constant 0 : index
    %33 = vector.load %arg4[%c0_11, %c0_12] : memref<512x512xbf16, #tpu.memory_space<vmem>>, vector<512x512xbf16>
    %cst_13 = arith.constant dense<0.000000e+00> : vector<16x512xf32>
    %34 = tpu.matmul %32, %33, %cst_13 {dimension_numbers = #tpu.dot_dimension_numbers<[1], [0], [0], [1], [0, 0, 1, 1], [], []>} : vector<16x512xbf16>, vector<512x512xbf16>, vector<16x512xf32> -> vector<16x512xf32>
    %c0_14 = arith.constant 0 : index
    %c0_15 = arith.constant 0 : index
    %35 = vector.load %arg5[%c0_14, %c0_15] : memref<1x512xf32, #tpu.memory_space<vmem>>, vector<1x512xf32>
    %36 = vector.broadcast %35 : vector<1x512xf32> to vector<16x512xf32>
    %37 = arith.addf %34, %36 : vector<16x512xf32>
    %38 = arith.addf %37, %1 : vector<16x512xf32>
    %cst_16 = arith.constant dense<0.000000e+00> : vector<16xf32>
    %39 = vector.multi_reduction <add>, %38, %cst_16 [1] : vector<16x512xf32> to vector<16xf32>
    %40 = vector.shape_cast %39 : vector<16xf32> to vector<16x1xf32>
    %cst_17 = arith.constant 5.120000e+02 : f32
    %41 = vector.broadcast %cst_17 : f32 to vector<16x1xf32>
    %42 = arith.divf %40, %41 : vector<16x1xf32>
    %43 = vector.broadcast %42 : vector<16x1xf32> to vector<16x512xf32>
    %44 = arith.subf %38, %43 : vector<16x512xf32>
    %45 = arith.mulf %44, %44 : vector<16x512xf32>
    %cst_18 = arith.constant dense<0.000000e+00> : vector<16xf32>
    %46 = vector.multi_reduction <add>, %45, %cst_18 [1] : vector<16x512xf32> to vector<16xf32>
    %47 = vector.shape_cast %46 : vector<16xf32> to vector<16x1xf32>
    %cst_19 = arith.constant 5.120000e+02 : f32
    %48 = vector.broadcast %cst_19 : f32 to vector<16x1xf32>
    %49 = arith.divf %47, %48 : vector<16x1xf32>
    %50 = vector.broadcast %42 : vector<16x1xf32> to vector<16x512xf32>
    %51 = arith.subf %38, %50 : vector<16x512xf32>
    %cst_20 = arith.constant 9.99999974E-6 : f32
    %52 = vector.broadcast %cst_20 : f32 to vector<16x1xf32>
    %53 = arith.addf %49, %52 : vector<16x1xf32>
    %54 = math.rsqrt %53 : vector<16x1xf32>
    %55 = vector.broadcast %54 : vector<16x1xf32> to vector<16x512xf32>
    %56 = arith.mulf %51, %55 : vector<16x512xf32>
    %c0_21 = arith.constant 0 : index
    %c0_22 = arith.constant 0 : index
    %57 = vector.load %arg6[%c0_21, %c0_22] : memref<1x512xf32, #tpu.memory_space<vmem>>, vector<1x512xf32>
    %58 = vector.broadcast %57 : vector<1x512xf32> to vector<16x512xf32>
    %59 = arith.mulf %56, %58 : vector<16x512xf32>
    %c0_23 = arith.constant 0 : index
    %c0_24 = arith.constant 0 : index
    %60 = vector.load %arg7[%c0_23, %c0_24] : memref<1x512xf32, #tpu.memory_space<vmem>>, vector<1x512xf32>
    %61 = vector.broadcast %60 : vector<1x512xf32> to vector<16x512xf32>
    %62 = arith.addf %59, %61 : vector<16x512xf32>
    %c0_25 = arith.constant 0 : index
    %c0_26 = arith.constant 0 : index
    %c0_27 = arith.constant 0 : index
    %63 = vector.load %arg8[%c0_25, %c0_26, %c0_27] : memref<1x16x512xf32, #tpu.memory_space<vmem>>, vector<1x16x512xf32>
    %64 = vector.shape_cast %63 : vector<1x16x512xf32> to vector<16x512xf32>
    %65 = vector.shape_cast %62 : vector<16x512xf32> to vector<1x16x512xf32>
    tpu.vector_store %arg8[%c0_25, %c0_26, %c0_27], %65 {strides = array<i32>} : memref<1x16x512xf32, #tpu.memory_space<vmem>>, vector<1x16x512xf32>,
    return
  }
  func.func @transform_0(%arg0: i32) -> (i32, i32, i32) {
    %c0_i32 = arith.constant 0 : i32
    %c0_i32_0 = arith.constant 0 : i32
    %c0_i32_1 = arith.constant 0 : i32
    return %arg0, %c0_i32, %c0_i32_0 : i32, i32, i32
  }
  func.func @transform_1(%arg0: i32) -> (i32, i32) {
    %c0_i32 = arith.constant 0 : i32
    %c0_i32_0 = arith.constant 0 : i32
    %c0_i32_1 = arith.constant 0 : i32
    return %c0_i32, %c0_i32_0 : i32, i32
  }
  func.func @transform_2(%arg0: i32) -> (i32, i32) {
    %c0_i32 = arith.constant 0 : i32
    %c0_i32_0 = arith.constant 0 : i32
    %c0_i32_1 = arith.constant 0 : i32
    return %c0_i32, %c0_i32_0 : i32, i32
  }
  func.func @transform_3(%arg0: i32) -> (i32, i32) {
    %c0_i32 = arith.constant 0 : i32
    %c0_i32_0 = arith.constant 0 : i32
    %c0_i32_1 = arith.constant 0 : i32
    return %c0_i32, %c0_i32_0 : i32, i32
  }
  func.func @transform_4(%arg0: i32) -> (i32, i32) {
    %c0_i32 = arith.constant 0 : i32
    %c0_i32_0 = arith.constant 0 : i32
    %c0_i32_1 = arith.constant 0 : i32
    return %c0_i32, %c0_i32_0 : i32, i32
  }
  func.func @transform_5(%arg0: i32) -> (i32, i32) {
    %c0_i32 = arith.constant 0 : i32
    %c0_i32_0 = arith.constant 0 : i32
    %c0_i32_1 = arith.constant 0 : i32
    return %c0_i32, %c0_i32_0 : i32, i32
  }
  func.func @transform_6(%arg0: i32) -> (i32, i32) {
    %c0_i32 = arith.constant 0 : i32
    %c0_i32_0 = arith.constant 0 : i32
    %c0_i32_1 = arith.constant 0 : i32
    return %c0_i32, %c0_i32_0 : i32, i32
  }
  func.func @transform_7(%arg0: i32) -> (i32, i32, i32) {
    %c0_i32 = arith.constant 0 : i32
    %c0_i32_0 = arith.constant 0 : i32
    %c0_i32_1 = arith.constant 0 : i32
    return %arg0, %c0_i32, %c0_i32_0 : i32, i32, i32
  }
}

</mosaic_0001>

<bundles_post_ra>
// kernel: tpu_custom_call.1
= control target key start
LH: loop header
LB: loop body
LE: loop exit
PB: predicated region body
PF: predicated region fallthrough
CT: control target
= control target key end

     0   :  { %12 = vsyncpa [#allocation3], 0  ;;  %s8072_s0 = inlined_call_operand.hbm [shape: f32[2,16,512], index: 0, kind: input, shape index: {}]   ;;  %s8073_s1 = inlined_call_operand.hbm [shape: bf16[512,1536], index: 1, kind: input, shape index: {}]   ;;  %s8074_s2 = inlined_call_operand.hbm [shape: f32[1,1536], index: 2, kind: input, shape index: {}]   ;;  %s8075_s3 = inlined_call_operand.hbm [shape: bf16[512,512], index: 3, kind: input, shape index: {}]   ;;  %s8076_s4 = inlined_call_operand.hbm [shape: f32[1,512], index: 4, kind: input, shape index: {}]   ;;  %s8077_s5 = inlined_call_operand.hbm [shape: f32[1,512], index: 5, kind: input, shape index: {}]   ;;  %s8078_s6 = inlined_call_operand.hbm [shape: f32[1,512], index: 6, kind: input, shape index: {}]   ;;  %s8079_s7 = inlined_call_operand.hbm [shape: f32[2,16,512], index: 7, kind: output, shape index: {}]  }
   0x1   :  { %14 = vsyncpa [#allocation3 + $0x1], 0 }
   0x2   :  { %15 = vsyncpa [#allocation6], 0 }
   0x3   :  { %16 = vsyncpa [#allocation9], 0 }
   0x4   :  { %17 = vsyncpa [#allocation12], 0 }
   0x5   :  { %18 = vsyncpa [#allocation4], 0 }
   0x6   :  { %20 = vsyncpa [#allocation4 + $0x1], 0  ;;  %s7484_s24 = smov 0   ;;  %s7486_s25 = smov 0  }
   0x7   :  { %s7488_s26 = smov 0   ;;  %s7490_s27 = smov 0  }
   0x8 LB: > { %s7423_s28 = smov [#allocation5]   ;;  %s7505_s30 = sadd.s32 4294967295, %s7421_s27   ;;  %s7421_s27 = sphi %s7490_s27, %s8105_s27   ;;  %s7417_s26 = sphi %s7488_s26, %s8104_s26   ;;  %s7413_s25 = sphi %s7486_s25, %s8103_s25   ;;  %s7409_s24 = sphi %s7484_s24, %s8102_s24  }
   0x9   : > { %s221_s29 = sshll.u32 %s7423_s28, 4  ;;  %p5542_p0 = scmp.ge.s32.totalorder %s7421_s27, 1  ;;  %s7510_s29 = int_to_ptr.vmem [resolvable:$true] %s221_s29 }
   0xa   : > { %p8080_p1 = scmp.eq.s32.totalorder %s7505_s30, 0  ;;  %p209_p2 = scmp.lt.s32.totalorder %s7421_s27, 3 }
   0xb   : > { %s7424_s9 = smov [#allocation8]   ;;  %s7425_s12 = smov [#allocation11]  }
   0xc   : > { %p7512_p3 = pnand %p5542_p0, %p209_p2  ;;  %s245_s10 = sshll.u32 %s7424_s9, 4  ;;  %s7525_s10 = int_to_ptr.vmem [resolvable:$true] %s245_s10 }
   0xd   : > { %s7527_s13 = sshll.u32 %s7425_s12, 4  ;;  %s7145_s16 = scalar_lea.hbm %s8073_s1, 49152  ;;  %s271_s13 = int_to_ptr.vmem [resolvable:$true] %s7527_s13 }
   0xe   : > { %s8083_s8 = scalar_select %p7512_p3, 1, 0 }
   0xf   : > { %p6241_p5 = pneg %p7512_p3  ;;  %p7146_p7 = scmp.ne.s32.totalorder %s8073_s1, %s7145_s16 }
  0x10   : > { %p7152_p11 = scmp.lt.u32.totalorder %s7145_s16, %s8073_s1 }
  0x11   : > { %p7521_p6 = pnand %p6241_p5, %p8080_p1 }
  0x13   : > { %p7537_p8 = pneg %p7521_p6 }
  0x15   : > { %p7148_p9 = pnand %p7537_p8, %p7146_p7 }
  0x17   : > { %p7149_p10 = pneg %p7148_p9 }
  0x19   : > { %p7154_p12 = pnand %p7152_p11, %p7149_p10 }
  0x1b   : > { %7157 = shalt.err (!%p7154_p12)
}
  0x1c   : > { %s7158_s22 = scalar_lea.vmem %s7510_s29, 49152  ;;  %p7166_p5 = scmp.lt.s32.totalorder %s7510_s29, %s7510_s29 }
  0x1d   : > { %p7159_p13 = scmp.ne.s32.totalorder %s7510_s29, %s7158_s22  ;;  %p7167_p4 = scmp.lt.s32.totalorder %s7158_s22, %s7158_s22 }
  0x1f   : > { %p7161_p0 = pnand %p7159_p13, %p7537_p8  ;;  %p7168_p7 = por %p7167_p4, %p7166_p5 }
  0x21   : > { %p7162_p2 = pneg %p7161_p0 }
  0x23   : > { %p7169_p9 = pnand %p7168_p7, %p7162_p2 }
  0x25   : > { %7172 = shalt.err (!%p7169_p9)
}
  0x26   : > { %s7426_s23 = smov 768   ;;  %s7427_s28 = smov 48  }
  0x27   : > { %6244 = dma.hbm_to_vmem [thread:$0]  (!%p7521_p6), %s8073_s1, 49152, %s7510_s29, [#allocation6], %s7426_s23, %s7426_s23, %s7427_s28  }
  0x28   : > { %s7173_s16 = scalar_lea.hbm %s8075_s3, 16384 }
  0x29   : > { %p7174_p4 = scmp.ne.s32.totalorder %s8075_s3, %s7173_s16  ;;  %p7180_p12 = scmp.lt.u32.totalorder %s7173_s16, %s8075_s3 }
  0x2b   : > { %p7176_p10 = pnand %p7174_p4, %p7537_p8 }
  0x2d   : > { %p7177_p11 = pneg %p7176_p10 }
  0x2f   : > { %p7182_p13 = pnand %p7180_p12, %p7177_p11 }
  0x31   : > { %7185 = shalt.err (!%p7182_p13)
}
  0x32   : > { %s7186_s29 = scalar_lea.vmem %s7525_s10, 16384  ;;  %p7194_p7 = scmp.lt.s32.totalorder %s7525_s10, %s7525_s10 }
  0x33   : > { %p7187_p0 = scmp.ne.s32.totalorder %s7525_s10, %s7186_s29  ;;  %p7195_p9 = scmp.lt.s32.totalorder %s7186_s29, %s7186_s29 }
  0x35   : > { %p7189_p2 = pnand %p7187_p0, %p7537_p8  ;;  %p7196_p4 = por %p7195_p9, %p7194_p7 }
  0x37   : > { %p7190_p5 = pneg %p7189_p2 }
  0x39   : > { %p7197_p10 = pnand %p7196_p4, %p7190_p5 }
  0x3b   : > { %7200 = shalt.err (!%p7197_p10)
}
  0x3c   : > { %s7428_s22 = smov 256   ;;  %s7429_s23 = smov 16  }
  0x3d   : > { %6250 = dma.hbm_to_vmem [thread:$0]  (!%p7521_p6), %s8075_s3, 16384, %s7525_s10, [#allocation9], %s7428_s22, %s7428_s22, %s7429_s23  }
  0x3e   : > { %s7201_s15 = scalar_lea.hbm %s8077_s5, 64 }
  0x3f   : > { %p7202_p11 = scmp.ne.s32.totalorder %s8077_s5, %s7201_s15  ;;  %p7208_p0 = scmp.lt.u32.totalorder %s7201_s15, %s8077_s5 }
  0x41   : > { %p7204_p12 = pnand %p7202_p11, %p7537_p8 }
  0x43   : > { %p7205_p13 = pneg %p7204_p12 }
  0x45   : > { %p7210_p2 = pnand %p7208_p0, %p7205_p13 }
  0x47   : > { %7213 = shalt.err (!%p7210_p2)
}
  0x48   : > { %s7214_s21 = scalar_lea.vmem %s271_s13, 64  ;;  %p7222_p4 = scmp.lt.s32.totalorder %s271_s13, %s271_s13 }
  0x49   : > { %p7215_p5 = scmp.ne.s32.totalorder %s271_s13, %s7214_s21  ;;  %p7223_p10 = scmp.lt.s32.totalorder %s7214_s21, %s7214_s21 }
  0x4b   : > { %p7217_p7 = pnand %p7215_p5, %p7537_p8  ;;  %p7224_p1 = por %p7223_p10, %p7222_p4 }
  0x4d   : > { %p7218_p9 = pneg %p7217_p7 }
  0x4f   : > { %p7225_p3 = pnand %p7224_p1, %p7218_p9 }
  0x51   : > { %7228 = shalt.err (!%p7225_p3)
}
  0x52   : > { %6256 = dma.hbm_to_vmem [thread:$0]  (!%p7521_p6), %s8077_s5, 64, %s271_s13, [#allocation12]  }
  0x53   : > { %s7430_s22 = smov [#allocation7]   ;;  %s7431_s28 = smov [#allocation10]  }
  0x54   : > { %s235_s23 = sshll.u32 %s7430_s22, 4  ;;  %s259_s9 = sshll.u32 %s7431_s28, 4  ;;  %s236_s23 = int_to_ptr.vmem [resolvable:$true] %s235_s23  ;;  %s260_s9 = int_to_ptr.vmem [resolvable:$true] %s259_s9 }
  0x55   : > { %s7229_s15 = scalar_lea.hbm %s8074_s2, 192 }
  0x56   : > { %p7230_p1 = scmp.ne.s32.totalorder %s8074_s2, %s7229_s15  ;;  %p7236_p12 = scmp.lt.u32.totalorder %s7229_s15, %s8074_s2 }
  0x58   : > { %p7232_p3 = pnand %p7230_p1, %p7537_p8 }
  0x5a   : > { %p7233_p11 = pneg %p7232_p3 }
  0x5c   : > { %p7238_p13 = pnand %p7236_p12, %p7233_p11 }
  0x5e   : > { %7241 = shalt.err (!%p7238_p13)
}
  0x5f   : > { %s7242_s13 = scalar_lea.vmem %s236_s23, 192  ;;  %p7250_p7 = scmp.lt.s32.totalorder %s236_s23, %s236_s23 }
  0x60   : > { %p7243_p0 = scmp.ne.s32.totalorder %s236_s23, %s7242_s13  ;;  %p7251_p9 = scmp.lt.s32.totalorder %s7242_s13, %s7242_s13 }
  0x62   : > { %p7245_p2 = pnand %p7243_p0, %p7537_p8  ;;  %p7252_p4 = por %p7251_p9, %p7250_p7 }
  0x64   : > { %p7246_p5 = pneg %p7245_p2 }
  0x66   : > { %p7253_p10 = pnand %p7252_p4, %p7246_p5 }
  0x68   : > { %7256 = shalt.err (!%p7253_p10)
}
  0x69   : > { %6247 = dma.hbm_to_vmem [thread:$0]  (!%p7521_p6), %s8074_s2, 192, %s236_s23, [#allocation6]  }
  0x6a   : > { %s7257_s28 = scalar_lea.hbm %s8076_s4, 64 }
  0x6b   : > { %p7258_p1 = scmp.ne.s32.totalorder %s8076_s4, %s7257_s28  ;;  %p7264_p12 = scmp.lt.u32.totalorder %s7257_s28, %s8076_s4 }
  0x6d   : > { %p7260_p3 = pnand %p7258_p1, %p7537_p8 }
  0x6f   : > { %p7261_p11 = pneg %p7260_p3 }
  0x71   : > { %p7266_p13 = pnand %p7264_p12, %p7261_p11 }
  0x73   : > { %7269 = shalt.err (!%p7266_p13)
}
  0x74   : > { %s7270_s17 = scalar_lea.vmem %s260_s9, 64  ;;  %p7278_p7 = scmp.lt.s32.totalorder %s260_s9, %s260_s9 }
  0x75   : > { %p7271_p0 = scmp.ne.s32.totalorder %s260_s9, %s7270_s17  ;;  %p7279_p9 = scmp.lt.s32.totalorder %s7270_s17, %s7270_s17 }
  0x77   : > { %p7273_p2 = pnand %p7271_p0, %p7537_p8  ;;  %p7280_p4 = por %p7279_p9, %p7278_p7 }
  0x79   : > { %p7274_p5 = pneg %p7273_p2 }
  0x7b   : > { %p7281_p10 = pnand %p7280_p4, %p7274_p5 }
  0x7d   : > { %7284 = shalt.err (!%p7281_p10)
}
  0x7e   : > { %6253 = dma.hbm_to_vmem [thread:$0]  (!%p7521_p6), %s8076_s4, 64, %s260_s9, [#allocation9]  }
  0x7f   : > { %s7432_s20 = smov [#allocation13]   ;;  %s7285_s29 = scalar_lea.hbm %s8078_s6, 64 }
  0x80   : > { %s281_s13 = sshll.u32 %s7432_s20, 4  ;;  %p7286_p1 = scmp.ne.s32.totalorder %s8078_s6, %s7285_s29  ;;  %s282_s13 = int_to_ptr.vmem [resolvable:$true] %s281_s13 }
  0x81   : > { %p7292_p12 = scmp.lt.u32.totalorder %s7285_s29, %s8078_s6 }
  0x82   : > { %p7288_p3 = pnand %p7286_p1, %p7537_p8 }
  0x84   : > { %p7289_p11 = pneg %p7288_p3 }
  0x86   : > { %p7294_p13 = pnand %p7292_p12, %p7289_p11 }
  0x88   : > { %7297 = shalt.err (!%p7294_p13)
}
  0x89   : > { %s7298_s9 = scalar_lea.vmem %s282_s13, 64  ;;  %p7306_p7 = scmp.lt.s32.totalorder %s282_s13, %s282_s13 }
  0x8a   : > { %p7299_p0 = scmp.ne.s32.totalorder %s282_s13, %s7298_s9  ;;  %p7307_p9 = scmp.lt.s32.totalorder %s7298_s9, %s7298_s9 }
  0x8c   : > { %p7301_p2 = pnand %p7299_p0, %p7537_p8  ;;  %p7308_p4 = por %p7307_p9, %p7306_p7 }
  0x8e   : > { %p7302_p5 = pneg %p7301_p2 }
  0x90   : > { %p7309_p10 = pnand %p7308_p4, %p7302_p5 }
  0x92   : > { %7312 = shalt.err (!%p7309_p10)
}
  0x93   : > { %6259 = dma.hbm_to_vmem [thread:$0]  (!%p7521_p6), %s8078_s6, 64, %s282_s13, [#allocation12]  }
  0x94   : > { %s5541_s19 = sadd.s32 4294967294, %s7421_s27   ;;  %s7656_s11 = sadd.s32 1, %s7421_s27  }
  0x95   : > { %s30_s17 = ssub.s32 %s7421_s27, %s7656_s11  ;;  %s33_s23 = sadd.s32 1, %s7417_s26 }
  0x96   : > { %p31_p8 = scmp.eq.s32.totalorder %s30_s17, 0  ;;  %p40_p1 = scmp.ne.s32.totalorder %s7417_s26, %s7413_s25 }
  0x97   : > { %p41_p3 = scmp.eq.s32.totalorder %s7421_s27, 0  ;;  %p46_p11 = scmp.ne.s32.totalorder %s7413_s25, %s7409_s24 }
  0x98   : > { %s7667_s18 = scalar_select %p31_p8, %s7417_s26, %s33_s23  }
  0x99   : > { %p7669_p12 = por %p41_p3, %p40_p1  ;;  %p8087_p13 = scmp.eq.s32.totalorder %s7505_s30, 0 }
  0x9a   : > { %p196_p0 = scmp.eq.s32.totalorder %s7505_s30, 1  ;;  %p202_p2 = scmp.eq.s32.totalorder %s5541_s19, 1 }
  0x9b   : > { %p7675_p6 = por %p8087_p13, %p46_p11  ;;  %p6274_p5 = scmp.lt.s32.totalorder %s7421_s27, 2 }
  0x9c   : > { %s292_s21 = sand.u32 1, %s7417_s26   ;;  %p7682_p7 = por %p196_p0, %p40_p1 }
  0x9d   : > { %p7686_p9 = por %p202_p2, %p46_p11  ;;  %s5550_s22 = sshll.u32 %s292_s21, 6 }
  0x9e   : > { %s8089_s10 = scalar_select %p7682_p7, 1, 0 }
  0x9f   : > { %s8090_s29 = scalar_select %p7686_p9, 1, 0 }
  0xa0   : > { %s6083_s28 = sshll.u32 %s7421_s27, 10  ;;  %s296_s15 = scalar_lea.vmem [#allocation2], %s5550_s22 }
  0xa1   : > { %s7694_s9 = scalar_lea.hbm %s8072_s0, %s6083_s28  ;;  %s303_s16 = sshll.u32 %s296_s15, 4  ;;  %s7696_s16 = int_to_ptr.vmem [resolvable:$true] %s303_s16 }
  0xa2   : > { %p7700_p4 = pnand %p6274_p5, %p7669_p12  ;;  %s7704_s17 = scalar_lea.sflag [#allocation3], %s292_s21 }
  0xa3   : > { %s7313_s23 = scalar_lea.hbm %s7694_s9, 1024  ;;  %s7318_s20 = scalar_lea.hbm %s8072_s0, 2048 }
  0xa4   : > { %p7314_p10 = scmp.ne.s32.totalorder %s7694_s9, %s7313_s23  ;;  %p7315_p8 = pneg %p7700_p4 }
  0xa5   : > { %p7319_p11 = scmp.lt.u32.totalorder %s7694_s9, %s8072_s0  ;;  %p7320_p12 = scmp.lt.u32.totalorder %s7318_s20, %s7313_s23 }
  0xa6   : > { %p7316_p1 = pnand %p7315_p8, %p7314_p10  ;;  %p7322_p0 = scmp.lt.u32.totalorder %s7313_s23, %s7694_s9 }
  0xa7   : > { %p7321_p13 = por %p7320_p12, %p7319_p11 }
  0xa8   : > { %p7317_p3 = pneg %p7316_p1 }
  0xa9   : > { %p7323_p2 = por %p7322_p0, %p7321_p13 }
  0xab   : > { %p7324_p5 = pnand %p7323_p2, %p7317_p3 }
  0xad   : > { %7327 = shalt.err (!%p7324_p5)
}
  0xae   : > { %s7328_s21 = scalar_lea.vmem %s7696_s16, 1024  ;;  %s7433_s15 = smov [#allocation2]  }
  0xaf   : > { %p7329_p10 = scmp.ne.s32.totalorder %s7696_s16, %s7328_s21  ;;  %s7333_s22 = sshll.u32 %s7433_s15, 4  ;;  %s7334_s22 = int_to_ptr.vmem [resolvable:$false] %s7333_s22 }
  0xb0   : > { %s7335_s28 = scalar_lea.vmem %s7334_s22, 2048  ;;  %p7336_p7 = scmp.lt.s32.totalorder %s7696_s16, %s7334_s22 }
  0xb1   : > { %p7331_p1 = pnand %p7329_p10, %p7315_p8  ;;  %p7337_p11 = scmp.lt.s32.totalorder %s7335_s28, %s7328_s21 }
  0xb3   : > { %p7332_p9 = pneg %p7331_p1  ;;  %p7338_p12 = por %p7337_p11, %p7336_p7 }
  0xb5   : > { %p7339_p13 = pnand %p7338_p12, %p7332_p9 }
  0xb7   : > { %7342 = shalt.err (!%p7339_p13)
}
  0xb8   : > { %s7434_s23 = smov 512   ;;  %s7435_s20 = smov 32  }
  0xb9   : > { %6263 = dma.hbm_to_vmem [thread:$0]  (!%p7700_p4), %s7694_s9, 1024, %s7696_s16, %s7704_s17, %s7434_s23, %s7434_s23, %s7435_s20  }
  0xba   : > { %p8092_p8 = scmp.ne.s32.totalorder %s8083_s8, 0 }
  0xbb   : > { %s7735_s12 = sand.u32 (!%p8092_p8), 1, %s7413_s25  }
  0xbc   : > { %315 = sbr.rel (%p8092_p8) target bundleno = 1931 (0x78b), region = 48  ;;  %s5554_s14 = sshll.u32 (!%p8092_p8), %s7735_s12, 6 }
  0xbd   : > { %s318_s21 = scalar_lea.sflag (!%p8092_p8), [#allocation3], %s7735_s12  ;;  %s7741_s15 = scalar_lea.vmem (!%p8092_p8), [#allocation2], %s5554_s14 }
  0xc3   : > { %7388 = dma.done.wait (%p7675_p6), %s318_s21, 1024  }
  0xc4   : > { %7390 = vsyncadd (%p7675_p6), %s318_s21, 4294966272  ;;  %p8093_p7 = scmp.eq.s32.totalorder %s7505_s30, 0 }
  0xc6   : > { %7392 = dma.done.wait (%p8093_p7), [#allocation6], 49344   ;;  %p8094_p9 = pmov %p8093_p7 }
  0xc7   : > { %p8095_p4 = pmov %p8093_p7 }
  0xc8   : > { %7394 = vsyncadd (%p8094_p9), [#allocation6], 4294917952 }
  0xc9   : > { %7396 = dma.done.wait (%p8095_p4), [#allocation9], 16448   ;;  %p8096_p3 = pmov %p8095_p4 }
  0xcb   : > { %7398 = vsyncadd (%p8096_p3), [#allocation9], 4294950848  ;;  %p8097_p0 = pmov %p8096_p3 }
  0xcd   : > { %7400 = dma.done.wait (%p8097_p0), [#allocation12], 128   ;;  %p8098_p2 = pmov %p8097_p0 }
  0xce   : > { %v6333_v0 = vld [vmem:[#allocation5 + $0x4] ss:$48 sps:$4 sm:$0xff]   ;;  %v6335_v1 = vld [vmem:[#allocation5 + $0xc] ss:$48 sps:$4 sm:$0xff]   ;;  %v6337_v2 = vld [vmem:[#allocation5] ss:$48 sps:$4 sm:$0xff]  }
  0xcf   : > { %7402 = vsyncadd (%p8098_p2), [#allocation12], 4294967168  ;;  %2757 = vmatprep.subr.bf16.mxu0 %v6333_v0  ;;  %v6338_v3 = vld [vmem:[#allocation5 + $0x8] ss:$48 sps:$4 sm:$0xff]   ;;  %2843 = vmatprep.subr.bf16.mxu1 %v6335_v1  ;;  %v6339_v4 = vld [vmem:[#allocation5 + $0x64] ss:$48 sps:$4 sm:$0xff]  }
  0xd0   : > { %2758 = vmatpush1.bf16.msra.mxu0 %v6337_v2  ;;  %2844 = vmatpush1.bf16.msra.mxu1 %v6338_v3  ;;  %v6341_v5 = vld [vmem:[#allocation5 + $0x6c] ss:$48 sps:$4 sm:$0xff]   ;;  %v6343_v6 = vld [vmem:[#allocation5 + $0x60] ss:$48 sps:$4 sm:$0xff]   ;;  %v6344_v7 = vld [vmem:[#allocation5 + $0x68] ss:$48 sps:$4 sm:$0xff]  }
  0xd1   : > { %2759 = vmatprep.subr.bf16.mxu0 %v6339_v4  ;;  %2845 = vmatprep.subr.bf16.mxu1 %v6341_v5  ;;  %v6345_v8 = vld [vmem:[#allocation5 + $0xc4] ss:$48 sps:$4 sm:$0xff]   ;;  %v6347_v9 = vld [vmem:[#allocation5 + $0xcc] ss:$48 sps:$4 sm:$0xff]   ;;  %v6349_v10 = vld [vmem:[#allocation5 + $0xc0] ss:$48 sps:$4 sm:$0xff]  }
  0xd2   : > { %v6350_v11 = vld [vmem:[#allocation5 + $0xc8] ss:$48 sps:$4 sm:$0xff]   ;;  %v6351_v12 = vld [vmem:[#allocation5 + $0x124] ss:$48 sps:$4 sm:$0xff]   ;;  %v6353_v13 = vld [vmem:[#allocation5 + $0x12c] ss:$48 sps:$4 sm:$0xff]  }
  0xd3   : > { %v6355_v14 = vld [vmem:[#allocation5 + $0x120] ss:$48 sps:$4 sm:$0xff]   ;;  %v6356_v15 = vld [vmem:[#allocation5 + $0x128] ss:$48 sps:$4 sm:$0xff]   ;;  %v6357_v16 = vld [vmem:[#allocation5 + $0x184] ss:$48 sps:$4 sm:$0xff]  }
  0xd4   : > { %2760 = vmatpush1.bf16.msra.mxu0 %v6343_v6  ;;  %2846 = vmatpush1.bf16.msra.mxu1 %v6344_v7  ;;  %v6359_v17 = vld [vmem:[#allocation5 + $0x18c] ss:$48 sps:$4 sm:$0xff]   ;;  %v6361_v18 = vld [vmem:[#allocation5 + $0x180] ss:$48 sps:$4 sm:$0xff]   ;;  %v6362_v19 = vld [vmem:[#allocation5 + $0x188] ss:$48 sps:$4 sm:$0xff]  }
  0xd5   : > { %2761 = vmatprep.subr.bf16.mxu0 %v6345_v8  ;;  %2847 = vmatprep.subr.bf16.mxu1 %v6347_v9  ;;  %v6363_v20 = vld [vmem:[#allocation5 + $0x1e4] ss:$48 sps:$4 sm:$0xff]   ;;  %v6365_v21 = vld [vmem:[#allocation5 + $0x1ec] ss:$48 sps:$4 sm:$0xff]   ;;  %v6367_v22 = vld [vmem:[#allocation5 + $0x1e0] ss:$48 sps:$4 sm:$0xff]  }
  0xd6   : > { %v6368_v23 = vld [vmem:[#allocation5 + $0x1e8] ss:$48 sps:$4 sm:$0xff]   ;;  %v6369_v24 = vld [vmem:[#allocation5 + $0x244] ss:$48 sps:$4 sm:$0xff]   ;;  %v6371_v25 = vld [vmem:[#allocation5 + $0x24c] ss:$48 sps:$4 sm:$0xff]  }
  0xd7   : > { %v6373_v26 = vld [vmem:[#allocation5 + $0x240] ss:$48 sps:$4 sm:$0xff]   ;;  %v6374_v27 = vld [vmem:[#allocation5 + $0x248] ss:$48 sps:$4 sm:$0xff]   ;;  %v6375_v28 = vld [vmem:[#allocation5 + $0x2a4] ss:$48 sps:$4 sm:$0xff]  }
  0xd8   : > { %2762 = vmatpush1.bf16.msra.mxu0 %v6349_v10  ;;  %2848 = vmatpush1.bf16.msra.mxu1 %v6350_v11  ;;  %v6377_v29 = vld [vmem:[#allocation5 + $0x2ac] ss:$48 sps:$4 sm:$0xff]   ;;  %v6379_v30 = vld [vmem:[#allocation5 + $0x2a0] ss:$48 sps:$4 sm:$0xff]   ;;  %v6380_v31 = vld [vmem:[#allocation5 + $0x2a8] ss:$48 sps:$4 sm:$0xff]  }
  0xd9   : > { %2763 = vmatprep.subr.bf16.mxu0 %v6351_v12  ;;  %2849 = vmatprep.subr.bf16.mxu1 %v6353_v13  ;;  %v6381_v32 = vld [vmem:[#allocation5 + $0x304] ss:$48 sps:$4 sm:$0xff]   ;;  %v6383_v33 = vld [vmem:[#allocation5 + $0x30c] ss:$48 sps:$4 sm:$0xff]   ;;  %v6385_v34 = vld [vmem:[#allocation5 + $0x300] ss:$48 sps:$4 sm:$0xff]  }
  0xda   : > { %v6386_v35 = vld [vmem:[#allocation5 + $0x308] ss:$48 sps:$4 sm:$0xff]   ;;  %v6387_v36 = vld [vmem:[#allocation5 + $0x364] ss:$48 sps:$4 sm:$0xff]   ;;  %v6389_v37 = vld [vmem:[#allocation5 + $0x36c] ss:$48 sps:$4 sm:$0xff]  }
  0xdb   : > { %v6391_v38 = vld [vmem:[#allocation5 + $0x360] ss:$48 sps:$4 sm:$0xff]   ;;  %v6392_v39 = vld [vmem:[#allocation5 + $0x368] ss:$48 sps:$4 sm:$0xff]   ;;  %v6393_v40 = vld [vmem:[#allocation5 + $0x3c4] ss:$48 sps:$4 sm:$0xff]  }
  0xdc   : > { %2764 = vmatpush1.bf16.msra.mxu0 %v6355_v14  ;;  %2850 = vmatpush1.bf16.msra.mxu1 %v6356_v15  ;;  %v6395_v41 = vld [vmem:[#allocation5 + $0x3cc] ss:$48 sps:$4 sm:$0xff]   ;;  %v6397_v42 = vld [vmem:[#allocation5 + $0x3c0] ss:$48 sps:$4 sm:$0xff]   ;;  %v6398_v43 = vld [vmem:[#allocation5 + $0x3c8] ss:$48 sps:$4 sm:$0xff]  }
  0xdd   : > { %2765 = vmatprep.subr.bf16.mxu0 %v6357_v16  ;;  %2851 = vmatprep.subr.bf16.mxu1 %v6359_v17  ;;  %v6399_v44 = vld [vmem:[#allocation5 + $0x424] ss:$48 sps:$4 sm:$0xff]   ;;  %v6401_v45 = vld [vmem:[#allocation5 + $0x42c] ss:$48 sps:$4 sm:$0xff]   ;;  %v6403_v48 = vld [vmem:[#allocation5 + $0x420] ss:$48 sps:$4 sm:$0xff]  }
  0xde   : > { %v378_v46 = vld [vmem:[%s7741_s15 + $0x8] sm:$0xff]  ;;  %v6405_v51 = vld [vmem:[#allocation5 + $0x484] ss:$48 sps:$4 sm:$0xff]   ;;  %v6409_v53 = vld [vmem:[#allocation5 + $0x480] ss:$48 sps:$4 sm:$0xff]   ;;  %vm7439_vm0 = vmmov 0  }
  0xdf   : > { %v382_v47 = vld [vmem:[%s7741_s15 + $0x28] sm:$0xff]  ;;  %v6411_v55 = vld [vmem:[#allocation5 + $0x4e4] ss:$48 sps:$4 sm:$0xff]   ;;  %v6415_v57 = vld [vmem:[#allocation5 + $0x4e0] ss:$48 sps:$4 sm:$0xff]   ;;  %vm3881_vm1 = vcmask 130048  }
  0xe0   : > { %2766 = vmatpush1.bf16.msra.mxu0 %v6361_v18  ;;  %2852 = vmatpush1.bf16.msra.mxu1 %v6362_v19  ;;  %v6404_v49 = vld [vmem:[#allocation5 + $0x428] ss:$48 sps:$4 sm:$0xff]   ;;  %v7761_v50 = vpack.c.bf16 %v382_v47, %v378_v46  ;;  %v6407_v52 = vld [vmem:[#allocation5 + $0x48c] ss:$48 sps:$4 sm:$0xff]   ;;  %v6417_v59 = vld [vmem:[#allocation5 + $0x544] ss:$48 sps:$4 sm:$0xff]  }
  0xe1   : > { %2767 = vmatprep.subr.bf16.mxu0 %v6363_v20  ;;  %2853 = vmatprep.subr.bf16.mxu1 %v6365_v21  ;;  %v6410_v54 = vld [vmem:[#allocation5 + $0x488] ss:$48 sps:$4 sm:$0xff]   ;;  %v6413_v56 = vld [vmem:[#allocation5 + $0x4ec] ss:$48 sps:$4 sm:$0xff]   ;;  %v6421_v61 = vld [vmem:[#allocation5 + $0x540] ss:$48 sps:$4 sm:$0xff]  }
  0xe2   : > { %2789 = vmatprep.mubr.bf16.mxu0 %v7761_v50  ;;  %2875 = vmatprep.mubr.bf16.mxu1 %v7761_v50  ;;  %v6416_v58 = vld [vmem:[#allocation5 + $0x4e8] ss:$48 sps:$4 sm:$0xff]   ;;  %v6419_v60 = vld [vmem:[#allocation5 + $0x54c] ss:$48 sps:$4 sm:$0xff]   ;;  %v6423_v63 = vld [vmem:[#allocation5 + $0x5a4] ss:$48 sps:$4 sm:$0xff]  }
  0xe3   : > { %v6422_v62 = vld [vmem:[#allocation5 + $0x548] ss:$48 sps:$4 sm:$0xff]   ;;  %v6425_v0 = vld [vmem:[#allocation5 + $0x5ac] ss:$48 sps:$4 sm:$0xff]   ;;  %v6427_v1 = vld [vmem:[#allocation5 + $0x5a0] ss:$48 sps:$4 sm:$0xff]  }
  0xe4   : > { %2768 = vmatpush1.bf16.msra.mxu0 %v6367_v22  ;;  %2854 = vmatpush1.bf16.msra.mxu1 %v6368_v23  ;;  %v6428_v2 = vld [vmem:[#allocation5 + $0x5a8] ss:$48 sps:$4 sm:$0xff]   ;;  %v6431_v3 = vld [vmem:[#allocation5 + $0x604] ss:$48 sps:$4 sm:$0xff]   ;;  %v6434_v6 = vld [vmem:[#allocation5 + $0x60c] ss:$48 sps:$4 sm:$0xff]  }
  0xe5   : > { %2769 = vmatprep.subr.bf16.mxu0 %v6369_v24  ;;  %2855 = vmatprep.subr.bf16.mxu1 %v6371_v25  ;;  %v377_v4 = vld [vmem:[%s7741_s15] sm:$0xff]  ;;  %v6432_v8 = vld [vmem:[#allocation5 + $0x608] ss:$48 sps:$4 sm:$0xff]   ;;  %v6440_v11 = vld [vmem:[#allocation5 + $0x66c] ss:$48 sps:$4 sm:$0xff]   ;;  %s6084_s8 = sshll.u32 %s7505_s30, 10 }
  0xe6   : > { %v381_v5 = vld [vmem:[%s7741_s15 + $0x20] sm:$0xff]  ;;  %v6438_v13 = vld [vmem:[#allocation5 + $0x668] ss:$48 sps:$4 sm:$0xff]   ;;  %v6446_v15 = vld [vmem:[#allocation5 + $0x6cc] ss:$48 sps:$4 sm:$0xff]   ;;  %s375_s13 = scalar_lea.vmem [#allocation14], %s5554_s14  ;;  %s8026_s30 = scalar_lea.hbm %s8079_s7, %s6084_s8 }
  0xe7   : > { %v6429_v7 = vld [vmem:[#allocation5 + $0x600] ss:$48 sps:$4 sm:$0xff]   ;;  %v7767_v9 = vpack.c.bf16 %v381_v5, %v377_v4  ;;  %v6437_v10 = vld [vmem:[#allocation5 + $0x664] ss:$48 sps:$4 sm:$0xff]   ;;  %v6444_v17 = vld [vmem:[#allocation5 + $0x6c8] ss:$48 sps:$4 sm:$0xff]  }
  0xe8   : > { %2770 = vmatpush1.bf16.msra.mxu0 %v6373_v26  ;;  %2856 = vmatpush1.bf16.msra.mxu1 %v6374_v27  ;;  %v6435_v12 = vld [vmem:[#allocation5 + $0x660] ss:$48 sps:$4 sm:$0xff]   ;;  %v6443_v14 = vld [vmem:[#allocation5 + $0x6c4] ss:$48 sps:$4 sm:$0xff]   ;;  %v6452_v19 = vld [vmem:[#allocation5 + $0x72c] ss:$48 sps:$4 sm:$0xff]  }
  0xe9   : > { %2771 = vmatprep.subr.bf16.mxu0 %v6375_v28  ;;  %2857 = vmatprep.subr.bf16.mxu1 %v6377_v29  ;;  %v6441_v16 = vld [vmem:[#allocation5 + $0x6c0] ss:$48 sps:$4 sm:$0xff]   ;;  %v6449_v18 = vld [vmem:[#allocation5 + $0x724] ss:$48 sps:$4 sm:$0xff]   ;;  %v6450_v21 = vld [vmem:[#allocation5 + $0x728] ss:$48 sps:$4 sm:$0xff]  }
  0xea   : > { %v6447_v20 = vld [vmem:[#allocation5 + $0x720] ss:$48 sps:$4 sm:$0xff]   ;;  %v6455_v22 = vld [vmem:[#allocation5 + $0x784] ss:$48 sps:$4 sm:$0xff]   ;;  %v6458_v23 = vld [vmem:[#allocation5 + $0x78c] ss:$48 sps:$4 sm:$0xff]  }
  0xeb   : > { %v6453_v24 = vld [vmem:[#allocation5 + $0x780] ss:$48 sps:$4 sm:$0xff]   ;;  %v6456_v25 = vld [vmem:[#allocation5 + $0x788] ss:$48 sps:$4 sm:$0xff]   ;;  %v6461_v26 = vld [vmem:[#allocation5 + $0x7e4] ss:$48 sps:$4 sm:$0xff]  }
  0xec   : > { %2772 = vmatpush1.bf16.msra.mxu0 %v6379_v30  ;;  %2858 = vmatpush1.bf16.msra.mxu1 %v6380_v31  ;;  %v6464_v27 = vld [vmem:[#allocation5 + $0x7ec] ss:$48 sps:$4 sm:$0xff]   ;;  %v6459_v28 = vld [vmem:[#allocation5 + $0x7e0] ss:$48 sps:$4 sm:$0xff]   ;;  %v6462_v29 = vld [vmem:[#allocation5 + $0x7e8] ss:$48 sps:$4 sm:$0xff]  }
  0xed   : > { %2773 = vmatprep.subr.bf16.mxu0 %v6381_v32  ;;  %2859 = vmatprep.subr.bf16.mxu1 %v6383_v33  ;;  %v6467_v30 = vld [vmem:[#allocation5 + $0x844] ss:$48 sps:$4 sm:$0xff]   ;;  %v6470_v31 = vld [vmem:[#allocation5 + $0x84c] ss:$48 sps:$4 sm:$0xff]   ;;  %v6465_v33 = vld [vmem:[#allocation5 + $0x840] ss:$48 sps:$4 sm:$0xff]  }
  0xee   : > { %v380_v32 = vld [vmem:[%s7741_s15 + $0x18] sm:$0xff]  ;;  %v6483_v47 = vld [vmem:[#allocation5 + $0x960] ss:$48 sps:$4 sm:$0xff]   ;;  %s5411_s9 = sshll.u32 %s375_s13, 4  ;;  %s5398_s17 = scalar_lea.sflag [#allocation4], %s7735_s12  ;;  %s8028_s9 = int_to_ptr.vmem [resolvable:$true] %s5411_s9 }
  0xef   : > { %v6488_v46 = vld [vmem:[#allocation5 + $0x96c] ss:$48 sps:$4 sm:$0xff]   ;;  %v6513_v4 = vld [vmem:[#allocation5 + $0xb40] ss:$48 sps:$4 sm:$0xff]   ;;  %v6516_v5 = vld [vmem:[#allocation5 + $0xb48] ss:$48 sps:$4 sm:$0xff]  }
  0xf0   : > { %2774 = vmatpush1.bf16.msra.mxu0 %v6385_v34  ;;  %2860 = vmatpush1.bf16.msra.mxu1 %v6386_v35  ;;  %v6468_v34 = vld [vmem:[#allocation5 + $0x848] ss:$48 sps:$4 sm:$0xff]   ;;  %s7343_s22 = scalar_lea.vmem %s8028_s9, 1024  ;;  %p8099_p5 = scmp.ne.s32.totalorder %s8089_s10, 0 }
  0xf1   : > { %2775 = vmatprep.subr.bf16.mxu0 %v6387_v36  ;;  %2861 = vmatprep.subr.bf16.mxu1 %v6389_v37  ;;  %v384_v35 = vld [vmem:[%s7741_s15 + $0x38] sm:$0xff]  ;;  %v6473_v36 = vld [vmem:[#allocation5 + $0x8a4] ss:$48 sps:$4 sm:$0xff]   ;;  %p7344_p6 = scmp.ne.s32.totalorder %s8028_s9, %s7343_s22  ;;  %s7441_s28 = smov [#allocation14]  }
  0xf2   : > { %v7773_v37 = vpack.c.bf16 %v384_v35, %v380_v32  ;;  %v6549_v32 = vld [vmem:[#allocation5 + $0x190] ss:$48 sps:$4 sm:$0xff]   ;;  %v6560_v35 = vld [vmem:[#allocation5 + $0x1fc] ss:$48 sps:$4 sm:$0xff]   ;;  %s7347_s23 = sshll.u32 %s7441_s28, 4  ;;  %s7348_s23 = int_to_ptr.vmem [resolvable:$false] %s7347_s23 }
  0xf3   : > { %p7345_p10 = pnand %p7344_p6, %p8099_p5  ;;  %s7349_s20 = scalar_lea.vmem %s7348_s23, 2048 }
  0xf4   : > { %2776 = vmatpush1.bf16.msra.mxu0 %v6391_v38  ;;  %2862 = vmatpush1.bf16.msra.mxu1 %v6392_v39  ;;  %v6476_v38 = vld [vmem:[#allocation5 + $0x8ac] ss:$48 sps:$4 sm:$0xff]   ;;  %v6471_v39 = vld [vmem:[#allocation5 + $0x8a0] ss:$48 sps:$4 sm:$0xff]   ;;  %p7350_p11 = scmp.lt.s32.totalorder %s8028_s9, %s7348_s23  ;;  %p7351_p12 = scmp.lt.s32.totalorder %s7349_s20, %s7343_s22 }
  0xf5   : > { %2777 = vmatprep.subr.bf16.mxu0 %v6393_v40  ;;  %2863 = vmatprep.subr.bf16.mxu1 %v6395_v41  ;;  %v6474_v40 = vld [vmem:[#allocation5 + $0x8a8] ss:$48 sps:$4 sm:$0xff]   ;;  %v6479_v41 = vld [vmem:[#allocation5 + $0x904] ss:$48 sps:$4 sm:$0xff]   ;;  %p7346_p1 = pneg %p7345_p10 }
  0xf6   : > { %p7352_p13 = por %p7351_p12, %p7350_p11 }
  0xf8   : > { %2778 = vmatpush1.bf16.msra.mxu0 %v6397_v42  ;;  %2864 = vmatpush1.bf16.msra.mxu1 %v6398_v43  ;;  %v6482_v42 = vld [vmem:[#allocation5 + $0x90c] ss:$48 sps:$4 sm:$0xff]   ;;  %v6477_v43 = vld [vmem:[#allocation5 + $0x900] ss:$48 sps:$4 sm:$0xff]   ;;  %p7353_p8 = pnand %p7352_p13, %p7346_p1 }
  0xf9   : > { %2779 = vmatprep.subr.bf16.mxu0 %v6399_v44  ;;  %2865 = vmatprep.subr.bf16.mxu1 %v6401_v45  ;;  %v6480_v44 = vld [vmem:[#allocation5 + $0x908] ss:$48 sps:$4 sm:$0xff]   ;;  %v6485_v45 = vld [vmem:[#allocation5 + $0x964] ss:$48 sps:$4 sm:$0xff]  }
  0xfc   : > { %2780 = vmatpush1.bf16.msra.mxu0 %v6403_v48  ;;  %2866 = vmatpush1.bf16.msra.mxu1 %v6404_v49  ;;  %v6486_v48 = vld [vmem:[#allocation5 + $0x968] ss:$48 sps:$4 sm:$0xff]   ;;  %v6491_v49 = vld [vmem:[#allocation5 + $0x9c4] ss:$48 sps:$4 sm:$0xff]  }
  0xfd   : > { %2781 = vmatprep.subr.bf16.mxu0 %v6405_v51  ;;  %2867 = vmatprep.subr.bf16.mxu1 %v6407_v52  ;;  %v6494_v51 = vld [vmem:[#allocation5 + $0x9cc] ss:$48 sps:$4 sm:$0xff]   ;;  %v6489_v52 = vld [vmem:[#allocation5 + $0x9c0] ss:$48 sps:$4 sm:$0xff]  }
 0x100   : > { %2782 = vmatpush1.bf16.msra.mxu0 %v6409_v53  ;;  %2868 = vmatpush1.bf16.msra.mxu1 %v6410_v54  ;;  %v6492_v53 = vld [vmem:[#allocation5 + $0x9c8] ss:$48 sps:$4 sm:$0xff]   ;;  %v6497_v54 = vld [vmem:[#allocation5 + $0xa24] ss:$48 sps:$4 sm:$0xff]  }
 0x101   : > { %2783 = vmatprep.subr.bf16.mxu0 %v6411_v55  ;;  %2869 = vmatprep.subr.bf16.mxu1 %v6413_v56  ;;  %v6500_v55 = vld [vmem:[#allocation5 + $0xa2c] ss:$48 sps:$4 sm:$0xff]   ;;  %v6495_v56 = vld [vmem:[#allocation5 + $0xa20] ss:$48 sps:$4 sm:$0xff]  }
 0x104   : > { %2784 = vmatpush1.bf16.msra.mxu0 %v6415_v57  ;;  %2870 = vmatpush1.bf16.msra.mxu1 %v6416_v58  ;;  %v6498_v57 = vld [vmem:[#allocation5 + $0xa28] ss:$48 sps:$4 sm:$0xff]   ;;  %v6503_v58 = vld [vmem:[#allocation5 + $0xa84] ss:$48 sps:$4 sm:$0xff]  }
 0x105   : > { %2785 = vmatprep.subr.bf16.mxu0 %v6417_v59  ;;  %2871 = vmatprep.subr.bf16.mxu1 %v6419_v60  ;;  %v6506_v59 = vld [vmem:[#allocation5 + $0xa8c] ss:$48 sps:$4 sm:$0xff]   ;;  %v6501_v60 = vld [vmem:[#allocation5 + $0xa80] ss:$48 sps:$4 sm:$0xff]  }
 0x108   : > { %2786 = vmatpush1.bf16.msra.mxu0 %v6421_v61  ;;  %2872 = vmatpush1.bf16.msra.mxu1 %v6422_v62  ;;  %v6504_v61 = vld [vmem:[#allocation5 + $0xa88] ss:$48 sps:$4 sm:$0xff]   ;;  %v6509_v62 = vld [vmem:[#allocation5 + $0xae4] ss:$48 sps:$4 sm:$0xff]  }
 0x109   : > { %2787 = vmatprep.subr.bf16.mxu0 %v6423_v63  ;;  %2873 = vmatprep.subr.bf16.mxu1 %v6425_v0  ;;  %v6512_v63 = vld [vmem:[#allocation5 + $0xaec] ss:$48 sps:$4 sm:$0xff]   ;;  %v6507_v0 = vld [vmem:[#allocation5 + $0xae0] ss:$48 sps:$4 sm:$0xff]  }
 0x10c   : > { %2788 = vmatpush1.bf16.msra.mxu0 %v6427_v1  ;;  %2874 = vmatpush1.bf16.msra.mxu1 %v6428_v2  ;;  %v6510_v1 = vld [vmem:[#allocation5 + $0xae8] ss:$48 sps:$4 sm:$0xff]   ;;  %v6515_v2 = vld [vmem:[#allocation5 + $0xb44] ss:$48 sps:$4 sm:$0xff]  }
 0x10d   : > { %2800 = vmatprep.subr.bf16.mxu0 %v6431_v3  ;;  %2886 = vmatprep.subr.bf16.mxu1 %v6434_v6  ;;  %v6518_v3 = vld [vmem:[#allocation5 + $0xb4c] ss:$48 sps:$4 sm:$0xff]   ;;  %v6521_v6 = vld [vmem:[#allocation5 + $0xba4] ss:$48 sps:$4 sm:$0xff]  }
 0x10f   : > { %2790 = vmatmul.mubr.bf16.vlgmr.msra.gmra.mrb[0].mxu0 %v7767_v9  ;;  %2876 = vmatmul.mubr.bf16.vlgmr.msra.gmra.mrb[0].mxu1 %v7767_v9 }
 0x110   : > { %2801 = vmatpush1.bf16.msra.mxu0 %v6429_v7  ;;  %2887 = vmatpush1.bf16.msra.mxu1 %v6432_v8  ;;  %v6524_v7 = vld [vmem:[#allocation5 + $0xbac] ss:$48 sps:$4 sm:$0xff]   ;;  %v6519_v8 = vld [vmem:[#allocation5 + $0xba0] ss:$48 sps:$4 sm:$0xff]  }
 0x111   : > { %2802 = vmatprep.subr.bf16.mxu0 %v6437_v10  ;;  %2888 = vmatprep.subr.bf16.mxu1 %v6440_v11  ;;  %v6522_v10 = vld [vmem:[#allocation5 + $0xba8] ss:$48 sps:$4 sm:$0xff]   ;;  %v379_v11 = vld [vmem:[%s7741_s15 + $0x10] sm:$0xff] }
 0x112   : > { %2832 = vmatprep.mubr.bf16.mxu0 %v7773_v37  ;;  %2918 = vmatprep.mubr.bf16.mxu1 %v7773_v37 }
 0x114   : > { %2803 = vmatpush1.bf16.msra.mxu0 %v6435_v12  ;;  %2889 = vmatpush1.bf16.msra.mxu1 %v6438_v13  ;;  %v383_v12 = vld [vmem:[%s7741_s15 + $0x30] sm:$0xff] }
 0x115   : > { %2804 = vmatprep.subr.bf16.mxu0 %v6443_v14  ;;  %2890 = vmatprep.subr.bf16.mxu1 %v6446_v15  ;;  %v6527_v13 = vld [vmem:[#allocation5 + $0x14] ss:$48 sps:$4 sm:$0xff]   ;;  %v6530_v14 = vld [vmem:[#allocation5 + $0x1c] ss:$48 sps:$4 sm:$0xff]   ;;  %v7779_v15 = vpack.c.bf16 %v383_v12, %v379_v11  ;;  %v6609_v11 = vld [vmem:[#allocation5 + $0x550] ss:$48 sps:$4 sm:$0xff]  }
 0x116   : > { %v6612_v12 = vld [vmem:[#allocation5 + $0x558] ss:$48 sps:$4 sm:$0xff]  }
 0x118   : > { %2805 = vmatpush1.bf16.msra.mxu0 %v6441_v16  ;;  %2891 = vmatpush1.bf16.msra.mxu1 %v6444_v17  ;;  %v6525_v16 = vld [vmem:[#allocation5 + $0x10] ss:$48 sps:$4 sm:$0xff]   ;;  %v6528_v17 = vld [vmem:[#allocation5 + $0x18] ss:$48 sps:$4 sm:$0xff]  }
 0x119   : > { %2806 = vmatprep.subr.bf16.mxu0 %v6449_v18  ;;  %2892 = vmatprep.subr.bf16.mxu1 %v6452_v19  ;;  %v6533_v18 = vld [vmem:[#allocation5 + $0x74] ss:$48 sps:$4 sm:$0xff]   ;;  %v6536_v19 = vld [vmem:[#allocation5 + $0x7c] ss:$48 sps:$4 sm:$0xff]  }
 0x11c   : > { %2807 = vmatpush1.bf16.msra.mxu0 %v6447_v20  ;;  %2893 = vmatpush1.bf16.msra.mxu1 %v6450_v21  ;;  %v6531_v20 = vld [vmem:[#allocation5 + $0x70] ss:$48 sps:$4 sm:$0xff]   ;;  %v6534_v21 = vld [vmem:[#allocation5 + $0x78] ss:$48 sps:$4 sm:$0xff]  }
 0x11d   : > { %2808 = vmatprep.subr.bf16.mxu0 %v6455_v22  ;;  %2894 = vmatprep.subr.bf16.mxu1 %v6458_v23  ;;  %v6539_v22 = vld [vmem:[#allocation5 + $0xd4] ss:$48 sps:$4 sm:$0xff]   ;;  %v6542_v23 = vld [vmem:[#allocation5 + $0xdc] ss:$48 sps:$4 sm:$0xff]  }
 0x120   : > { %2809 = vmatpush1.bf16.msra.mxu0 %v6453_v24  ;;  %2895 = vmatpush1.bf16.msra.mxu1 %v6456_v25  ;;  %v6537_v24 = vld [vmem:[#allocation5 + $0xd0] ss:$48 sps:$4 sm:$0xff]   ;;  %v6540_v25 = vld [vmem:[#allocation5 + $0xd8] ss:$48 sps:$4 sm:$0xff]  }
 0x121   : > { %2810 = vmatprep.subr.bf16.mxu0 %v6461_v26  ;;  %2896 = vmatprep.subr.bf16.mxu1 %v6464_v27  ;;  %v6545_v26 = vld [vmem:[#allocation5 + $0x134] ss:$48 sps:$4 sm:$0xff]   ;;  %v6548_v27 = vld [vmem:[#allocation5 + $0x13c] ss:$48 sps:$4 sm:$0xff]  }
 0x124   : > { %2811 = vmatpush1.bf16.msra.mxu0 %v6459_v28  ;;  %2897 = vmatpush1.bf16.msra.mxu1 %v6462_v29  ;;  %v6543_v28 = vld [vmem:[#allocation5 + $0x130] ss:$48 sps:$4 sm:$0xff]   ;;  %v6546_v29 = vld [vmem:[#allocation5 + $0x138] ss:$48 sps:$4 sm:$0xff]  }
 0x125   : > { %2812 = vmatprep.subr.bf16.mxu0 %v6467_v30  ;;  %2898 = vmatprep.subr.bf16.mxu1 %v6470_v31  ;;  %v6551_v30 = vld [vmem:[#allocation5 + $0x194] ss:$48 sps:$4 sm:$0xff]   ;;  %v6554_v31 = vld [vmem:[#allocation5 + $0x19c] ss:$48 sps:$4 sm:$0xff]  }
 0x128   : > { %2813 = vmatpush1.bf16.msra.mxu0 %v6465_v33  ;;  %2899 = vmatpush1.bf16.msra.mxu1 %v6468_v34  ;;  %v6552_v33 = vld [vmem:[#allocation5 + $0x198] ss:$48 sps:$4 sm:$0xff]   ;;  %v6557_v34 = vld [vmem:[#allocation5 + $0x1f4] ss:$48 sps:$4 sm:$0xff]  }
 0x129   : > { %2814 = vmatprep.subr.bf16.mxu0 %v6473_v36  ;;  %2900 = vmatprep.subr.bf16.mxu1 %v6476_v38  ;;  %v6555_v36 = vld [vmem:[#allocation5 + $0x1f0] ss:$48 sps:$4 sm:$0xff]   ;;  %v6558_v38 = vld [vmem:[#allocation5 + $0x1f8] ss:$48 sps:$4 sm:$0xff]  }
 0x12c   : > { %2815 = vmatpush1.bf16.msra.mxu0 %v6471_v39  ;;  %2901 = vmatpush1.bf16.msra.mxu1 %v6474_v40  ;;  %v6563_v39 = vld [vmem:[#allocation5 + $0x254] ss:$48 sps:$4 sm:$0xff]   ;;  %v6566_v40 = vld [vmem:[#allocation5 + $0x25c] ss:$48 sps:$4 sm:$0xff]  }
 0x12d   : > { %2816 = vmatprep.subr.bf16.mxu0 %v6479_v41  ;;  %2902 = vmatprep.subr.bf16.mxu1 %v6482_v42  ;;  %v6561_v41 = vld [vmem:[#allocation5 + $0x250] ss:$48 sps:$4 sm:$0xff]   ;;  %v6564_v42 = vld [vmem:[#allocation5 + $0x258] ss:$48 sps:$4 sm:$0xff]  }
 0x130   : > { %2817 = vmatpush1.bf16.msra.mxu0 %v6477_v43  ;;  %2903 = vmatpush1.bf16.msra.mxu1 %v6480_v44  ;;  %v6569_v43 = vld [vmem:[#allocation5 + $0x2b4] ss:$48 sps:$4 sm:$0xff]   ;;  %v6572_v44 = vld [vmem:[#allocation5 + $0x2bc] ss:$48 sps:$4 sm:$0xff]  }
 0x131   : > { %2818 = vmatprep.subr.bf16.mxu0 %v6485_v45  ;;  %2904 = vmatprep.subr.bf16.mxu1 %v6488_v46  ;;  %v6567_v45 = vld [vmem:[#allocation5 + $0x2b0] ss:$48 sps:$4 sm:$0xff]   ;;  %v6570_v46 = vld [vmem:[#allocation5 + $0x2b8] ss:$48 sps:$4 sm:$0xff]  }
 0x134   : > { %2819 = vmatpush1.bf16.msra.mxu0 %v6483_v47  ;;  %2905 = vmatpush1.bf16.msra.mxu1 %v6486_v48  ;;  %v6575_v47 = vld [vmem:[#allocation5 + $0x314] ss:$48 sps:$4 sm:$0xff]   ;;  %v6578_v48 = vld [vmem:[#allocation5 + $0x31c] ss:$48 sps:$4 sm:$0xff]  }
 0x135   : > { %2820 = vmatprep.subr.bf16.mxu0 %v6491_v49  ;;  %2906 = vmatprep.subr.bf16.mxu1 %v6494_v51  ;;  %v6573_v49 = vld [vmem:[#allocation5 + $0x310] ss:$48 sps:$4 sm:$0xff]   ;;  %v6576_v51 = vld [vmem:[#allocation5 + $0x318] ss:$48 sps:$4 sm:$0xff]  }
 0x138   : > { %2821 = vmatpush1.bf16.msra.mxu0 %v6489_v52  ;;  %2907 = vmatpush1.bf16.msra.mxu1 %v6492_v53  ;;  %v6581_v52 = vld [vmem:[#allocation5 + $0x374] ss:$48 sps:$4 sm:$0xff]   ;;  %v6584_v53 = vld [vmem:[#allocation5 + $0x37c] ss:$48 sps:$4 sm:$0xff]  }
 0x139   : > { %2822 = vmatprep.subr.bf16.mxu0 %v6497_v54  ;;  %2908 = vmatprep.subr.bf16.mxu1 %v6500_v55  ;;  %v6579_v54 = vld [vmem:[#allocation5 + $0x370] ss:$48 sps:$4 sm:$0xff]   ;;  %v6582_v55 = vld [vmem:[#allocation5 + $0x378] ss:$48 sps:$4 sm:$0xff]  }
 0x13c   : > { %2823 = vmatpush1.bf16.msra.mxu0 %v6495_v56  ;;  %2909 = vmatpush1.bf16.msra.mxu1 %v6498_v57  ;;  %v6587_v56 = vld [vmem:[#allocation5 + $0x3d4] ss:$48 sps:$4 sm:$0xff]   ;;  %v6590_v57 = vld [vmem:[#allocation5 + $0x3dc] ss:$48 sps:$4 sm:$0xff]  }
 0x13d   : > { %2824 = vmatprep.subr.bf16.mxu0 %v6503_v58  ;;  %2910 = vmatprep.subr.bf16.mxu1 %v6506_v59  ;;  %v6585_v58 = vld [vmem:[#allocation5 + $0x3d0] ss:$48 sps:$4 sm:$0xff]   ;;  %v6588_v59 = vld [vmem:[#allocation5 + $0x3d8] ss:$48 sps:$4 sm:$0xff]  }
 0x140   : > { %2825 = vmatpush1.bf16.msra.mxu0 %v6501_v60  ;;  %2911 = vmatpush1.bf16.msra.mxu1 %v6504_v61  ;;  %v6593_v60 = vld [vmem:[#allocation5 + $0x434] ss:$48 sps:$4 sm:$0xff]   ;;  %v6596_v61 = vld [vmem:[#allocation5 + $0x43c] ss:$48 sps:$4 sm:$0xff]  }
 0x141   : > { %2826 = vmatprep.subr.bf16.mxu0 %v6509_v62  ;;  %2912 = vmatprep.subr.bf16.mxu1 %v6512_v63  ;;  %v6591_v62 = vld [vmem:[#allocation5 + $0x430] ss:$48 sps:$4 sm:$0xff]   ;;  %v6594_v63 = vld [vmem:[#allocation5 + $0x438] ss:$48 sps:$4 sm:$0xff]  }
 0x144   : > { %2827 = vmatpush1.bf16.msra.mxu0 %v6507_v0  ;;  %2913 = vmatpush1.bf16.msra.mxu1 %v6510_v1  ;;  %v6599_v0 = vld [vmem:[#allocation5 + $0x494] ss:$48 sps:$4 sm:$0xff]   ;;  %v6602_v1 = vld [vmem:[#allocation5 + $0x49c] ss:$48 sps:$4 sm:$0xff]  }
 0x145   : > { %2828 = vmatprep.subr.bf16.mxu0 %v6515_v2  ;;  %2914 = vmatprep.subr.bf16.mxu1 %v6518_v3  ;;  %v6597_v2 = vld [vmem:[#allocation5 + $0x490] ss:$48 sps:$4 sm:$0xff]   ;;  %v6600_v3 = vld [vmem:[#allocation5 + $0x498] ss:$48 sps:$4 sm:$0xff]  }
 0x148   : > { %2829 = vmatpush1.bf16.msra.mxu0 %v6513_v4  ;;  %2915 = vmatpush1.bf16.msra.mxu1 %v6516_v5  ;;  %v6605_v4 = vld [vmem:[#allocation5 + $0x4f4] ss:$48 sps:$4 sm:$0xff]   ;;  %v6608_v5 = vld [vmem:[#allocation5 + $0x4fc] ss:$48 sps:$4 sm:$0xff]  }
 0x149   : > { %2830 = vmatprep.subr.bf16.mxu0 %v6521_v6  ;;  %2916 = vmatprep.subr.bf16.mxu1 %v6524_v7  ;;  %v6603_v6 = vld [vmem:[#allocation5 + $0x4f0] ss:$48 sps:$4 sm:$0xff]   ;;  %v6606_v7 = vld [vmem:[#allocation5 + $0x4f8] ss:$48 sps:$4 sm:$0xff]  }
 0x14c   : > { %2831 = vmatpush1.bf16.msra.mxu0 %v6519_v8  ;;  %2917 = vmatpush1.bf16.msra.mxu1 %v6522_v10  ;;  %v6611_v8 = vld [vmem:[#allocation5 + $0x554] ss:$48 sps:$4 sm:$0xff]   ;;  %v6614_v10 = vld [vmem:[#allocation5 + $0x55c] ss:$48 sps:$4 sm:$0xff]  }
 0x14d   : > { %2929 = vmatprep.subr.bf16.mxu0 %v6527_v13  ;;  %3015 = vmatprep.subr.bf16.mxu1 %v6530_v14  ;;  %v6617_v13 = vld [vmem:[#allocation5 + $0x5b4] ss:$48 sps:$4 sm:$0xff]   ;;  %v6620_v14 = vld [vmem:[#allocation5 + $0x5bc] ss:$48 sps:$4 sm:$0xff]  }
 0x14f   : > { %2833 = vmatmul.mubr.bf16.vlgmr.msra.gmra.mrb[0].mxu0 %v7779_v15  ;;  %2919 = vmatmul.mubr.bf16.vlgmr.msra.gmra.mrb[0].mxu1 %v7779_v15 }
 0x150   : > { %2930 = vmatpush1.bf16.msra.mxu0 %v6525_v16  ;;  %3016 = vmatpush1.bf16.msra.mxu1 %v6528_v17  ;;  %v6615_v16 = vld [vmem:[#allocation5 + $0x5b0] ss:$48 sps:$4 sm:$0xff]   ;;  %v6618_v17 = vld [vmem:[#allocation5 + $0x5b8] ss:$48 sps:$4 sm:$0xff]  }
 0x151   : > { %2931 = vmatprep.subr.bf16.mxu0 %v6533_v18  ;;  %3017 = vmatprep.subr.bf16.mxu1 %v6536_v19  ;;  %v6623_v18 = vld [vmem:[#allocation5 + $0x614] ss:$48 sps:$4 sm:$0xff]   ;;  %v6626_v19 = vld [vmem:[#allocation5 + $0x61c] ss:$48 sps:$4 sm:$0xff]  }
 0x152   : > { %2961 = vmatprep.mubr.bf16.mxu0 %v7761_v50  ;;  %3047 = vmatprep.mubr.bf16.mxu1 %v7761_v50 }
 0x154   : > { %2932 = vmatpush1.bf16.msra.mxu0 %v6531_v20  ;;  %3018 = vmatpush1.bf16.msra.mxu1 %v6534_v21  ;;  %v6621_v20 = vld [vmem:[#allocation5 + $0x610] ss:$48 sps:$4 sm:$0xff]   ;;  %v6624_v21 = vld [vmem:[#allocation5 + $0x618] ss:$48 sps:$4 sm:$0xff]  }
 0x155   : > { %2933 = vmatprep.subr.bf16.mxu0 %v6539_v22  ;;  %3019 = vmatprep.subr.bf16.mxu1 %v6542_v23  ;;  %v6629_v22 = vld [vmem:[#allocation5 + $0x674] ss:$48 sps:$4 sm:$0xff]   ;;  %v6632_v23 = vld [vmem:[#allocation5 + $0x67c] ss:$48 sps:$4 sm:$0xff]  }
 0x158   : > { %2934 = vmatpush1.bf16.msra.mxu0 %v6537_v24  ;;  %3020 = vmatpush1.bf16.msra.mxu1 %v6540_v25  ;;  %v6627_v24 = vld [vmem:[#allocation5 + $0x670] ss:$48 sps:$4 sm:$0xff]   ;;  %v6630_v25 = vld [vmem:[#allocation5 + $0x678] ss:$48 sps:$4 sm:$0xff]  }
 0x159   : > { %2935 = vmatprep.subr.bf16.mxu0 %v6545_v26  ;;  %3021 = vmatprep.subr.bf16.mxu1 %v6548_v27  ;;  %v6635_v26 = vld [vmem:[#allocation5 + $0x6d4] ss:$48 sps:$4 sm:$0xff]   ;;  %v6638_v27 = vld [vmem:[#allocation5 + $0x6dc] ss:$48 sps:$4 sm:$0xff]  }
 0x15c   : > { %2936 = vmatpush1.bf16.msra.mxu0 %v6543_v28  ;;  %3022 = vmatpush1.bf16.msra.mxu1 %v6546_v29  ;;  %v6633_v28 = vld [vmem:[#allocation5 + $0x6d0] ss:$48 sps:$4 sm:$0xff]   ;;  %v6636_v29 = vld [vmem:[#allocation5 + $0x6d8] ss:$48 sps:$4 sm:$0xff]  }
 0x15d   : > { %2937 = vmatprep.subr.bf16.mxu0 %v6551_v30  ;;  %3023 = vmatprep.subr.bf16.mxu1 %v6554_v31  ;;  %v6641_v30 = vld [vmem:[#allocation5 + $0x734] ss:$48 sps:$4 sm:$0xff]   ;;  %v6644_v31 = vld [vmem:[#allocation5 + $0x73c] ss:$48 sps:$4 sm:$0xff]  }
 0x160   : > { %2938 = vmatpush1.bf16.msra.mxu0 %v6549_v32  ;;  %3024 = vmatpush1.bf16.msra.mxu1 %v6552_v33  ;;  %v6639_v32 = vld [vmem:[#allocation5 + $0x730] ss:$48 sps:$4 sm:$0xff]   ;;  %v6642_v33 = vld [vmem:[#allocation5 + $0x738] ss:$48 sps:$4 sm:$0xff]  }
 0x161   : > { %2939 = vmatprep.subr.bf16.mxu0 %v6557_v34  ;;  %3025 = vmatprep.subr.bf16.mxu1 %v6560_v35  ;;  %v6647_v34 = vld [vmem:[#allocation5 + $0x794] ss:$48 sps:$4 sm:$0xff]   ;;  %v6650_v35 = vld [vmem:[#allocation5 + $0x79c] ss:$48 sps:$4 sm:$0xff]  }
 0x164   : > { %2940 = vmatpush1.bf16.msra.mxu0 %v6555_v36  ;;  %3026 = vmatpush1.bf16.msra.mxu1 %v6558_v38  ;;  %v6645_v36 = vld [vmem:[#allocation5 + $0x790] ss:$48 sps:$4 sm:$0xff]   ;;  %v6648_v38 = vld [vmem:[#allocation5 + $0x798] ss:$48 sps:$4 sm:$0xff]  }
 0x165   : > { %2941 = vmatprep.subr.bf16.mxu0 %v6563_v39  ;;  %3027 = vmatprep.subr.bf16.mxu1 %v6566_v40  ;;  %v6653_v39 = vld [vmem:[#allocation5 + $0x7f4] ss:$48 sps:$4 sm:$0xff]   ;;  %v6656_v40 = vld [vmem:[#allocation5 + $0x7fc] ss:$48 sps:$4 sm:$0xff]  }
 0x168   : > { %2942 = vmatpush1.bf16.msra.mxu0 %v6561_v41  ;;  %3028 = vmatpush1.bf16.msra.mxu1 %v6564_v42  ;;  %v6651_v41 = vld [vmem:[#allocation5 + $0x7f0] ss:$48 sps:$4 sm:$0xff]   ;;  %v6654_v42 = vld [vmem:[#allocation5 + $0x7f8] ss:$48 sps:$4 sm:$0xff]  }
 0x169   : > { %2943 = vmatprep.subr.bf16.mxu0 %v6569_v43  ;;  %3029 = vmatprep.subr.bf16.mxu1 %v6572_v44  ;;  %v6659_v43 = vld [vmem:[#allocation5 + $0x854] ss:$48 sps:$4 sm:$0xff]   ;;  %v6662_v44 = vld [vmem:[#allocation5 + $0x85c] ss:$48 sps:$4 sm:$0xff]  }
 0x16c   : > { %2944 = vmatpush1.bf16.msra.mxu0 %v6567_v45  ;;  %3030 = vmatpush1.bf16.msra.mxu1 %v6570_v46  ;;  %v6657_v45 = vld [vmem:[#allocation5 + $0x850] ss:$48 sps:$4 sm:$0xff]   ;;  %v6660_v46 = vld [vmem:[#allocation5 + $0x858] ss:$48 sps:$4 sm:$0xff]  }
 0x16d   : > { %2945 = vmatprep.subr.bf16.mxu0 %v6575_v47  ;;  %3031 = vmatprep.subr.bf16.mxu1 %v6578_v48  ;;  %v6665_v47 = vld [vmem:[#allocation5 + $0x8b4] ss:$48 sps:$4 sm:$0xff]   ;;  %v6668_v48 = vld [vmem:[#allocation5 + $0x8bc] ss:$48 sps:$4 sm:$0xff]  }
 0x170   : > { %2946 = vmatpush1.bf16.msra.mxu0 %v6573_v49  ;;  %3032 = vmatpush1.bf16.msra.mxu1 %v6576_v51  ;;  %v6663_v49 = vld [vmem:[#allocation5 + $0x8b0] ss:$48 sps:$4 sm:$0xff]   ;;  %v6666_v51 = vld [vmem:[#allocation5 + $0x8b8] ss:$48 sps:$4 sm:$0xff]  }
 0x171   : > { %2947 = vmatprep.subr.bf16.mxu0 %v6581_v52  ;;  %3033 = vmatprep.subr.bf16.mxu1 %v6584_v53  ;;  %v6671_v52 = vld [vmem:[#allocation5 + $0x914] ss:$48 sps:$4 sm:$0xff]   ;;  %v6674_v53 = vld [vmem:[#allocation5 + $0x91c] ss:$48 sps:$4 sm:$0xff]  }
 0x174   : > { %2948 = vmatpush1.bf16.msra.mxu0 %v6579_v54  ;;  %3034 = vmatpush1.bf16.msra.mxu1 %v6582_v55  ;;  %v6669_v54 = vld [vmem:[#allocation5 + $0x910] ss:$48 sps:$4 sm:$0xff]   ;;  %v6672_v55 = vld [vmem:[#allocation5 + $0x918] ss:$48 sps:$4 sm:$0xff]  }
 0x175   : > { %2949 = vmatprep.subr.bf16.mxu0 %v6587_v56  ;;  %3035 = vmatprep.subr.bf16.mxu1 %v6590_v57  ;;  %v6677_v56 = vld [vmem:[#allocation5 + $0x974] ss:$48 sps:$4 sm:$0xff]   ;;  %v6680_v57 = vld [vmem:[#allocation5 + $0x97c] ss:$48 sps:$4 sm:$0xff]  }
 0x178   : > { %2950 = vmatpush1.bf16.msra.mxu0 %v6585_v58  ;;  %3036 = vmatpush1.bf16.msra.mxu1 %v6588_v59  ;;  %v6675_v58 = vld [vmem:[#allocation5 + $0x970] ss:$48 sps:$4 sm:$0xff]   ;;  %v6678_v59 = vld [vmem:[#allocation5 + $0x978] ss:$48 sps:$4 sm:$0xff]  }
 0x179   : > { %2951 = vmatprep.subr.bf16.mxu0 %v6593_v60  ;;  %3037 = vmatprep.subr.bf16.mxu1 %v6596_v61  ;;  %v6683_v60 = vld [vmem:[#allocation5 + $0x9d4] ss:$48 sps:$4 sm:$0xff]   ;;  %v6686_v61 = vld [vmem:[#allocation5 + $0x9dc] ss:$48 sps:$4 sm:$0xff]  }
 0x17c   : > { %2952 = vmatpush1.bf16.msra.mxu0 %v6591_v62  ;;  %3038 = vmatpush1.bf16.msra.mxu1 %v6594_v63  ;;  %v6681_v62 = vld [vmem:[#allocation5 + $0x9d0] ss:$48 sps:$4 sm:$0xff]   ;;  %v6684_v63 = vld [vmem:[#allocation5 + $0x9d8] ss:$48 sps:$4 sm:$0xff]  }
 0x17d   : > { %2953 = vmatprep.subr.bf16.mxu0 %v6599_v0  ;;  %3039 = vmatprep.subr.bf16.mxu1 %v6602_v1  ;;  %v6689_v0 = vld [vmem:[#allocation5 + $0xa34] ss:$48 sps:$4 sm:$0xff]   ;;  %v6692_v1 = vld [vmem:[#allocation5 + $0xa3c] ss:$48 sps:$4 sm:$0xff]  }
 0x180   : > { %2954 = vmatpush1.bf16.msra.mxu0 %v6597_v2  ;;  %3040 = vmatpush1.bf16.msra.mxu1 %v6600_v3  ;;  %v6687_v2 = vld [vmem:[#allocation5 + $0xa30] ss:$48 sps:$4 sm:$0xff]   ;;  %v6690_v3 = vld [vmem:[#allocation5 + $0xa38] ss:$48 sps:$4 sm:$0xff]  }
 0x181   : > { %2955 = vmatprep.subr.bf16.mxu0 %v6605_v4  ;;  %3041 = vmatprep.subr.bf16.mxu1 %v6608_v5  ;;  %v6695_v4 = vld [vmem:[#allocation5 + $0xa94] ss:$48 sps:$4 sm:$0xff]   ;;  %v6698_v5 = vld [vmem:[#allocation5 + $0xa9c] ss:$48 sps:$4 sm:$0xff]  }
 0x184   : > { %2956 = vmatpush1.bf16.msra.mxu0 %v6603_v6  ;;  %3042 = vmatpush1.bf16.msra.mxu1 %v6606_v7  ;;  %v6693_v6 = vld [vmem:[#allocation5 + $0xa90] ss:$48 sps:$4 sm:$0xff]   ;;  %v6696_v7 = vld [vmem:[#allocation5 + $0xa98] ss:$48 sps:$4 sm:$0xff]  }
 0x185   : > { %2957 = vmatprep.subr.bf16.mxu0 %v6611_v8  ;;  %3043 = vmatprep.subr.bf16.mxu1 %v6614_v10  ;;  %v6701_v8 = vld [vmem:[#allocation5 + $0xaf4] ss:$48 sps:$4 sm:$0xff]   ;;  %v6704_v10 = vld [vmem:[#allocation5 + $0xafc] ss:$48 sps:$4 sm:$0xff]  }
 0x188   : > { %2958 = vmatpush1.bf16.msra.mxu0 %v6609_v11  ;;  %3044 = vmatpush1.bf16.msra.mxu1 %v6612_v12  ;;  %v6699_v11 = vld [vmem:[#allocation5 + $0xaf0] ss:$48 sps:$4 sm:$0xff]   ;;  %v6702_v12 = vld [vmem:[#allocation5 + $0xaf8] ss:$48 sps:$4 sm:$0xff]  }
 0x189   : > { %2959 = vmatprep.subr.bf16.mxu0 %v6617_v13  ;;  %3045 = vmatprep.subr.bf16.mxu1 %v6620_v14  ;;  %v6707_v13 = vld [vmem:[#allocation5 + $0xb54] ss:$48 sps:$4 sm:$0xff]   ;;  %v6710_v14 = vld [vmem:[#allocation5 + $0xb5c] ss:$48 sps:$4 sm:$0xff]  }
 0x18c   : > { %2960 = vmatpush1.bf16.msra.mxu0 %v6615_v16  ;;  %3046 = vmatpush1.bf16.msra.mxu1 %v6618_v17  ;;  %v6705_v16 = vld [vmem:[#allocation5 + $0xb50] ss:$48 sps:$4 sm:$0xff]   ;;  %v6708_v17 = vld [vmem:[#allocation5 + $0xb58] ss:$48 sps:$4 sm:$0xff]  }
 0x18d   : > { %2972 = vmatprep.subr.bf16.mxu0 %v6623_v18  ;;  %3058 = vmatprep.subr.bf16.mxu1 %v6626_v19  ;;  %v6713_v18 = vld [vmem:[#allocation5 + $0xbb4] ss:$48 sps:$4 sm:$0xff]   ;;  %v6716_v19 = vld [vmem:[#allocation5 + $0xbbc] ss:$48 sps:$4 sm:$0xff]  }
 0x18f   : > { %2962 = vmatmul.mubr.bf16.vlgmr.msra.gmra.mrb[4].mxu0 %v7767_v9  ;;  %3048 = vmatmul.mubr.bf16.vlgmr.msra.gmra.mrb[4].mxu1 %v7767_v9 }
 0x190   : > { %2973 = vmatpush1.bf16.msra.mxu0 %v6621_v20  ;;  %3059 = vmatpush1.bf16.msra.mxu1 %v6624_v21  ;;  %v6711_v20 = vld [vmem:[#allocation5 + $0xbb0] ss:$48 sps:$4 sm:$0xff]   ;;  %v6714_v21 = vld [vmem:[#allocation5 + $0xbb8] ss:$48 sps:$4 sm:$0xff]  }
 0x191   : > { %2974 = vmatprep.subr.bf16.mxu0 %v6629_v22  ;;  %3060 = vmatprep.subr.bf16.mxu1 %v6632_v23  ;;  %v6719_v22 = vld [vmem:[#allocation5 + $0x24] ss:$48 sps:$4 sm:$0xff]   ;;  %v6722_v23 = vld [vmem:[#allocation5 + $0x2c] ss:$48 sps:$4 sm:$0xff]  }
 0x192   : > { %3004 = vmatprep.mubr.bf16.mxu0 %v7773_v37  ;;  %3090 = vmatprep.mubr.bf16.mxu1 %v7773_v37 }
 0x194   : > { %2975 = vmatpush1.bf16.msra.mxu0 %v6627_v24  ;;  %3061 = vmatpush1.bf16.msra.mxu1 %v6630_v25  ;;  %v6717_v24 = vld [vmem:[#allocation5 + $0x20] ss:$48 sps:$4 sm:$0xff]   ;;  %v6720_v25 = vld [vmem:[#allocation5 + $0x28] ss:$48 sps:$4 sm:$0xff]  }
 0x195   : > { %2976 = vmatprep.subr.bf16.mxu0 %v6635_v26  ;;  %3062 = vmatprep.subr.bf16.mxu1 %v6638_v27  ;;  %v6725_v26 = vld [vmem:[#allocation5 + $0x84] ss:$48 sps:$4 sm:$0xff]   ;;  %v6728_v27 = vld [vmem:[#allocation5 + $0x8c] ss:$48 sps:$4 sm:$0xff]  }
 0x198   : > { %2977 = vmatpush1.bf16.msra.mxu0 %v6633_v28  ;;  %3063 = vmatpush1.bf16.msra.mxu1 %v6636_v29  ;;  %v6723_v28 = vld [vmem:[#allocation5 + $0x80] ss:$48 sps:$4 sm:$0xff]   ;;  %v6726_v29 = vld [vmem:[#allocation5 + $0x88] ss:$48 sps:$4 sm:$0xff]  }
 0x199   : > { %2978 = vmatprep.subr.bf16.mxu0 %v6641_v30  ;;  %3064 = vmatprep.subr.bf16.mxu1 %v6644_v31  ;;  %v6731_v30 = vld [vmem:[#allocation5 + $0xe4] ss:$48 sps:$4 sm:$0xff]   ;;  %v6734_v31 = vld [vmem:[#allocation5 + $0xec] ss:$48 sps:$4 sm:$0xff]  }
 0x19c   : > { %2979 = vmatpush1.bf16.msra.mxu0 %v6639_v32  ;;  %3065 = vmatpush1.bf16.msra.mxu1 %v6642_v33  ;;  %v6729_v32 = vld [vmem:[#allocation5 + $0xe0] ss:$48 sps:$4 sm:$0xff]   ;;  %v6732_v33 = vld [vmem:[#allocation5 + $0xe8] ss:$48 sps:$4 sm:$0xff]  }
 0x19d   : > { %2980 = vmatprep.subr.bf16.mxu0 %v6647_v34  ;;  %3066 = vmatprep.subr.bf16.mxu1 %v6650_v35  ;;  %v6737_v34 = vld [vmem:[#allocation5 + $0x144] ss:$48 sps:$4 sm:$0xff]   ;;  %v6740_v35 = vld [vmem:[#allocation5 + $0x14c] ss:$48 sps:$4 sm:$0xff]  }
 0x1a0   : > { %2981 = vmatpush1.bf16.msra.mxu0 %v6645_v36  ;;  %3067 = vmatpush1.bf16.msra.mxu1 %v6648_v38  ;;  %v6735_v36 = vld [vmem:[#allocation5 + $0x140] ss:$48 sps:$4 sm:$0xff]   ;;  %v6738_v38 = vld [vmem:[#allocation5 + $0x148] ss:$48 sps:$4 sm:$0xff]  }
 0x1a1   : > { %2982 = vmatprep.subr.bf16.mxu0 %v6653_v39  ;;  %3068 = vmatprep.subr.bf16.mxu1 %v6656_v40  ;;  %v6743_v39 = vld [vmem:[#allocation5 + $0x1a4] ss:$48 sps:$4 sm:$0xff]   ;;  %v6746_v40 = vld [vmem:[#allocation5 + $0x1ac] ss:$48 sps:$4 sm:$0xff]  }
 0x1a4   : > { %2983 = vmatpush1.bf16.msra.mxu0 %v6651_v41  ;;  %3069 = vmatpush1.bf16.msra.mxu1 %v6654_v42  ;;  %v6741_v41 = vld [vmem:[#allocation5 + $0x1a0] ss:$48 sps:$4 sm:$0xff]   ;;  %v6744_v42 = vld [vmem:[#allocation5 + $0x1a8] ss:$48 sps:$4 sm:$0xff]  }
 0x1a5   : > { %2984 = vmatprep.subr.bf16.mxu0 %v6659_v43  ;;  %3070 = vmatprep.subr.bf16.mxu1 %v6662_v44  ;;  %v6749_v43 = vld [vmem:[#allocation5 + $0x204] ss:$48 sps:$4 sm:$0xff]   ;;  %v6752_v44 = vld [vmem:[#allocation5 + $0x20c] ss:$48 sps:$4 sm:$0xff]  }
 0x1a8   : > { %2985 = vmatpush1.bf16.msra.mxu0 %v6657_v45  ;;  %3071 = vmatpush1.bf16.msra.mxu1 %v6660_v46  ;;  %v6750_v45 = vld [vmem:[#allocation5 + $0x208] ss:$48 sps:$4 sm:$0xff]   ;;  %v6755_v46 = vld [vmem:[#allocation5 + $0x264] ss:$48 sps:$4 sm:$0xff]  }
 0x1a9   : > { %2986 = vmatprep.subr.bf16.mxu0 %v6665_v47  ;;  %3072 = vmatprep.subr.bf16.mxu1 %v6668_v48  ;;  %v6758_v47 = vld [vmem:[#allocation5 + $0x26c] ss:$48 sps:$4 sm:$0xff]   ;;  %v6753_v48 = vld [vmem:[#allocation5 + $0x260] ss:$48 sps:$4 sm:$0xff]  }
 0x1ac   : > { %2987 = vmatpush1.bf16.msra.mxu0 %v6663_v49  ;;  %3073 = vmatpush1.bf16.msra.mxu1 %v6666_v51  ;;  %v6756_v49 = vld [vmem:[#allocation5 + $0x268] ss:$48 sps:$4 sm:$0xff]   ;;  %v6761_v51 = vld [vmem:[#allocation5 + $0x2c4] ss:$48 sps:$4 sm:$0xff]  }
 0x1ad   : > { %2988 = vmatprep.subr.bf16.mxu0 %v6671_v52  ;;  %3074 = vmatprep.subr.bf16.mxu1 %v6674_v53  ;;  %v6764_v52 = vld [vmem:[#allocation5 + $0x2cc] ss:$48 sps:$4 sm:$0xff]   ;;  %v6759_v53 = vld [vmem:[#allocation5 + $0x2c0] ss:$48 sps:$4 sm:$0xff]  }
 0x1b0   : > { %2989 = vmatpush1.bf16.msra.mxu0 %v6669_v54  ;;  %3075 = vmatpush1.bf16.msra.mxu1 %v6672_v55  ;;  %v6762_v54 = vld [vmem:[#allocation5 + $0x2c8] ss:$48 sps:$4 sm:$0xff]   ;;  %v6767_v55 = vld [vmem:[#allocation5 + $0x324] ss:$48 sps:$4 sm:$0xff]  }
 0x1b1   : > { %2990 = vmatprep.subr.bf16.mxu0 %v6677_v56  ;;  %3076 = vmatprep.subr.bf16.mxu1 %v6680_v57  ;;  %v6770_v56 = vld [vmem:[#allocation5 + $0x32c] ss:$48 sps:$4 sm:$0xff]   ;;  %v6765_v57 = vld [vmem:[#allocation5 + $0x320] ss:$48 sps:$4 sm:$0xff]  }
 0x1b4   : > { %2991 = vmatpush1.bf16.msra.mxu0 %v6675_v58  ;;  %3077 = vmatpush1.bf16.msra.mxu1 %v6678_v59  ;;  %v6768_v58 = vld [vmem:[#allocation5 + $0x328] ss:$48 sps:$4 sm:$0xff]   ;;  %v6773_v59 = vld [vmem:[#allocation5 + $0x384] ss:$48 sps:$4 sm:$0xff]  }
 0x1b5   : > { %2992 = vmatprep.subr.bf16.mxu0 %v6683_v60  ;;  %3078 = vmatprep.subr.bf16.mxu1 %v6686_v61  ;;  %v6776_v60 = vld [vmem:[#allocation5 + $0x38c] ss:$48 sps:$4 sm:$0xff]   ;;  %v6771_v61 = vld [vmem:[#allocation5 + $0x380] ss:$48 sps:$4 sm:$0xff]  }
 0x1b8   : > { %2993 = vmatpush1.bf16.msra.mxu0 %v6681_v62  ;;  %3079 = vmatpush1.bf16.msra.mxu1 %v6684_v63  ;;  %v6774_v62 = vld [vmem:[#allocation5 + $0x388] ss:$48 sps:$4 sm:$0xff]   ;;  %v6779_v63 = vld [vmem:[#allocation5 + $0x3e4] ss:$48 sps:$4 sm:$0xff]  }
 0x1b9   : > { %2994 = vmatprep.subr.bf16.mxu0 %v6689_v0  ;;  %3080 = vmatprep.subr.bf16.mxu1 %v6692_v1  ;;  %v6782_v0 = vld [vmem:[#allocation5 + $0x3ec] ss:$48 sps:$4 sm:$0xff]   ;;  %v6777_v1 = vld [vmem:[#allocation5 + $0x3e0] ss:$48 sps:$4 sm:$0xff]  }
 0x1bc   : > { %2995 = vmatpush1.bf16.msra.mxu0 %v6687_v2  ;;  %3081 = vmatpush1.bf16.msra.mxu1 %v6690_v3  ;;  %v6780_v2 = vld [vmem:[#allocation5 + $0x3e8] ss:$48 sps:$4 sm:$0xff]   ;;  %v6785_v3 = vld [vmem:[#allocation5 + $0x444] ss:$48 sps:$4 sm:$0xff]  }
 0x1bd   : > { %2996 = vmatprep.subr.bf16.mxu0 %v6695_v4  ;;  %3082 = vmatprep.subr.bf16.mxu1 %v6698_v5  ;;  %v6788_v4 = vld [vmem:[#allocation5 + $0x44c] ss:$48 sps:$4 sm:$0xff]   ;;  %v6783_v5 = vld [vmem:[#allocation5 + $0x440] ss:$48 sps:$4 sm:$0xff]  }
 0x1c0   : > { %2997 = vmatpush1.bf16.msra.mxu0 %v6693_v6  ;;  %3083 = vmatpush1.bf16.msra.mxu1 %v6696_v7  ;;  %v6786_v6 = vld [vmem:[#allocation5 + $0x448] ss:$48 sps:$4 sm:$0xff]   ;;  %v6791_v7 = vld [vmem:[#allocation5 + $0x4a4] ss:$48 sps:$4 sm:$0xff]  }
 0x1c1   : > { %2998 = vmatprep.subr.bf16.mxu0 %v6701_v8  ;;  %3084 = vmatprep.subr.bf16.mxu1 %v6704_v10  ;;  %v6794_v8 = vld [vmem:[#allocation5 + $0x4ac] ss:$48 sps:$4 sm:$0xff]   ;;  %v6789_v10 = vld [vmem:[#allocation5 + $0x4a0] ss:$48 sps:$4 sm:$0xff]  }
 0x1c4   : > { %2999 = vmatpush1.bf16.msra.mxu0 %v6699_v11  ;;  %3085 = vmatpush1.bf16.msra.mxu1 %v6702_v12  ;;  %v6792_v11 = vld [vmem:[#allocation5 + $0x4a8] ss:$48 sps:$4 sm:$0xff]   ;;  %v6797_v12 = vld [vmem:[#allocation5 + $0x504] ss:$48 sps:$4 sm:$0xff]  }
 0x1c5   : > { %3000 = vmatprep.subr.bf16.mxu0 %v6707_v13  ;;  %3086 = vmatprep.subr.bf16.mxu1 %v6710_v14  ;;  %v6800_v13 = vld [vmem:[#allocation5 + $0x50c] ss:$48 sps:$4 sm:$0xff]   ;;  %v6795_v14 = vld [vmem:[#allocation5 + $0x500] ss:$48 sps:$4 sm:$0xff]  }
 0x1c8   : > { %3001 = vmatpush1.bf16.msra.mxu0 %v6705_v16  ;;  %3087 = vmatpush1.bf16.msra.mxu1 %v6708_v17  ;;  %v6798_v16 = vld [vmem:[#allocation5 + $0x508] ss:$48 sps:$4 sm:$0xff]   ;;  %v6803_v17 = vld [vmem:[#allocation5 + $0x564] ss:$48 sps:$4 sm:$0xff]  }
 0x1c9   : > { %3002 = vmatprep.subr.bf16.mxu0 %v6713_v18  ;;  %3088 = vmatprep.subr.bf16.mxu1 %v6716_v19  ;;  %v6806_v18 = vld [vmem:[#allocation5 + $0x56c] ss:$48 sps:$4 sm:$0xff]   ;;  %v6801_v19 = vld [vmem:[#allocation5 + $0x560] ss:$48 sps:$4 sm:$0xff]  }
 0x1cc   : > { %3003 = vmatpush1.bf16.msra.mxu0 %v6711_v20  ;;  %3089 = vmatpush1.bf16.msra.mxu1 %v6714_v21  ;;  %v6804_v20 = vld [vmem:[#allocation5 + $0x568] ss:$48 sps:$4 sm:$0xff]   ;;  %v6809_v21 = vld [vmem:[#allocation5 + $0x5c4] ss:$48 sps:$4 sm:$0xff]  }
 0x1cd   : > { %3101 = vmatprep.subr.bf16.mxu0 %v6719_v22  ;;  %3187 = vmatprep.subr.bf16.mxu1 %v6722_v23  ;;  %v6812_v22 = vld [vmem:[#allocation5 + $0x5cc] ss:$48 sps:$4 sm:$0xff]   ;;  %v6807_v23 = vld [vmem:[#allocation5 + $0x5c0] ss:$48 sps:$4 sm:$0xff]  }
 0x1cf   : > { %3005 = vmatmul.mubr.bf16.vlgmr.msra.gmra.mrb[4].mxu0 %v7779_v15  ;;  %3091 = vmatmul.mubr.bf16.vlgmr.msra.gmra.mrb[4].mxu1 %v7779_v15 }
 0x1d0   : > { %3102 = vmatpush1.bf16.msra.mxu0 %v6717_v24  ;;  %3188 = vmatpush1.bf16.msra.mxu1 %v6720_v25  ;;  %v6810_v24 = vld [vmem:[#allocation5 + $0x5c8] ss:$48 sps:$4 sm:$0xff]   ;;  %v6815_v25 = vld [vmem:[#allocation5 + $0x624] ss:$48 sps:$4 sm:$0xff]  }
 0x1d1   : > { %3103 = vmatprep.subr.bf16.mxu0 %v6725_v26  ;;  %3189 = vmatprep.subr.bf16.mxu1 %v6728_v27  ;;  %v6818_v26 = vld [vmem:[#allocation5 + $0x62c] ss:$48 sps:$4 sm:$0xff]   ;;  %v6813_v27 = vld [vmem:[#allocation5 + $0x620] ss:$48 sps:$4 sm:$0xff]  }
 0x1d2   : > { %3133 = vmatprep.mubr.bf16.mxu0 %v7761_v50  ;;  %3219 = vmatprep.mubr.bf16.mxu1 %v7761_v50  ;;  %v6747_v50 = vld [vmem:[#allocation5 + $0x200] ss:$48 sps:$4 sm:$0xff]  }
 0x1d4   : > { %3104 = vmatpush1.bf16.msra.mxu0 %v6723_v28  ;;  %3190 = vmatpush1.bf16.msra.mxu1 %v6726_v29  ;;  %v6816_v28 = vld [vmem:[#allocation5 + $0x628] ss:$48 sps:$4 sm:$0xff]   ;;  %v6821_v29 = vld [vmem:[#allocation5 + $0x684] ss:$48 sps:$4 sm:$0xff]  }
 0x1d5   : > { %3105 = vmatprep.subr.bf16.mxu0 %v6731_v30  ;;  %3191 = vmatprep.subr.bf16.mxu1 %v6734_v31  ;;  %v6824_v30 = vld [vmem:[#allocation5 + $0x68c] ss:$48 sps:$4 sm:$0xff]   ;;  %v6819_v31 = vld [vmem:[#allocation5 + $0x680] ss:$48 sps:$4 sm:$0xff]  }
 0x1d8   : > { %3106 = vmatpush1.bf16.msra.mxu0 %v6729_v32  ;;  %3192 = vmatpush1.bf16.msra.mxu1 %v6732_v33  ;;  %v6822_v32 = vld [vmem:[#allocation5 + $0x688] ss:$48 sps:$4 sm:$0xff]   ;;  %v6827_v33 = vld [vmem:[#allocation5 + $0x6e4] ss:$48 sps:$4 sm:$0xff]  }
 0x1d9   : > { %3107 = vmatprep.subr.bf16.mxu0 %v6737_v34  ;;  %3193 = vmatprep.subr.bf16.mxu1 %v6740_v35  ;;  %v6830_v34 = vld [vmem:[#allocation5 + $0x6ec] ss:$48 sps:$4 sm:$0xff]   ;;  %v777_v35 = vlaneseq }
 0x1dc   : > { %3108 = vmatpush1.bf16.msra.mxu0 %v6735_v36  ;;  %3194 = vmatpush1.bf16.msra.mxu1 %v6738_v38  ;;  %v6825_v36 = vld [vmem:[#allocation5 + $0x6e0] ss:$48 sps:$4 sm:$0xff]   ;;  %v6828_v38 = vld [vmem:[#allocation5 + $0x6e8] ss:$48 sps:$4 sm:$0xff]  }
 0x1dd   : > { %3109 = vmatprep.subr.bf16.mxu0 %v6743_v39  ;;  %3195 = vmatprep.subr.bf16.mxu1 %v6746_v40  ;;  %v6836_v39 = vld [vmem:[#allocation5 + $0x74c] ss:$48 sps:$4 sm:$0xff]   ;;  %v7797_v40 = vshrl.u32 %v777_v35, 7  ;;  %v6855_v35 = vld [vmem:[#allocation5 + $0x8c0] ss:$48 sps:$4 sm:$0xff]  }
 0x1e0   : > { %3110 = vmatpush1.bf16.msra.mxu0 %v6741_v41  ;;  %3196 = vmatpush1.bf16.msra.mxu1 %v6744_v42  ;;  %v6831_v41 = vld [vmem:[#allocation5 + $0x740] ss:$48 sps:$4 sm:$0xff]   ;;  %v6834_v42 = vld [vmem:[#allocation5 + $0x748] ss:$48 sps:$4 sm:$0xff]  }
 0x1e1   : > { %3111 = vmatprep.subr.bf16.mxu0 %v6749_v43  ;;  %3197 = vmatprep.subr.bf16.mxu1 %v6752_v44  ;;  %v6839_v43 = vld [vmem:[#allocation5 + $0x7a4] ss:$48 sps:$4 sm:$0xff]   ;;  %v6842_v44 = vld [vmem:[#allocation5 + $0x7ac] ss:$48 sps:$4 sm:$0xff]  }
 0x1e4   : > { %3112 = vmatpush1.bf16.msra.mxu0 %v6747_v50  ;;  %3198 = vmatpush1.bf16.msra.mxu1 %v6750_v45  ;;  %v7802_v50 = vsub.s32 0, %v7797_v40  ;;  %v7805_v45 = vsub.s32 2, %v7797_v40 }
 0x1e5   : > { %3113 = vmatprep.subr.bf16.mxu0 %v6755_v46  ;;  %3199 = vmatprep.subr.bf16.mxu1 %v6758_v47  ;;  %v7808_v46 = vsub.s32 1, %v7797_v40  ;;  %v7811_v47 = vsub.s32 3, %v7797_v40 }
 0x1e8   : > { %3114 = vmatpush1.bf16.msra.mxu0 %v6753_v48  ;;  %3200 = vmatpush1.bf16.msra.mxu1 %v6756_v49  ;;  %v7436_v48 = vmov 1983009808  }
 0x1e9   : > { %3115 = vmatprep.subr.bf16.mxu0 %v6761_v51  ;;  %3201 = vmatprep.subr.bf16.mxu1 %v6764_v52  ;;  %v3286_v49 = vunpack.c.l.s4 %v7436_v48  ;;  %v6837_v51 = vld [vmem:[#allocation5 + $0x7a0] ss:$48 sps:$4 sm:$0xff]   ;;  %v6840_v52 = vld [vmem:[#allocation5 + $0x7a8] ss:$48 sps:$4 sm:$0xff]  }
 0x1ec   : > { %3116 = vmatpush1.bf16.msra.mxu0 %v6759_v53  ;;  %3202 = vmatpush1.bf16.msra.mxu1 %v6762_v54  ;;  %v6845_v53 = vld [vmem:[#allocation5 + $0x804] ss:$48 sps:$4 sm:$0xff]   ;;  %v6848_v54 = vld [vmem:[#allocation5 + $0x80c] ss:$48 sps:$4 sm:$0xff]  }
 0x1ed   : > { %3117 = vmatprep.subr.bf16.mxu0 %v6767_v55  ;;  %3203 = vmatprep.subr.bf16.mxu1 %v6770_v56 }
 0x1f0   : > { %3118 = vmatpush1.bf16.msra.mxu0 %v6765_v57  ;;  %3204 = vmatpush1.bf16.msra.mxu1 %v6768_v58  ;;  %v7437_v57 = vmov 1966171168  }
 0x1f1   : > { %3119 = vmatprep.subr.bf16.mxu0 %v6773_v59  ;;  %3205 = vmatprep.subr.bf16.mxu1 %v6776_v60  ;;  %v3362_v58 = vunpack.c.l.s4 %v7437_v57  ;;  %v3287_v60 = vunpack.c.0.s8 %v3286_v49  ;;  %v6863_v49 = vld [vmem:[#allocation5 + $0x924] ss:$48 sps:$4 sm:$0xff]  }
 0x1f4   : > { %3120 = vmatpush1.bf16.msra.mxu0 %v6771_v61  ;;  %3206 = vmatpush1.bf16.msra.mxu1 %v6774_v62  ;;  %v6843_v62 = vld [vmem:[#allocation5 + $0x800] ss:$48 sps:$4 sm:$0xff]  }
 0x1f5   : > { %3121 = vmatprep.subr.bf16.mxu0 %v6779_v63  ;;  %3207 = vmatprep.subr.bf16.mxu1 %v6782_v0  ;;  %v6846_v63 = vld [vmem:[#allocation5 + $0x808] ss:$48 sps:$4 sm:$0xff]   ;;  %v6851_v0 = vld [vmem:[#allocation5 + $0x864] ss:$48 sps:$4 sm:$0xff]  }
 0x1f8   : > { %3122 = vmatpush1.bf16.msra.mxu0 %v6777_v1  ;;  %3208 = vmatpush1.bf16.msra.mxu1 %v6780_v2  ;;  %v6854_v1 = vld [vmem:[#allocation5 + $0x86c] ss:$48 sps:$4 sm:$0xff]  }
 0x1f9   : > { %3123 = vmatprep.subr.bf16.mxu0 %v6785_v3  ;;  %3209 = vmatprep.subr.bf16.mxu1 %v6788_v4 }
 0x1fc   : > { %3124 = vmatpush1.bf16.msra.mxu0 %v6783_v5  ;;  %3210 = vmatpush1.bf16.msra.mxu1 %v6786_v6 }
 0x1fd   : > { %3125 = vmatprep.subr.bf16.mxu0 %v6791_v7  ;;  %3211 = vmatprep.subr.bf16.mxu1 %v6794_v8  ;;  %v3363_v8 = vunpack.c.0.s8 %v3362_v58 }
 0x200   : > { %3126 = vmatpush1.bf16.msra.mxu0 %v6789_v10  ;;  %3212 = vmatpush1.bf16.msra.mxu1 %v6792_v11  ;;  %v7822_v11 = vsub.s32 %v3287_v60, %v7797_v40  ;;  %v6861_v60 = vld [vmem:[#allocation5 + $0x920] ss:$48 sps:$4 sm:$0xff]  }
 0x201   : > { %3127 = vmatprep.subr.bf16.mxu0 %v6797_v12  ;;  %3213 = vmatprep.subr.bf16.mxu1 %v6800_v13 }
 0x204   : > { %3128 = vmatpush1.bf16.msra.mxu0 %v6795_v14  ;;  %3214 = vmatpush1.bf16.msra.mxu1 %v6798_v16  ;;  %v6849_v16 = vld [vmem:[#allocation5 + $0x860] ss:$48 sps:$4 sm:$0xff]  }
 0x205   : > { %3129 = vmatprep.subr.bf16.mxu0 %v6803_v17  ;;  %3215 = vmatprep.subr.bf16.mxu1 %v6806_v18 }
 0x208   : > { %3130 = vmatpush1.bf16.msra.mxu0 %v6801_v19  ;;  %3216 = vmatpush1.bf16.msra.mxu1 %v6804_v20 }
 0x209   : > { %3131 = vmatprep.subr.bf16.mxu0 %v6809_v21  ;;  %3217 = vmatprep.subr.bf16.mxu1 %v6812_v22  ;;  %v6852_v21 = vld [vmem:[#allocation5 + $0x868] ss:$48 sps:$4 sm:$0xff]  }
 0x20c   : > { %3132 = vmatpush1.bf16.msra.mxu0 %v6807_v23  ;;  %3218 = vmatpush1.bf16.msra.mxu1 %v6810_v24 }
 0x20d   : > { %3144 = vmatprep.subr.bf16.mxu0 %v6815_v25  ;;  %3230 = vmatprep.subr.bf16.mxu1 %v6818_v26  ;;  %v6857_v26 = vld [vmem:[#allocation5 + $0x8c4] ss:$48 sps:$4 sm:$0xff]  }
 0x20f   : > { %3134 = vmatmul.mubr.bf16.vlgmr.msra.gmra.mrb[8].mxu0 %v7767_v9  ;;  %3220 = vmatmul.mubr.bf16.vlgmr.msra.gmra.mrb[8].mxu1 %v7767_v9  ;;  %v6833_v9 = vld [vmem:[#allocation5 + $0x744] ss:$48 sps:$4 sm:$0xff]  }
 0x210   : > { %3145 = vmatpush1.bf16.msra.mxu0 %v6813_v27  ;;  %3231 = vmatpush1.bf16.msra.mxu1 %v6816_v28  ;;  %v7825_v27 = vsub.s32 %v3363_v8, %v7797_v40 }
 0x211   : > { %3146 = vmatprep.subr.bf16.mxu0 %v6821_v29  ;;  %3232 = vmatprep.subr.bf16.mxu1 %v6824_v30  ;;  %v6860_v30 = vld [vmem:[#allocation5 + $0x8cc] ss:$48 sps:$4 sm:$0xff]  }
 0x212   : > { %3176 = vmatprep.mubr.bf16.mxu0 %v7773_v37  ;;  %3262 = vmatprep.mubr.bf16.mxu1 %v7773_v37  ;;  %v7799_v37 = vld [vmem:[#allocation7] sm:$0xff] }
 0x213   : > { %v780_v55 = vrot.slane %v7799_v37, %v7802_v50  ;;  %v788_v56 = vrot.slane %v7799_v37, %v7805_v45  ;;  %v784_v59 = vrot.slane %v7799_v37, %v7808_v46  ;;  %v792_v61 = vrot.slane %v7799_v37, %v7811_v47 }
 0x214   : > { %3147 = vmatpush1.bf16.msra.mxu0 %v6819_v31  ;;  %3233 = vmatpush1.bf16.msra.mxu1 %v6822_v32 }
 0x215   : > { %3148 = vmatprep.subr.bf16.mxu0 %v6827_v33  ;;  %3234 = vmatprep.subr.bf16.mxu1 %v6830_v34 }
 0x218   : > { %3149 = vmatpush1.bf16.msra.mxu0 %v6825_v36  ;;  %3235 = vmatpush1.bf16.msra.mxu1 %v6828_v38 }
 0x219   : > { %3150 = vmatprep.subr.bf16.mxu0 %v6833_v9  ;;  %3236 = vmatprep.subr.bf16.mxu1 %v6836_v39 }
 0x21c   : > { %3151 = vmatpush1.bf16.msra.mxu0 %v6831_v41  ;;  %3237 = vmatpush1.bf16.msra.mxu1 %v6834_v42  ;;  %v6858_v41 = vld [vmem:[#allocation5 + $0x8c8] ss:$48 sps:$4 sm:$0xff]  }
 0x21d   : > { %3152 = vmatprep.subr.bf16.mxu0 %v6839_v43  ;;  %3238 = vmatprep.subr.bf16.mxu1 %v6842_v44 }
 0x220   : > { %3153 = vmatpush1.bf16.msra.mxu0 %v6837_v51  ;;  %3239 = vmatpush1.bf16.msra.mxu1 %v6840_v52  ;;  %v6866_v51 = vld [vmem:[#allocation5 + $0x92c] ss:$48 sps:$4 sm:$0xff]  }
 0x221   : > { %3154 = vmatprep.subr.bf16.mxu0 %v6845_v53  ;;  %3240 = vmatprep.subr.bf16.mxu1 %v6848_v54 }
 0x222   : > { %v2834_v2 = vpop.f32.mrb[0].mxu0  ;;  %v2920_v3 = vpop.f32.mrb[0].mxu1 }
 0x223   : > { %v6149_v4 = vadd.f32 %v2834_v2, %v780_v55  ;;  %v6153_v5 = vadd.f32 %v2920_v3, %v788_v56  ;;  %v2836_v6 = vpop.f32.mrb[1].mxu0  ;;  %v2922_v7 = vpop.f32.mrb[1].mxu1  ;;  %v6869_v2 = vld [vmem:[#allocation5 + $0x984] ss:$48 sps:$4 sm:$0xff]   ;;  %v6872_v3 = vld [vmem:[#allocation5 + $0x98c] ss:$48 sps:$4 sm:$0xff]  }
 0x224   : > { %v6150_v10 = vadd.f32 %v2836_v6, %v784_v59  ;;  %v6154_v12 = vadd.f32 %v2922_v7, %v792_v61  ;;  %v2838_v13 = vpop.f32.mrb[2].mxu0  ;;  %v2924_v14 = vpop.f32.mrb[2].mxu1  ;;  %3155 = vmatpush1.bf16.msra.mxu0 %v6843_v62  ;;  %3241 = vmatpush1.bf16.msra.mxu1 %v6846_v63 }
 0x225   : > { %v6151_v17 = vadd.f32 %v2838_v13, %v780_v55  ;;  %v6155_v18 = vadd.f32 %v2924_v14, %v788_v56  ;;  %v2840_v19 = vpop.f32.mrb[3].mxu0  ;;  %v2926_v20 = vpop.f32.mrb[3].mxu1  ;;  %3156 = vmatprep.subr.bf16.mxu0 %v6851_v0  ;;  %3242 = vmatprep.subr.bf16.mxu1 %v6854_v1  ;;  %v6864_v1 = vld [vmem:[#allocation5 + $0x928] ss:$48 sps:$4 sm:$0xff]   ;;  %v6875_v14 = vld [vmem:[#allocation5 + $0x9e4] ss:$48 sps:$4 sm:$0xff]  }
 0x226   : > { %v3281_v22 = vcombine.low %v6149_v4, %v6150_v10  ;;  %v3282_v23 = vcombine.high %v6149_v4, %v6150_v10  ;;  %v3283_v24 = vcombine.low %v6153_v5, %v6154_v12  ;;  %v3284_v25 = vcombine.high %v6153_v5, %v6154_v12  ;;  %v6867_v12 = vld [vmem:[#allocation5 + $0x980] ss:$48 sps:$4 sm:$0xff]   ;;  %v6870_v13 = vld [vmem:[#allocation5 + $0x988] ss:$48 sps:$4 sm:$0xff]  }
 0x227   : > { %v6152_v28 = vadd.f32 %v2840_v19, %v784_v59  ;;  %v6156_v29 = vadd.f32 %v2926_v20, %v792_v61  ;;  %v6873_v19 = vld [vmem:[#allocation5 + $0x9e0] ss:$48 sps:$4 sm:$0xff]   ;;  %v6876_v20 = vld [vmem:[#allocation5 + $0x9e8] ss:$48 sps:$4 sm:$0xff]  }
 0x228   : > { %v3291_v31 = vrot.slane %v3281_v22, %v7822_v11  ;;  %v3298_v32 = vrot.slane %v3282_v23, %v7822_v11  ;;  %v3305_v33 = vrot.slane %v3283_v24, %v7822_v11  ;;  %v3312_v34 = vrot.slane %v3284_v25, %v7822_v11  ;;  %3157 = vmatpush1.bf16.msra.mxu0 %v6849_v16  ;;  %v6884_v22 = vld [vmem:[#allocation5 + $0xa4c] ss:$48 sps:$4 sm:$0xff]   ;;  %v6879_v23 = vld [vmem:[#allocation5 + $0xa40] ss:$48 sps:$4 sm:$0xff]   ;;  %v6882_v24 = vld [vmem:[#allocation5 + $0xa48] ss:$48 sps:$4 sm:$0xff]  }
 0x229   : > { %v3317_v36 = vcombine.low %v6151_v17, %v6152_v28  ;;  %v3318_v38 = vcombine.high %v6151_v17, %v6152_v28  ;;  %v3319_v9 = vcombine.low %v6155_v18, %v6156_v29  ;;  %v3320_v39 = vcombine.high %v6155_v18, %v6156_v29  ;;  %3243 = vmatpush1.bf16.msra.mxu1 %v6852_v21  ;;  %v6878_v18 = vld [vmem:[#allocation5 + $0x9ec] ss:$48 sps:$4 sm:$0xff]   ;;  %v6881_v21 = vld [vmem:[#allocation5 + $0xa44] ss:$48 sps:$4 sm:$0xff]   ;;  %v6885_v28 = vld [vmem:[#allocation5 + $0xaa0] ss:$48 sps:$4 sm:$0xff]  }
 0x22a   : > { %v3313_v42 = vcombine.low %v3291_v31, %v3305_v33  ;;  %v3314_v43 = vcombine.high %v3291_v31, %v3305_v33  ;;  %v3315_v44 = vcombine.low %v3298_v32, %v3312_v34  ;;  %v3316_v48 = vcombine.high %v3298_v32, %v3312_v34  ;;  %3158 = vmatprep.subr.bf16.mxu0 %v6857_v26  ;;  %v6887_v25 = vld [vmem:[#allocation5 + $0xaa4] ss:$48 sps:$4 sm:$0xff]   ;;  %v6890_v26 = vld [vmem:[#allocation5 + $0xaac] ss:$48 sps:$4 sm:$0xff]   ;;  %v6888_v29 = vld [vmem:[#allocation5 + $0xaa8] ss:$48 sps:$4 sm:$0xff]  }
 0x22b   : > { %v3327_v52 = vrot.slane %v3317_v36, %v7822_v11  ;;  %v3334_v53 = vrot.slane %v3318_v38, %v7822_v11  ;;  %v3341_v54 = vrot.slane %v3319_v9, %v7822_v11  ;;  %v3348_v55 = vrot.slane %v3320_v39, %v7822_v11  ;;  %3244 = vmatprep.subr.bf16.mxu1 %v6860_v30  ;;  %v6893_v30 = vld [vmem:[#allocation5 + $0xb04] ss:$48 sps:$4 sm:$0xff]   ;;  %v6896_v31 = vld [vmem:[#allocation5 + $0xb0c] ss:$48 sps:$4 sm:$0xff]   ;;  %v6891_v32 = vld [vmem:[#allocation5 + $0xb00] ss:$48 sps:$4 sm:$0xff]  }
 0x22c   : > { %v7836_v56 = vrot.slane %v3313_v42, %v7825_v27  ;;  %v7839_v57 = vrot.slane %v3314_v43, %v7825_v27  ;;  %v7842_v58 = vrot.slane %v3315_v44, %v7825_v27  ;;  %v7845_v59 = vrot.slane %v3316_v48, %v7825_v27  ;;  %3159 = vmatpush1.bf16.msra.mxu0 %v6855_v35  ;;  %v6894_v33 = vld [vmem:[#allocation5 + $0xb08] ss:$48 sps:$4 sm:$0xff]   ;;  %v6899_v34 = vld [vmem:[#allocation5 + $0xb64] ss:$48 sps:$4 sm:$0xff]   ;;  %v6902_v35 = vld [vmem:[#allocation5 + $0xb6c] ss:$48 sps:$4 sm:$0xff]  }
 0x22d   : > { %v3349_v61 = vcombine.low %v3327_v52, %v3341_v54  ;;  %v3350_v62 = vcombine.high %v3327_v52, %v3341_v54  ;;  %v3351_v63 = vcombine.low %v3334_v53, %v3348_v55  ;;  %v3352_v0 = vcombine.high %v3334_v53, %v3348_v55  ;;  %3245 = vmatpush1.bf16.msra.mxu1 %v6858_v41  ;;  %v6897_v36 = vld [vmem:[#allocation5 + $0xb60] ss:$48 sps:$4 sm:$0xff]   ;;  %v6900_v38 = vld [vmem:[#allocation5 + $0xb68] ss:$48 sps:$4 sm:$0xff]   ;;  %v6905_v9 = vld [vmem:[#allocation5 + $0xbc4] ss:$48 sps:$4 sm:$0xff]  }
 0x22e   : > { %3160 = vmatprep.subr.bf16.mxu0 %v6863_v49  ;;  %3246 = vmatprep.subr.bf16.mxu1 %v6866_v51  ;;  %v3417_v4 = vpack.c.bf16 %v7839_v57, %v7836_v56  ;;  %v3418_v5 = vpack.c.bf16 %v7845_v59, %v7842_v58  ;;  %v6908_v39 = vld [vmem:[#allocation5 + $0xbcc] ss:$48 sps:$4 sm:$0xff]   ;;  %v6903_v41 = vld [vmem:[#allocation5 + $0xbc0] ss:$48 sps:$4 sm:$0xff]   ;;  %v6906_v42 = vld [vmem:[#allocation5 + $0xbc8] ss:$48 sps:$4 sm:$0xff]  }
 0x22f   : > { %v7852_v6 = vrot.slane %v3349_v61, %v7825_v27  ;;  %v7855_v7 = vrot.slane %v3350_v62, %v7825_v27  ;;  %v7858_v8 = vrot.slane %v3351_v63, %v7825_v27  ;;  %v7861_v10 = vrot.slane %v3352_v0, %v7825_v27  ;;  %v774_v56 = vld [vmem:[#allocation7 + $0x8] sm:$0xf] }
 0x230   : > { %3161 = vmatpush1.bf16.msra.mxu0 %v6861_v60  ;;  %v7438_v43 = vmov 0.0   ;;  %v795_v44 = vsub.s32 4, %v7797_v40  ;;  %v803_v48 = vsub.s32 6, %v7797_v40  ;;  %v799_v49 = vsub.s32 5, %v7797_v40 }
 0x231   : > { %3247 = vmatpush1.bf16.msra.mxu1 %v6864_v1  ;;  %3162 = vmatprep.subr.bf16.mxu0 %v6869_v2  ;;  %v3419_v16 = vpack.c.bf16 %v7855_v7, %v7852_v6  ;;  %v3420_v17 = vpack.c.bf16 %v7861_v10, %v7858_v8  ;;  %v807_v51 = vsub.s32 7, %v7797_v40  ;;  %v812_v57 = vrot.slane %v774_v56, %v7802_v50 }
 0x232   : > { %3248 = vmatprep.subr.bf16.mxu1 %v6872_v3  ;;  %v796_v52 = vrot.slane %v7799_v37, %v795_v44  ;;  %v804_v53 = vrot.slane %v7799_v37, %v803_v48  ;;  %v820_v58 = vrot.slane %v774_v56, %v7805_v45  ;;  %v816_v59 = vrot.slane %v774_v56, %v7808_v46 }
 0x233   : > { %v808_v54 = vrot.slane %v7799_v37, %v807_v51 }
 0x234   : > { %3163 = vmatpush1.bf16.msra.mxu0 %v6867_v12 }
 0x235   : > { %3249 = vmatpush1.bf16.msra.mxu1 %v6870_v13  ;;  %3164 = vmatprep.subr.bf16.mxu0 %v6875_v14 }
 0x236   : > { %3250 = vmatprep.subr.bf16.mxu1 %v6878_v18 }
 0x238   : > { %3165 = vmatpush1.bf16.msra.mxu0 %v6873_v19 }
 0x239   : > { %3251 = vmatpush1.bf16.msra.mxu1 %v6876_v20  ;;  %3166 = vmatprep.subr.bf16.mxu0 %v6881_v21 }
 0x23a   : > { %3252 = vmatprep.subr.bf16.mxu1 %v6884_v22 }
 0x23c   : > { %3167 = vmatpush1.bf16.msra.mxu0 %v6879_v23 }
 0x23d   : > { %3253 = vmatpush1.bf16.msra.mxu1 %v6882_v24  ;;  %3168 = vmatprep.subr.bf16.mxu0 %v6887_v25 }
 0x23e   : > { %3254 = vmatprep.subr.bf16.mxu1 %v6890_v26 }
 0x240   : > { %3169 = vmatpush1.bf16.msra.mxu0 %v6885_v28 }
 0x241   : > { %3255 = vmatpush1.bf16.msra.mxu1 %v6888_v29  ;;  %3170 = vmatprep.subr.bf16.mxu0 %v6893_v30 }
 0x242   : > { %3256 = vmatprep.subr.bf16.mxu1 %v6896_v31 }
 0x244   : > { %3171 = vmatpush1.bf16.msra.mxu0 %v6891_v32 }
 0x245   : > { %3257 = vmatpush1.bf16.msra.mxu1 %v6894_v33  ;;  %3172 = vmatprep.subr.bf16.mxu0 %v6899_v34 }
 0x246   : > { %3258 = vmatprep.subr.bf16.mxu1 %v6902_v35 }
 0x248   : > { %3173 = vmatpush1.bf16.msra.mxu0 %v6897_v36 }
 0x249   : > { %3259 = vmatpush1.bf16.msra.mxu1 %v6900_v38  ;;  %3174 = vmatprep.subr.bf16.mxu0 %v6905_v9 }
 0x24a   : > { %3260 = vmatprep.subr.bf16.mxu1 %v6908_v39 }
 0x24c   : > { %3175 = vmatpush1.bf16.msra.mxu0 %v6903_v41 }
 0x24d   : > { %3261 = vmatpush1.bf16.msra.mxu1 %v6906_v42  ;;  %6101 = vmatprep.subr.bf16.mxu0 %v7438_v43 }
 0x24e   : > { %6107 = vmatprep.subr.bf16.mxu1 %v7438_v43 }
 0x24f   : > { %3177 = vmatmul.mubr.bf16.vlgmr.msra.gmra.mrb[8].mxu0 %v7779_v15 }
 0x250   : > { %3263 = vmatmul.mubr.bf16.vlgmr.msra.gmra.mrb[8].mxu1 %v7779_v15  ;;  %6103 = vmatprep.mubr.msk.bf16.mxu0 %vm7439_vm0, %v7438_v43  ;;  %v800_v15 = vrot.slane %v7799_v37, %v799_v49 }
 0x251   : > { %6109 = vmatprep.mubr.msk.bf16.mxu1 %vm7439_vm0, %v7438_v43 }
 0x2a2   : > { %v3006_v55 = vpop.f32.mrb[4].mxu0  ;;  %v3092_v60 = vpop.f32.mrb[4].mxu1 }
 0x2a3   : > { %v6157_v61 = vadd.f32 %v3006_v55, %v796_v52  ;;  %v6161_v62 = vadd.f32 %v3092_v60, %v804_v53  ;;  %v3008_v63 = vpop.f32.mrb[5].mxu0  ;;  %v3094_v0 = vpop.f32.mrb[5].mxu1 }
 0x2a4   : > { %v6158_v1 = vadd.f32 %v3008_v63, %v800_v15  ;;  %v6162_v2 = vadd.f32 %v3094_v0, %v808_v54  ;;  %v3010_v3 = vpop.f32.mrb[6].mxu0  ;;  %v3096_v12 = vpop.f32.mrb[6].mxu1 }
 0x2a5   : > { %v6159_v13 = vadd.f32 %v3010_v3, %v796_v52  ;;  %v6163_v14 = vadd.f32 %v3096_v12, %v804_v53  ;;  %v3012_v18 = vpop.f32.mrb[7].mxu0  ;;  %v3098_v19 = vpop.f32.mrb[7].mxu1 }
 0x2a6   : > { %v3429_v20 = vcombine.low %v6157_v61, %v6158_v1  ;;  %v3430_v21 = vcombine.high %v6157_v61, %v6158_v1  ;;  %v3431_v22 = vcombine.low %v6161_v62, %v6162_v2  ;;  %v3432_v23 = vcombine.high %v6161_v62, %v6162_v2 }
 0x2a7   : > { %v6160_v24 = vadd.f32 %v3012_v18, %v800_v15  ;;  %v6164_v37 = vadd.f32 %v3098_v19, %v808_v54 }
 0x2a8   : > { %v3439_v25 = vrot.slane %v3429_v20, %v7822_v11  ;;  %v3446_v26 = vrot.slane %v3430_v21, %v7822_v11  ;;  %v3453_v28 = vrot.slane %v3431_v22, %v7822_v11  ;;  %v3460_v29 = vrot.slane %v3432_v23, %v7822_v11 }
 0x2a9   : > { %v3465_v30 = vcombine.low %v6159_v13, %v6160_v24  ;;  %v3466_v31 = vcombine.high %v6159_v13, %v6160_v24  ;;  %v3467_v32 = vcombine.low %v6163_v14, %v6164_v37  ;;  %v3468_v33 = vcombine.high %v6163_v14, %v6164_v37 }
 0x2aa   : > { %v3461_v34 = vcombine.low %v3439_v25, %v3453_v28  ;;  %v3462_v35 = vcombine.high %v3439_v25, %v3453_v28  ;;  %v3463_v36 = vcombine.low %v3446_v26, %v3460_v29  ;;  %v3464_v38 = vcombine.high %v3446_v26, %v3460_v29 }
 0x2ab   : > { %v3475_v9 = vrot.slane %v3465_v30, %v7822_v11  ;;  %v3482_v39 = vrot.slane %v3466_v31, %v7822_v11  ;;  %v3489_v41 = vrot.slane %v3467_v32, %v7822_v11  ;;  %v3496_v42 = vrot.slane %v3468_v33, %v7822_v11 }
 0x2ac   : > { %v3515_v44 = vrot.slane %v3461_v34, %v7825_v27  ;;  %v3522_v48 = vrot.slane %v3462_v35, %v7825_v27  ;;  %v3529_v49 = vrot.slane %v3463_v36, %v7825_v27  ;;  %v3536_v51 = vrot.slane %v3464_v38, %v7825_v27 }
 0x2ad   : > { %v3497_v52 = vcombine.low %v3475_v9, %v3489_v41  ;;  %v3498_v53 = vcombine.high %v3475_v9, %v3489_v41  ;;  %v3499_v15 = vcombine.low %v3482_v39, %v3496_v42  ;;  %v3500_v54 = vcombine.high %v3482_v39, %v3496_v42 }
 0x2ae   : > { %v3565_v55 = vpack.c.bf16 %v3522_v48, %v3515_v44  ;;  %v3566_v60 = vpack.c.bf16 %v3536_v51, %v3529_v49 }
 0x2af   : > { %v3543_v61 = vrot.slane %v3497_v52, %v7825_v27  ;;  %v3550_v62 = vrot.slane %v3498_v53, %v7825_v27  ;;  %v3557_v63 = vrot.slane %v3499_v15, %v7825_v27  ;;  %v3564_v0 = vrot.slane %v3500_v54, %v7825_v27 }
 0x2b0   : > { %6102 = vmatpush3.bf16.xpose.msra.mxu0 %v3565_v55  ;;  %6108 = vmatpush3.bf16.xpose.msra.mxu1 %v3566_v60 }
 0x2b1   : > { %6113 = vmatprep.subr.bf16.mxu0 %v7438_v43  ;;  %6119 = vmatprep.subr.bf16.mxu1 %v7438_v43  ;;  %v3567_v1 = vpack.c.bf16 %v3550_v62, %v3543_v61  ;;  %v3568_v2 = vpack.c.bf16 %v3564_v0, %v3557_v63 }
 0x2b7   : > { %6104 = vmatmul.mubr.bf16.vlgmr.msra.gmra.mrb[12].mxu0 %v3417_v4  ;;  %6110 = vmatmul.mubr.bf16.vlgmr.msra.gmra.mrb[12].mxu1 %v3418_v5  ;;  %v824_v4 = vrot.slane %v774_v56, %v7811_v47 }
 0x2b8   : > { %6114 = vmatpush3.bf16.xpose.msra.mxu0 %v3567_v1  ;;  %6120 = vmatpush3.bf16.xpose.msra.mxu1 %v3568_v2 }
 0x2b9   : > { %6115 = vmatprep.mubr.msk.bf16.mxu0 %vm7439_vm0, %v7438_v43  ;;  %6121 = vmatprep.mubr.msk.bf16.mxu1 %vm7439_vm0, %v7438_v43 }
 0x2ba   : > { %6125 = vmatprep.subr.bf16.mxu0 %v7438_v43  ;;  %6131 = vmatprep.subr.bf16.mxu1 %v7438_v43 }
 0x2bf   : > { %6116 = vmatmul.mubr.bf16.vlgmr.msra.gmra.mrb[16].mxu0 %v3419_v16  ;;  %6122 = vmatmul.mubr.bf16.vlgmr.msra.gmra.mrb[16].mxu1 %v3420_v17 }
 0x2c0   : > { %6127 = vmatprep.mubr.msk.bf16.mxu0 %vm7439_vm0, %v7438_v43  ;;  %6133 = vmatprep.mubr.msk.bf16.mxu1 %vm7439_vm0, %v7438_v43 }
 0x322   : > { %v3178_v5 = vpop.f32.mrb[8].mxu0 }
 0x323   : > { %v6165_v6 = vadd.f32 %v3178_v5, %v812_v57  ;;  %v3264_v7 = vpop.f32.mrb[8].mxu1  ;;  %v3180_v8 = vpop.f32.mrb[9].mxu0 }
 0x324   : > { %v6169_v10 = vadd.f32 %v3264_v7, %v820_v58  ;;  %v6166_v16 = vadd.f32 %v3180_v8, %v816_v59  ;;  %v3266_v17 = vpop.f32.mrb[9].mxu1  ;;  %v3182_v3 = vpop.f32.mrb[10].mxu0 }
 0x325   : > { %v6170_v12 = vadd.f32 %v3266_v17, %v824_v4  ;;  %v6167_v13 = vadd.f32 %v3182_v3, %v812_v57  ;;  %v3268_v14 = vpop.f32.mrb[10].mxu1  ;;  %v3184_v18 = vpop.f32.mrb[11].mxu0 }
 0x326   : > { %v3577_v19 = vcombine.low %v6165_v6, %v6166_v16  ;;  %v3578_v20 = vcombine.high %v6165_v6, %v6166_v16  ;;  %v6171_v21 = vadd.f32 %v3268_v14, %v820_v58  ;;  %v6168_v22 = vadd.f32 %v3184_v18, %v816_v59  ;;  %v3270_v23 = vpop.f32.mrb[11].mxu1 }
 0x327   : > { %v3579_v24 = vcombine.low %v6169_v10, %v6170_v12  ;;  %v3580_v37 = vcombine.high %v6169_v10, %v6170_v12  ;;  %v6172_v25 = vadd.f32 %v3270_v23, %v824_v4 }
 0x328   : > { %v3587_v26 = vrot.slane %v3577_v19, %v7822_v11  ;;  %v3594_v28 = vrot.slane %v3578_v20, %v7822_v11  ;;  %v3613_v29 = vcombine.low %v6167_v13, %v6168_v22  ;;  %v3614_v30 = vcombine.high %v6167_v13, %v6168_v22 }
 0x329   : > { %v3601_v31 = vrot.slane %v3579_v24, %v7822_v11  ;;  %v3608_v32 = vrot.slane %v3580_v37, %v7822_v11  ;;  %v3615_v33 = vcombine.low %v6171_v21, %v6172_v25  ;;  %v3616_v34 = vcombine.high %v6171_v21, %v6172_v25 }
 0x32a   : > { %v3623_v35 = vrot.slane %v3613_v29, %v7822_v11  ;;  %v3630_v36 = vrot.slane %v3614_v30, %v7822_v11 }
 0x32b   : > { %v3609_v38 = vcombine.low %v3587_v26, %v3601_v31  ;;  %v3610_v9 = vcombine.high %v3587_v26, %v3601_v31  ;;  %v3611_v39 = vcombine.low %v3594_v28, %v3608_v32  ;;  %v3612_v41 = vcombine.high %v3594_v28, %v3608_v32 }
 0x32c   : > { %v3637_v42 = vrot.slane %v3615_v33, %v7822_v11  ;;  %v3644_v44 = vrot.slane %v3616_v34, %v7822_v11 }
 0x32d   : > { %v3663_v48 = vrot.slane %v3609_v38, %v7825_v27  ;;  %v3670_v49 = vrot.slane %v3610_v9, %v7825_v27  ;;  %v3677_v51 = vrot.slane %v3611_v39, %v7825_v27  ;;  %v3684_v52 = vrot.slane %v3612_v41, %v7825_v27 }
 0x32e   : > { %v3645_v53 = vcombine.low %v3623_v35, %v3637_v42  ;;  %v3646_v15 = vcombine.high %v3623_v35, %v3637_v42  ;;  %v3647_v54 = vcombine.low %v3630_v36, %v3644_v44  ;;  %v3648_v55 = vcombine.high %v3630_v36, %v3644_v44 }
 0x32f   : > { %v3713_v60 = vpack.c.bf16 %v3670_v49, %v3663_v48  ;;  %v3714_v61 = vpack.c.bf16 %v3684_v52, %v3677_v51 }
 0x330   : > { %v7940_v62 = vrot.slane %v3645_v53, %v7825_v27  ;;  %v7943_v63 = vrot.slane %v3646_v15, %v7825_v27  ;;  %v7946_v0 = vrot.slane %v3647_v54, %v7825_v27  ;;  %v7949_v1 = vrot.slane %v3648_v55, %v7825_v27 }
 0x331   : > { %6126 = vmatpush3.bf16.msra.mxu0 %v3713_v60  ;;  %6132 = vmatpush3.bf16.msra.mxu1 %v3714_v61 }
 0x332   : > { %6137 = vmatprep.subr.bf16.mxu0 %v7438_v43  ;;  %6143 = vmatprep.subr.bf16.mxu1 %v7438_v43  ;;  %v3715_v2 = vpack.c.bf16 %v7943_v63, %v7940_v62  ;;  %v3716_v56 = vpack.c.bf16 %v7949_v1, %v7946_v0 }
 0x38a   : > { %v3751_v57 = vpop.f32.mrb[12].mxu0  ;;  %v3792_v58 = vpop.f32.mrb[12].mxu1 }
 0x38b   : > { %v6105_v59 = vpop.f32.mrb[13].mxu0  ;;  %v6111_v4 = vpop.f32.mrb[13].mxu1  ;;  %v3888_v27 = vsel %vm3881_vm1, %v3792_v58, -inf  ;;  %v3882_v5 = vsel %vm3881_vm1, %v3751_v57, -inf }
 0x38c   : > { %3889 = vmax.xlane.f32.xlu1 %v3888_v27  ;;  %v3795_v6 = vpop.f32.mrb[14].mxu1  ;;  %3883 = vmax.xlane.f32.xlu0 %v3882_v5  ;;  %v3754_v7 = vpop.f32.mrb[14].mxu0 }
 0x38d   : > { %v6106_v8 = vpop.f32.mrb[15].mxu0  ;;  %v6112_v10 = vpop.f32.mrb[15].mxu1  ;;  %v3891_v16 = vsel %vm3881_vm1, %v3795_v6, -inf  ;;  %v3885_v17 = vsel %vm3881_vm1, %v3754_v7, -inf }
 0x390   : > { %3892 = vmax.xlane.f32.xlu1 %v3891_v16  ;;  %3886 = vmax.xlane.f32.xlu0 %v3885_v17  ;;  %v6911_v17 = vld [vmem:[#allocation8 + $0x4] ss:$16 sps:$4 sm:$0xff]  }
 0x392   : > { %v3833_v3 = vpop.f32.mrb[16].mxu0  ;;  %v3874_v12 = vpop.f32.mrb[16].mxu1 }
 0x393   : > { %v6117_v13 = vpop.f32.mrb[17].mxu0  ;;  %v6123_v14 = vpop.f32.mrb[17].mxu1  ;;  %v3894_v18 = vsel %vm3881_vm1, %v3833_v3, -inf  ;;  %v3900_v24 = vsel %vm3881_vm1, %v3874_v12, -inf }
 0x394   : > { %v3877_v19 = vpop.f32.mrb[18].mxu1  ;;  %3895 = vmax.xlane.f32.xlu0 %v3894_v18  ;;  %v3836_v20 = vpop.f32.mrb[18].mxu0  ;;  %v6917_v13 = vld [vmem:[#allocation8 + $0x24] ss:$16 sps:$4 sm:$0xff]   ;;  %v6920_v14 = vld [vmem:[#allocation8 + $0x2c] ss:$16 sps:$4 sm:$0xff]  }
 0x395   : > { %v6118_v21 = vpop.f32.mrb[19].mxu0  ;;  %v6124_v22 = vpop.f32.mrb[19].mxu1  ;;  %v3897_v23 = vsel %vm3881_vm1, %v3836_v20, -inf  ;;  %v3903_v37 = vsel %vm3881_vm1, %v3877_v19, -inf  ;;  %v6915_v18 = vld [vmem:[#allocation8 + $0x20] ss:$16 sps:$4 sm:$0xff]  }
 0x396   : > { %3898 = vmax.xlane.f32.xlu1 %v3897_v23  ;;  %v6926_v21 = vld [vmem:[#allocation8 + $0x4c] ss:$16 sps:$4 sm:$0xff]   ;;  %v6921_v22 = vld [vmem:[#allocation8 + $0x40] ss:$16 sps:$4 sm:$0xff]   ;;  %v6924_v23 = vld [vmem:[#allocation8 + $0x48] ss:$16 sps:$4 sm:$0xff]  }
 0x398   : > { %3901 = vmax.xlane.f32.xlu0 %v3900_v24  ;;  %v6929_v24 = vld [vmem:[#allocation8 + $0x64] ss:$16 sps:$4 sm:$0xff]  }
 0x39a   : > { %3904 = vmax.xlane.f32.xlu1 %v3903_v37  ;;  %v6932_v37 = vld [vmem:[#allocation8 + $0x6c] ss:$16 sps:$4 sm:$0xff]  }
 0x419   : > { %v3890_v25 = vpop.xlane.xlu1 %3889  ;;  %v3884_v26 = vpop.xlane.xlu0 %3883 }
 0x41a   : > { %v3908_v28 = vsub.f32 %v3792_v58, %v3890_v25  ;;  %v3906_v29 = vsub.f32 %v3751_v57, %v3884_v26  ;;  %v6927_v25 = vld [vmem:[#allocation8 + $0x60] ss:$16 sps:$4 sm:$0xff]   ;;  %v6930_v26 = vld [vmem:[#allocation8 + $0x68] ss:$16 sps:$4 sm:$0xff]  }
 0x41c   : > { %v3914_v30 = vmul.f32 1.442695, %v3906_v29  ;;  %v3918_v31 = vmul.f32 1.442695, %v3908_v28  ;;  %v6935_v28 = vld [vmem:[#allocation8 + $0x84] ss:$16 sps:$4 sm:$0xff]  }
 0x41d   : > { %v3893_v32 = vpop.xlane.xlu1 %3892  ;;  %v3887_v33 = vpop.xlane.xlu0 %3886  ;;  %v6938_v29 = vld [vmem:[#allocation8 + $0x8c] ss:$16 sps:$4 sm:$0xff]  }
 0x41e   : > { %v3909_v34 = vsub.f32 %v3795_v6, %v3893_v32  ;;  %v3907_v35 = vsub.f32 %v3754_v7, %v3887_v33  ;;  %7101 = vpow2.f32 %v3914_v30  ;;  %v6933_v30 = vld [vmem:[#allocation8 + $0x80] ss:$16 sps:$4 sm:$0xff]   ;;  %v6941_v32 = vld [vmem:[#allocation8 + $0xa4] ss:$16 sps:$4 sm:$0xff]   ;;  %v6944_v33 = vld [vmem:[#allocation8 + $0xac] ss:$16 sps:$4 sm:$0xff]  }
 0x41f   : > { %7103 = vpow2.f32 %v3918_v31  ;;  %v6936_v31 = vld [vmem:[#allocation8 + $0x88] ss:$16 sps:$4 sm:$0xff]  }
 0x420   : > { %v3920_v36 = vmul.f32 1.442695, %v3909_v34  ;;  %v3916_v38 = vmul.f32 1.442695, %v3907_v35  ;;  %v6939_v34 = vld [vmem:[#allocation8 + $0xa0] ss:$16 sps:$4 sm:$0xff]  }
 0x421   : > { %v3896_v9 = vpop.xlane.xlu0 %3895  ;;  %v6942_v35 = vld [vmem:[#allocation8 + $0xa8] ss:$16 sps:$4 sm:$0xff]  }
 0x422   : > { %7105 = vpow2.f32 %v3920_v36  ;;  %v3910_v39 = vsub.f32 %v3833_v3, %v3896_v9  ;;  %v6912_v3 = vld [vmem:[#allocation8 + $0x8] ss:$16 sps:$4 sm:$0xff]   ;;  %v6947_v36 = vld [vmem:[#allocation8 + $0xc4] ss:$16 sps:$4 sm:$0xff]   ;;  %v6945_v9 = vld [vmem:[#allocation8 + $0xc0] ss:$16 sps:$4 sm:$0xff]  }
 0x423   : > { %7107 = vpow2.f32 %v3916_v38  ;;  %v3899_v41 = vpop.xlane.xlu1 %3898  ;;  %v6950_v38 = vld [vmem:[#allocation8 + $0xcc] ss:$16 sps:$4 sm:$0xff]  }
 0x424   : > { %v3922_v42 = vmul.f32 1.442695, %v3910_v39  ;;  %v3911_v44 = vsub.f32 %v3836_v20, %v3899_v41  ;;  %v6923_v20 = vld [vmem:[#allocation8 + $0x44] ss:$16 sps:$4 sm:$0xff]   ;;  %v6948_v39 = vld [vmem:[#allocation8 + $0xc8] ss:$16 sps:$4 sm:$0xff]  }
 0x425   : > { %v3902_v48 = vpop.xlane.xlu0 %3901  ;;  %v6953_v41 = vld [vmem:[#allocation8 + $0xe4] ss:$16 sps:$4 sm:$0xff]  }
 0x426   : > { %7109 = vpow2.f32 %v3922_v42  ;;  %v3924_v49 = vmul.f32 1.442695, %v3911_v44  ;;  %v3912_v51 = vsub.f32 %v3874_v12, %v3902_v48  ;;  %v6914_v12 = vld [vmem:[#allocation8 + $0xc] ss:$16 sps:$4 sm:$0xff]   ;;  %v6951_v44 = vld [vmem:[#allocation8 + $0xe0] ss:$16 sps:$4 sm:$0xff]  }
 0x427   : > { %v3905_v52 = vpop.xlane.xlu1 %3904  ;;  %v6956_v42 = vld [vmem:[#allocation8 + $0xec] ss:$16 sps:$4 sm:$0xff]   ;;  %v6954_v48 = vld [vmem:[#allocation8 + $0xe8] ss:$16 sps:$4 sm:$0xff]  }
 0x428   : > { %7111 = vpow2.f32 %v3924_v49  ;;  %v3926_v53 = vmul.f32 1.442695, %v3912_v51  ;;  %v3913_v15 = vsub.f32 %v3877_v19, %v3905_v52  ;;  %v7102_v54 = vpop.eup %7101  ;;  %v6918_v19 = vld [vmem:[#allocation8 + $0x28] ss:$16 sps:$4 sm:$0xff]   ;;  %v6959_v49 = vld [vmem:[#allocation8 + $0x104] ss:$16 sps:$4 sm:$0xff]  }
 0x429   : > { %v3930_v60 = vsel %vm3881_vm1, %v7102_v54, 0.0  ;;  %v7104_v61 = vpop.eup %7103  ;;  %v6962_v51 = vld [vmem:[#allocation8 + $0x10c] ss:$16 sps:$4 sm:$0xff]   ;;  %v6957_v52 = vld [vmem:[#allocation8 + $0x100] ss:$16 sps:$4 sm:$0xff]  }
 0x42a   : > { %7113 = vpow2.f32 %v3926_v53  ;;  %v3928_v55 = vmul.f32 1.442695, %v3913_v15  ;;  %3931 = vadd.xlane.f32.xlu0 %v3930_v60  ;;  %v3936_v4 = vsel %vm3881_vm1, %v7104_v61, 0.0  ;;  %v6960_v53 = vld [vmem:[#allocation8 + $0x108] ss:$16 sps:$4 sm:$0xff]  }
 0x42b   : > { %v6965_v15 = vld [vmem:[#allocation8 + $0x124] ss:$16 sps:$4 sm:$0xff]   ;;  %v6966_v60 = vld [vmem:[#allocation8 + $0x128] ss:$16 sps:$4 sm:$0xff]  }
 0x42c   : > { %v7106_v57 = vpop.eup %7105  ;;  %7115 = vpow2.f32 %v3928_v55  ;;  %v6963_v55 = vld [vmem:[#allocation8 + $0x120] ss:$16 sps:$4 sm:$0xff]  }
 0x42d   : > { %v7108_v58 = vpop.eup %7107  ;;  %v3955_v59 = vpack.c.bf16 %v7106_v57, %v7104_v61  ;;  %v3939_v10 = vsel %vm3881_vm1, %v7106_v57, 0.0  ;;  %v6971_v61 = vld [vmem:[#allocation8 + $0x144] ss:$16 sps:$4 sm:$0xff]   ;;  %v6974_v57 = vld [vmem:[#allocation8 + $0x14c] ss:$16 sps:$4 sm:$0xff]  }
 0x42e   : > { %v3933_v27 = vsel %vm3881_vm1, %v7108_v58, 0.0  ;;  %v3954_v5 = vpack.c.bf16 %v7108_v58, %v7102_v54  ;;  %3937 = vadd.xlane.f32.xlu0 %v3936_v4  ;;  %v6968_v54 = vld [vmem:[#allocation8 + $0x12c] ss:$16 sps:$4 sm:$0xff]   ;;  %v6969_v58 = vld [vmem:[#allocation8 + $0x140] ss:$16 sps:$4 sm:$0xff]  }
 0x42f   : > { %3934 = vadd.xlane.f32.xlu1 %v3933_v27  ;;  %6134 = vmatmul.mubr.msk.bf16.vlgmr.msra.gmra.mrb[20].mxu1 %vm3881_vm1, %v3955_v59  ;;  %v6972_v59 = vld [vmem:[#allocation8 + $0x148] ss:$16 sps:$4 sm:$0xff]   ;;  %v6977_v4 = vld [vmem:[#allocation8 + $0x164] ss:$16 sps:$4 sm:$0xff]   ;;  %v6980_v27 = vld [vmem:[#allocation8 + $0x16c] ss:$16 sps:$4 sm:$0xff]  }
 0x430   : > { %v7110_v6 = vpop.eup %7109  ;;  %6128 = vmatmul.mubr.msk.bf16.vlgmr.msra.gmra.mrb[20].mxu0 %vm3881_vm1, %v3954_v5  ;;  %6144 = vmatpush3.bf16.msra.mxu1 %v3716_v56  ;;  %v6975_v5 = vld [vmem:[#allocation8 + $0x160] ss:$16 sps:$4 sm:$0xff]  }
 0x431   : > { %6138 = vmatpush3.bf16.msra.mxu0 %v3715_v2  ;;  %v3942_v7 = vsel %vm3881_vm1, %v7110_v6, 0.0  ;;  %6139 = vmatprep.mubr.msk.bf16.mxu0 %vm7439_vm0, %v7438_v43 }
 0x432   : > { %v7112_v8 = vpop.eup %7111  ;;  %6145 = vmatprep.mubr.msk.bf16.mxu1 %vm7439_vm0, %v7438_v43  ;;  %3943 = vadd.xlane.f32.xlu0 %v3942_v7  ;;  %v6909_v43 = vld [vmem:[#allocation8] ss:$16 sps:$4 sm:$0xff]   ;;  %v6983_v7 = vld [vmem:[#allocation8 + $0x184] ss:$16 sps:$4 sm:$0xff]  }
 0x433   : > { %3940 = vadd.xlane.f32.xlu1 %v3939_v10  ;;  %v3956_v16 = vpack.c.bf16 %v7112_v8, %v7110_v6  ;;  %v3945_v0 = vsel %vm3881_vm1, %v7112_v8, 0.0  ;;  %5096 = vmatprep.subr.bf16.mxu0 %v6911_v17  ;;  %v6978_v6 = vld [vmem:[#allocation8 + $0x168] ss:$16 sps:$4 sm:$0xff]   ;;  %v6986_v8 = vld [vmem:[#allocation8 + $0x18c] ss:$16 sps:$4 sm:$0xff]  }
 0x434   : > { %v7114_v62 = vpop.eup %7113  ;;  %5182 = vmatprep.subr.bf16.mxu1 %v6914_v12  ;;  %v6981_v10 = vld [vmem:[#allocation8 + $0x180] ss:$16 sps:$4 sm:$0xff]   ;;  %v6996_v17 = vld [vmem:[#allocation8 + $0x1c8] ss:$16 sps:$4 sm:$0xff]   ;;  %v7001_v12 = vld [vmem:[#allocation8 + $0x1e4] ss:$16 sps:$4 sm:$0xff]  }
 0x435   : > { %v3948_v63 = vsel %vm3881_vm1, %v7114_v62, 0.0 }
 0x436   : > { %v7116_v2 = vpop.eup %7115  ;;  %3949 = vadd.xlane.f32.xlu0 %v3948_v63  ;;  %v6992_v63 = vld [vmem:[#allocation8 + $0x1ac] ss:$16 sps:$4 sm:$0xff]  }
 0x437   : > { %3946 = vadd.xlane.f32.xlu1 %v3945_v0  ;;  %v3957_v1 = vpack.c.bf16 %v7116_v2, %v7114_v62  ;;  %v3951_v56 = vsel %vm3881_vm1, %v7116_v2, 0.0  ;;  %v6989_v62 = vld [vmem:[#allocation8 + $0x1a4] ss:$16 sps:$4 sm:$0xff]   ;;  %v6987_v2 = vld [vmem:[#allocation8 + $0x1a0] ss:$16 sps:$4 sm:$0xff]  }
 0x438   : > { %6140 = vmatmul.mubr.msk.bf16.vlgmr.msra.gmra.mrb[24].mxu0 %vm3881_vm1, %v3956_v16  ;;  %v6984_v16 = vld [vmem:[#allocation8 + $0x188] ss:$16 sps:$4 sm:$0xff]  }
 0x439   : > { %6146 = vmatmul.mubr.msk.bf16.vlgmr.msra.gmra.mrb[24].mxu1 %vm3881_vm1, %v3957_v1  ;;  %5097 = vmatpush1.bf16.msra.mxu0 %v6909_v43  ;;  %v6990_v0 = vld [vmem:[#allocation8 + $0x1a8] ss:$16 sps:$4 sm:$0xff]   ;;  %v6995_v1 = vld [vmem:[#allocation8 + $0x1c4] ss:$16 sps:$4 sm:$0xff]   ;;  %v6993_v43 = vld [vmem:[#allocation8 + $0x1c0] ss:$16 sps:$4 sm:$0xff]  }
 0x43a   : > { %5183 = vmatpush1.bf16.msra.mxu1 %v6912_v3  ;;  %5098 = vmatprep.subr.bf16.mxu0 %v6917_v13  ;;  %v6999_v3 = vld [vmem:[#allocation8 + $0x1e0] ss:$16 sps:$4 sm:$0xff]   ;;  %v7002_v13 = vld [vmem:[#allocation8 + $0x1e8] ss:$16 sps:$4 sm:$0xff]  }
 0x43b   : > { %3952 = vadd.xlane.f32.xlu1 %v3951_v56  ;;  %5184 = vmatprep.subr.bf16.mxu1 %v6920_v14  ;;  %v6998_v56 = vld [vmem:[#allocation8 + $0x1cc] ss:$16 sps:$4 sm:$0xff]  }
 0x43c   : > { %v7004_v14 = vld [vmem:[#allocation8 + $0x1ec] ss:$16 sps:$4 sm:$0xff]  }
 0x43d   : > { %5099 = vmatpush1.bf16.msra.mxu0 %v6915_v18  ;;  %v7007_v18 = vld [vmem:[#allocation8 + $0x204] ss:$16 sps:$4 sm:$0xff]  }
 0x43e   : > { %5185 = vmatpush1.bf16.msra.mxu1 %v6918_v19  ;;  %5100 = vmatprep.subr.bf16.mxu0 %v6923_v20  ;;  %v7010_v19 = vld [vmem:[#allocation8 + $0x20c] ss:$16 sps:$4 sm:$0xff]  }
 0x43f   : > { %5186 = vmatprep.subr.bf16.mxu1 %v6926_v21 }
 0x441   : > { %5101 = vmatpush1.bf16.msra.mxu0 %v6921_v22 }
 0x442   : > { %5187 = vmatpush1.bf16.msra.mxu1 %v6924_v23  ;;  %5102 = vmatprep.subr.bf16.mxu0 %v6929_v24 }
 0x443   : > { %5188 = vmatprep.subr.bf16.mxu1 %v6932_v37 }
 0x445   : > { %5103 = vmatpush1.bf16.msra.mxu0 %v6927_v25  ;;  %v7440_v25 = vmov 1935823168  }
 0x446   : > { %5189 = vmatpush1.bf16.msra.mxu1 %v6930_v26  ;;  %5104 = vmatprep.subr.bf16.mxu0 %v6935_v28  ;;  %v4159_v26 = vunpack.c.l.s4 %v7440_v25 }
 0x447   : > { %5190 = vmatprep.subr.bf16.mxu1 %v6938_v29 }
 0x448   : > { %v4160_v29 = vunpack.c.0.s8 %v4159_v26 }
 0x449   : > { %5105 = vmatpush1.bf16.msra.mxu0 %v6933_v30 }
 0x44a   : > { %5191 = vmatpush1.bf16.msra.mxu1 %v6936_v31  ;;  %5106 = vmatprep.subr.bf16.mxu0 %v6941_v32 }
 0x44b   : > { %5192 = vmatprep.subr.bf16.mxu1 %v6944_v33 }
 0x44d   : > { %5107 = vmatpush1.bf16.msra.mxu0 %v6939_v34 }
 0x44e   : > { %5193 = vmatpush1.bf16.msra.mxu1 %v6942_v35  ;;  %5108 = vmatprep.subr.bf16.mxu0 %v6947_v36 }
 0x44f   : > { %5194 = vmatprep.subr.bf16.mxu1 %v6950_v38  ;;  %v4163_v38 = vsub.s32 %v4160_v29, %v7797_v40 }
 0x451   : > { %5109 = vmatpush1.bf16.msra.mxu0 %v6945_v9 }
 0x452   : > { %5195 = vmatpush1.bf16.msra.mxu1 %v6948_v39  ;;  %5110 = vmatprep.subr.bf16.mxu0 %v6953_v41 }
 0x453   : > { %5196 = vmatprep.subr.bf16.mxu1 %v6956_v42 }
 0x455   : > { %5111 = vmatpush1.bf16.msra.mxu0 %v6951_v44 }
 0x456   : > { %5197 = vmatpush1.bf16.msra.mxu1 %v6954_v48  ;;  %5112 = vmatprep.subr.bf16.mxu0 %v6959_v49 }
 0x457   : > { %5198 = vmatprep.subr.bf16.mxu1 %v6962_v51 }
 0x459   : > { %5113 = vmatpush1.bf16.msra.mxu0 %v6957_v52 }
 0x45a   : > { %5199 = vmatpush1.bf16.msra.mxu1 %v6960_v53  ;;  %5114 = vmatprep.subr.bf16.mxu0 %v6965_v15 }
 0x45b   : > { %5200 = vmatprep.subr.bf16.mxu1 %v6968_v54 }
 0x45d   : > { %5115 = vmatpush1.bf16.msra.mxu0 %v6963_v55 }
 0x45e   : > { %5201 = vmatpush1.bf16.msra.mxu1 %v6966_v60  ;;  %5116 = vmatprep.subr.bf16.mxu0 %v6971_v61 }
 0x45f   : > { %5202 = vmatprep.subr.bf16.mxu1 %v6974_v57 }
 0x461   : > { %5117 = vmatpush1.bf16.msra.mxu0 %v6969_v58 }
 0x462   : > { %5203 = vmatpush1.bf16.msra.mxu1 %v6972_v59  ;;  %5118 = vmatprep.subr.bf16.mxu0 %v6977_v4 }
 0x463   : > { %5204 = vmatprep.subr.bf16.mxu1 %v6980_v27 }
 0x465   : > { %5119 = vmatpush1.bf16.msra.mxu0 %v6975_v5 }
 0x466   : > { %5205 = vmatpush1.bf16.msra.mxu1 %v6978_v6  ;;  %5120 = vmatprep.subr.bf16.mxu0 %v6983_v7 }
 0x467   : > { %5206 = vmatprep.subr.bf16.mxu1 %v6986_v8 }
 0x469   : > { %5121 = vmatpush1.bf16.msra.mxu0 %v6981_v10 }
 0x46a   : > { %5207 = vmatpush1.bf16.msra.mxu1 %v6984_v16  ;;  %5122 = vmatprep.subr.bf16.mxu0 %v6989_v62 }
 0x46b   : > { %5208 = vmatprep.subr.bf16.mxu1 %v6992_v63 }
 0x46d   : > { %5123 = vmatpush1.bf16.msra.mxu0 %v6987_v2 }
 0x46e   : > { %5209 = vmatpush1.bf16.msra.mxu1 %v6990_v0  ;;  %5124 = vmatprep.subr.bf16.mxu0 %v6995_v1 }
 0x46f   : > { %5210 = vmatprep.subr.bf16.mxu1 %v6998_v56 }
 0x471   : > { %5125 = vmatpush1.bf16.msra.mxu0 %v6993_v43 }
 0x472   : > { %5211 = vmatpush1.bf16.msra.mxu1 %v6996_v17  ;;  %5126 = vmatprep.subr.bf16.mxu0 %v7001_v12 }
 0x473   : > { %5212 = vmatprep.subr.bf16.mxu1 %v7004_v14 }
 0x475   : > { %5127 = vmatpush1.bf16.msra.mxu0 %v6999_v3 }
 0x476   : > { %5213 = vmatpush1.bf16.msra.mxu1 %v7002_v13  ;;  %5139 = vmatprep.subr.bf16.mxu0 %v7007_v18 }
 0x477   : > { %5225 = vmatprep.subr.bf16.mxu1 %v7010_v19 }
 0x4b7   : > { %v3932_v20 = vpop.xlane.xlu0 %3931 }
 0x4b8   : > { %7117 = vrcp.f32 %v3932_v20 }
 0x4bb   : > { %v3938_v22 = vpop.xlane.xlu0 %3937 }
 0x4bc   : > { %v3935_v21 = vpop.xlane.xlu1 %3934  ;;  %7119 = vrcp.f32 %v3938_v22 }
 0x4bd   : > { %7121 = vrcp.f32 %v3935_v21 }
 0x4bf   : > { %v3944_v24 = vpop.xlane.xlu0 %3943 }
 0x4c0   : > { %v3941_v23 = vpop.xlane.xlu1 %3940 }
 0x4c1   : > { %7123 = vrcp.f32 %v3941_v23 }
 0x4c2   : > { %7125 = vrcp.f32 %v3944_v24  ;;  %v7118_v31 = vpop.eup %7117 }
 0x4c3   : > { %v3950_v28 = vpop.xlane.xlu0 %3949 }
 0x4c4   : > { %v3947_v37 = vpop.xlane.xlu1 %3946  ;;  %7127 = vrcp.f32 %v3950_v28 }
 0x4c5   : > { %7129 = vrcp.f32 %v3947_v37 }
 0x4c6   : > { %v7120_v32 = vpop.eup %7119 }
 0x4c7   : > { %v7122_v35 = vpop.eup %7121 }
 0x4c8   : > { %v3953_v30 = vpop.xlane.xlu1 %3952 }
 0x4c9   : > { %7131 = vrcp.f32 %v3953_v30 }
 0x4cb   : > { %v7124_v42 = vpop.eup %7123 }
 0x4cc   : > { %v7126_v4 = vpop.eup %7125 }
 0x4ce   : > { %v7128_v27 = vpop.eup %7127 }
 0x4cf   : > { %v7130_v62 = vpop.eup %7129 }
 0x4d3   : > { %v7132_v56 = vpop.eup %7131 }
 0x502   : > { %v4039_v34 = vpop.f32.mrb[20].mxu1 }
 0x503   : > { %v3995_v33 = vpop.f32.mrb[20].mxu0  ;;  %v4152_v9 = vmul.f32 %v7120_v32, %v4039_v34  ;;  %v6135_v41 = vpop.f32.mrb[21].mxu1 }
 0x504   : > { %v4150_v36 = vmul.f32 %v7118_v31, %v3995_v33  ;;  %v6129_v39 = vpop.f32.mrb[21].mxu0  ;;  %v4042_v48 = vpop.f32.mrb[22].mxu1  ;;  %v7008_v41 = vld [vmem:[#allocation8 + $0x208] ss:$16 sps:$4 sm:$0xff]  }
 0x505   : > { %v3998_v44 = vpop.f32.mrb[22].mxu0  ;;  %v4153_v51 = vmul.f32 %v7124_v42, %v4042_v48  ;;  %v6136_v53 = vpop.f32.mrb[23].mxu1  ;;  %v4178_v54 = vrot.slane %v4152_v9, %v4163_v38  ;;  %v7005_v39 = vld [vmem:[#allocation8 + $0x200] ss:$16 sps:$4 sm:$0xff]   ;;  %v7013_v48 = vld [vmem:[#allocation8 + $0x224] ss:$16 sps:$4 sm:$0xff]  }
 0x506   : > { %v4151_v49 = vmul.f32 %v7122_v35, %v3998_v44  ;;  %v6130_v52 = vpop.f32.mrb[23].mxu0  ;;  %v4164_v15 = vrot.slane %v4150_v36, %v4163_v38  ;;  %v7022_v53 = vld [vmem:[#allocation8 + $0x24c] ss:$16 sps:$4 sm:$0xff]  }
 0x507   : > { %v4185_v60 = vrot.slane %v4153_v51, %v4163_v38  ;;  %v7014_v51 = vld [vmem:[#allocation8 + $0x228] ss:$16 sps:$4 sm:$0xff]   ;;  %v7019_v52 = vld [vmem:[#allocation8 + $0x244] ss:$16 sps:$4 sm:$0xff]  }
 0x508   : > { %v4171_v55 = vrot.slane %v4151_v49, %v4163_v38  ;;  %v7016_v49 = vld [vmem:[#allocation8 + $0x22c] ss:$16 sps:$4 sm:$0xff]  }
 0x509   : > { %v4224_v58 = vcombine.low %v4178_v54, %v4185_v60  ;;  %v4225_v59 = vcombine.high %v4178_v54, %v4185_v60  ;;  %v7020_v54 = vld [vmem:[#allocation8 + $0x248] ss:$16 sps:$4 sm:$0xff]   ;;  %v7028_v60 = vld [vmem:[#allocation8 + $0x26c] ss:$16 sps:$4 sm:$0xff]  }
 0x50a   : > { %v4222_v61 = vcombine.low %v4164_v15, %v4171_v55  ;;  %v4223_v57 = vcombine.high %v4164_v15, %v4171_v55  ;;  %v7017_v15 = vld [vmem:[#allocation8 + $0x240] ss:$16 sps:$4 sm:$0xff]   ;;  %v7025_v55 = vld [vmem:[#allocation8 + $0x264] ss:$16 sps:$4 sm:$0xff]  }
 0x50b   : > { %v4083_v40 = vpop.f32.mrb[24].mxu0  ;;  %v4246_v7 = vrot.slane %v4224_v58, %v7822_v11  ;;  %v4253_v8 = vrot.slane %v4225_v59, %v7822_v11  ;;  %v7031_v58 = vld [vmem:[#allocation8 + $0x284] ss:$16 sps:$4 sm:$0xff]   ;;  %v7034_v59 = vld [vmem:[#allocation8 + $0x28c] ss:$16 sps:$4 sm:$0xff]  }
 0x50c   : > { %v4232_v5 = vrot.slane %v4222_v61, %v7822_v11  ;;  %v4239_v6 = vrot.slane %v4223_v57, %v7822_v11  ;;  %v6141_v10 = vpop.f32.mrb[25].mxu0  ;;  %v4127_v16 = vpop.f32.mrb[24].mxu1  ;;  %v4154_v63 = vmul.f32 %v7126_v4, %v4083_v40  ;;  %v7023_v61 = vld [vmem:[#allocation8 + $0x260] ss:$16 sps:$4 sm:$0xff]   ;;  %v7026_v57 = vld [vmem:[#allocation8 + $0x268] ss:$16 sps:$4 sm:$0xff]  }
 0x50d   : > { %v4086_v2 = vpop.f32.mrb[26].mxu0  ;;  %v4156_v0 = vmul.f32 %v7128_v27, %v4127_v16  ;;  %v6147_v1 = vpop.f32.mrb[25].mxu1  ;;  %v7029_v4 = vld [vmem:[#allocation8 + $0x280] ss:$16 sps:$4 sm:$0xff]   ;;  %v7032_v40 = vld [vmem:[#allocation8 + $0x288] ss:$16 sps:$4 sm:$0xff]  }
 0x50e   : > { %v4254_v43 = vcombine.low %v4232_v5, %v4246_v7  ;;  %v4256_v17 = vcombine.low %v4239_v6, %v4253_v8  ;;  %v4155_v3 = vmul.f32 %v7130_v62, %v4086_v2  ;;  %v6142_v12 = vpop.f32.mrb[27].mxu0  ;;  %v4130_v13 = vpop.f32.mrb[26].mxu1  ;;  %v4255_v14 = vcombine.high %v4232_v5, %v4246_v7  ;;  %v7037_v27 = vld [vmem:[#allocation8 + $0x2a4] ss:$16 sps:$4 sm:$0xff]   ;;  %v7040_v5 = vld [vmem:[#allocation8 + $0x2ac] ss:$16 sps:$4 sm:$0xff]  }
 0x50f   : > { %v4157_v18 = vmul.f32 %v7132_v56, %v4130_v13  ;;  %v6148_v19 = vpop.f32.mrb[27].mxu1  ;;  %v4257_v20 = vcombine.high %v4239_v6, %v4253_v8  ;;  %v4192_v21 = vrot.slane %v4154_v63, %v4163_v38  ;;  %v4206_v23 = vrot.slane %v4156_v0, %v4163_v38  ;;  %v7035_v6 = vld [vmem:[#allocation8 + $0x2a0] ss:$16 sps:$4 sm:$0xff]   ;;  %v7038_v7 = vld [vmem:[#allocation8 + $0x2a8] ss:$16 sps:$4 sm:$0xff]  }
 0x510   : > { %v4199_v22 = vrot.slane %v4155_v3, %v4163_v38  ;;  %v7043_v8 = vld [vmem:[#allocation8 + $0x2c4] ss:$16 sps:$4 sm:$0xff]   ;;  %v7046_v10 = vld [vmem:[#allocation8 + $0x2cc] ss:$16 sps:$4 sm:$0xff]   ;;  %v7041_v16 = vld [vmem:[#allocation8 + $0x2c0] ss:$16 sps:$4 sm:$0xff]  }
 0x511   : > { %v4213_v24 = vrot.slane %v4157_v18, %v4163_v38  ;;  %v7044_v62 = vld [vmem:[#allocation8 + $0x2c8] ss:$16 sps:$4 sm:$0xff]   ;;  %v7049_v63 = vld [vmem:[#allocation8 + $0x2e4] ss:$16 sps:$4 sm:$0xff]   ;;  %v7052_v2 = vld [vmem:[#allocation8 + $0x2ec] ss:$16 sps:$4 sm:$0xff]  }
 0x512   : > { %v4258_v37 = vcombine.low %v4192_v21, %v4199_v22  ;;  %v4259_v25 = vcombine.high %v4192_v21, %v4199_v22  ;;  %v7047_v0 = vld [vmem:[#allocation8 + $0x2e0] ss:$16 sps:$4 sm:$0xff]   ;;  %v7050_v1 = vld [vmem:[#allocation8 + $0x2e8] ss:$16 sps:$4 sm:$0xff]   ;;  %v7055_v56 = vld [vmem:[#allocation8 + $0x304] ss:$16 sps:$4 sm:$0xff]  }
 0x513   : > { %v4260_v26 = vcombine.low %v4206_v23, %v4213_v24  ;;  %v4261_v28 = vcombine.high %v4206_v23, %v4213_v24  ;;  %v7056_v3 = vld [vmem:[#allocation8 + $0x308] ss:$16 sps:$4 sm:$0xff]   ;;  %v7061_v12 = vld [vmem:[#allocation8 + $0x324] ss:$16 sps:$4 sm:$0xff]   ;;  %v7064_v13 = vld [vmem:[#allocation8 + $0x32c] ss:$16 sps:$4 sm:$0xff]  }
 0x514   : > { %v4268_v29 = vrot.slane %v4258_v37, %v7822_v11  ;;  %v4275_v30 = vrot.slane %v4259_v25, %v7822_v11  ;;  %v7062_v18 = vld [vmem:[#allocation8 + $0x328] ss:$16 sps:$4 sm:$0xff]   ;;  %v7067_v19 = vld [vmem:[#allocation8 + $0x344] ss:$16 sps:$4 sm:$0xff]   ;;  %v7065_v21 = vld [vmem:[#allocation8 + $0x340] ss:$16 sps:$4 sm:$0xff]  }
 0x515   : > { %v4282_v31 = vrot.slane %v4260_v26, %v7822_v11  ;;  %v4289_v32 = vrot.slane %v4261_v28, %v7822_v11  ;;  %v7011_v11 = vld [vmem:[#allocation8 + $0x220] ss:$16 sps:$4 sm:$0xff]   ;;  %v7068_v22 = vld [vmem:[#allocation8 + $0x348] ss:$16 sps:$4 sm:$0xff]   ;;  %v7073_v23 = vld [vmem:[#allocation8 + $0x364] ss:$16 sps:$4 sm:$0xff]  }
 0x516   : > { %v7076_v24 = vld [vmem:[#allocation8 + $0x36c] ss:$16 sps:$4 sm:$0xff]   ;;  %v7071_v37 = vld [vmem:[#allocation8 + $0x360] ss:$16 sps:$4 sm:$0xff]   ;;  %v7074_v25 = vld [vmem:[#allocation8 + $0x368] ss:$16 sps:$4 sm:$0xff]  }
 0x517   : > { %v4290_v33 = vcombine.low %v4268_v29, %v4282_v31  ;;  %v4292_v34 = vcombine.low %v4275_v30, %v4289_v32  ;;  %v4291_v35 = vcombine.high %v4268_v29, %v4282_v31  ;;  %v4293_v36 = vcombine.high %v4275_v30, %v4289_v32  ;;  %v7079_v26 = vld [vmem:[#allocation8 + $0x384] ss:$16 sps:$4 sm:$0xff]   ;;  %v7082_v28 = vld [vmem:[#allocation8 + $0x38c] ss:$16 sps:$4 sm:$0xff]   ;;  %v7077_v29 = vld [vmem:[#allocation8 + $0x380] ss:$16 sps:$4 sm:$0xff]  }
 0x518   : > { %v7080_v30 = vld [vmem:[#allocation8 + $0x388] ss:$16 sps:$4 sm:$0xff]   ;;  %v7085_v31 = vld [vmem:[#allocation8 + $0x3a4] ss:$16 sps:$4 sm:$0xff]   ;;  %v7088_v32 = vld [vmem:[#allocation8 + $0x3ac] ss:$16 sps:$4 sm:$0xff]  }
 0x519   : > { %v4303_v9 = vpack.c.bf16 %v4291_v35, %v4255_v14  ;;  %v4302_v38 = vpack.c.bf16 %v4290_v33, %v4254_v43  ;;  %v4305_v42 = vpack.c.bf16 %v4293_v36, %v4257_v20  ;;  %v7996_v44 = vpack.c.bf16 %v4292_v34, %v4256_v17  ;;  %v7058_v43 = vld [vmem:[#allocation8 + $0x30c] ss:$16 sps:$4 sm:$0xff]   ;;  %v7053_v17 = vld [vmem:[#allocation8 + $0x300] ss:$16 sps:$4 sm:$0xff]   ;;  %v7086_v34 = vld [vmem:[#allocation8 + $0x3a8] ss:$16 sps:$4 sm:$0xff]  }
 0x51a   : > { %v7059_v14 = vld [vmem:[#allocation8 + $0x320] ss:$16 sps:$4 sm:$0xff]   ;;  %v7070_v20 = vld [vmem:[#allocation8 + $0x34c] ss:$16 sps:$4 sm:$0xff]   ;;  %v7091_v35 = vld [vmem:[#allocation8 + $0x3c4] ss:$16 sps:$4 sm:$0xff]  }
 0x51b   : > { %5128 = vmatprep.mubr.bf16.mxu0 %v4303_v9  ;;  %5214 = vmatprep.mubr.bf16.mxu1 %v4303_v9  ;;  %v7083_v33 = vld [vmem:[#allocation8 + $0x3a0] ss:$16 sps:$4 sm:$0xff]   ;;  %v7094_v36 = vld [vmem:[#allocation8 + $0x3cc] ss:$16 sps:$4 sm:$0xff]  }
 0x51c   : > { %5129 = vmatmul.mubr.bf16.vlgmr.msra.gmra.mrb[28].mxu0 %v4302_v38  ;;  %5215 = vmatmul.mubr.bf16.vlgmr.msra.gmra.mrb[28].mxu1 %v4302_v38  ;;  %v7089_v9 = vld [vmem:[#allocation8 + $0x3c0] ss:$16 sps:$4 sm:$0xff]   ;;  %v7100_v38 = vld [vmem:[#allocation8 + $0x3ec] ss:$16 sps:$4 sm:$0xff]  }
 0x51d   : > { %5140 = vmatpush1.bf16.msra.mxu0 %v7005_v39  ;;  %5226 = vmatpush1.bf16.msra.mxu1 %v7008_v41  ;;  %v7092_v39 = vld [vmem:[#allocation8 + $0x3c8] ss:$16 sps:$4 sm:$0xff]   ;;  %v7097_v41 = vld [vmem:[#allocation8 + $0x3e4] ss:$16 sps:$4 sm:$0xff]  }
 0x51e   : > { %5171 = vmatprep.mubr.bf16.mxu0 %v4305_v42  ;;  %5257 = vmatprep.mubr.bf16.mxu1 %v4305_v42  ;;  %v7095_v42 = vld [vmem:[#allocation8 + $0x3e0] ss:$16 sps:$4 sm:$0xff]  }
 0x51f   : > { %5141 = vmatprep.subr.bf16.mxu0 %v7013_v48  ;;  %5227 = vmatprep.subr.bf16.mxu1 %v7016_v49  ;;  %v7098_v48 = vld [vmem:[#allocation8 + $0x3e8] ss:$16 sps:$4 sm:$0xff]   ;;  %v4434_v49 = vld [vmem:[#allocation10] sm:$0xf] }
 0x521   : > { %5142 = vmatpush1.bf16.msra.mxu0 %v7011_v11  ;;  %5228 = vmatpush1.bf16.msra.mxu1 %v7014_v51  ;;  %v4439_v11 = vrot.slane %v4434_v49, %v7802_v50  ;;  %v4447_v51 = vrot.slane %v4434_v49, %v7805_v45 }
 0x522   : > { %5143 = vmatprep.subr.bf16.mxu0 %v7019_v52  ;;  %5229 = vmatprep.subr.bf16.mxu1 %v7022_v53  ;;  %v4443_v52 = vrot.slane %v4434_v49, %v7808_v46 }
 0x525   : > { %5144 = vmatpush1.bf16.msra.mxu0 %v7017_v15  ;;  %5230 = vmatpush1.bf16.msra.mxu1 %v7020_v54  ;;  %v4451_v54 = vrot.slane %v4434_v49, %v7811_v47 }
 0x526   : > { %5145 = vmatprep.subr.bf16.mxu0 %v7025_v55  ;;  %5231 = vmatprep.subr.bf16.mxu1 %v7028_v60 }
 0x529   : > { %5146 = vmatpush1.bf16.msra.mxu0 %v7023_v61  ;;  %5232 = vmatpush1.bf16.msra.mxu1 %v7026_v57 }
 0x52a   : > { %5147 = vmatprep.subr.bf16.mxu0 %v7031_v58  ;;  %5233 = vmatprep.subr.bf16.mxu1 %v7034_v59 }
 0x52d   : > { %5148 = vmatpush1.bf16.msra.mxu0 %v7029_v4  ;;  %5234 = vmatpush1.bf16.msra.mxu1 %v7032_v40  ;;  %v7137_v4 = vld [vmem:[%s7741_s15] sm:$0xff] }
 0x52e   : > { %5149 = vmatprep.subr.bf16.mxu0 %v7037_v27  ;;  %5235 = vmatprep.subr.bf16.mxu1 %v7040_v5 }
 0x531   : > { %5150 = vmatpush1.bf16.msra.mxu0 %v7035_v6  ;;  %5236 = vmatpush1.bf16.msra.mxu1 %v7038_v7  ;;  %v7138_v7 = vld [vmem:[%s7741_s15 + $0x8] sm:$0xff] }
 0x532   : > { %5151 = vmatprep.subr.bf16.mxu0 %v7043_v8  ;;  %5237 = vmatprep.subr.bf16.mxu1 %v7046_v10 }
 0x535   : > { %5152 = vmatpush1.bf16.msra.mxu0 %v7041_v16  ;;  %5238 = vmatpush1.bf16.msra.mxu1 %v7044_v62 }
 0x536   : > { %5153 = vmatprep.subr.bf16.mxu0 %v7049_v63  ;;  %5239 = vmatprep.subr.bf16.mxu1 %v7052_v2  ;;  %v7139_v63 = vld [vmem:[%s7741_s15 + $0x20] sm:$0xff] }
 0x539   : > { %5154 = vmatpush1.bf16.msra.mxu0 %v7047_v0  ;;  %5240 = vmatpush1.bf16.msra.mxu1 %v7050_v1  ;;  %v7140_v0 = vld [vmem:[%s7741_s15 + $0x10] sm:$0xff] }
 0x53a   : > { %5155 = vmatprep.subr.bf16.mxu0 %v7055_v56  ;;  %5241 = vmatprep.subr.bf16.mxu1 %v7058_v43  ;;  %v7141_v43 = vld [vmem:[%s7741_s15 + $0x28] sm:$0xff] }
 0x53d   : > { %5156 = vmatpush1.bf16.msra.mxu0 %v7053_v17  ;;  %5242 = vmatpush1.bf16.msra.mxu1 %v7056_v3 }
 0x53e   : > { %5157 = vmatprep.subr.bf16.mxu0 %v7061_v12  ;;  %5243 = vmatprep.subr.bf16.mxu1 %v7064_v13  ;;  %v7142_v12 = vld [vmem:[%s7741_s15 + $0x18] sm:$0xff] }
 0x541   : > { %5158 = vmatpush1.bf16.msra.mxu0 %v7059_v14  ;;  %5244 = vmatpush1.bf16.msra.mxu1 %v7062_v18  ;;  %v7143_v14 = vld [vmem:[%s7741_s15 + $0x30] sm:$0xff] }
 0x542   : > { %5159 = vmatprep.subr.bf16.mxu0 %v7067_v19  ;;  %5245 = vmatprep.subr.bf16.mxu1 %v7070_v20 }
 0x545   : > { %5160 = vmatpush1.bf16.msra.mxu0 %v7065_v21  ;;  %5246 = vmatpush1.bf16.msra.mxu1 %v7068_v22  ;;  %v7144_v21 = vld [vmem:[%s7741_s15 + $0x38] sm:$0xff] }
 0x546   : > { %5161 = vmatprep.subr.bf16.mxu0 %v7073_v23  ;;  %5247 = vmatprep.subr.bf16.mxu1 %v7076_v24 }
 0x549   : > { %5162 = vmatpush1.bf16.msra.mxu0 %v7071_v37  ;;  %5248 = vmatpush1.bf16.msra.mxu1 %v7074_v25 }
 0x54a   : > { %5163 = vmatprep.subr.bf16.mxu0 %v7079_v26  ;;  %5249 = vmatprep.subr.bf16.mxu1 %v7082_v28 }
 0x54d   : > { %5164 = vmatpush1.bf16.msra.mxu0 %v7077_v29  ;;  %5250 = vmatpush1.bf16.msra.mxu1 %v7080_v30 }
 0x54e   : > { %5165 = vmatprep.subr.bf16.mxu0 %v7085_v31  ;;  %5251 = vmatprep.subr.bf16.mxu1 %v7088_v32 }
 0x551   : > { %5166 = vmatpush1.bf16.msra.mxu0 %v7083_v33  ;;  %5252 = vmatpush1.bf16.msra.mxu1 %v7086_v34 }
 0x552   : > { %5167 = vmatprep.subr.bf16.mxu0 %v7091_v35  ;;  %5253 = vmatprep.subr.bf16.mxu1 %v7094_v36 }
 0x555   : > { %5168 = vmatpush1.bf16.msra.mxu0 %v7089_v9  ;;  %5254 = vmatpush1.bf16.msra.mxu1 %v7092_v39 }
 0x556   : > { %5169 = vmatprep.subr.bf16.mxu0 %v7097_v41  ;;  %5255 = vmatprep.subr.bf16.mxu1 %v7100_v38 }
 0x559   : > { %5170 = vmatpush1.bf16.msra.mxu0 %v7095_v42  ;;  %5256 = vmatpush1.bf16.msra.mxu1 %v7098_v48 }
 0x55c   : > { %5172 = vmatmul.mubr.bf16.vlgmr.msra.gmra.mrb[28].mxu0 %v7996_v44  ;;  %5258 = vmatmul.mubr.bf16.vlgmr.msra.gmra.mrb[28].mxu1 %v7996_v44 }
 0x62f   : > { %v5173_v53 = vpop.f32.mrb[28].mxu0  ;;  %v5259_v15 = vpop.f32.mrb[28].mxu1 }
 0x630   : > { %v6173_v55 = vadd.f32 %v5173_v53, %v4439_v11  ;;  %v5175_v60 = vpop.f32.mrb[29].mxu0  ;;  %v5261_v61 = vpop.f32.mrb[29].mxu1  ;;  %v6177_v57 = vadd.f32 %v5259_v15, %v4447_v51 }
 0x631   : > { %v6174_v58 = vadd.f32 %v5175_v60, %v4443_v52  ;;  %v5177_v44 = vpop.f32.mrb[30].mxu0  ;;  %v5263_v59 = vpop.f32.mrb[30].mxu1  ;;  %v6178_v10 = vadd.f32 %v5261_v61, %v4451_v54 }
 0x632   : > { %v5268_v40 = vadd.f32 %v7137_v4, %v6173_v55  ;;  %v6175_v27 = vadd.f32 %v5177_v44, %v4439_v11  ;;  %v5179_v5 = vpop.f32.mrb[31].mxu0  ;;  %v5265_v6 = vpop.f32.mrb[31].mxu1  ;;  %v6179_v16 = vadd.f32 %v5263_v59, %v4447_v51  ;;  %v5270_v1 = vadd.f32 %v7140_v0, %v6177_v57 }
 0x633   : > { %v5269_v8 = vadd.f32 %v7138_v7, %v6174_v58  ;;  %v6176_v62 = vadd.f32 %v5179_v5, %v4443_v52  ;;  %v6180_v3 = vadd.f32 %v5265_v6, %v4451_v54  ;;  %v5271_v13 = vadd.f32 %v7142_v12, %v6178_v10 }
 0x634   : > { %v5272_v2 = vadd.f32 %v7139_v63, %v6175_v27  ;;  %v5274_v18 = vadd.f32 %v7143_v14, %v6179_v16  ;;  %v5359_v27 = vld [vmem:[#allocation13] sm:$0xf] }
 0x635   : > { %v5276_v56 = vadd.f32 %v5269_v8, %v5268_v40  ;;  %v5273_v17 = vadd.f32 %v7141_v43, %v6176_v62  ;;  %v5275_v22 = vadd.f32 %v7144_v21, %v6180_v3  ;;  %v5364_v16 = vrot.slane %v5359_v27, %v7802_v50 }
 0x636   : > { %v5372_v62 = vrot.slane %v5359_v27, %v7805_v45  ;;  %v5368_v63 = vrot.slane %v5359_v27, %v7808_v46 }
 0x637   : > { %v5281_v19 = vadd.f32 %v5273_v17, %v5272_v2  ;;  %v5277_v20 = vadd.f32 %v5276_v56, %v5270_v1 }
 0x639   : > { %v5278_v23 = vadd.f32 %v5277_v20, %v5271_v13  ;;  %v5282_v24 = vadd.f32 %v5281_v19, %v5274_v18 }
 0x63b   : > { %5279 = vadd.xlane.f32.xlu0 %v5278_v23  ;;  %v5283_v37 = vadd.f32 %v5282_v24, %v5275_v22 }
 0x63d   : > { %5284 = vadd.xlane.f32.xlu1 %v5283_v37 }
 0x6c8   : > { %v5280_v25 = vpop.xlane.xlu0 %5279 }
 0x6c9   : > { %v5287_v26 = vmul.f32 0.001953125, %v5280_v25 }
 0x6ca   : > { %v5285_v28 = vpop.xlane.xlu1 %5284 }
 0x6cb   : > { %v5289_v29 = vsub.f32 %v5268_v40, %v5287_v26  ;;  %v5290_v30 = vsub.f32 %v5269_v8, %v5287_v26  ;;  %v5288_v31 = vmul.f32 0.001953125, %v5285_v28  ;;  %v5291_v32 = vsub.f32 %v5270_v1, %v5287_v26  ;;  %v5329_v40 = vld [vmem:[#allocation11] sm:$0xf] }
 0x6cc   : > { %v5292_v33 = vsub.f32 %v5271_v13, %v5287_v26  ;;  %v5334_v5 = vrot.slane %v5329_v40, %v7802_v50  ;;  %v5342_v6 = vrot.slane %v5329_v40, %v7805_v45  ;;  %v5338_v7 = vrot.slane %v5329_v40, %v7808_v46 }
 0x6cd   : > { %v5293_v34 = vsub.f32 %v5272_v2, %v5288_v31  ;;  %v5294_v35 = vsub.f32 %v5273_v17, %v5288_v31  ;;  %v5297_v36 = vmul.f32 %v5289_v29, %v5289_v29  ;;  %v5298_v9 = vmul.f32 %v5290_v30, %v5290_v30 }
 0x6ce   : > { %v5299_v39 = vmul.f32 %v5291_v32, %v5291_v32  ;;  %v5295_v41 = vsub.f32 %v5274_v18, %v5288_v31  ;;  %v5296_v42 = vsub.f32 %v5275_v22, %v5288_v31  ;;  %v5300_v11 = vmul.f32 %v5292_v33, %v5292_v33 }
 0x6cf   : > { %v5305_v38 = vadd.f32 %v5298_v9, %v5297_v36  ;;  %v5301_v48 = vmul.f32 %v5293_v34, %v5293_v34  ;;  %v5302_v49 = vmul.f32 %v5294_v35, %v5294_v35  ;;  %v5346_v8 = vrot.slane %v5329_v40, %v7811_v47 }
 0x6d0   : > { %v5303_v52 = vmul.f32 %v5295_v41, %v5295_v41  ;;  %v5304_v54 = vmul.f32 %v5296_v42, %v5296_v42  ;;  %v5376_v2 = vrot.slane %v5359_v27, %v7811_v47 }
 0x6d1   : > { %v5306_v51 = vadd.f32 %v5305_v38, %v5299_v39  ;;  %v5310_v53 = vadd.f32 %v5302_v49, %v5301_v48 }
 0x6d3   : > { %v5307_v15 = vadd.f32 %v5306_v51, %v5300_v11  ;;  %v5311_v55 = vadd.f32 %v5310_v53, %v5303_v52 }
 0x6d5   : > { %5308 = vadd.xlane.f32.xlu0 %v5307_v15  ;;  %v5312_v60 = vadd.f32 %v5311_v55, %v5304_v54 }
 0x6d7   : > { %5313 = vadd.xlane.f32.xlu1 %v5312_v60 }
 0x762   : > { %v5309_v61 = vpop.xlane.xlu0 %5308 }
 0x763   : > { %v5315_v57 = vmul.f32 0.001953125, %v5309_v61 }
 0x764   : > { %v5314_v58 = vpop.xlane.xlu1 %5313 }
 0x765   : > { %v5317_v44 = vadd.f32 1e-05, %v5315_v57  ;;  %v5316_v59 = vmul.f32 0.001953125, %v5314_v58 }
 0x767   : > { %7133 = vrsqrt.f32 %v5317_v44  ;;  %v5318_v4 = vadd.f32 1e-05, %v5316_v59 }
 0x769   : > { %7135 = vrsqrt.f32 %v5318_v4 }
 0x771   : > { %v7134_v10 = vpop.eup %7133 }
 0x772   : > { %v5321_v0 = vmul.f32 %v7134_v10, %v5289_v29  ;;  %v5322_v1 = vmul.f32 %v7134_v10, %v5290_v30  ;;  %v5323_v56 = vmul.f32 %v7134_v10, %v5291_v32  ;;  %v5324_v43 = vmul.f32 %v7134_v10, %v5292_v33 }
 0x773   : > { %v7136_v17 = vpop.eup %7135 }
 0x774   : > { %v5351_v3 = vmul.f32 %v5334_v5, %v5321_v0  ;;  %v5352_v12 = vmul.f32 %v5338_v7, %v5322_v1  ;;  %v5353_v13 = vmul.f32 %v5342_v6, %v5323_v56  ;;  %v5354_v14 = vmul.f32 %v5346_v8, %v5324_v43 }
 0x775   : > { %v5325_v18 = vmul.f32 %v7136_v17, %v5293_v34  ;;  %v5326_v19 = vmul.f32 %v7136_v17, %v5294_v35  ;;  %v5327_v50 = vmul.f32 %v7136_v17, %v5295_v41  ;;  %v5328_v20 = vmul.f32 %v7136_v17, %v5296_v42 }
 0x776   : > { %v5381_v45 = vadd.f32 %v5364_v16, %v5351_v3  ;;  %v5382_v46 = vadd.f32 %v5368_v63, %v5352_v12  ;;  %v5383_v47 = vadd.f32 %v5372_v62, %v5353_v13  ;;  %v5384_v21 = vadd.f32 %v5376_v2, %v5354_v14 }
 0x777   : > { %v5355_v22 = vmul.f32 %v5334_v5, %v5325_v18  ;;  %v5356_v23 = vmul.f32 %v5338_v7, %v5326_v19  ;;  %v5357_v24 = vmul.f32 %v5342_v6, %v5327_v50  ;;  %v5358_v37 = vmul.f32 %v5346_v8, %v5328_v20 }
 0x778   : > { %5389 = vst [vmem:[%s375_s13] sm:$0xff] %v5381_v45  ;;  %5390 = vst [vmem:[%s375_s13 + $0x8] sm:$0xff] %v5382_v46 }
 0x779   : > { %5391 = vst [vmem:[%s375_s13 + $0x10] sm:$0xff] %v5383_v47  ;;  %5392 = vst [vmem:[%s375_s13 + $0x18] sm:$0xff] %v5384_v21  ;;  %v5385_v25 = vadd.f32 %v5364_v16, %v5355_v22  ;;  %v5386_v26 = vadd.f32 %v5368_v63, %v5356_v23  ;;  %v5387_v28 = vadd.f32 %v5372_v62, %v5357_v24 }
 0x77a   : > { %v5388_v29 = vadd.f32 %v5376_v2, %v5358_v37 }
 0x77b   : > { %5393 = vst [vmem:[%s375_s13 + $0x20] sm:$0xff] %v5385_v25  ;;  %5394 = vst [vmem:[%s375_s13 + $0x28] sm:$0xff] %v5386_v26 }
 0x77c   : > { %5395 = vst [vmem:[%s375_s13 + $0x30] sm:$0xff] %v5387_v28  ;;  %5396 = vst [vmem:[%s375_s13 + $0x38] sm:$0xff] %v5388_v29 }
 0x77d   : > { %7356 = shalt.err (!%p7353_p8)
}
 0x77e   : > { %s7357_s14 = scalar_lea.hbm %s8026_s30, 1024  ;;  %s7361_s8 = scalar_lea.hbm %s8079_s7, 2048 }
 0x77f   : > { %p7358_p7 = scmp.ne.s32.totalorder %s8026_s30, %s7357_s14  ;;  %p7362_p3 = scmp.lt.u32.totalorder %s8026_s30, %s8079_s7 }
 0x780   : > { %p7363_p0 = scmp.lt.u32.totalorder %s7361_s8, %s7357_s14  ;;  %p7365_p6 = scmp.lt.u32.totalorder %s7357_s14, %s8026_s30 }
 0x781   : > { %p7359_p9 = pnand %p7358_p7, %p8099_p5 }
 0x782   : > { %p7364_p2 = por %p7363_p0, %p7362_p3 }
 0x783   : > { %p7360_p4 = pneg %p7359_p9 }
 0x784   : > { %p7366_p10 = por %p7365_p6, %p7364_p2 }
 0x786   : > { %p7367_p1 = pnand %p7366_p10, %p7360_p4 }
 0x788   : > { %7370 = shalt.err (!%p7367_p1)
}
 0x789   : > { %s7442_s19 = smov 512   ;;  %s7443_s22 = smov 32  }
 0x78a   : > { %6239 = dma.vmem_to_hbm [thread:$0]  (%p8099_p5), %s8028_s9, 1024, %s8026_s30, %s5398_s17, %s7442_s19, %s7442_s19, %s7443_s22  }
 0x78b PF: > { %s5426_s28 = sand.u32 1, %s7409_s24   ;;  %p8100_p11 = scmp.ne.s32.totalorder %s8090_s29, 0 }
 0x78c   : > { %p8101_p12 = scmp.ge.s32.totalorder %s7421_s27, 2  ;;  %s5427_s23 = scalar_lea.sflag [#allocation4], %s5426_s28 }
 0x78e   : > { %p6265_p13 = pnand %p8101_p12, %p8100_p11 }
 0x790   : > { %7404 = dma.done.wait (!%p6265_p13), %s5427_s23, 1024  }
 0x791   : > { %7406 = vsyncadd (!%p6265_p13), %s5427_s23, 4294966272  ;;  %p23_p8 = scmp.ge.s32.totalorder %s7656_s11, 4   ;;  %s8102_s24 = smov %s7413_s25 }
 0x792   : > { %s8103_s25 = smov %s7417_s26  ;;  %s8104_s26 = smov %s7667_s18 }
 0x793   : > { %s8105_s27 = smov %s7656_s11  ;;  %25 = sbr.rel (!%p23_p8) target bundleno = 8 (0x8), region = 117 }
 0x79a   :  { %5432 = vsyncpa [#allocation3], 1 }
 0x79b   :  { %5434 = vsyncpa [#allocation3 + $0x1], 1 }
 0x79c   :  { %5435 = vsyncpa [#allocation6], 1 }
 0x79d   :  { %5436 = vsyncpa [#allocation9], 1 }
 0x79e   :  { %5437 = vsyncpa [#allocation12], 1 }
 0x79f   :  { %5438 = vsyncpa [#allocation4], 1 }
 0x7a0   :  { %5440 = vsyncpa [#allocation4 + $0x1], 1 }

// kernel: tpu_custom_call.1
= control target key start
LH: loop header
LB: loop body
LE: loop exit
PB: predicated region body
PF: predicated region fallthrough
CT: control target
= control target key end

     0   :  { %12 = vsyncpa [#allocation3], 0  ;;  %s8072_s0 = inlined_call_operand.hbm [shape: f32[2,16,512], index: 0, kind: input, shape index: {}]   ;;  %s8073_s1 = inlined_call_operand.hbm [shape: bf16[512,1536], index: 1, kind: input, shape index: {}]   ;;  %s8074_s2 = inlined_call_operand.hbm [shape: f32[1,1536], index: 2, kind: input, shape index: {}]   ;;  %s8075_s3 = inlined_call_operand.hbm [shape: bf16[512,512], index: 3, kind: input, shape index: {}]   ;;  %s8076_s4 = inlined_call_operand.hbm [shape: f32[1,512], index: 4, kind: input, shape index: {}]   ;;  %s8077_s5 = inlined_call_operand.hbm [shape: f32[1,512], index: 5, kind: input, shape index: {}]   ;;  %s8078_s6 = inlined_call_operand.hbm [shape: f32[1,512], index: 6, kind: input, shape index: {}]   ;;  %s8079_s7 = inlined_call_operand.hbm [shape: f32[2,16,512], index: 7, kind: output, shape index: {}]  }
   0x1   :  { %14 = vsyncpa [#allocation3 + $0x1], 0 }
   0x2   :  { %15 = vsyncpa [#allocation6], 0 }
   0x3   :  { %16 = vsyncpa [#allocation9], 0 }
   0x4   :  { %17 = vsyncpa [#allocation12], 0 }
   0x5   :  { %18 = vsyncpa [#allocation4], 0 }
   0x6   :  { %20 = vsyncpa [#allocation4 + $0x1], 0  ;;  %s7484_s24 = smov 0   ;;  %s7486_s25 = smov 0  }
   0x7   :  { %s7488_s26 = smov 0   ;;  %s7490_s27 = smov 0  }
   0x8 LB: > { %s7423_s28 = smov [#allocation5]   ;;  %s7505_s30 = sadd.s32 4294967295, %s7421_s27   ;;  %s7421_s27 = sphi %s7490_s27, %s8105_s27   ;;  %s7417_s26 = sphi %s7488_s26, %s8104_s26   ;;  %s7413_s25 = sphi %s7486_s25, %s8103_s25   ;;  %s7409_s24 = sphi %s7484_s24, %s8102_s24  }
   0x9   : > { %s221_s29 = sshll.u32 %s7423_s28, 4  ;;  %p5542_p0 = scmp.ge.s32.totalorder %s7421_s27, 1  ;;  %s7510_s29 = int_to_ptr.vmem [resolvable:$true] %s221_s29 }
   0xa   : > { %p8080_p1 = scmp.eq.s32.totalorder %s7505_s30, 0  ;;  %p209_p2 = scmp.lt.s32.totalorder %s7421_s27, 3 }
   0xb   : > { %s7424_s9 = smov [#allocation8]   ;;  %s7425_s12 = smov [#allocation11]  }
   0xc   : > { %p7512_p3 = pnand %p5542_p0, %p209_p2  ;;  %s245_s10 = sshll.u32 %s7424_s9, 4  ;;  %s7525_s10 = int_to_ptr.vmem [resolvable:$true] %s245_s10 }
   0xd   : > { %s7527_s13 = sshll.u32 %s7425_s12, 4  ;;  %s7145_s16 = scalar_lea.hbm %s8073_s1, 49152  ;;  %s271_s13 = int_to_ptr.vmem [resolvable:$true] %s7527_s13 }
   0xe   : > { %s8083_s8 = scalar_select %p7512_p3, 1, 0 }
   0xf   : > { %p6241_p5 = pneg %p7512_p3  ;;  %p7146_p7 = scmp.ne.s32.totalorder %s8073_s1, %s7145_s16 }
  0x10   : > { %p7152_p11 = scmp.lt.u32.totalorder %s7145_s16, %s8073_s1 }
  0x11   : > { %p7521_p6 = pnand %p6241_p5, %p8080_p1 }
  0x13   : > { %p7537_p8 = pneg %p7521_p6 }
  0x15   : > { %p7148_p9 = pnand %p7537_p8, %p7146_p7 }
  0x17   : > { %p7149_p10 = pneg %p7148_p9 }
  0x19   : > { %p7154_p12 = pnand %p7152_p11, %p7149_p10 }
  0x1b   : > { %7157 = shalt.err (!%p7154_p12)
}
  0x1c   : > { %s7158_s22 = scalar_lea.vmem %s7510_s29, 49152  ;;  %p7166_p5 = scmp.lt.s32.totalorder %s7510_s29, %s7510_s29 }
  0x1d   : > { %p7159_p13 = scmp.ne.s32.totalorder %s7510_s29, %s7158_s22  ;;  %p7167_p4 = scmp.lt.s32.totalorder %s7158_s22, %s7158_s22 }
  0x1f   : > { %p7161_p0 = pnand %p7159_p13, %p7537_p8  ;;  %p7168_p7 = por %p7167_p4, %p7166_p5 }
  0x21   : > { %p7162_p2 = pneg %p7161_p0 }
  0x23   : > { %p7169_p9 = pnand %p7168_p7, %p7162_p2 }
  0x25   : > { %7172 = shalt.err (!%p7169_p9)
}
  0x26   : > { %s7426_s23 = smov 768   ;;  %s7427_s28 = smov 48  }
  0x27   : > { %6244 = dma.hbm_to_vmem [thread:$0]  (!%p7521_p6), %s8073_s1, 49152, %s7510_s29, [#allocation6], %s7426_s23, %s7426_s23, %s7427_s28  }
  0x28   : > { %s7173_s16 = scalar_lea.hbm %s8075_s3, 16384 }
  0x29   : > { %p7174_p4 = scmp.ne.s32.totalorder %s8075_s3, %s7173_s16  ;;  %p7180_p12 = scmp.lt.u32.totalorder %s7173_s16, %s8075_s3 }
  0x2b   : > { %p7176_p10 = pnand %p7174_p4, %p7537_p8 }
  0x2d   : > { %p7177_p11 = pneg %p7176_p10 }
  0x2f   : > { %p7182_p13 = pnand %p7180_p12, %p7177_p11 }
  0x31   : > { %7185 = shalt.err (!%p7182_p13)
}
  0x32   : > { %s7186_s29 = scalar_lea.vmem %s7525_s10, 16384  ;;  %p7194_p7 = scmp.lt.s32.totalorder %s7525_s10, %s7525_s10 }
  0x33   : > { %p7187_p0 = scmp.ne.s32.totalorder %s7525_s10, %s7186_s29  ;;  %p7195_p9 = scmp.lt.s32.totalorder %s7186_s29, %s7186_s29 }
  0x35   : > { %p7189_p2 = pnand %p7187_p0, %p7537_p8  ;;  %p7196_p4 = por %p7195_p9, %p7194_p7 }
  0x37   : > { %p7190_p5 = pneg %p7189_p2 }
  0x39   : > { %p7197_p10 = pnand %p7196_p4, %p7190_p5 }
  0x3b   : > { %7200 = shalt.err (!%p7197_p10)
}
  0x3c   : > { %s7428_s22 = smov 256   ;;  %s7429_s23 = smov 16  }
  0x3d   : > { %6250 = dma.hbm_to_vmem [thread:$0]  (!%p7521_p6), %s8075_s3, 16384, %s7525_s10, [#allocation9], %s7428_s22, %s7428_s22, %s7429_s23  }
  0x3e   : > { %s7201_s15 = scalar_lea.hbm %s8077_s5, 64 }
  0x3f   : > { %p7202_p11 = scmp.ne.s32.totalorder %s8077_s5, %s7201_s15  ;;  %p7208_p0 = scmp.lt.u32.totalorder %s7201_s15, %s8077_s5 }
  0x41   : > { %p7204_p12 = pnand %p7202_p11, %p7537_p8 }
  0x43   : > { %p7205_p13 = pneg %p7204_p12 }
  0x45   : > { %p7210_p2 = pnand %p7208_p0, %p7205_p13 }
  0x47   : > { %7213 = shalt.err (!%p7210_p2)
}
  0x48   : > { %s7214_s21 = scalar_lea.vmem %s271_s13, 64  ;;  %p7222_p4 = scmp.lt.s32.totalorder %s271_s13, %s271_s13 }
  0x49   : > { %p7215_p5 = scmp.ne.s32.totalorder %s271_s13, %s7214_s21  ;;  %p7223_p10 = scmp.lt.s32.totalorder %s7214_s21, %s7214_s21 }
  0x4b   : > { %p7217_p7 = pnand %p7215_p5, %p7537_p8  ;;  %p7224_p1 = por %p7223_p10, %p7222_p4 }
  0x4d   : > { %p7218_p9 = pneg %p7217_p7 }
  0x4f   : > { %p7225_p3 = pnand %p7224_p1, %p7218_p9 }
  0x51   : > { %7228 = shalt.err (!%p7225_p3)
}
  0x52   : > { %6256 = dma.hbm_to_vmem [thread:$0]  (!%p7521_p6), %s8077_s5, 64, %s271_s13, [#allocation12]  }
  0x53   : > { %s7430_s22 = smov [#allocation7]   ;;  %s7431_s28 = smov [#allocation10]  }
  0x54   : > { %s235_s23 = sshll.u32 %s7430_s22, 4  ;;  %s259_s9 = sshll.u32 %s7431_s28, 4  ;;  %s236_s23 = int_to_ptr.vmem [resolvable:$true] %s235_s23  ;;  %s260_s9 = int_to_ptr.vmem [resolvable:$true] %s259_s9 }
  0x55   : > { %s7229_s15 = scalar_lea.hbm %s8074_s2, 192 }
  0x56   : > { %p7230_p1 = scmp.ne.s32.totalorder %s8074_s2, %s7229_s15  ;;  %p7236_p12 = scmp.lt.u32.totalorder %s7229_s15, %s8074_s2 }
  0x58   : > { %p7232_p3 = pnand %p7230_p1, %p7537_p8 }
  0x5a   : > { %p7233_p11 = pneg %p7232_p3 }
  0x5c   : > { %p7238_p13 = pnand %p7236_p12, %p7233_p11 }
  0x5e   : > { %7241 = shalt.err (!%p7238_p13)
}
  0x5f   : > { %s7242_s13 = scalar_lea.vmem %s236_s23, 192  ;;  %p7250_p7 = scmp.lt.s32.totalorder %s236_s23, %s236_s23 }
  0x60   : > { %p7243_p0 = scmp.ne.s32.totalorder %s236_s23, %s7242_s13  ;;  %p7251_p9 = scmp.lt.s32.totalorder %s7242_s13, %s7242_s13 }
  0x62   : > { %p7245_p2 = pnand %p7243_p0, %p7537_p8  ;;  %p7252_p4 = por %p7251_p9, %p7250_p7 }
  0x64   : > { %p7246_p5 = pneg %p7245_p2 }
  0x66   : > { %p7253_p10 = pnand %p7252_p4, %p7246_p5 }
  0x68   : > { %7256 = shalt.err (!%p7253_p10)
}
  0x69   : > { %6247 = dma.hbm_to_vmem [thread:$0]  (!%p7521_p6), %s8074_s2, 192, %s236_s23, [#allocation6]  }
  0x6a   : > { %s7257_s28 = scalar_lea.hbm %s8076_s4, 64 }
  0x6b   : > { %p7258_p1 = scmp.ne.s32.totalorder %s8076_s4, %s7257_s28  ;;  %p7264_p12 = scmp.lt.u32.totalorder %s7257_s28, %s8076_s4 }
  0x6d   : > { %p7260_p3 = pnand %p7258_p1, %p7537_p8 }
  0x6f   : > { %p7261_p11 = pneg %p7260_p3 }
  0x71   : > { %p7266_p13 = pnand %p7264_p12, %p7261_p11 }
  0x73   : > { %7269 = shalt.err (!%p7266_p13)
}
  0x74   : > { %s7270_s17 = scalar_lea.vmem %s260_s9, 64  ;;  %p7278_p7 = scmp.lt.s32.totalorder %s260_s9, %s260_s9 }
  0x75   : > { %p7271_p0 = scmp.ne.s32.totalorder %s260_s9, %s7270_s17  ;;  %p7279_p9 = scmp.lt.s32.totalorder %s7270_s17, %s7270_s17 }
  0x77   : > { %p7273_p2 = pnand %p7271_p0, %p7537_p8  ;;  %p7280_p4 = por %p7279_p9, %p7278_p7 }
  0x79   : > { %p7274_p5 = pneg %p7273_p2 }
  0x7b   : > { %p7281_p10 = pnand %p7280_p4, %p7274_p5 }
  0x7d   : > { %7284 = shalt.err (!%p7281_p10)
}
  0x7e   : > { %6253 = dma.hbm_to_vmem [thread:$0]  (!%p7521_p6), %s8076_s4, 64, %s260_s9, [#allocation9]  }
  0x7f   : > { %s7432_s20 = smov [#allocation13]   ;;  %s7285_s29 = scalar_lea.hbm %s8078_s6, 64 }
  0x80   : > { %s281_s13 = sshll.u32 %s7432_s20, 4  ;;  %p7286_p1 = scmp.ne.s32.totalorder %s8078_s6, %s7285_s29  ;;  %s282_s13 = int_to_ptr.vmem [resolvable:$true] %s281_s13 }
  0x81   : > { %p7292_p12 = scmp.lt.u32.totalorder %s7285_s29, %s8078_s6 }
  0x82   : > { %p7288_p3 = pnand %p7286_p1, %p7537_p8 }
  0x84   : > { %p7289_p11 = pneg %p7288_p3 }
  0x86   : > { %p7294_p13 = pnand %p7292_p12, %p7289_p11 }
  0x88   : > { %7297 = shalt.err (!%p7294_p13)
}
  0x89   : > { %s7298_s9 = scalar_lea.vmem %s282_s13, 64  ;;  %p7306_p7 = scmp.lt.s32.totalorder %s282_s13, %s282_s13 }
  0x8a   : > { %p7299_p0 = scmp.ne.s32.totalorder %s282_s13, %s7298_s9  ;;  %p7307_p9 = scmp.lt.s32.totalorder %s7298_s9, %s7298_s9 }
  0x8c   : > { %p7301_p2 = pnand %p7299_p0, %p7537_p8  ;;  %p7308_p4 = por %p7307_p9, %p7306_p7 }
  0x8e   : > { %p7302_p5 = pneg %p7301_p2 }
  0x90   : > { %p7309_p10 = pnand %p7308_p4, %p7302_p5 }
  0x92   : > { %7312 = shalt.err (!%p7309_p10)
}
  0x93   : > { %6259 = dma.hbm_to_vmem [thread:$0]  (!%p7521_p6), %s8078_s6, 64, %s282_s13, [#allocation12]  }
  0x94   : > { %s5541_s19 = sadd.s32 4294967294, %s7421_s27   ;;  %s7656_s11 = sadd.s32 1, %s7421_s27  }
  0x95   : > { %s30_s17 = ssub.s32 %s7421_s27, %s7656_s11  ;;  %s33_s23 = sadd.s32 1, %s7417_s26 }
  0x96   : > { %p31_p8 = scmp.eq.s32.totalorder %s30_s17, 0  ;;  %p40_p1 = scmp.ne.s32.totalorder %s7417_s26, %s7413_s25 }
  0x97   : > { %p41_p3 = scmp.eq.s32.totalorder %s7421_s27, 0  ;;  %p46_p11 = scmp.ne.s32.totalorder %s7413_s25, %s7409_s24 }
  0x98   : > { %s7667_s18 = scalar_select %p31_p8, %s7417_s26, %s33_s23  }
  0x99   : > { %p7669_p12 = por %p41_p3, %p40_p1  ;;  %p8087_p13 = scmp.eq.s32.totalorder %s7505_s30, 0 }
  0x9a   : > { %p196_p0 = scmp.eq.s32.totalorder %s7505_s30, 1  ;;  %p202_p2 = scmp.eq.s32.totalorder %s5541_s19, 1 }
  0x9b   : > { %p7675_p6 = por %p8087_p13, %p46_p11  ;;  %p6274_p5 = scmp.lt.s32.totalorder %s7421_s27, 2 }
  0x9c   : > { %s292_s21 = sand.u32 1, %s7417_s26   ;;  %p7682_p7 = por %p196_p0, %p40_p1 }
  0x9d   : > { %p7686_p9 = por %p202_p2, %p46_p11  ;;  %s5550_s22 = sshll.u32 %s292_s21, 6 }
  0x9e   : > { %s8089_s10 = scalar_select %p7682_p7, 1, 0 }
  0x9f   : > { %s8090_s29 = scalar_select %p7686_p9, 1, 0 }
  0xa0   : > { %s6083_s28 = sshll.u32 %s7421_s27, 10  ;;  %s296_s15 = scalar_lea.vmem [#allocation2], %s5550_s22 }
  0xa1   : > { %s7694_s9 = scalar_lea.hbm %s8072_s0, %s6083_s28  ;;  %s303_s16 = sshll.u32 %s296_s15, 4  ;;  %s7696_s16 = int_to_ptr.vmem [resolvable:$true] %s303_s16 }
  0xa2   : > { %p7700_p4 = pnand %p6274_p5, %p7669_p12  ;;  %s7704_s17 = scalar_lea.sflag [#allocation3], %s292_s21 }
  0xa3   : > { %s7313_s23 = scalar_lea.hbm %s7694_s9, 1024  ;;  %s7318_s20 = scalar_lea.hbm %s8072_s0, 2048 }
  0xa4   : > { %p7314_p10 = scmp.ne.s32.totalorder %s7694_s9, %s7313_s23  ;;  %p7315_p8 = pneg %p7700_p4 }
  0xa5   : > { %p7319_p11 = scmp.lt.u32.totalorder %s7694_s9, %s8072_s0  ;;  %p7320_p12 = scmp.lt.u32.totalorder %s7318_s20, %s7313_s23 }
  0xa6   : > { %p7316_p1 = pnand %p7315_p8, %p7314_p10  ;;  %p7322_p0 = scmp.lt.u32.totalorder %s7313_s23, %s7694_s9 }
  0xa7   : > { %p7321_p13 = por %p7320_p12, %p7319_p11 }
  0xa8   : > { %p7317_p3 = pneg %p7316_p1 }
  0xa9   : > { %p7323_p2 = por %p7322_p0, %p7321_p13 }
  0xab   : > { %p7324_p5 = pnand %p7323_p2, %p7317_p3 }
  0xad   : > { %7327 = shalt.err (!%p7324_p5)
}
  0xae   : > { %s7328_s21 = scalar_lea.vmem %s7696_s16, 1024  ;;  %s7433_s15 = smov [#allocation2]  }
  0xaf   : > { %p7329_p10 = scmp.ne.s32.totalorder %s7696_s16, %s7328_s21  ;;  %s7333_s22 = sshll.u32 %s7433_s15, 4  ;;  %s7334_s22 = int_to_ptr.vmem [resolvable:$false] %s7333_s22 }
  0xb0   : > { %s7335_s28 = scalar_lea.vmem %s7334_s22, 2048  ;;  %p7336_p7 = scmp.lt.s32.totalorder %s7696_s16, %s7334_s22 }
  0xb1   : > { %p7331_p1 = pnand %p7329_p10, %p7315_p8  ;;  %p7337_p11 = scmp.lt.s32.totalorder %s7335_s28, %s7328_s21 }
  0xb3   : > { %p7332_p9 = pneg %p7331_p1  ;;  %p7338_p12 = por %p7337_p11, %p7336_p7 }
  0xb5   : > { %p7339_p13 = pnand %p7338_p12, %p7332_p9 }
  0xb7   : > { %7342 = shalt.err (!%p7339_p13)
}
  0xb8   : > { %s7434_s23 = smov 512   ;;  %s7435_s20 = smov 32  }
  0xb9   : > { %6263 = dma.hbm_to_vmem [thread:$0]  (!%p7700_p4), %s7694_s9, 1024, %s7696_s16, %s7704_s17, %s7434_s23, %s7434_s23, %s7435_s20  }
  0xba   : > { %p8092_p8 = scmp.ne.s32.totalorder %s8083_s8, 0 }
  0xbb   : > { %s7735_s12 = sand.u32 (!%p8092_p8), 1, %s7413_s25  }
  0xbc   : > { %315 = sbr.rel (%p8092_p8) target bundleno = 1931 (0x78b), region = 48  ;;  %s5554_s14 = sshll.u32 (!%p8092_p8), %s7735_s12, 6 }
  0xbd   : > { %s318_s21 = scalar_lea.sflag (!%p8092_p8), [#allocation3], %s7735_s12  ;;  %s7741_s15 = scalar_lea.vmem (!%p8092_p8), [#allocation2], %s5554_s14 }
  0xc3   : > { %7388 = dma.done.wait (%p7675_p6), %s318_s21, 1024  }
  0xc4   : > { %7390 = vsyncadd (%p7675_p6), %s318_s21, 4294966272  ;;  %p8093_p7 = scmp.eq.s32.totalorder %s7505_s30, 0 }
  0xc6   : > { %7392 = dma.done.wait (%p8093_p7), [#allocation6], 49344   ;;  %p8094_p9 = pmov %p8093_p7 }
  0xc7   : > { %p8095_p4 = pmov %p8093_p7 }
  0xc8   : > { %7394 = vsyncadd (%p8094_p9), [#allocation6], 4294917952 }
  0xc9   : > { %7396 = dma.done.wait (%p8095_p4), [#allocation9], 16448   ;;  %p8096_p3 = pmov %p8095_p4 }
  0xcb   : > { %7398 = vsyncadd (%p8096_p3), [#allocation9], 4294950848  ;;  %p8097_p0 = pmov %p8096_p3 }
  0xcd   : > { %7400 = dma.done.wait (%p8097_p0), [#allocation12], 128   ;;  %p8098_p2 = pmov %p8097_p0 }
  0xce   : > { %v6333_v0 = vld [vmem:[#allocation5 + $0x4] ss:$48 sps:$4 sm:$0xff]   ;;  %v6335_v1 = vld [vmem:[#allocation5 + $0xc] ss:$48 sps:$4 sm:$0xff]   ;;  %v6337_v2 = vld [vmem:[#allocation5] ss:$48 sps:$4 sm:$0xff]  }
  0xcf   : > { %7402 = vsyncadd (%p8098_p2), [#allocation12], 4294967168  ;;  %2757 = vmatprep.subr.bf16.mxu0 %v6333_v0  ;;  %v6338_v3 = vld [vmem:[#allocation5 + $0x8] ss:$48 sps:$4 sm:$0xff]   ;;  %2843 = vmatprep.subr.bf16.mxu1 %v6335_v1  ;;  %v6339_v4 = vld [vmem:[#allocation5 + $0x64] ss:$48 sps:$4 sm:$0xff]  }
  0xd0   : > { %2758 = vmatpush1.bf16.msra.mxu0 %v6337_v2  ;;  %2844 = vmatpush1.bf16.msra.mxu1 %v6338_v3  ;;  %v6341_v5 = vld [vmem:[#allocation5 + $0x6c] ss:$48 sps:$4 sm:$0xff]   ;;  %v6343_v6 = vld [vmem:[#allocation5 + $0x60] ss:$48 sps:$4 sm:$0xff]   ;;  %v6344_v7 = vld [vmem:[#allocation5 + $0x68] ss:$48 sps:$4 sm:$0xff]  }
  0xd1   : > { %2759 = vmatprep.subr.bf16.mxu0 %v6339_v4  ;;  %2845 = vmatprep.subr.bf16.mxu1 %v6341_v5  ;;  %v6345_v8 = vld [vmem:[#allocation5 + $0xc4] ss:$48 sps:$4 sm:$0xff]   ;;  %v6347_v9 = vld [vmem:[#allocation5 + $0xcc] ss:$48 sps:$4 sm:$0xff]   ;;  %v6349_v10 = vld [vmem:[#allocation5 + $0xc0] ss:$48 sps:$4 sm:$0xff]  }
  0xd2   : > { %v6350_v11 = vld [vmem:[#allocation5 + $0xc8] ss:$48 sps:$4 sm:$0xff]   ;;  %v6351_v12 = vld [vmem:[#allocation5 + $0x124] ss:$48 sps:$4 sm:$0xff]   ;;  %v6353_v13 = vld [vmem:[#allocation5 + $0x12c] ss:$48 sps:$4 sm:$0xff]  }
  0xd3   : > { %v6355_v14 = vld [vmem:[#allocation5 + $0x120] ss:$48 sps:$4 sm:$0xff]   ;;  %v6356_v15 = vld [vmem:[#allocation5 + $0x128] ss:$48 sps:$4 sm:$0xff]   ;;  %v6357_v16 = vld [vmem:[#allocation5 + $0x184] ss:$48 sps:$4 sm:$0xff]  }
  0xd4   : > { %2760 = vmatpush1.bf16.msra.mxu0 %v6343_v6  ;;  %2846 = vmatpush1.bf16.msra.mxu1 %v6344_v7  ;;  %v6359_v17 = vld [vmem:[#allocation5 + $0x18c] ss:$48 sps:$4 sm:$0xff]   ;;  %v6361_v18 = vld [vmem:[#allocation5 + $0x180] ss:$48 sps:$4 sm:$0xff]   ;;  %v6362_v19 = vld [vmem:[#allocation5 + $0x188] ss:$48 sps:$4 sm:$0xff]  }
  0xd5   : > { %2761 = vmatprep.subr.bf16.mxu0 %v6345_v8  ;;  %2847 = vmatprep.subr.bf16.mxu1 %v6347_v9  ;;  %v6363_v20 = vld [vmem:[#allocation5 + $0x1e4] ss:$48 sps:$4 sm:$0xff]   ;;  %v6365_v21 = vld [vmem:[#allocation5 + $0x1ec] ss:$48 sps:$4 sm:$0xff]   ;;  %v6367_v22 = vld [vmem:[#allocation5 + $0x1e0] ss:$48 sps:$4 sm:$0xff]  }
  0xd6   : > { %v6368_v23 = vld [vmem:[#allocation5 + $0x1e8] ss:$48 sps:$4 sm:$0xff]   ;;  %v6369_v24 = vld [vmem:[#allocation5 + $0x244] ss:$48 sps:$4 sm:$0xff]   ;;  %v6371_v25 = vld [vmem:[#allocation5 + $0x24c] ss:$48 sps:$4 sm:$0xff]  }
  0xd7   : > { %v6373_v26 = vld [vmem:[#allocation5 + $0x240] ss:$48 sps:$4 sm:$0xff]   ;;  %v6374_v27 = vld [vmem:[#allocation5 + $0x248] ss:$48 sps:$4 sm:$0xff]   ;;  %v6375_v28 = vld [vmem:[#allocation5 + $0x2a4] ss:$48 sps:$4 sm:$0xff]  }
  0xd8   : > { %2762 = vmatpush1.bf16.msra.mxu0 %v6349_v10  ;;  %2848 = vmatpush1.bf16.msra.mxu1 %v6350_v11  ;;  %v6377_v29 = vld [vmem:[#allocation5 + $0x2ac] ss:$48 sps:$4 sm:$0xff]   ;;  %v6379_v30 = vld [vmem:[#allocation5 + $0x2a0] ss:$48 sps:$4 sm:$0xff]   ;;  %v6380_v31 = vld [vmem:[#allocation5 + $0x2a8] ss:$48 sps:$4 sm:$0xff]  }
  0xd9   : > { %2763 = vmatprep.subr.bf16.mxu0 %v6351_v12  ;;  %2849 = vmatprep.subr.bf16.mxu1 %v6353_v13  ;;  %v6381_v32 = vld [vmem:[#allocation5 + $0x304] ss:$48 sps:$4 sm:$0xff]   ;;  %v6383_v33 = vld [vmem:[#allocation5 + $0x30c] ss:$48 sps:$4 sm:$0xff]   ;;  %v6385_v34 = vld [vmem:[#allocation5 + $0x300] ss:$48 sps:$4 sm:$0xff]  }
  0xda   : > { %v6386_v35 = vld [vmem:[#allocation5 + $0x308] ss:$48 sps:$4 sm:$0xff]   ;;  %v6387_v36 = vld [vmem:[#allocation5 + $0x364] ss:$48 sps:$4 sm:$0xff]   ;;  %v6389_v37 = vld [vmem:[#allocation5 + $0x36c] ss:$48 sps:$4 sm:$0xff]  }
  0xdb   : > { %v6391_v38 = vld [vmem:[#allocation5 + $0x360] ss:$48 sps:$4 sm:$0xff]   ;;  %v6392_v39 = vld [vmem:[#allocation5 + $0x368] ss:$48 sps:$4 sm:$0xff]   ;;  %v6393_v40 = vld [vmem:[#allocation5 + $0x3c4] ss:$48 sps:$4 sm:$0xff]  }
  0xdc   : > { %2764 = vmatpush1.bf16.msra.mxu0 %v6355_v14  ;;  %2850 = vmatpush1.bf16.msra.mxu1 %v6356_v15  ;;  %v6395_v41 = vld [vmem:[#allocation5 + $0x3cc] ss:$48 sps:$4 sm:$0xff]   ;;  %v6397_v42 = vld [vmem:[#allocation5 + $0x3c0] ss:$48 sps:$4 sm:$0xff]   ;;  %v6398_v43 = vld [vmem:[#allocation5 + $0x3c8] ss:$48 sps:$4 sm:$0xff]  }
  0xdd   : > { %2765 = vmatprep.subr.bf16.mxu0 %v6357_v16  ;;  %2851 = vmatprep.subr.bf16.mxu1 %v6359_v17  ;;  %v6399_v44 = vld [vmem:[#allocation5 + $0x424] ss:$48 sps:$4 sm:$0xff]   ;;  %v6401_v45 = vld [vmem:[#allocation5 + $0x42c] ss:$48 sps:$4 sm:$0xff]   ;;  %v6403_v48 = vld [vmem:[#allocation5 + $0x420] ss:$48 sps:$4 sm:$0xff]  }
  0xde   : > { %v378_v46 = vld [vmem:[%s7741_s15 + $0x8] sm:$0xff]  ;;  %v6405_v51 = vld [vmem:[#allocation5 + $0x484] ss:$48 sps:$4 sm:$0xff]   ;;  %v6409_v53 = vld [vmem:[#allocation5 + $0x480] ss:$48 sps:$4 sm:$0xff]   ;;  %vm7439_vm0 = vmmov 0  }
  0xdf   : > { %v382_v47 = vld [vmem:[%s7741_s15 + $0x28] sm:$0xff]  ;;  %v6411_v55 = vld [vmem:[#allocation5 + $0x4e4] ss:$48 sps:$4 sm:$0xff]   ;;  %v6415_v57 = vld [vmem:[#allocation5 + $0x4e0] ss:$48 sps:$4 sm:$0xff]   ;;  %vm3881_vm1 = vcmask 130048  }
  0xe0   : > { %2766 = vmatpush1.bf16.msra.mxu0 %v6361_v18  ;;  %2852 = vmatpush1.bf16.msra.mxu1 %v6362_v19  ;;  %v6404_v49 = vld [vmem:[#allocation5 + $0x428] ss:$48 sps:$4 sm:$0xff]   ;;  %v7761_v50 = vpack.c.bf16 %v382_v47, %v378_v46  ;;  %v6407_v52 = vld [vmem:[#allocation5 + $0x48c] ss:$48 sps:$4 sm:$0xff]   ;;  %v6417_v59 = vld [vmem:[#allocation5 + $0x544] ss:$48 sps:$4 sm:$0xff]  }
  0xe1   : > { %2767 = vmatprep.subr.bf16.mxu0 %v6363_v20  ;;  %2853 = vmatprep.subr.bf16.mxu1 %v6365_v21  ;;  %v6410_v54 = vld [vmem:[#allocation5 + $0x488] ss:$48 sps:$4 sm:$0xff]   ;;  %v6413_v56 = vld [vmem:[#allocation5 + $0x4ec] ss:$48 sps:$4 sm:$0xff]   ;;  %v6421_v61 = vld [vmem:[#allocation5 + $0x540] ss:$48 sps:$4 sm:$0xff]  }
  0xe2   : > { %2789 = vmatprep.mubr.bf16.mxu0 %v7761_v50  ;;  %2875 = vmatprep.mubr.bf16.mxu1 %v7761_v50  ;;  %v6416_v58 = vld [vmem:[#allocation5 + $0x4e8] ss:$48 sps:$4 sm:$0xff]   ;;  %v6419_v60 = vld [vmem:[#allocation5 + $0x54c] ss:$48 sps:$4 sm:$0xff]   ;;  %v6423_v63 = vld [vmem:[#allocation5 + $0x5a4] ss:$48 sps:$4 sm:$0xff]  }
  0xe3   : > { %v6422_v62 = vld [vmem:[#allocation5 + $0x548] ss:$48 sps:$4 sm:$0xff]   ;;  %v6425_v0 = vld [vmem:[#allocation5 + $0x5ac] ss:$48 sps:$4 sm:$0xff]   ;;  %v6427_v1 = vld [vmem:[#allocation5 + $0x5a0] ss:$48 sps:$4 sm:$0xff]  }
  0xe4   : > { %2768 = vmatpush1.bf16.msra.mxu0 %v6367_v22  ;;  %2854 = vmatpush1.bf16.msra.mxu1 %v6368_v23  ;;  %v6428_v2 = vld [vmem:[#allocation5 + $0x5a8] ss:$48 sps:$4 sm:$0xff]   ;;  %v6431_v3 = vld [vmem:[#allocation5 + $0x604] ss:$48 sps:$4 sm:$0xff]   ;;  %v6434_v6 = vld [vmem:[#allocation5 + $0x60c] ss:$48 sps:$4 sm:$0xff]  }
  0xe5   : > { %2769 = vmatprep.subr.bf16.mxu0 %v6369_v24  ;;  %2855 = vmatprep.subr.bf16.mxu1 %v6371_v25  ;;  %v377_v4 = vld [vmem:[%s7741_s15] sm:$0xff]  ;;  %v6432_v8 = vld [vmem:[#allocation5 + $0x608] ss:$48 sps:$4 sm:$0xff]   ;;  %v6440_v11 = vld [vmem:[#allocation5 + $0x66c] ss:$48 sps:$4 sm:$0xff]   ;;  %s6084_s8 = sshll.u32 %s7505_s30, 10 }
  0xe6   : > { %v381_v5 = vld [vmem:[%s7741_s15 + $0x20] sm:$0xff]  ;;  %v6438_v13 = vld [vmem:[#allocation5 + $0x668] ss:$48 sps:$4 sm:$0xff]   ;;  %v6446_v15 = vld [vmem:[#allocation5 + $0x6cc] ss:$48 sps:$4 sm:$0xff]   ;;  %s375_s13 = scalar_lea.vmem [#allocation14], %s5554_s14  ;;  %s8026_s30 = scalar_lea.hbm %s8079_s7, %s6084_s8 }
  0xe7   : > { %v6429_v7 = vld [vmem:[#allocation5 + $0x600] ss:$48 sps:$4 sm:$0xff]   ;;  %v7767_v9 = vpack.c.bf16 %v381_v5, %v377_v4  ;;  %v6437_v10 = vld [vmem:[#allocation5 + $0x664] ss:$48 sps:$4 sm:$0xff]   ;;  %v6444_v17 = vld [vmem:[#allocation5 + $0x6c8] ss:$48 sps:$4 sm:$0xff]  }
  0xe8   : > { %2770 = vmatpush1.bf16.msra.mxu0 %v6373_v26  ;;  %2856 = vmatpush1.bf16.msra.mxu1 %v6374_v27  ;;  %v6435_v12 = vld [vmem:[#allocation5 + $0x660] ss:$48 sps:$4 sm:$0xff]   ;;  %v6443_v14 = vld [vmem:[#allocation5 + $0x6c4] ss:$48 sps:$4 sm:$0xff]   ;;  %v6452_v19 = vld [vmem:[#allocation5 + $0x72c] ss:$48 sps:$4 sm:$0xff]  }
  0xe9   : > { %2771 = vmatprep.subr.bf16.mxu0 %v6375_v28  ;;  %2857 = vmatprep.subr.bf16.mxu1 %v6377_v29  ;;  %v6441_v16 = vld [vmem:[#allocation5 + $0x6c0] ss:$48 sps:$4 sm:$0xff]   ;;  %v6449_v18 = vld [vmem:[#allocation5 + $0x724] ss:$48 sps:$4 sm:$0xff]   ;;  %v6450_v21 = vld [vmem:[#allocation5 + $0x728] ss:$48 sps:$4 sm:$0xff]  }
  0xea   : > { %v6447_v20 = vld [vmem:[#allocation5 + $0x720] ss:$48 sps:$4 sm:$0xff]   ;;  %v6455_v22 = vld [vmem:[#allocation5 + $0x784] ss:$48 sps:$4 sm:$0xff]   ;;  %v6458_v23 = vld [vmem:[#allocation5 + $0x78c] ss:$48 sps:$4 sm:$0xff]  }
  0xeb   : > { %v6453_v24 = vld [vmem:[#allocation5 + $0x780] ss:$48 sps:$4 sm:$0xff]   ;;  %v6456_v25 = vld [vmem:[#allocation5 + $0x788] ss:$48 sps:$4 sm:$0xff]   ;;  %v6461_v26 = vld [vmem:[#allocation5 + $0x7e4] ss:$48 sps:$4 sm:$0xff]  }
  0xec   : > { %2772 = vmatpush1.bf16.msra.mxu0 %v6379_v30  ;;  %2858 = vmatpush1.bf16.msra.mxu1 %v6380_v31  ;;  %v6464_v27 = vld [vmem:[#allocation5 + $0x7ec] ss:$48 sps:$4 sm:$0xff]   ;;  %v6459_v28 = vld [vmem:[#allocation5 + $0x7e0] ss:$48 sps:$4 sm:$0xff]   ;;  %v6462_v29 = vld [vmem:[#allocation5 + $0x7e8] ss:$48 sps:$4 sm:$0xff]  }
  0xed   : > { %2773 = vmatprep.subr.bf16.mxu0 %v6381_v32  ;;  %2859 = vmatprep.subr.bf16.mxu1 %v6383_v33  ;;  %v6467_v30 = vld [vmem:[#allocation5 + $0x844] ss:$48 sps:$4 sm:$0xff]   ;;  %v6470_v31 = vld [vmem:[#allocation5 + $0x84c] ss:$48 sps:$4 sm:$0xff]   ;;  %v6465_v33 = vld [vmem:[#allocation5 + $0x840] ss:$48 sps:$4 sm:$0xff]  }
  0xee   : > { %v380_v32 = vld [vmem:[%s7741_s15 + $0x18] sm:$0xff]  ;;  %v6483_v47 = vld [vmem:[#allocation5 + $0x960] ss:$48 sps:$4 sm:$0xff]   ;;  %s5411_s9 = sshll.u32 %s375_s13, 4  ;;  %s5398_s17 = scalar_lea.sflag [#allocation4], %s7735_s12  ;;  %s8028_s9 = int_to_ptr.vmem [resolvable:$true] %s5411_s9 }
  0xef   : > { %v6488_v46 = vld [vmem:[#allocation5 + $0x96c] ss:$48 sps:$4 sm:$0xff]   ;;  %v6513_v4 = vld [vmem:[#allocation5 + $0xb40] ss:$48 sps:$4 sm:$0xff]   ;;  %v6516_v5 = vld [vmem:[#allocation5 + $0xb48] ss:$48 sps:$4 sm:$0xff]  }
  0xf0   : > { %2774 = vmatpush1.bf16.msra.mxu0 %v6385_v34  ;;  %2860 = vmatpush1.bf16.msra.mxu1 %v6386_v35  ;;  %v6468_v34 = vld [vmem:[#allocation5 + $0x848] ss:$48 sps:$4 sm:$0xff]   ;;  %s7343_s22 = scalar_lea.vmem %s8028_s9, 1024  ;;  %p8099_p5 = scmp.ne.s32.totalorder %s8089_s10, 0 }
  0xf1   : > { %2775 = vmatprep.subr.bf16.mxu0 %v6387_v36  ;;  %2861 = vmatprep.subr.bf16.mxu1 %v6389_v37  ;;  %v384_v35 = vld [vmem:[%s7741_s15 + $0x38] sm:$0xff]  ;;  %v6473_v36 = vld [vmem:[#allocation5 + $0x8a4] ss:$48 sps:$4 sm:$0xff]   ;;  %p7344_p6 = scmp.ne.s32.totalorder %s8028_s9, %s7343_s22  ;;  %s7441_s28 = smov [#allocation14]  }
  0xf2   : > { %v7773_v37 = vpack.c.bf16 %v384_v35, %v380_v32  ;;  %v6549_v32 = vld [vmem:[#allocation5 + $0x190] ss:$48 sps:$4 sm:$0xff]   ;;  %v6560_v35 = vld [vmem:[#allocation5 + $0x1fc] ss:$48 sps:$4 sm:$0xff]   ;;  %s7347_s23 = sshll.u32 %s7441_s28, 4  ;;  %s7348_s23 = int_to_ptr.vmem [resolvable:$false] %s7347_s23 }
  0xf3   : > { %p7345_p10 = pnand %p7344_p6, %p8099_p5  ;;  %s7349_s20 = scalar_lea.vmem %s7348_s23, 2048 }
  0xf4   : > { %2776 = vmatpush1.bf16.msra.mxu0 %v6391_v38  ;;  %2862 = vmatpush1.bf16.msra.mxu1 %v6392_v39  ;;  %v6476_v38 = vld [vmem:[#allocation5 + $0x8ac] ss:$48 sps:$4 sm:$0xff]   ;;  %v6471_v39 = vld [vmem:[#allocation5 + $0x8a0] ss:$48 sps:$4 sm:$0xff]   ;;  %p7350_p11 = scmp.lt.s32.totalorder %s8028_s9, %s7348_s23  ;;  %p7351_p12 = scmp.lt.s32.totalorder %s7349_s20, %s7343_s22 }
  0xf5   : > { %2777 = vmatprep.subr.bf16.mxu0 %v6393_v40  ;;  %2863 = vmatprep.subr.bf16.mxu1 %v6395_v41  ;;  %v6474_v40 = vld [vmem:[#allocation5 + $0x8a8] ss:$48 sps:$4 sm:$0xff]   ;;  %v6479_v41 = vld [vmem:[#allocation5 + $0x904] ss:$48 sps:$4 sm:$0xff]   ;;  %p7346_p1 = pneg %p7345_p10 }
  0xf6   : > { %p7352_p13 = por %p7351_p12, %p7350_p11 }
  0xf8   : > { %2778 = vmatpush1.bf16.msra.mxu0 %v6397_v42  ;;  %2864 = vmatpush1.bf16.msra.mxu1 %v6398_v43  ;;  %v6482_v42 = vld [vmem:[#allocation5 + $0x90c] ss:$48 sps:$4 sm:$0xff]   ;;  %v6477_v43 = vld [vmem:[#allocation5 + $0x900] ss:$48 sps:$4 sm:$0xff]   ;;  %p7353_p8 = pnand %p7352_p13, %p7346_p1 }
  0xf9   : > { %2779 = vmatprep.subr.bf16.mxu0 %v6399_v44  ;;  %2865 = vmatprep.subr.bf16.mxu1 %v6401_v45  ;;  %v6480_v44 = vld [vmem:[#allocation5 + $0x908] ss:$48 sps:$4 sm:$0xff]   ;;  %v6485_v45 = vld [vmem:[#allocation5 + $0x964] ss:$48 sps:$4 sm:$0xff]  }
  0xfc   : > { %2780 = vmatpush1.bf16.msra.mxu0 %v6403_v48  ;;  %2866 = vmatpush1.bf16.msra.mxu1 %v6404_v49  ;;  %v6486_v48 = vld [vmem:[#allocation5 + $0x968] ss:$48 sps:$4 sm:$0xff]   ;;  %v6491_v49 = vld [vmem:[#allocation5 + $0x9c4] ss:$48 sps:$4 sm:$0xff]  }
  0xfd   : > { %2781 = vmatprep.subr.bf16.mxu0 %v6405_v51  ;;  %2867 = vmatprep.subr.bf16.mxu1 %v6407_v52  ;;  %v6494_v51 = vld [vmem:[#allocation5 + $0x9cc] ss:$48 sps:$4 sm:$0xff]   ;;  %v6489_v52 = vld [vmem:[#allocation5 + $0x9c0] ss:$48 sps:$4 sm:$0xff]  }
 0x100   : > { %2782 = vmatpush1.bf16.msra.mxu0 %v6409_v53  ;;  %2868 = vmatpush1.bf16.msra.mxu1 %v6410_v54  ;;  %v6492_v53 = vld [vmem:[#allocation5 + $0x9c8] ss:$48 sps:$4 sm:$0xff]   ;;  %v6497_v54 = vld [vmem:[#allocation5 + $0xa24] ss:$48 sps:$4 sm:$0xff]  }
 0x101   : > { %2783 = vmatprep.subr.bf16.mxu0 %v6411_v55  ;;  %2869 = vmatprep.subr.bf16.mxu1 %v6413_v56  ;;  %v6500_v55 = vld [vmem:[#allocation5 + $0xa2c] ss:$48 sps:$4 sm:$0xff]   ;;  %v6495_v56 = vld [vmem:[#allocation5 + $0xa20] ss:$48 sps:$4 sm:$0xff]  }
 0x104   : > { %2784 = vmatpush1.bf16.msra.mxu0 %v6415_v57  ;;  %2870 = vmatpush1.bf16.msra.mxu1 %v6416_v58  ;;  %v6498_v57 = vld [vmem:[#allocation5 + $0xa28] ss:$48 sps:$4 sm:$0xff]   ;;  %v6503_v58 = vld [vmem:[#allocation5 + $0xa84] ss:$48 sps:$4 sm:$0xff]  }
 0x105   : > { %2785 = vmatprep.subr.bf16.mxu0 %v6417_v59  ;;  %2871 = vmatprep.subr.bf16.mxu1 %v6419_v60  ;;  %v6506_v59 = vld [vmem:[#allocation5 + $0xa8c] ss:$48 sps:$4 sm:$0xff]   ;;  %v6501_v60 = vld [vmem:[#allocation5 + $0xa80] ss:$48 sps:$4 sm:$0xff]  }
 0x108   : > { %2786 = vmatpush1.bf16.msra.mxu0 %v6421_v61  ;;  %2872 = vmatpush1.bf16.msra.mxu1 %v6422_v62  ;;  %v6504_v61 = vld [vmem:[#allocation5 + $0xa88] ss:$48 sps:$4 sm:$0xff]   ;;  %v6509_v62 = vld [vmem:[#allocation5 + $0xae4] ss:$48 sps:$4 sm:$0xff]  }
 0x109   : > { %2787 = vmatprep.subr.bf16.mxu0 %v6423_v63  ;;  %2873 = vmatprep.subr.bf16.mxu1 %v6425_v0  ;;  %v6512_v63 = vld [vmem:[#allocation5 + $0xaec] ss:$48 sps:$4 sm:$0xff]   ;;  %v6507_v0 = vld [vmem:[#allocation5 + $0xae0] ss:$48 sps:$4 sm:$0xff]  }
 0x10c   : > { %2788 = vmatpush1.bf16.msra.mxu0 %v6427_v1  ;;  %2874 = vmatpush1.bf16.msra.mxu1 %v6428_v2  ;;  %v6510_v1 = vld [vmem:[#allocation5 + $0xae8] ss:$48 sps:$4 sm:$0xff]   ;;  %v6515_v2 = vld [vmem:[#allocation5 + $0xb44] ss:$48 sps:$4 sm:$0xff]  }
 0x10d   : > { %2800 = vmatprep.subr.bf16.mxu0 %v6431_v3  ;;  %2886 = vmatprep.subr.bf16.mxu1 %v6434_v6  ;;  %v6518_v3 = vld [vmem:[#allocation5 + $0xb4c] ss:$48 sps:$4 sm:$0xff]   ;;  %v6521_v6 = vld [vmem:[#allocation5 + $0xba4] ss:$48 sps:$4 sm:$0xff]  }
 0x10f   : > { %2790 = vmatmul.mubr.bf16.vlgmr.msra.gmra.mrb[0].mxu0 %v7767_v9  ;;  %2876 = vmatmul.mubr.bf16.vlgmr.msra.gmra.mrb[0].mxu1 %v7767_v9 }
 0x110   : > { %2801 = vmatpush1.bf16.msra.mxu0 %v6429_v7  ;;  %2887 = vmatpush1.bf16.msra.mxu1 %v6432_v8  ;;  %v6524_v7 = vld [vmem:[#allocation5 + $0xbac] ss:$48 sps:$4 sm:$0xff]   ;;  %v6519_v8 = vld [vmem:[#allocation5 + $0xba0] ss:$48 sps:$4 sm:$0xff]  }
 0x111   : > { %2802 = vmatprep.subr.bf16.mxu0 %v6437_v10  ;;  %2888 = vmatprep.subr.bf16.mxu1 %v6440_v11  ;;  %v6522_v10 = vld [vmem:[#allocation5 + $0xba8] ss:$48 sps:$4 sm:$0xff]   ;;  %v379_v11 = vld [vmem:[%s7741_s15 + $0x10] sm:$0xff] }
 0x112   : > { %2832 = vmatprep.mubr.bf16.mxu0 %v7773_v37  ;;  %2918 = vmatprep.mubr.bf16.mxu1 %v7773_v37 }
 0x114   : > { %2803 = vmatpush1.bf16.msra.mxu0 %v6435_v12  ;;  %2889 = vmatpush1.bf16.msra.mxu1 %v6438_v13  ;;  %v383_v12 = vld [vmem:[%s7741_s15 + $0x30] sm:$0xff] }
 0x115   : > { %2804 = vmatprep.subr.bf16.mxu0 %v6443_v14  ;;  %2890 = vmatprep.subr.bf16.mxu1 %v6446_v15  ;;  %v6527_v13 = vld [vmem:[#allocation5 + $0x14] ss:$48 sps:$4 sm:$0xff]   ;;  %v6530_v14 = vld [vmem:[#allocation5 + $0x1c] ss:$48 sps:$4 sm:$0xff]   ;;  %v7779_v15 = vpack.c.bf16 %v383_v12, %v379_v11  ;;  %v6609_v11 = vld [vmem:[#allocation5 + $0x550] ss:$48 sps:$4 sm:$0xff]  }
 0x116   : > { %v6612_v12 = vld [vmem:[#allocation5 + $0x558] ss:$48 sps:$4 sm:$0xff]  }
 0x118   : > { %2805 = vmatpush1.bf16.msra.mxu0 %v6441_v16  ;;  %2891 = vmatpush1.bf16.msra.mxu1 %v6444_v17  ;;  %v6525_v16 = vld [vmem:[#allocation5 + $0x10] ss:$48 sps:$4 sm:$0xff]   ;;  %v6528_v17 = vld [vmem:[#allocation5 + $0x18] ss:$48 sps:$4 sm:$0xff]  }
 0x119   : > { %2806 = vmatprep.subr.bf16.mxu0 %v6449_v18  ;;  %2892 = vmatprep.subr.bf16.mxu1 %v6452_v19  ;;  %v6533_v18 = vld [vmem:[#allocation5 + $0x74] ss:$48 sps:$4 sm:$0xff]   ;;  %v6536_v19 = vld [vmem:[#allocation5 + $0x7c] ss:$48 sps:$4 sm:$0xff]  }
 0x11c   : > { %2807 = vmatpush1.bf16.msra.mxu0 %v6447_v20  ;;  %2893 = vmatpush1.bf16.msra.mxu1 %v6450_v21  ;;  %v6531_v20 = vld [vmem:[#allocation5 + $0x70] ss:$48 sps:$4 sm:$0xff]   ;;  %v6534_v21 = vld [vmem:[#allocation5 + $0x78] ss:$48 sps:$4 sm:$0xff]  }
 0x11d   : > { %2808 = vmatprep.subr.bf16.mxu0 %v6455_v22  ;;  %2894 = vmatprep.subr.bf16.mxu1 %v6458_v23  ;;  %v6539_v22 = vld [vmem:[#allocation5 + $0xd4] ss:$48 sps:$4 sm:$0xff]   ;;  %v6542_v23 = vld [vmem:[#allocation5 + $0xdc] ss:$48 sps:$4 sm:$0xff]  }
 0x120   : > { %2809 = vmatpush1.bf16.msra.mxu0 %v6453_v24  ;;  %2895 = vmatpush1.bf16.msra.mxu1 %v6456_v25  ;;  %v6537_v24 = vld [vmem:[#allocation5 + $0xd0] ss:$48 sps:$4 sm:$0xff]   ;;  %v6540_v25 = vld [vmem:[#allocation5 + $0xd8] ss:$48 sps:$4 sm:$0xff]  }
 0x121   : > { %2810 = vmatprep.subr.bf16.mxu0 %v6461_v26  ;;  %2896 = vmatprep.subr.bf16.mxu1 %v6464_v27  ;;  %v6545_v26 = vld [vmem:[#allocation5 + $0x134] ss:$48 sps:$4 sm:$0xff]   ;;  %v6548_v27 = vld [vmem:[#allocation5 + $0x13c] ss:$48 sps:$4 sm:$0xff]  }
 0x124   : > { %2811 = vmatpush1.bf16.msra.mxu0 %v6459_v28  ;;  %2897 = vmatpush1.bf16.msra.mxu1 %v6462_v29  ;;  %v6543_v28 = vld [vmem:[#allocation5 + $0x130] ss:$48 sps:$4 sm:$0xff]   ;;  %v6546_v29 = vld [vmem:[#allocation5 + $0x138] ss:$48 sps:$4 sm:$0xff]  }
 0x125   : > { %2812 = vmatprep.subr.bf16.mxu0 %v6467_v30  ;;  %2898 = vmatprep.subr.bf16.mxu1 %v6470_v31  ;;  %v6551_v30 = vld [vmem:[#allocation5 + $0x194] ss:$48 sps:$4 sm:$0xff]   ;;  %v6554_v31 = vld [vmem:[#allocation5 + $0x19c] ss:$48 sps:$4 sm:$0xff]  }
 0x128   : > { %2813 = vmatpush1.bf16.msra.mxu0 %v6465_v33  ;;  %2899 = vmatpush1.bf16.msra.mxu1 %v6468_v34  ;;  %v6552_v33 = vld [vmem:[#allocation5 + $0x198] ss:$48 sps:$4 sm:$0xff]   ;;  %v6557_v34 = vld [vmem:[#allocation5 + $0x1f4] ss:$48 sps:$4 sm:$0xff]  }
 0x129   : > { %2814 = vmatprep.subr.bf16.mxu0 %v6473_v36  ;;  %2900 = vmatprep.subr.bf16.mxu1 %v6476_v38  ;;  %v6555_v36 = vld [vmem:[#allocation5 + $0x1f0] ss:$48 sps:$4 sm:$0xff]   ;;  %v6558_v38 = vld [vmem:[#allocation5 + $0x1f8] ss:$48 sps:$4 sm:$0xff]  }
 0x12c   : > { %2815 = vmatpush1.bf16.msra.mxu0 %v6471_v39  ;;  %2901 = vmatpush1.bf16.msra.mxu1 %v6474_v40  ;;  %v6563_v39 = vld [vmem:[#allocation5 + $0x254] ss:$48 sps:$4 sm:$0xff]   ;;  %v6566_v40 = vld [vmem:[#allocation5 + $0x25c] ss:$48 sps:$4 sm:$0xff]  }
 0x12d   : > { %2816 = vmatprep.subr.bf16.mxu0 %v6479_v41  ;;  %2902 = vmatprep.subr.bf16.mxu1 %v6482_v42  ;;  %v6561_v41 = vld [vmem:[#allocation5 + $0x250] ss:$48 sps:$4 sm:$0xff]   ;;  %v6564_v42 = vld [vmem:[#allocation5 + $0x258] ss:$48 sps:$4 sm:$0xff]  }
 0x130   : > { %2817 = vmatpush1.bf16.msra.mxu0 %v6477_v43  ;;  %2903 = vmatpush1.bf16.msra.mxu1 %v6480_v44  ;;  %v6569_v43 = vld [vmem:[#allocation5 + $0x2b4] ss:$48 sps:$4 sm:$0xff]   ;;  %v6572_v44 = vld [vmem:[#allocation5 + $0x2bc] ss:$48 sps:$4 sm:$0xff]  }
 0x131   : > { %2818 = vmatprep.subr.bf16.mxu0 %v6485_v45  ;;  %2904 = vmatprep.subr.bf16.mxu1 %v6488_v46  ;;  %v6567_v45 = vld [vmem:[#allocation5 + $0x2b0] ss:$48 sps:$4 sm:$0xff]   ;;  %v6570_v46 = vld [vmem:[#allocation5 + $0x2b8] ss:$48 sps:$4 sm:$0xff]  }
 0x134   : > { %2819 = vmatpush1.bf16.msra.mxu0 %v6483_v47  ;;  %2905 = vmatpush1.bf16.msra.mxu1 %v6486_v48  ;;  %v6575_v47 = vld [vmem:[#allocation5 + $0x314] ss:$48 sps:$4 sm:$0xff]   ;;  %v6578_v48 = vld [vmem:[#allocation5 + $0x31c] ss:$48 sps:$4 sm:$0xff]  }
 0x135   : > { %2820 = vmatprep.subr.bf16.mxu0 %v6491_v49  ;;  %2906 = vmatprep.subr.bf16.mxu1 %v6494_v51  ;;  %v6573_v49 = vld [vmem:[#allocation5 + $0x310] ss:$48 sps:$4 sm:$0xff]   ;;  %v6576_v51 = vld [vmem:[#allocation5 + $0x318] ss:$48 sps:$4 sm:$0xff]  }
 0x138   : > { %2821 = vmatpush1.bf16.msra.mxu0 %v6489_v52  ;;  %2907 = vmatpush1.bf16.msra.mxu1 %v6492_v53  ;;  %v6581_v52 = vld [vmem:[#allocation5 + $0x374] ss:$48 sps:$4 sm:$0xff]   ;;  %v6584_v53 = vld [vmem:[#allocation5 + $0x37c] ss:$48 sps:$4 sm:$0xff]  }
 0x139   : > { %2822 = vmatprep.subr.bf16.mxu0 %v6497_v54  ;;  %2908 = vmatprep.subr.bf16.mxu1 %v6500_v55  ;;  %v6579_v54 = vld [vmem:[#allocation5 + $0x370] ss:$48 sps:$4 sm:$0xff]   ;;  %v6582_v55 = vld [vmem:[#allocation5 + $0x378] ss:$48 sps:$4 sm:$0xff]  }
 0x13c   : > { %2823 = vmatpush1.bf16.msra.mxu0 %v6495_v56  ;;  %2909 = vmatpush1.bf16.msra.mxu1 %v6498_v57  ;;  %v6587_v56 = vld [vmem:[#allocation5 + $0x3d4] ss:$48 sps:$4 sm:$0xff]   ;;  %v6590_v57 = vld [vmem:[#allocation5 + $0x3dc] ss:$48 sps:$4 sm:$0xff]  }
 0x13d   : > { %2824 = vmatprep.subr.bf16.mxu0 %v6503_v58  ;;  %2910 = vmatprep.subr.bf16.mxu1 %v6506_v59  ;;  %v6585_v58 = vld [vmem:[#allocation5 + $0x3d0] ss:$48 sps:$4 sm:$0xff]   ;;  %v6588_v59 = vld [vmem:[#allocation5 + $0x3d8] ss:$48 sps:$4 sm:$0xff]  }
 0x140   : > { %2825 = vmatpush1.bf16.msra.mxu0 %v6501_v60  ;;  %2911 = vmatpush1.bf16.msra.mxu1 %v6504_v61  ;;  %v6593_v60 = vld [vmem:[#allocation5 + $0x434] ss:$48 sps:$4 sm:$0xff]   ;;  %v6596_v61 = vld [vmem:[#allocation5 + $0x43c] ss:$48 sps:$4 sm:$0xff]  }
 0x141   : > { %2826 = vmatprep.subr.bf16.mxu0 %v6509_v62  ;;  %2912 = vmatprep.subr.bf16.mxu1 %v6512_v63  ;;  %v6591_v62 = vld [vmem:[#allocation5 + $0x430] ss:$48 sps:$4 sm:$0xff]   ;;  %v6594_v63 = vld [vmem:[#allocation5 + $0x438] ss:$48 sps:$4 sm:$0xff]  }
 0x144   : > { %2827 = vmatpush1.bf16.msra.mxu0 %v6507_v0  ;;  %2913 = vmatpush1.bf16.msra.mxu1 %v6510_v1  ;;  %v6599_v0 = vld [vmem:[#allocation5 + $0x494] ss:$48 sps:$4 sm:$0xff]   ;;  %v6602_v1 = vld [vmem:[#allocation5 + $0x49c] ss:$48 sps:$4 sm:$0xff]  }
 0x145   : > { %2828 = vmatprep.subr.bf16.mxu0 %v6515_v2  ;;  %2914 = vmatprep.subr.bf16.mxu1 %v6518_v3  ;;  %v6597_v2 = vld [vmem:[#allocation5 + $0x490] ss:$48 sps:$4 sm:$0xff]   ;;  %v6600_v3 = vld [vmem:[#allocation5 + $0x498] ss:$48 sps:$4 sm:$0xff]  }
 0x148   : > { %2829 = vmatpush1.bf16.msra.mxu0 %v6513_v4  ;;  %2915 = vmatpush1.bf16.msra.mxu1 %v6516_v5  ;;  %v6605_v4 = vld [vmem:[#allocation5 + $0x4f4] ss:$48 sps:$4 sm:$0xff]   ;;  %v6608_v5 = vld [vmem:[#allocation5 + $0x4fc] ss:$48 sps:$4 sm:$0xff]  }
 0x149   : > { %2830 = vmatprep.subr.bf16.mxu0 %v6521_v6  ;;  %2916 = vmatprep.subr.bf16.mxu1 %v6524_v7  ;;  %v6603_v6 = vld [vmem:[#allocation5 + $0x4f0] ss:$48 sps:$4 sm:$0xff]   ;;  %v6606_v7 = vld [vmem:[#allocation5 + $0x4f8] ss:$48 sps:$4 sm:$0xff]  }
 0x14c   : > { %2831 = vmatpush1.bf16.msra.mxu0 %v6519_v8  ;;  %2917 = vmatpush1.bf16.msra.mxu1 %v6522_v10  ;;  %v6611_v8 = vld [vmem:[#allocation5 + $0x554] ss:$48 sps:$4 sm:$0xff]   ;;  %v6614_v10 = vld [vmem:[#allocation5 + $0x55c] ss:$48 sps:$4 sm:$0xff]  }
 0x14d   : > { %2929 = vmatprep.subr.bf16.mxu0 %v6527_v13  ;;  %3015 = vmatprep.subr.bf16.mxu1 %v6530_v14  ;;  %v6617_v13 = vld [vmem:[#allocation5 + $0x5b4] ss:$48 sps:$4 sm:$0xff]   ;;  %v6620_v14 = vld [vmem:[#allocation5 + $0x5bc] ss:$48 sps:$4 sm:$0xff]  }
 0x14f   : > { %2833 = vmatmul.mubr.bf16.vlgmr.msra.gmra.mrb[0].mxu0 %v7779_v15  ;;  %2919 = vmatmul.mubr.bf16.vlgmr.msra.gmra.mrb[0].mxu1 %v7779_v15 }
 0x150   : > { %2930 = vmatpush1.bf16.msra.mxu0 %v6525_v16  ;;  %3016 = vmatpush1.bf16.msra.mxu1 %v6528_v17  ;;  %v6615_v16 = vld [vmem:[#allocation5 + $0x5b0] ss:$48 sps:$4 sm:$0xff]   ;;  %v6618_v17 = vld [vmem:[#allocation5 + $0x5b8] ss:$48 sps:$4 sm:$0xff]  }
 0x151   : > { %2931 = vmatprep.subr.bf16.mxu0 %v6533_v18  ;;  %3017 = vmatprep.subr.bf16.mxu1 %v6536_v19  ;;  %v6623_v18 = vld [vmem:[#allocation5 + $0x614] ss:$48 sps:$4 sm:$0xff]   ;;  %v6626_v19 = vld [vmem:[#allocation5 + $0x61c] ss:$48 sps:$4 sm:$0xff]  }
 0x152   : > { %2961 = vmatprep.mubr.bf16.mxu0 %v7761_v50  ;;  %3047 = vmatprep.mubr.bf16.mxu1 %v7761_v50 }
 0x154   : > { %2932 = vmatpush1.bf16.msra.mxu0 %v6531_v20  ;;  %3018 = vmatpush1.bf16.msra.mxu1 %v6534_v21  ;;  %v6621_v20 = vld [vmem:[#allocation5 + $0x610] ss:$48 sps:$4 sm:$0xff]   ;;  %v6624_v21 = vld [vmem:[#allocation5 + $0x618] ss:$48 sps:$4 sm:$0xff]  }
 0x155   : > { %2933 = vmatprep.subr.bf16.mxu0 %v6539_v22  ;;  %3019 = vmatprep.subr.bf16.mxu1 %v6542_v23  ;;  %v6629_v22 = vld [vmem:[#allocation5 + $0x674] ss:$48 sps:$4 sm:$0xff]   ;;  %v6632_v23 = vld [vmem:[#allocation5 + $0x67c] ss:$48 sps:$4 sm:$0xff]  }
 0x158   : > { %2934 = vmatpush1.bf16.msra.mxu0 %v6537_v24  ;;  %3020 = vmatpush1.bf16.msra.mxu1 %v6540_v25  ;;  %v6627_v24 = vld [vmem:[#allocation5 + $0x670] ss:$48 sps:$4 sm:$0xff]   ;;  %v6630_v25 = vld [vmem:[#allocation5 + $0x678] ss:$48 sps:$4 sm:$0xff]  }
 0x159   : > { %2935 = vmatprep.subr.bf16.mxu0 %v6545_v26  ;;  %3021 = vmatprep.subr.bf16.mxu1 %v6548_v27  ;;  %v6635_v26 = vld [vmem:[#allocation5 + $0x6d4] ss:$48 sps:$4 sm:$0xff]   ;;  %v6638_v27 = vld [vmem:[#allocation5 + $0x6dc] ss:$48 sps:$4 sm:$0xff]  }
 0x15c   : > { %2936 = vmatpush1.bf16.msra.mxu0 %v6543_v28  ;;  %3022 = vmatpush1.bf16.msra.mxu1 %v6546_v29  ;;  %v6633_v28 = vld [vmem:[#allocation5 + $0x6d0] ss:$48 sps:$4 sm:$0xff]   ;;  %v6636_v29 = vld [vmem:[#allocation5 + $0x6d8] ss:$48 sps:$4 sm:$0xff]  }
 0x15d   : > { %2937 = vmatprep.subr.bf16.mxu0 %v6551_v30  ;;  %3023 = vmatprep.subr.bf16.mxu1 %v6554_v31  ;;  %v6641_v30 = vld [vmem:[#allocation5 + $0x734] ss:$48 sps:$4 sm:$0xff]   ;;  %v6644_v31 = vld [vmem:[#allocation5 + $0x73c] ss:$48 sps:$4 sm:$0xff]  }
 0x160   : > { %2938 = vmatpush1.bf16.msra.mxu0 %v6549_v32  ;;  %3024 = vmatpush1.bf16.msra.mxu1 %v6552_v33  ;;  %v6639_v32 = vld [vmem:[#allocation5 + $0x730] ss:$48 sps:$4 sm:$0xff]   ;;  %v6642_v33 = vld [vmem:[#allocation5 + $0x738] ss:$48 sps:$4 sm:$0xff]  }
 0x161   : > { %2939 = vmatprep.subr.bf16.mxu0 %v6557_v34  ;;  %3025 = vmatprep.subr.bf16.mxu1 %v6560_v35  ;;  %v6647_v34 = vld [vmem:[#allocation5 + $0x794] ss:$48 sps:$4 sm:$0xff]   ;;  %v6650_v35 = vld [vmem:[#allocation5 + $0x79c] ss:$48 sps:$4 sm:$0xff]  }
 0x164   : > { %2940 = vmatpush1.bf16.msra.mxu0 %v6555_v36  ;;  %3026 = vmatpush1.bf16.msra.mxu1 %v6558_v38  ;;  %v6645_v36 = vld [vmem:[#allocation5 + $0x790] ss:$48 sps:$4 sm:$0xff]   ;;  %v6648_v38 = vld [vmem:[#allocation5 + $0x798] ss:$48 sps:$4 sm:$0xff]  }
 0x165   : > { %2941 = vmatprep.subr.bf16.mxu0 %v6563_v39  ;;  %3027 = vmatprep.subr.bf16.mxu1 %v6566_v40  ;;  %v6653_v39 = vld [vmem:[#allocation5 + $0x7f4] ss:$48 sps:$4 sm:$0xff]   ;;  %v6656_v40 = vld [vmem:[#allocation5 + $0x7fc] ss:$48 sps:$4 sm:$0xff]  }
 0x168   : > { %2942 = vmatpush1.bf16.msra.mxu0 %v6561_v41  ;;  %3028 = vmatpush1.bf16.msra.mxu1 %v6564_v42  ;;  %v6651_v41 = vld [vmem:[#allocation5 + $0x7f0] ss:$48 sps:$4 sm:$0xff]   ;;  %v6654_v42 = vld [vmem:[#allocation5 + $0x7f8] ss:$48 sps:$4 sm:$0xff]  }
 0x169   : > { %2943 = vmatprep.subr.bf16.mxu0 %v6569_v43  ;;  %3029 = vmatprep.subr.bf16.mxu1 %v6572_v44  ;;  %v6659_v43 = vld [vmem:[#allocation5 + $0x854] ss:$48 sps:$4 sm:$0xff]   ;;  %v6662_v44 = vld [vmem:[#allocation5 + $0x85c] ss:$48 sps:$4 sm:$0xff]  }
 0x16c   : > { %2944 = vmatpush1.bf16.msra.mxu0 %v6567_v45  ;;  %3030 = vmatpush1.bf16.msra.mxu1 %v6570_v46  ;;  %v6657_v45 = vld [vmem:[#allocation5 + $0x850] ss:$48 sps:$4 sm:$0xff]   ;;  %v6660_v46 = vld [vmem:[#allocation5 + $0x858] ss:$48 sps:$4 sm:$0xff]  }
 0x16d   : > { %2945 = vmatprep.subr.bf16.mxu0 %v6575_v47  ;;  %3031 = vmatprep.subr.bf16.mxu1 %v6578_v48  ;;  %v6665_v47 = vld [vmem:[#allocation5 + $0x8b4] ss:$48 sps:$4 sm:$0xff]   ;;  %v6668_v48 = vld [vmem:[#allocation5 + $0x8bc] ss:$48 sps:$4 sm:$0xff]  }
 0x170   : > { %2946 = vmatpush1.bf16.msra.mxu0 %v6573_v49  ;;  %3032 = vmatpush1.bf16.msra.mxu1 %v6576_v51  ;;  %v6663_v49 = vld [vmem:[#allocation5 + $0x8b0] ss:$48 sps:$4 sm:$0xff]   ;;  %v6666_v51 = vld [vmem:[#allocation5 + $0x8b8] ss:$48 sps:$4 sm:$0xff]  }
 0x171   : > { %2947 = vmatprep.subr.bf16.mxu0 %v6581_v52  ;;  %3033 = vmatprep.subr.bf16.mxu1 %v6584_v53  ;;  %v6671_v52 = vld [vmem:[#allocation5 + $0x914] ss:$48 sps:$4 sm:$0xff]   ;;  %v6674_v53 = vld [vmem:[#allocation5 + $0x91c] ss:$48 sps:$4 sm:$0xff]  }
 0x174   : > { %2948 = vmatpush1.bf16.msra.mxu0 %v6579_v54  ;;  %3034 = vmatpush1.bf16.msra.mxu1 %v6582_v55  ;;  %v6669_v54 = vld [vmem:[#allocation5 + $0x910] ss:$48 sps:$4 sm:$0xff]   ;;  %v6672_v55 = vld [vmem:[#allocation5 + $0x918] ss:$48 sps:$4 sm:$0xff]  }
 0x175   : > { %2949 = vmatprep.subr.bf16.mxu0 %v6587_v56  ;;  %3035 = vmatprep.subr.bf16.mxu1 %v6590_v57  ;;  %v6677_v56 = vld [vmem:[#allocation5 + $0x974] ss:$48 sps:$4 sm:$0xff]   ;;  %v6680_v57 = vld [vmem:[#allocation5 + $0x97c] ss:$48 sps:$4 sm:$0xff]  }
 0x178   : > { %2950 = vmatpush1.bf16.msra.mxu0 %v6585_v58  ;;  %3036 = vmatpush1.bf16.msra.mxu1 %v6588_v59  ;;  %v6675_v58 = vld [vmem:[#allocation5 + $0x970] ss:$48 sps:$4 sm:$0xff]   ;;  %v6678_v59 = vld [vmem:[#allocation5 + $0x978] ss:$48 sps:$4 sm:$0xff]  }
 0x179   : > { %2951 = vmatprep.subr.bf16.mxu0 %v6593_v60  ;;  %3037 = vmatprep.subr.bf16.mxu1 %v6596_v61  ;;  %v6683_v60 = vld [vmem:[#allocation5 + $0x9d4] ss:$48 sps:$4 sm:$0xff]   ;;  %v6686_v61 = vld [vmem:[#allocation5 + $0x9dc] ss:$48 sps:$4 sm:$0xff]  }
 0x17c   : > { %2952 = vmatpush1.bf16.msra.mxu0 %v6591_v62  ;;  %3038 = vmatpush1.bf16.msra.mxu1 %v6594_v63  ;;  %v6681_v62 = vld [vmem:[#allocation5 + $0x9d0] ss:$48 sps:$4 sm:$0xff]   ;;  %v6684_v63 = vld [vmem:[#allocation5 + $0x9d8] ss:$48 sps:$4 sm:$0xff]  }
 0x17d   : > { %2953 = vmatprep.subr.bf16.mxu0 %v6599_v0  ;;  %3039 = vmatprep.subr.bf16.mxu1 %v6602_v1  ;;  %v6689_v0 = vld [vmem:[#allocation5 + $0xa34] ss:$48 sps:$4 sm:$0xff]   ;;  %v6692_v1 = vld [vmem:[#allocation5 + $0xa3c] ss:$48 sps:$4 sm:$0xff]  }
 0x180   : > { %2954 = vmatpush1.bf16.msra.mxu0 %v6597_v2  ;;  %3040 = vmatpush1.bf16.msra.mxu1 %v6600_v3  ;;  %v6687_v2 = vld [vmem:[#allocation5 + $0xa30] ss:$48 sps:$4 sm:$0xff]   ;;  %v6690_v3 = vld [vmem:[#allocation5 + $0xa38] ss:$48 sps:$4 sm:$0xff]  }
 0x181   : > { %2955 = vmatprep.subr.bf16.mxu0 %v6605_v4  ;;  %3041 = vmatprep.subr.bf16.mxu1 %v6608_v5  ;;  %v6695_v4 = vld [vmem:[#allocation5 + $0xa94] ss:$48 sps:$4 sm:$0xff]   ;;  %v6698_v5 = vld [vmem:[#allocation5 + $0xa9c] ss:$48 sps:$4 sm:$0xff]  }
 0x184   : > { %2956 = vmatpush1.bf16.msra.mxu0 %v6603_v6  ;;  %3042 = vmatpush1.bf16.msra.mxu1 %v6606_v7  ;;  %v6693_v6 = vld [vmem:[#allocation5 + $0xa90] ss:$48 sps:$4 sm:$0xff]   ;;  %v6696_v7 = vld [vmem:[#allocation5 + $0xa98] ss:$48 sps:$4 sm:$0xff]  }
 0x185   : > { %2957 = vmatprep.subr.bf16.mxu0 %v6611_v8  ;;  %3043 = vmatprep.subr.bf16.mxu1 %v6614_v10  ;;  %v6701_v8 = vld [vmem:[#allocation5 + $0xaf4] ss:$48 sps:$4 sm:$0xff]   ;;  %v6704_v10 = vld [vmem:[#allocation5 + $0xafc] ss:$48 sps:$4 sm:$0xff]  }
 0x188   : > { %2958 = vmatpush1.bf16.msra.mxu0 %v6609_v11  ;;  %3044 = vmatpush1.bf16.msra.mxu1 %v6612_v12  ;;  %v6699_v11 = vld [vmem:[#allocation5 + $0xaf0] ss:$48 sps:$4 sm:$0xff]   ;;  %v6702_v12 = vld [vmem:[#allocation5 + $0xaf8] ss:$48 sps:$4 sm:$0xff]  }
 0x189   : > { %2959 = vmatprep.subr.bf16.mxu0 %v6617_v13  ;;  %3045 = vmatprep.subr.bf16.mxu1 %v6620_v14  ;;  %v6707_v13 = vld [vmem:[#allocation5 + $0xb54] ss:$48 sps:$4 sm:$0xff]   ;;  %v6710_v14 = vld [vmem:[#allocation5 + $0xb5c] ss:$48 sps:$4 sm:$0xff]  }
 0x18c   : > { %2960 = vmatpush1.bf16.msra.mxu0 %v6615_v16  ;;  %3046 = vmatpush1.bf16.msra.mxu1 %v6618_v17  ;;  %v6705_v16 = vld [vmem:[#allocation5 + $0xb50] ss:$48 sps:$4 sm:$0xff]   ;;  %v6708_v17 = vld [vmem:[#allocation5 + $0xb58] ss:$48 sps:$4 sm:$0xff]  }
 0x18d   : > { %2972 = vmatprep.subr.bf16.mxu0 %v6623_v18  ;;  %3058 = vmatprep.subr.bf16.mxu1 %v6626_v19  ;;  %v6713_v18 = vld [vmem:[#allocation5 + $0xbb4] ss:$48 sps:$4 sm:$0xff]   ;;  %v6716_v19 = vld [vmem:[#allocation5 + $0xbbc] ss:$48 sps:$4 sm:$0xff]  }
 0x18f   : > { %2962 = vmatmul.mubr.bf16.vlgmr.msra.gmra.mrb[4].mxu0 %v7767_v9  ;;  %3048 = vmatmul.mubr.bf16.vlgmr.msra.gmra.mrb[4].mxu1 %v7767_v9 }
 0x190   : > { %2973 = vmatpush1.bf16.msra.mxu0 %v6621_v20  ;;  %3059 = vmatpush1.bf16.msra.mxu1 %v6624_v21  ;;  %v6711_v20 = vld [vmem:[#allocation5 + $0xbb0] ss:$48 sps:$4 sm:$0xff]   ;;  %v6714_v21 = vld [vmem:[#allocation5 + $0xbb8] ss:$48 sps:$4 sm:$0xff]  }
 0x191   : > { %2974 = vmatprep.subr.bf16.mxu0 %v6629_v22  ;;  %3060 = vmatprep.subr.bf16.mxu1 %v6632_v23  ;;  %v6719_v22 = vld [vmem:[#allocation5 + $0x24] ss:$48 sps:$4 sm:$0xff]   ;;  %v6722_v23 = vld [vmem:[#allocation5 + $0x2c] ss:$48 sps:$4 sm:$0xff]  }
 0x192   : > { %3004 = vmatprep.mubr.bf16.mxu0 %v7773_v37  ;;  %3090 = vmatprep.mubr.bf16.mxu1 %v7773_v37 }
 0x194   : > { %2975 = vmatpush1.bf16.msra.mxu0 %v6627_v24  ;;  %3061 = vmatpush1.bf16.msra.mxu1 %v6630_v25  ;;  %v6717_v24 = vld [vmem:[#allocation5 + $0x20] ss:$48 sps:$4 sm:$0xff]   ;;  %v6720_v25 = vld [vmem:[#allocation5 + $0x28] ss:$48 sps:$4 sm:$0xff]  }
 0x195   : > { %2976 = vmatprep.subr.bf16.mxu0 %v6635_v26  ;;  %3062 = vmatprep.subr.bf16.mxu1 %v6638_v27  ;;  %v6725_v26 = vld [vmem:[#allocation5 + $0x84] ss:$48 sps:$4 sm:$0xff]   ;;  %v6728_v27 = vld [vmem:[#allocation5 + $0x8c] ss:$48 sps:$4 sm:$0xff]  }
 0x198   : > { %2977 = vmatpush1.bf16.msra.mxu0 %v6633_v28  ;;  %3063 = vmatpush1.bf16.msra.mxu1 %v6636_v29  ;;  %v6723_v28 = vld [vmem:[#allocation5 + $0x80] ss:$48 sps:$4 sm:$0xff]   ;;  %v6726_v29 = vld [vmem:[#allocation5 + $0x88] ss:$48 sps:$4 sm:$0xff]  }
 0x199   : > { %2978 = vmatprep.subr.bf16.mxu0 %v6641_v30  ;;  %3064 = vmatprep.subr.bf16.mxu1 %v6644_v31  ;;  %v6731_v30 = vld [vmem:[#allocation5 + $0xe4] ss:$48 sps:$4 sm:$0xff]   ;;  %v6734_v31 = vld [vmem:[#allocation5 + $0xec] ss:$48 sps:$4 sm:$0xff]  }
 0x19c   : > { %2979 = vmatpush1.bf16.msra.mxu0 %v6639_v32  ;;  %3065 = vmatpush1.bf16.msra.mxu1 %v6642_v33  ;;  %v6729_v32 = vld [vmem:[#allocation5 + $0xe0] ss:$48 sps:$4 sm:$0xff]   ;;  %v6732_v33 = vld [vmem:[#allocation5 + $0xe8] ss:$48 sps:$4 sm:$0xff]  }
 0x19d   : > { %2980 = vmatprep.subr.bf16.mxu0 %v6647_v34  ;;  %3066 = vmatprep.subr.bf16.mxu1 %v6650_v35  ;;  %v6737_v34 = vld [vmem:[#allocation5 + $0x144] ss:$48 sps:$4 sm:$0xff]   ;;  %v6740_v35 = vld [vmem:[#allocation5 + $0x14c] ss:$48 sps:$4 sm:$0xff]  }
 0x1a0   : > { %2981 = vmatpush1.bf16.msra.mxu0 %v6645_v36  ;;  %3067 = vmatpush1.bf16.msra.mxu1 %v6648_v38  ;;  %v6735_v36 = vld [vmem:[#allocation5 + $0x140] ss:$48 sps:$4 sm:$0xff]   ;;  %v6738_v38 = vld [vmem:[#allocation5 + $0x148] ss:$48 sps:$4 sm:$0xff]  }
 0x1a1   : > { %2982 = vmatprep.subr.bf16.mxu0 %v6653_v39  ;;  %3068 = vmatprep.subr.bf16.mxu1 %v6656_v40  ;;  %v6743_v39 = vld [vmem:[#allocation5 + $0x1a4] ss:$48 sps:$4 sm:$0xff]   ;;  %v6746_v40 = vld [vmem:[#allocation5 + $0x1ac] ss:$48 sps:$4 sm:$0xff]  }
 0x1a4   : > { %2983 = vmatpush1.bf16.msra.mxu0 %v6651_v41  ;;  %3069 = vmatpush1.bf16.msra.mxu1 %v6654_v42  ;;  %v6741_v41 = vld [vmem:[#allocation5 + $0x1a0] ss:$48 sps:$4 sm:$0xff]   ;;  %v6744_v42 = vld [vmem:[#allocation5 + $0x1a8] ss:$48 sps:$4 sm:$0xff]  }
 0x1a5   : > { %2984 = vmatprep.subr.bf16.mxu0 %v6659_v43  ;;  %3070 = vmatprep.subr.bf16.mxu1 %v6662_v44  ;;  %v6749_v43 = vld [vmem:[#allocation5 + $0x204] ss:$48 sps:$4 sm:$0xff]   ;;  %v6752_v44 = vld [vmem:[#allocation5 + $0x20c] ss:$48 sps:$4 sm:$0xff]  }
 0x1a8   : > { %2985 = vmatpush1.bf16.msra.mxu0 %v6657_v45  ;;  %3071 = vmatpush1.bf16.msra.mxu1 %v6660_v46  ;;  %v6750_v45 = vld [vmem:[#allocation5 + $0x208] ss:$48 sps:$4 sm:$0xff]   ;;  %v6755_v46 = vld [vmem:[#allocation5 + $0x264] ss:$48 sps:$4 sm:$0xff]  }
 0x1a9   : > { %2986 = vmatprep.subr.bf16.mxu0 %v6665_v47  ;;  %3072 = vmatprep.subr.bf16.mxu1 %v6668_v48  ;;  %v6758_v47 = vld [vmem:[#allocation5 + $0x26c] ss:$48 sps:$4 sm:$0xff]   ;;  %v6753_v48 = vld [vmem:[#allocation5 + $0x260] ss:$48 sps:$4 sm:$0xff]  }
 0x1ac   : > { %2987 = vmatpush1.bf16.msra.mxu0 %v6663_v49  ;;  %3073 = vmatpush1.bf16.msra.mxu1 %v6666_v51  ;;  %v6756_v49 = vld [vmem:[#allocation5 + $0x268] ss:$48 sps:$4 sm:$0xff]   ;;  %v6761_v51 = vld [vmem:[#allocation5 + $0x2c4] ss:$48 sps:$4 sm:$0xff]  }
 0x1ad   : > { %2988 = vmatprep.subr.bf16.mxu0 %v6671_v52  ;;  %3074 = vmatprep.subr.bf16.mxu1 %v6674_v53  ;;  %v6764_v52 = vld [vmem:[#allocation5 + $0x2cc] ss:$48 sps:$4 sm:$0xff]   ;;  %v6759_v53 = vld [vmem:[#allocation5 + $0x2c0] ss:$48 sps:$4 sm:$0xff]  }
 0x1b0   : > { %2989 = vmatpush1.bf16.msra.mxu0 %v6669_v54  ;;  %3075 = vmatpush1.bf16.msra.mxu1 %v6672_v55  ;;  %v6762_v54 = vld [vmem:[#allocation5 + $0x2c8] ss:$48 sps:$4 sm:$0xff]   ;;  %v6767_v55 = vld [vmem:[#allocation5 + $0x324] ss:$48 sps:$4 sm:$0xff]  }
 0x1b1   : > { %2990 = vmatprep.subr.bf16.mxu0 %v6677_v56  ;;  %3076 = vmatprep.subr.bf16.mxu1 %v6680_v57  ;;  %v6770_v56 = vld [vmem:[#allocation5 + $0x32c] ss:$48 sps:$4 sm:$0xff]   ;;  %v6765_v57 = vld [vmem:[#allocation5 + $0x320] ss:$48 sps:$4 sm:$0xff]  }
 0x1b4   : > { %2991 = vmatpush1.bf16.msra.mxu0 %v6675_v58  ;;  %3077 = vmatpush1.bf16.msra.mxu1 %v6678_v59  ;;  %v6768_v58 = vld [vmem:[#allocation5 + $0x328] ss:$48 sps:$4 sm:$0xff]   ;;  %v6773_v59 = vld [vmem:[#allocation5 + $0x384] ss:$48 sps:$4 sm:$0xff]  }
 0x1b5   : > { %2992 = vmatprep.subr.bf16.mxu0 %v6683_v60  ;;  %3078 = vmatprep.subr.bf16.mxu1 %v6686_v61  ;;  %v6776_v60 = vld [vmem:[#allocation5 + $0x38c] ss:$48 sps:$4 sm:$0xff]   ;;  %v6771_v61 = vld [vmem:[#allocation5 + $0x380] ss:$48 sps:$4 sm:$0xff]  }
 0x1b8   : > { %2993 = vmatpush1.bf16.msra.mxu0 %v6681_v62  ;;  %3079 = vmatpush1.bf16.msra.mxu1 %v6684_v63  ;;  %v6774_v62 = vld [vmem:[#allocation5 + $0x388] ss:$48 sps:$4 sm:$0xff]   ;;  %v6779_v63 = vld [vmem:[#allocation5 + $0x3e4] ss:$48 sps:$4 sm:$0xff]  }
 0x1b9   : > { %2994 = vmatprep.subr.bf16.mxu0 %v6689_v0  ;;  %3080 = vmatprep.subr.bf16.mxu1 %v6692_v1  ;;  %v6782_v0 = vld [vmem:[#allocation5 + $0x3ec] ss:$48 sps:$4 sm:$0xff]   ;;  %v6777_v1 = vld [vmem:[#allocation5 + $0x3e0] ss:$48 sps:$4 sm:$0xff]  }
 0x1bc   : > { %2995 = vmatpush1.bf16.msra.mxu0 %v6687_v2  ;;  %3081 = vmatpush1.bf16.msra.mxu1 %v6690_v3  ;;  %v6780_v2 = vld [vmem:[#allocation5 + $0x3e8] ss:$48 sps:$4 sm:$0xff]   ;;  %v6785_v3 = vld [vmem:[#allocation5 + $0x444] ss:$48 sps:$4 sm:$0xff]  }
 0x1bd   : > { %2996 = vmatprep.subr.bf16.mxu0 %v6695_v4  ;;  %3082 = vmatprep.subr.bf16.mxu1 %v6698_v5  ;;  %v6788_v4 = vld [vmem:[#allocation5 + $0x44c] ss:$48 sps:$4 sm:$0xff]   ;;  %v6783_v5 = vld [vmem:[#allocation5 + $0x440] ss:$48 sps:$4 sm:$0xff]  }
 0x1c0   : > { %2997 = vmatpush1.bf16.msra.mxu0 %v6693_v6  ;;  %3083 = vmatpush1.bf16.msra.mxu1 %v6696_v7  ;;  %v6786_v6 = vld [vmem:[#allocation5 + $0x448] ss:$48 sps:$4 sm:$0xff]   ;;  %v6791_v7 = vld [vmem:[#allocation5 + $0x4a4] ss:$48 sps:$4 sm:$0xff]  }
 0x1c1   : > { %2998 = vmatprep.subr.bf16.mxu0 %v6701_v8  ;;  %3084 = vmatprep.subr.bf16.mxu1 %v6704_v10  ;;  %v6794_v8 = vld [vmem:[#allocation5 + $0x4ac] ss:$48 sps:$4 sm:$0xff]   ;;  %v6789_v10 = vld [vmem:[#allocation5 + $0x4a0] ss:$48 sps:$4 sm:$0xff]  }
 0x1c4   : > { %2999 = vmatpush1.bf16.msra.mxu0 %v6699_v11  ;;  %3085 = vmatpush1.bf16.msra.mxu1 %v6702_v12  ;;  %v6792_v11 = vld [vmem:[#allocation5 + $0x4a8] ss:$48 sps:$4 sm:$0xff]   ;;  %v6797_v12 = vld [vmem:[#allocation5 + $0x504] ss:$48 sps:$4 sm:$0xff]  }
 0x1c5   : > { %3000 = vmatprep.subr.bf16.mxu0 %v6707_v13  ;;  %3086 = vmatprep.subr.bf16.mxu1 %v6710_v14  ;;  %v6800_v13 = vld [vmem:[#allocation5 + $0x50c] ss:$48 sps:$4 sm:$0xff]   ;;  %v6795_v14 = vld [vmem:[#allocation5 + $0x500] ss:$48 sps:$4 sm:$0xff]  }
 0x1c8   : > { %3001 = vmatpush1.bf16.msra.mxu0 %v6705_v16  ;;  %3087 = vmatpush1.bf16.msra.mxu1 %v6708_v17  ;;  %v6798_v16 = vld [vmem:[#allocation5 + $0x508] ss:$48 sps:$4 sm:$0xff]   ;;  %v6803_v17 = vld [vmem:[#allocation5 + $0x564] ss:$48 sps:$4 sm:$0xff]  }
 0x1c9   : > { %3002 = vmatprep.subr.bf16.mxu0 %v6713_v18  ;;  %3088 = vmatprep.subr.bf16.mxu1 %v6716_v19  ;;  %v6806_v18 = vld [vmem:[#allocation5 + $0x56c] ss:$48 sps:$4 sm:$0xff]   ;;  %v6801_v19 = vld [vmem:[#allocation5 + $0x560] ss:$48 sps:$4 sm:$0xff]  }
 0x1cc   : > { %3003 = vmatpush1.bf16.msra.mxu0 %v6711_v20  ;;  %3089 = vmatpush1.bf16.msra.mxu1 %v6714_v21  ;;  %v6804_v20 = vld [vmem:[#allocation5 + $0x568] ss:$48 sps:$4 sm:$0xff]   ;;  %v6809_v21 = vld [vmem:[#allocation5 + $0x5c4] ss:$48 sps:$4 sm:$0xff]  }
 0x1cd   : > { %3101 = vmatprep.subr.bf16.mxu0 %v6719_v22  ;;  %3187 = vmatprep.subr.bf16.mxu1 %v6722_v23  ;;  %v6812_v22 = vld [vmem:[#allocation5 + $0x5cc] ss:$48 sps:$4 sm:$0xff]   ;;  %v6807_v23 = vld [vmem:[#allocation5 + $0x5c0] ss:$48 sps:$4 sm:$0xff]  }
 0x1cf   : > { %3005 = vmatmul.mubr.bf16.vlgmr.msra.gmra.mrb[4].mxu0 %v7779_v15  ;;  %3091 = vmatmul.mubr.bf16.vlgmr.msra.gmra.mrb[4].mxu1 %v7779_v15 }
 0x1d0   : > { %3102 = vmatpush1.bf16.msra.mxu0 %v6717_v24  ;;  %3188 = vmatpush1.bf16.msra.mxu1 %v6720_v25  ;;  %v6810_v24 = vld [vmem:[#allocation5 + $0x5c8] ss:$48 sps:$4 sm:$0xff]   ;;  %v6815_v25 = vld [vmem:[#allocation5 + $0x624] ss:$48 sps:$4 sm:$0xff]  }
 0x1d1   : > { %3103 = vmatprep.subr.bf16.mxu0 %v6725_v26  ;;  %3189 = vmatprep.subr.bf16.mxu1 %v6728_v27  ;;  %v6818_v26 = vld [vmem:[#allocation5 + $0x62c] ss:$48 sps:$4 sm:$0xff]   ;;  %v6813_v27 = vld [vmem:[#allocation5 + $0x620] ss:$48 sps:$4 sm:$0xff]  }
 0x1d2   : > { %3133 = vmatprep.mubr.bf16.mxu0 %v7761_v50  ;;  %3219 = vmatprep.mubr.bf16.mxu1 %v7761_v50  ;;  %v6747_v50 = vld [vmem:[#allocation5 + $0x200] ss:$48 sps:$4 sm:$0xff]  }
 0x1d4   : > { %3104 = vmatpush1.bf16.msra.mxu0 %v6723_v28  ;;  %3190 = vmatpush1.bf16.msra.mxu1 %v6726_v29  ;;  %v6816_v28 = vld [vmem:[#allocation5 + $0x628] ss:$48 sps:$4 sm:$0xff]   ;;  %v6821_v29 = vld [vmem:[#allocation5 + $0x684] ss:$48 sps:$4 sm:$0xff]  }
 0x1d5   : > { %3105 = vmatprep.subr.bf16.mxu0 %v6731_v30  ;;  %3191 = vmatprep.subr.bf16.mxu1 %v6734_v31  ;;  %v6824_v30 = vld [vmem:[#allocation5 + $0x68c] ss:$48 sps:$4 sm:$0xff]   ;;  %v6819_v31 = vld [vmem:[#allocation5 + $0x680] ss:$48 sps:$4 sm:$0xff]  }
 0x1d8   : > { %3106 = vmatpush1.bf16.msra.mxu0 %v6729_v32  ;;  %3192 = vmatpush1.bf16.msra.mxu1 %v6732_v33  ;;  %v6822_v32 = vld [vmem:[#allocation5 + $0x688] ss:$48 sps:$4 sm:$0xff]   ;;  %v6827_v33 = vld [vmem:[#allocation5 + $0x6e4] ss:$48 sps:$4 sm:$0xff]  }
 0x1d9   : > { %3107 = vmatprep.subr.bf16.mxu0 %v6737_v34  ;;  %3193 = vmatprep.subr.bf16.mxu1 %v6740_v35  ;;  %v6830_v34 = vld [vmem:[#allocation5 + $0x6ec] ss:$48 sps:$4 sm:$0xff]   ;;  %v777_v35 = vlaneseq }
 0x1dc   : > { %3108 = vmatpush1.bf16.msra.mxu0 %v6735_v36  ;;  %3194 = vmatpush1.bf16.msra.mxu1 %v6738_v38  ;;  %v6825_v36 = vld [vmem:[#allocation5 + $0x6e0] ss:$48 sps:$4 sm:$0xff]   ;;  %v6828_v38 = vld [vmem:[#allocation5 + $0x6e8] ss:$48 sps:$4 sm:$0xff]  }
 0x1dd   : > { %3109 = vmatprep.subr.bf16.mxu0 %v6743_v39  ;;  %3195 = vmatprep.subr.bf16.mxu1 %v6746_v40  ;;  %v6836_v39 = vld [vmem:[#allocation5 + $0x74c] ss:$48 sps:$4 sm:$0xff]   ;;  %v7797_v40 = vshrl.u32 %v777_v35, 7  ;;  %v6855_v35 = vld [vmem:[#allocation5 + $0x8c0] ss:$48 sps:$4 sm:$0xff]  }
 0x1e0   : > { %3110 = vmatpush1.bf16.msra.mxu0 %v6741_v41  ;;  %3196 = vmatpush1.bf16.msra.mxu1 %v6744_v42  ;;  %v6831_v41 = vld [vmem:[#allocation5 + $0x740] ss:$48 sps:$4 sm:$0xff]   ;;  %v6834_v42 = vld [vmem:[#allocation5 + $0x748] ss:$48 sps:$4 sm:$0xff]  }
 0x1e1   : > { %3111 = vmatprep.subr.bf16.mxu0 %v6749_v43  ;;  %3197 = vmatprep.subr.bf16.mxu1 %v6752_v44  ;;  %v6839_v43 = vld [vmem:[#allocation5 + $0x7a4] ss:$48 sps:$4 sm:$0xff]   ;;  %v6842_v44 = vld [vmem:[#allocation5 + $0x7ac] ss:$48 sps:$4 sm:$0xff]  }
 0x1e4   : > { %3112 = vmatpush1.bf16.msra.mxu0 %v6747_v50  ;;  %3198 = vmatpush1.bf16.msra.mxu1 %v6750_v45  ;;  %v7802_v50 = vsub.s32 0, %v7797_v40  ;;  %v7805_v45 = vsub.s32 2, %v7797_v40 }
 0x1e5   : > { %3113 = vmatprep.subr.bf16.mxu0 %v6755_v46  ;;  %3199 = vmatprep.subr.bf16.mxu1 %v6758_v47  ;;  %v7808_v46 = vsub.s32 1, %v7797_v40  ;;  %v7811_v47 = vsub.s32 3, %v7797_v40 }
 0x1e8   : > { %3114 = vmatpush1.bf16.msra.mxu0 %v6753_v48  ;;  %3200 = vmatpush1.bf16.msra.mxu1 %v6756_v49  ;;  %v7436_v48 = vmov 1983009808  }
 0x1e9   : > { %3115 = vmatprep.subr.bf16.mxu0 %v6761_v51  ;;  %3201 = vmatprep.subr.bf16.mxu1 %v6764_v52  ;;  %v3286_v49 = vunpack.c.l.s4 %v7436_v48  ;;  %v6837_v51 = vld [vmem:[#allocation5 + $0x7a0] ss:$48 sps:$4 sm:$0xff]   ;;  %v6840_v52 = vld [vmem:[#allocation5 + $0x7a8] ss:$48 sps:$4 sm:$0xff]  }
 0x1ec   : > { %3116 = vmatpush1.bf16.msra.mxu0 %v6759_v53  ;;  %3202 = vmatpush1.bf16.msra.mxu1 %v6762_v54  ;;  %v6845_v53 = vld [vmem:[#allocation5 + $0x804] ss:$48 sps:$4 sm:$0xff]   ;;  %v6848_v54 = vld [vmem:[#allocation5 + $0x80c] ss:$48 sps:$4 sm:$0xff]  }
 0x1ed   : > { %3117 = vmatprep.subr.bf16.mxu0 %v6767_v55  ;;  %3203 = vmatprep.subr.bf16.mxu1 %v6770_v56 }
 0x1f0   : > { %3118 = vmatpush1.bf16.msra.mxu0 %v6765_v57  ;;  %3204 = vmatpush1.bf16.msra.mxu1 %v6768_v58  ;;  %v7437_v57 = vmov 1966171168  }
 0x1f1   : > { %3119 = vmatprep.subr.bf16.mxu0 %v6773_v59  ;;  %3205 = vmatprep.subr.bf16.mxu1 %v6776_v60  ;;  %v3362_v58 = vunpack.c.l.s4 %v7437_v57  ;;  %v3287_v60 = vunpack.c.0.s8 %v3286_v49  ;;  %v6863_v49 = vld [vmem:[#allocation5 + $0x924] ss:$48 sps:$4 sm:$0xff]  }
 0x1f4   : > { %3120 = vmatpush1.bf16.msra.mxu0 %v6771_v61  ;;  %3206 = vmatpush1.bf16.msra.mxu1 %v6774_v62  ;;  %v6843_v62 = vld [vmem:[#allocation5 + $0x800] ss:$48 sps:$4 sm:$0xff]  }
 0x1f5   : > { %3121 = vmatprep.subr.bf16.mxu0 %v6779_v63  ;;  %3207 = vmatprep.subr.bf16.mxu1 %v6782_v0  ;;  %v6846_v63 = vld [vmem:[#allocation5 + $0x808] ss:$48 sps:$4 sm:$0xff]   ;;  %v6851_v0 = vld [vmem:[#allocation5 + $0x864] ss:$48 sps:$4 sm:$0xff]  }
 0x1f8   : > { %3122 = vmatpush1.bf16.msra.mxu0 %v6777_v1  ;;  %3208 = vmatpush1.bf16.msra.mxu1 %v6780_v2  ;;  %v6854_v1 = vld [vmem:[#allocation5 + $0x86c] ss:$48 sps:$4 sm:$0xff]  }
 0x1f9   : > { %3123 = vmatprep.subr.bf16.mxu0 %v6785_v3  ;;  %3209 = vmatprep.subr.bf16.mxu1 %v6788_v4 }
 0x1fc   : > { %3124 = vmatpush1.bf16.msra.mxu0 %v6783_v5  ;;  %3210 = vmatpush1.bf16.msra.mxu1 %v6786_v6 }
 0x1fd   : > { %3125 = vmatprep.subr.bf16.mxu0 %v6791_v7  ;;  %3211 = vmatprep.subr.bf16.mxu1 %v6794_v8  ;;  %v3363_v8 = vunpack.c.0.s8 %v3362_v58 }
 0x200   : > { %3126 = vmatpush1.bf16.msra.mxu0 %v6789_v10  ;;  %3212 = vmatpush1.bf16.msra.mxu1 %v6792_v11  ;;  %v7822_v11 = vsub.s32 %v3287_v60, %v7797_v40  ;;  %v6861_v60 = vld [vmem:[#allocation5 + $0x920] ss:$48 sps:$4 sm:$0xff]  }
 0x201   : > { %3127 = vmatprep.subr.bf16.mxu0 %v6797_v12  ;;  %3213 = vmatprep.subr.bf16.mxu1 %v6800_v13 }
 0x204   : > { %3128 = vmatpush1.bf16.msra.mxu0 %v6795_v14  ;;  %3214 = vmatpush1.bf16.msra.mxu1 %v6798_v16  ;;  %v6849_v16 = vld [vmem:[#allocation5 + $0x860] ss:$48 sps:$4 sm:$0xff]  }
 0x205   : > { %3129 = vmatprep.subr.bf16.mxu0 %v6803_v17  ;;  %3215 = vmatprep.subr.bf16.mxu1 %v6806_v18 }
 0x208   : > { %3130 = vmatpush1.bf16.msra.mxu0 %v6801_v19  ;;  %3216 = vmatpush1.bf16.msra.mxu1 %v6804_v20 }
 0x209   : > { %3131 = vmatprep.subr.bf16.mxu0 %v6809_v21  ;;  %3217 = vmatprep.subr.bf16.mxu1 %v6812_v22  ;;  %v6852_v21 = vld [vmem:[#allocation5 + $0x868] ss:$48 sps:$4 sm:$0xff]  }
 0x20c   : > { %3132 = vmatpush1.bf16.msra.mxu0 %v6807_v23  ;;  %3218 = vmatpush1.bf16.msra.mxu1 %v6810_v24 }
 0x20d   : > { %3144 = vmatprep.subr.bf16.mxu0 %v6815_v25  ;;  %3230 = vmatprep.subr.bf16.mxu1 %v6818_v26  ;;  %v6857_v26 = vld [vmem:[#allocation5 + $0x8c4] ss:$48 sps:$4 sm:$0xff]  }
 0x20f   : > { %3134 = vmatmul.mubr.bf16.vlgmr.msra.gmra.mrb[8].mxu0 %v7767_v9  ;;  %3220 = vmatmul.mubr.bf16.vlgmr.msra.gmra.mrb[8].mxu1 %v7767_v9  ;;  %v6833_v9 = vld [vmem:[#allocation5 + $0x744] ss:$48 sps:$4 sm:$0xff]  }
 0x210   : > { %3145 = vmatpush1.bf16.msra.mxu0 %v6813_v27  ;;  %3231 = vmatpush1.bf16.msra.mxu1 %v6816_v28  ;;  %v7825_v27 = vsub.s32 %v3363_v8, %v7797_v40 }
 0x211   : > { %3146 = vmatprep.subr.bf16.mxu0 %v6821_v29  ;;  %3232 = vmatprep.subr.bf16.mxu1 %v6824_v30  ;;  %v6860_v30 = vld [vmem:[#allocation5 + $0x8cc] ss:$48 sps:$4 sm:$0xff]  }
 0x212   : > { %3176 = vmatprep.mubr.bf16.mxu0 %v7773_v37  ;;  %3262 = vmatprep.mubr.bf16.mxu1 %v7773_v37  ;;  %v7799_v37 = vld [vmem:[#allocation7] sm:$0xff] }
 0x213   : > { %v780_v55 = vrot.slane %v7799_v37, %v7802_v50  ;;  %v788_v56 = vrot.slane %v7799_v37, %v7805_v45  ;;  %v784_v59 = vrot.slane %v7799_v37, %v7808_v46  ;;  %v792_v61 = vrot.slane %v7799_v37, %v7811_v47 }
 0x214   : > { %3147 = vmatpush1.bf16.msra.mxu0 %v6819_v31  ;;  %3233 = vmatpush1.bf16.msra.mxu1 %v6822_v32 }
 0x215   : > { %3148 = vmatprep.subr.bf16.mxu0 %v6827_v33  ;;  %3234 = vmatprep.subr.bf16.mxu1 %v6830_v34 }
 0x218   : > { %3149 = vmatpush1.bf16.msra.mxu0 %v6825_v36  ;;  %3235 = vmatpush1.bf16.msra.mxu1 %v6828_v38 }
 0x219   : > { %3150 = vmatprep.subr.bf16.mxu0 %v6833_v9  ;;  %3236 = vmatprep.subr.bf16.mxu1 %v6836_v39 }
 0x21c   : > { %3151 = vmatpush1.bf16.msra.mxu0 %v6831_v41  ;;  %3237 = vmatpush1.bf16.msra.mxu1 %v6834_v42  ;;  %v6858_v41 = vld [vmem:[#allocation5 + $0x8c8] ss:$48 sps:$4 sm:$0xff]  }
 0x21d   : > { %3152 = vmatprep.subr.bf16.mxu0 %v6839_v43  ;;  %3238 = vmatprep.subr.bf16.mxu1 %v6842_v44 }
 0x220   : > { %3153 = vmatpush1.bf16.msra.mxu0 %v6837_v51  ;;  %3239 = vmatpush1.bf16.msra.mxu1 %v6840_v52  ;;  %v6866_v51 = vld [vmem:[#allocation5 + $0x92c] ss:$48 sps:$4 sm:$0xff]  }
 0x221   : > { %3154 = vmatprep.subr.bf16.mxu0 %v6845_v53  ;;  %3240 = vmatprep.subr.bf16.mxu1 %v6848_v54 }
 0x222   : > { %v2834_v2 = vpop.f32.mrb[0].mxu0  ;;  %v2920_v3 = vpop.f32.mrb[0].mxu1 }
 0x223   : > { %v6149_v4 = vadd.f32 %v2834_v2, %v780_v55  ;;  %v6153_v5 = vadd.f32 %v2920_v3, %v788_v56  ;;  %v2836_v6 = vpop.f32.mrb[1].mxu0  ;;  %v2922_v7 = vpop.f32.mrb[1].mxu1  ;;  %v6869_v2 = vld [vmem:[#allocation5 + $0x984] ss:$48 sps:$4 sm:$0xff]   ;;  %v6872_v3 = vld [vmem:[#allocation5 + $0x98c] ss:$48 sps:$4 sm:$0xff]  }
 0x224   : > { %v6150_v10 = vadd.f32 %v2836_v6, %v784_v59  ;;  %v6154_v12 = vadd.f32 %v2922_v7, %v792_v61  ;;  %v2838_v13 = vpop.f32.mrb[2].mxu0  ;;  %v2924_v14 = vpop.f32.mrb[2].mxu1  ;;  %3155 = vmatpush1.bf16.msra.mxu0 %v6843_v62  ;;  %3241 = vmatpush1.bf16.msra.mxu1 %v6846_v63 }
 0x225   : > { %v6151_v17 = vadd.f32 %v2838_v13, %v780_v55  ;;  %v6155_v18 = vadd.f32 %v2924_v14, %v788_v56  ;;  %v2840_v19 = vpop.f32.mrb[3].mxu0  ;;  %v2926_v20 = vpop.f32.mrb[3].mxu1  ;;  %3156 = vmatprep.subr.bf16.mxu0 %v6851_v0  ;;  %3242 = vmatprep.subr.bf16.mxu1 %v6854_v1  ;;  %v6864_v1 = vld [vmem:[#allocation5 + $0x928] ss:$48 sps:$4 sm:$0xff]   ;;  %v6875_v14 = vld [vmem:[#allocation5 + $0x9e4] ss:$48 sps:$4 sm:$0xff]  }
 0x226   : > { %v3281_v22 = vcombine.low %v6149_v4, %v6150_v10  ;;  %v3282_v23 = vcombine.high %v6149_v4, %v6150_v10  ;;  %v3283_v24 = vcombine.low %v6153_v5, %v6154_v12  ;;  %v3284_v25 = vcombine.high %v6153_v5, %v6154_v12  ;;  %v6867_v12 = vld [vmem:[#allocation5 + $0x980] ss:$48 sps:$4 sm:$0xff]   ;;  %v6870_v13 = vld [vmem:[#allocation5 + $0x988] ss:$48 sps:$4 sm:$0xff]  }
 0x227   : > { %v6152_v28 = vadd.f32 %v2840_v19, %v784_v59  ;;  %v6156_v29 = vadd.f32 %v2926_v20, %v792_v61  ;;  %v6873_v19 = vld [vmem:[#allocation5 + $0x9e0] ss:$48 sps:$4 sm:$0xff]   ;;  %v6876_v20 = vld [vmem:[#allocation5 + $0x9e8] ss:$48 sps:$4 sm:$0xff]  }
 0x228   : > { %v3291_v31 = vrot.slane %v3281_v22, %v7822_v11  ;;  %v3298_v32 = vrot.slane %v3282_v23, %v7822_v11  ;;  %v3305_v33 = vrot.slane %v3283_v24, %v7822_v11  ;;  %v3312_v34 = vrot.slane %v3284_v25, %v7822_v11  ;;  %3157 = vmatpush1.bf16.msra.mxu0 %v6849_v16  ;;  %v6884_v22 = vld [vmem:[#allocation5 + $0xa4c] ss:$48 sps:$4 sm:$0xff]   ;;  %v6879_v23 = vld [vmem:[#allocation5 + $0xa40] ss:$48 sps:$4 sm:$0xff]   ;;  %v6882_v24 = vld [vmem:[#allocation5 + $0xa48] ss:$48 sps:$4 sm:$0xff]  }
 0x229   : > { %v3317_v36 = vcombine.low %v6151_v17, %v6152_v28  ;;  %v3318_v38 = vcombine.high %v6151_v17, %v6152_v28  ;;  %v3319_v9 = vcombine.low %v6155_v18, %v6156_v29  ;;  %v3320_v39 = vcombine.high %v6155_v18, %v6156_v29  ;;  %3243 = vmatpush1.bf16.msra.mxu1 %v6852_v21  ;;  %v6878_v18 = vld [vmem:[#allocation5 + $0x9ec] ss:$48 sps:$4 sm:$0xff]   ;;  %v6881_v21 = vld [vmem:[#allocation5 + $0xa44] ss:$48 sps:$4 sm:$0xff]   ;;  %v6885_v28 = vld [vmem:[#allocation5 + $0xaa0] ss:$48 sps:$4 sm:$0xff]  }
 0x22a   : > { %v3313_v42 = vcombine.low %v3291_v31, %v3305_v33  ;;  %v3314_v43 = vcombine.high %v3291_v31, %v3305_v33  ;;  %v3315_v44 = vcombine.low %v3298_v32, %v3312_v34  ;;  %v3316_v48 = vcombine.high %v3298_v32, %v3312_v34  ;;  %3158 = vmatprep.subr.bf16.mxu0 %v6857_v26  ;;  %v6887_v25 = vld [vmem:[#allocation5 + $0xaa4] ss:$48 sps:$4 sm:$0xff]   ;;  %v6890_v26 = vld [vmem:[#allocation5 + $0xaac] ss:$48 sps:$4 sm:$0xff]   ;;  %v6888_v29 = vld [vmem:[#allocation5 + $0xaa8] ss:$48 sps:$4 sm:$0xff]  }
 0x22b   : > { %v3327_v52 = vrot.slane %v3317_v36, %v7822_v11  ;;  %v3334_v53 = vrot.slane %v3318_v38, %v7822_v11  ;;  %v3341_v54 = vrot.slane %v3319_v9, %v7822_v11  ;;  %v3348_v55 = vrot.slane %v3320_v39, %v7822_v11  ;;  %3244 = vmatprep.subr.bf16.mxu1 %v6860_v30  ;;  %v6893_v30 = vld [vmem:[#allocation5 + $0xb04] ss:$48 sps:$4 sm:$0xff]   ;;  %v6896_v31 = vld [vmem:[#allocation5 + $0xb0c] ss:$48 sps:$4 sm:$0xff]   ;;  %v6891_v32 = vld [vmem:[#allocation5 + $0xb00] ss:$48 sps:$4 sm:$0xff]  }
 0x22c   : > { %v7836_v56 = vrot.slane %v3313_v42, %v7825_v27  ;;  %v7839_v57 = vrot.slane %v3314_v43, %v7825_v27  ;;  %v7842_v58 = vrot.slane %v3315_v44, %v7825_v27  ;;  %v7845_v59 = vrot.slane %v3316_v48, %v7825_v27  ;;  %3159 = vmatpush1.bf16.msra.mxu0 %v6855_v35  ;;  %v6894_v33 = vld [vmem:[#allocation5 + $0xb08] ss:$48 sps:$4 sm:$0xff]   ;;  %v6899_v34 = vld [vmem:[#allocation5 + $0xb64] ss:$48 sps:$4 sm:$0xff]   ;;  %v6902_v35 = vld [vmem:[#allocation5 + $0xb6c] ss:$48 sps:$4 sm:$0xff]  }
 0x22d   : > { %v3349_v61 = vcombine.low %v3327_v52, %v3341_v54  ;;  %v3350_v62 = vcombine.high %v3327_v52, %v3341_v54  ;;  %v3351_v63 = vcombine.low %v3334_v53, %v3348_v55  ;;  %v3352_v0 = vcombine.high %v3334_v53, %v3348_v55  ;;  %3245 = vmatpush1.bf16.msra.mxu1 %v6858_v41  ;;  %v6897_v36 = vld [vmem:[#allocation5 + $0xb60] ss:$48 sps:$4 sm:$0xff]   ;;  %v6900_v38 = vld [vmem:[#allocation5 + $0xb68] ss:$48 sps:$4 sm:$0xff]   ;;  %v6905_v9 = vld [vmem:[#allocation5 + $0xbc4] ss:$48 sps:$4 sm:$0xff]  }
 0x22e   : > { %3160 = vmatprep.subr.bf16.mxu0 %v6863_v49  ;;  %3246 = vmatprep.subr.bf16.mxu1 %v6866_v51  ;;  %v3417_v4 = vpack.c.bf16 %v7839_v57, %v7836_v56  ;;  %v3418_v5 = vpack.c.bf16 %v7845_v59, %v7842_v58  ;;  %v6908_v39 = vld [vmem:[#allocation5 + $0xbcc] ss:$48 sps:$4 sm:$0xff]   ;;  %v6903_v41 = vld [vmem:[#allocation5 + $0xbc0] ss:$48 sps:$4 sm:$0xff]   ;;  %v6906_v42 = vld [vmem:[#allocation5 + $0xbc8] ss:$48 sps:$4 sm:$0xff]  }
 0x22f   : > { %v7852_v6 = vrot.slane %v3349_v61, %v7825_v27  ;;  %v7855_v7 = vrot.slane %v3350_v62, %v7825_v27  ;;  %v7858_v8 = vrot.slane %v3351_v63, %v7825_v27  ;;  %v7861_v10 = vrot.slane %v3352_v0, %v7825_v27  ;;  %v774_v56 = vld [vmem:[#allocation7 + $0x8] sm:$0xf] }
 0x230   : > { %3161 = vmatpush1.bf16.msra.mxu0 %v6861_v60  ;;  %v7438_v43 = vmov 0.0   ;;  %v795_v44 = vsub.s32 4, %v7797_v40  ;;  %v803_v48 = vsub.s32 6, %v7797_v40  ;;  %v799_v49 = vsub.s32 5, %v7797_v40 }
 0x231   : > { %3247 = vmatpush1.bf16.msra.mxu1 %v6864_v1  ;;  %3162 = vmatprep.subr.bf16.mxu0 %v6869_v2  ;;  %v3419_v16 = vpack.c.bf16 %v7855_v7, %v7852_v6  ;;  %v3420_v17 = vpack.c.bf16 %v7861_v10, %v7858_v8  ;;  %v807_v51 = vsub.s32 7, %v7797_v40  ;;  %v812_v57 = vrot.slane %v774_v56, %v7802_v50 }
 0x232   : > { %3248 = vmatprep.subr.bf16.mxu1 %v6872_v3  ;;  %v796_v52 = vrot.slane %v7799_v37, %v795_v44  ;;  %v804_v53 = vrot.slane %v7799_v37, %v803_v48  ;;  %v820_v58 = vrot.slane %v774_v56, %v7805_v45  ;;  %v816_v59 = vrot.slane %v774_v56, %v7808_v46 }
 0x233   : > { %v808_v54 = vrot.slane %v7799_v37, %v807_v51 }
 0x234   : > { %3163 = vmatpush1.bf16.msra.mxu0 %v6867_v12 }
 0x235   : > { %3249 = vmatpush1.bf16.msra.mxu1 %v6870_v13  ;;  %3164 = vmatprep.subr.bf16.mxu0 %v6875_v14 }
 0x236   : > { %3250 = vmatprep.subr.bf16.mxu1 %v6878_v18 }
 0x238   : > { %3165 = vmatpush1.bf16.msra.mxu0 %v6873_v19 }
 0x239   : > { %3251 = vmatpush1.bf16.msra.mxu1 %v6876_v20  ;;  %3166 = vmatprep.subr.bf16.mxu0 %v6881_v21 }
 0x23a   : > { %3252 = vmatprep.subr.bf16.mxu1 %v6884_v22 }
 0x23c   : > { %3167 = vmatpush1.bf16.msra.mxu0 %v6879_v23 }
 0x23d   : > { %3253 = vmatpush1.bf16.msra.mxu1 %v6882_v24  ;;  %3168 = vmatprep.subr.bf16.mxu0 %v6887_v25 }
 0x23e   : > { %3254 = vmatprep.subr.bf16.mxu1 %v6890_v26 }
 0x240   : > { %3169 = vmatpush1.bf16.msra.mxu0 %v6885_v28 }
 0x241   : > { %3255 = vmatpush1.bf16.msra.mxu1 %v6888_v29  ;;  %3170 = vmatprep.subr.bf16.mxu0 %v6893_v30 }
 0x242   : > { %3256 = vmatprep.subr.bf16.mxu1 %v6896_v31 }
 0x244   : > { %3171 = vmatpush1.bf16.msra.mxu0 %v6891_v32 }
 0x245   : > { %3257 = vmatpush1.bf16.msra.mxu1 %v6894_v33  ;;  %3172 = vmatprep.subr.bf16.mxu0 %v6899_v34 }
 0x246   : > { %3258 = vmatprep.subr.bf16.mxu1 %v6902_v35 }
 0x248   : > { %3173 = vmatpush1.bf16.msra.mxu0 %v6897_v36 }
 0x249   : > { %3259 = vmatpush1.bf16.msra.mxu1 %v6900_v38  ;;  %3174 = vmatprep.subr.bf16.mxu0 %v6905_v9 }
 0x24a   : > { %3260 = vmatprep.subr.bf16.mxu1 %v6908_v39 }
 0x24c   : > { %3175 = vmatpush1.bf16.msra.mxu0 %v6903_v41 }
 0x24d   : > { %3261 = vmatpush1.bf16.msra.mxu1 %v6906_v42  ;;  %6101 = vmatprep.subr.bf16.mxu0 %v7438_v43 }
 0x24e   : > { %6107 = vmatprep.subr.bf16.mxu1 %v7438_v43 }
 0x24f   : > { %3177 = vmatmul.mubr.bf16.vlgmr.msra.gmra.mrb[8].mxu0 %v7779_v15 }
 0x250   : > { %3263 = vmatmul.mubr.bf16.vlgmr.msra.gmra.mrb[8].mxu1 %v7779_v15  ;;  %6103 = vmatprep.mubr.msk.bf16.mxu0 %vm7439_vm0, %v7438_v43  ;;  %v800_v15 = vrot.slane %v7799_v37, %v799_v49 }
 0x251   : > { %6109 = vmatprep.mubr.msk.bf16.mxu1 %vm7439_vm0, %v7438_v43 }
 0x2a2   : > { %v3006_v55 = vpop.f32.mrb[4].mxu0  ;;  %v3092_v60 = vpop.f32.mrb[4].mxu1 }
 0x2a3   : > { %v6157_v61 = vadd.f32 %v3006_v55, %v796_v52  ;;  %v6161_v62 = vadd.f32 %v3092_v60, %v804_v53  ;;  %v3008_v63 = vpop.f32.mrb[5].mxu0  ;;  %v3094_v0 = vpop.f32.mrb[5].mxu1 }
 0x2a4   : > { %v6158_v1 = vadd.f32 %v3008_v63, %v800_v15  ;;  %v6162_v2 = vadd.f32 %v3094_v0, %v808_v54  ;;  %v3010_v3 = vpop.f32.mrb[6].mxu0  ;;  %v3096_v12 = vpop.f32.mrb[6].mxu1 }
 0x2a5   : > { %v6159_v13 = vadd.f32 %v3010_v3, %v796_v52  ;;  %v6163_v14 = vadd.f32 %v3096_v12, %v804_v53  ;;  %v3012_v18 = vpop.f32.mrb[7].mxu0  ;;  %v3098_v19 = vpop.f32.mrb[7].mxu1 }
 0x2a6   : > { %v3429_v20 = vcombine.low %v6157_v61, %v6158_v1  ;;  %v3430_v21 = vcombine.high %v6157_v61, %v6158_v1  ;;  %v3431_v22 = vcombine.low %v6161_v62, %v6162_v2  ;;  %v3432_v23 = vcombine.high %v6161_v62, %v6162_v2 }
 0x2a7   : > { %v6160_v24 = vadd.f32 %v3012_v18, %v800_v15  ;;  %v6164_v37 = vadd.f32 %v3098_v19, %v808_v54 }
 0x2a8   : > { %v3439_v25 = vrot.slane %v3429_v20, %v7822_v11  ;;  %v3446_v26 = vrot.slane %v3430_v21, %v7822_v11  ;;  %v3453_v28 = vrot.slane %v3431_v22, %v7822_v11  ;;  %v3460_v29 = vrot.slane %v3432_v23, %v7822_v11 }
 0x2a9   : > { %v3465_v30 = vcombine.low %v6159_v13, %v6160_v24  ;;  %v3466_v31 = vcombine.high %v6159_v13, %v6160_v24  ;;  %v3467_v32 = vcombine.low %v6163_v14, %v6164_v37  ;;  %v3468_v33 = vcombine.high %v6163_v14, %v6164_v37 }
 0x2aa   : > { %v3461_v34 = vcombine.low %v3439_v25, %v3453_v28  ;;  %v3462_v35 = vcombine.high %v3439_v25, %v3453_v28  ;;  %v3463_v36 = vcombine.low %v3446_v26, %v3460_v29  ;;  %v3464_v38 = vcombine.high %v3446_v26, %v3460_v29 }
 0x2ab   : > { %v3475_v9 = vrot.slane %v3465_v30, %v7822_v11  ;;  %v3482_v39 = vrot.slane %v3466_v31, %v7822_v11  ;;  %v3489_v41 = vrot.slane %v3467_v32, %v7822_v11  ;;  %v3496_v42 = vrot.slane %v3468_v33, %v7822_v11 }
 0x2ac   : > { %v3515_v44 = vrot.slane %v3461_v34, %v7825_v27  ;;  %v3522_v48 = vrot.slane %v3462_v35, %v7825_v27  ;;  %v3529_v49 = vrot.slane %v3463_v36, %v7825_v27  ;;  %v3536_v51 = vrot.slane %v3464_v38, %v7825_v27 }
 0x2ad   : > { %v3497_v52 = vcombine.low %v3475_v9, %v3489_v41  ;;  %v3498_v53 = vcombine.high %v3475_v9, %v3489_v41  ;;  %v3499_v15 = vcombine.low %v3482_v39, %v3496_v42  ;;  %v3500_v54 = vcombine.high %v3482_v39, %v3496_v42 }
 0x2ae   : > { %v3565_v55 = vpack.c.bf16 %v3522_v48, %v3515_v44  ;;  %v3566_v60 = vpack.c.bf16 %v3536_v51, %v3529_v49 }
 0x2af   : > { %v3543_v61 = vrot.slane %v3497_v52, %v7825_v27  ;;  %v3550_v62 = vrot.slane %v3498_v53, %v7825_v27  ;;  %v3557_v63 = vrot.slane %v3499_v15, %v7825_v27  ;;  %v3564_v0 = vrot.slane %v3500_v54, %v7825_v27 }
 0x2b0   : > { %6102 = vmatpush3.bf16.xpose.msra.mxu0 %v3565_v55  ;;  %6108 = vmatpush3.bf16.xpose.msra.mxu1 %v3566_v60 }
 0x2b1   : > { %6113 = vmatprep.subr.bf16.mxu0 %v7438_v43  ;;  %6119 = vmatprep.subr.bf16.mxu1 %v7438_v43  ;;  %v3567_v1 = vpack.c.bf16 %v3550_v62, %v3543_v61  ;;  %v3568_v2 = vpack.c.bf16 %v3564_v0, %v3557_v63 }
 0x2b7   : > { %6104 = vmatmul.mubr.bf16.vlgmr.msra.gmra.mrb[12].mxu0 %v3417_v4  ;;  %6110 = vmatmul.mubr.bf16.vlgmr.msra.gmra.mrb[12].mxu1 %v3418_v5  ;;  %v824_v4 = vrot.slane %v774_v56, %v7811_v47 }
 0x2b8   : > { %6114 = vmatpush3.bf16.xpose.msra.mxu0 %v3567_v1  ;;  %6120 = vmatpush3.bf16.xpose.msra.mxu1 %v3568_v2 }
 0x2b9   : > { %6115 = vmatprep.mubr.msk.bf16.mxu0 %vm7439_vm0, %v7438_v43  ;;  %6121 = vmatprep.mubr.msk.bf16.mxu1 %vm7439_vm0, %v7438_v43 }
 0x2ba   : > { %6125 = vmatprep.subr.bf16.mxu0 %v7438_v43  ;;  %6131 = vmatprep.subr.bf16.mxu1 %v7438_v43 }
 0x2bf   : > { %6116 = vmatmul.mubr.bf16.vlgmr.msra.gmra.mrb[16].mxu0 %v3419_v16  ;;  %6122 = vmatmul.mubr.bf16.vlgmr.msra.gmra.mrb[16].mxu1 %v3420_v17 }
 0x2c0   : > { %6127 = vmatprep.mubr.msk.bf16.mxu0 %vm7439_vm0, %v7438_v43  ;;  %6133 = vmatprep.mubr.msk.bf16.mxu1 %vm7439_vm0, %v7438_v43 }
 0x322   : > { %v3178_v5 = vpop.f32.mrb[8].mxu0 }
 0x323   : > { %v6165_v6 = vadd.f32 %v3178_v5, %v812_v57  ;;  %v3264_v7 = vpop.f32.mrb[8].mxu1  ;;  %v3180_v8 = vpop.f32.mrb[9].mxu0 }
 0x324   : > { %v6169_v10 = vadd.f32 %v3264_v7, %v820_v58  ;;  %v6166_v16 = vadd.f32 %v3180_v8, %v816_v59  ;;  %v3266_v17 = vpop.f32.mrb[9].mxu1  ;;  %v3182_v3 = vpop.f32.mrb[10].mxu0 }
 0x325   : > { %v6170_v12 = vadd.f32 %v3266_v17, %v824_v4  ;;  %v6167_v13 = vadd.f32 %v3182_v3, %v812_v57  ;;  %v3268_v14 = vpop.f32.mrb[10].mxu1  ;;  %v3184_v18 = vpop.f32.mrb[11].mxu0 }
 0x326   : > { %v3577_v19 = vcombine.low %v6165_v6, %v6166_v16  ;;  %v3578_v20 = vcombine.high %v6165_v6, %v6166_v16  ;;  %v6171_v21 = vadd.f32 %v3268_v14, %v820_v58  ;;  %v6168_v22 = vadd.f32 %v3184_v18, %v816_v59  ;;  %v3270_v23 = vpop.f32.mrb[11].mxu1 }
 0x327   : > { %v3579_v24 = vcombine.low %v6169_v10, %v6170_v12  ;;  %v3580_v37 = vcombine.high %v6169_v10, %v6170_v12  ;;  %v6172_v25 = vadd.f32 %v3270_v23, %v824_v4 }
 0x328   : > { %v3587_v26 = vrot.slane %v3577_v19, %v7822_v11  ;;  %v3594_v28 = vrot.slane %v3578_v20, %v7822_v11  ;;  %v3613_v29 = vcombine.low %v6167_v13, %v6168_v22  ;;  %v3614_v30 = vcombine.high %v6167_v13, %v6168_v22 }
 0x329   : > { %v3601_v31 = vrot.slane %v3579_v24, %v7822_v11  ;;  %v3608_v32 = vrot.slane %v3580_v37, %v7822_v11  ;;  %v3615_v33 = vcombine.low %v6171_v21, %v6172_v25  ;;  %v3616_v34 = vcombine.high %v6171_v21, %v6172_v25 }
 0x32a   : > { %v3623_v35 = vrot.slane %v3613_v29, %v7822_v11  ;;  %v3630_v36 = vrot.slane %v3614_v30, %v7822_v11 }
 0x32b   : > { %v3609_v38 = vcombine.low %v3587_v26, %v3601_v31  ;;  %v3610_v9 = vcombine.high %v3587_v26, %v3601_v31  ;;  %v3611_v39 = vcombine.low %v3594_v28, %v3608_v32  ;;  %v3612_v41 = vcombine.high %v3594_v28, %v3608_v32 }
 0x32c   : > { %v3637_v42 = vrot.slane %v3615_v33, %v7822_v11  ;;  %v3644_v44 = vrot.slane %v3616_v34, %v7822_v11 }
 0x32d   : > { %v3663_v48 = vrot.slane %v3609_v38, %v7825_v27  ;;  %v3670_v49 = vrot.slane %v3610_v9, %v7825_v27  ;;  %v3677_v51 = vrot.slane %v3611_v39, %v7825_v27  ;;  %v3684_v52 = vrot.slane %v3612_v41, %v7825_v27 }
 0x32e   : > { %v3645_v53 = vcombine.low %v3623_v35, %v3637_v42  ;;  %v3646_v15 = vcombine.high %v3623_v35, %v3637_v42  ;;  %v3647_v54 = vcombine.low %v3630_v36, %v3644_v44  ;;  %v3648_v55 = vcombine.high %v3630_v36, %v3644_v44 }
 0x32f   : > { %v3713_v60 = vpack.c.bf16 %v3670_v49, %v3663_v48  ;;  %v3714_v61 = vpack.c.bf16 %v3684_v52, %v3677_v51 }
 0x330   : > { %v7940_v62 = vrot.slane %v3645_v53, %v7825_v27  ;;  %v7943_v63 = vrot.slane %v3646_v15, %v7825_v27  ;;  %v7946_v0 = vrot.slane %v3647_v54, %v7825_v27  ;;  %v7949_v1 = vrot.slane %v3648_v55, %v7825_v27 }
 0x331   : > { %6126 = vmatpush3.bf16.msra.mxu0 %v3713_v60  ;;  %6132 = vmatpush3.bf16.msra.mxu1 %v3714_v61 }
 0x332   : > { %6137 = vmatprep.subr.bf16.mxu0 %v7438_v43  ;;  %6143 = vmatprep.subr.bf16.mxu1 %v7438_v43  ;;  %v3715_v2 = vpack.c.bf16 %v7943_v63, %v7940_v62  ;;  %v3716_v56 = vpack.c.bf16 %v7949_v1, %v7946_v0 }
 0x38a   : > { %v3751_v57 = vpop.f32.mrb[12].mxu0  ;;  %v3792_v58 = vpop.f32.mrb[12].mxu1 }
 0x38b   : > { %v6105_v59 = vpop.f32.mrb[13].mxu0  ;;  %v6111_v4 = vpop.f32.mrb[13].mxu1  ;;  %v3888_v27 = vsel %vm3881_vm1, %v3792_v58, -inf  ;;  %v3882_v5 = vsel %vm3881_vm1, %v3751_v57, -inf }
 0x38c   : > { %3889 = vmax.xlane.f32.xlu1 %v3888_v27  ;;  %v3795_v6 = vpop.f32.mrb[14].mxu1  ;;  %3883 = vmax.xlane.f32.xlu0 %v3882_v5  ;;  %v3754_v7 = vpop.f32.mrb[14].mxu0 }
 0x38d   : > { %v6106_v8 = vpop.f32.mrb[15].mxu0  ;;  %v6112_v10 = vpop.f32.mrb[15].mxu1  ;;  %v3891_v16 = vsel %vm3881_vm1, %v3795_v6, -inf  ;;  %v3885_v17 = vsel %vm3881_vm1, %v3754_v7, -inf }
 0x390   : > { %3892 = vmax.xlane.f32.xlu1 %v3891_v16  ;;  %3886 = vmax.xlane.f32.xlu0 %v3885_v17  ;;  %v6911_v17 = vld [vmem:[#allocation8 + $0x4] ss:$16 sps:$4 sm:$0xff]  }
 0x392   : > { %v3833_v3 = vpop.f32.mrb[16].mxu0  ;;  %v3874_v12 = vpop.f32.mrb[16].mxu1 }
 0x393   : > { %v6117_v13 = vpop.f32.mrb[17].mxu0  ;;  %v6123_v14 = vpop.f32.mrb[17].mxu1  ;;  %v3894_v18 = vsel %vm3881_vm1, %v3833_v3, -inf  ;;  %v3900_v24 = vsel %vm3881_vm1, %v3874_v12, -inf }
 0x394   : > { %v3877_v19 = vpop.f32.mrb[18].mxu1  ;;  %3895 = vmax.xlane.f32.xlu0 %v3894_v18  ;;  %v3836_v20 = vpop.f32.mrb[18].mxu0  ;;  %v6917_v13 = vld [vmem:[#allocation8 + $0x24] ss:$16 sps:$4 sm:$0xff]   ;;  %v6920_v14 = vld [vmem:[#allocation8 + $0x2c] ss:$16 sps:$4 sm:$0xff]  }
 0x395   : > { %v6118_v21 = vpop.f32.mrb[19].mxu0  ;;  %v6124_v22 = vpop.f32.mrb[19].mxu1  ;;  %v3897_v23 = vsel %vm3881_vm1, %v3836_v20, -inf  ;;  %v3903_v37 = vsel %vm3881_vm1, %v3877_v19, -inf  ;;  %v6915_v18 = vld [vmem:[#allocation8 + $0x20] ss:$16 sps:$4 sm:$0xff]  }
 0x396   : > { %3898 = vmax.xlane.f32.xlu1 %v3897_v23  ;;  %v6926_v21 = vld [vmem:[#allocation8 + $0x4c] ss:$16 sps:$4 sm:$0xff]   ;;  %v6921_v22 = vld [vmem:[#allocation8 + $0x40] ss:$16 sps:$4 sm:$0xff]   ;;  %v6924_v23 = vld [vmem:[#allocation8 + $0x48] ss:$16 sps:$4 sm:$0xff]  }
 0x398   : > { %3901 = vmax.xlane.f32.xlu0 %v3900_v24  ;;  %v6929_v24 = vld [vmem:[#allocation8 + $0x64] ss:$16 sps:$4 sm:$0xff]  }
 0x39a   : > { %3904 = vmax.xlane.f32.xlu1 %v3903_v37  ;;  %v6932_v37 = vld [vmem:[#allocation8 + $0x6c] ss:$16 sps:$4 sm:$0xff]  }
 0x419   : > { %v3890_v25 = vpop.xlane.xlu1 %3889  ;;  %v3884_v26 = vpop.xlane.xlu0 %3883 }
 0x41a   : > { %v3908_v28 = vsub.f32 %v3792_v58, %v3890_v25  ;;  %v3906_v29 = vsub.f32 %v3751_v57, %v3884_v26  ;;  %v6927_v25 = vld [vmem:[#allocation8 + $0x60] ss:$16 sps:$4 sm:$0xff]   ;;  %v6930_v26 = vld [vmem:[#allocation8 + $0x68] ss:$16 sps:$4 sm:$0xff]  }
 0x41c   : > { %v3914_v30 = vmul.f32 1.442695, %v3906_v29  ;;  %v3918_v31 = vmul.f32 1.442695, %v3908_v28  ;;  %v6935_v28 = vld [vmem:[#allocation8 + $0x84] ss:$16 sps:$4 sm:$0xff]  }
 0x41d   : > { %v3893_v32 = vpop.xlane.xlu1 %3892  ;;  %v3887_v33 = vpop.xlane.xlu0 %3886  ;;  %v6938_v29 = vld [vmem:[#allocation8 + $0x8c] ss:$16 sps:$4 sm:$0xff]  }
 0x41e   : > { %v3909_v34 = vsub.f32 %v3795_v6, %v3893_v32  ;;  %v3907_v35 = vsub.f32 %v3754_v7, %v3887_v33  ;;  %7101 = vpow2.f32 %v3914_v30  ;;  %v6933_v30 = vld [vmem:[#allocation8 + $0x80] ss:$16 sps:$4 sm:$0xff]   ;;  %v6941_v32 = vld [vmem:[#allocation8 + $0xa4] ss:$16 sps:$4 sm:$0xff]   ;;  %v6944_v33 = vld [vmem:[#allocation8 + $0xac] ss:$16 sps:$4 sm:$0xff]  }
 0x41f   : > { %7103 = vpow2.f32 %v3918_v31  ;;  %v6936_v31 = vld [vmem:[#allocation8 + $0x88] ss:$16 sps:$4 sm:$0xff]  }
 0x420   : > { %v3920_v36 = vmul.f32 1.442695, %v3909_v34  ;;  %v3916_v38 = vmul.f32 1.442695, %v3907_v35  ;;  %v6939_v34 = vld [vmem:[#allocation8 + $0xa0] ss:$16 sps:$4 sm:$0xff]  }
 0x421   : > { %v3896_v9 = vpop.xlane.xlu0 %3895  ;;  %v6942_v35 = vld [vmem:[#allocation8 + $0xa8] ss:$16 sps:$4 sm:$0xff]  }
 0x422   : > { %7105 = vpow2.f32 %v3920_v36  ;;  %v3910_v39 = vsub.f32 %v3833_v3, %v3896_v9  ;;  %v6912_v3 = vld [vmem:[#allocation8 + $0x8] ss:$16 sps:$4 sm:$0xff]   ;;  %v6947_v36 = vld [vmem:[#allocation8 + $0xc4] ss:$16 sps:$4 sm:$0xff]   ;;  %v6945_v9 = vld [vmem:[#allocation8 + $0xc0] ss:$16 sps:$4 sm:$0xff]  }
 0x423   : > { %7107 = vpow2.f32 %v3916_v38  ;;  %v3899_v41 = vpop.xlane.xlu1 %3898  ;;  %v6950_v38 = vld [vmem:[#allocation8 + $0xcc] ss:$16 sps:$4 sm:$0xff]  }
 0x424   : > { %v3922_v42 = vmul.f32 1.442695, %v3910_v39  ;;  %v3911_v44 = vsub.f32 %v3836_v20, %v3899_v41  ;;  %v6923_v20 = vld [vmem:[#allocation8 + $0x44] ss:$16 sps:$4 sm:$0xff]   ;;  %v6948_v39 = vld [vmem:[#allocation8 + $0xc8] ss:$16 sps:$4 sm:$0xff]  }
 0x425   : > { %v3902_v48 = vpop.xlane.xlu0 %3901  ;;  %v6953_v41 = vld [vmem:[#allocation8 + $0xe4] ss:$16 sps:$4 sm:$0xff]  }
 0x426   : > { %7109 = vpow2.f32 %v3922_v42  ;;  %v3924_v49 = vmul.f32 1.442695, %v3911_v44  ;;  %v3912_v51 = vsub.f32 %v3874_v12, %v3902_v48  ;;  %v6914_v12 = vld [vmem:[#allocation8 + $0xc] ss:$16 sps:$4 sm:$0xff]   ;;  %v6951_v44 = vld [vmem:[#allocation8 + $0xe0] ss:$16 sps:$4 sm:$0xff]  }
 0x427   : > { %v3905_v52 = vpop.xlane.xlu1 %3904  ;;  %v6956_v42 = vld [vmem:[#allocation8 + $0xec] ss:$16 sps:$4 sm:$0xff]   ;;  %v6954_v48 = vld [vmem:[#allocation8 + $0xe8] ss:$16 sps:$4 sm:$0xff]  }
 0x428   : > { %7111 = vpow2.f32 %v3924_v49  ;;  %v3926_v53 = vmul.f32 1.442695, %v3912_v51  ;;  %v3913_v15 = vsub.f32 %v3877_v19, %v3905_v52  ;;  %v7102_v54 = vpop.eup %7101  ;;  %v6918_v19 = vld [vmem:[#allocation8 + $0x28] ss:$16 sps:$4 sm:$0xff]   ;;  %v6959_v49 = vld [vmem:[#allocation8 + $0x104] ss:$16 sps:$4 sm:$0xff]  }
 0x429   : > { %v3930_v60 = vsel %vm3881_vm1, %v7102_v54, 0.0  ;;  %v7104_v61 = vpop.eup %7103  ;;  %v6962_v51 = vld [vmem:[#allocation8 + $0x10c] ss:$16 sps:$4 sm:$0xff]   ;;  %v6957_v52 = vld [vmem:[#allocation8 + $0x100] ss:$16 sps:$4 sm:$0xff]  }
 0x42a   : > { %7113 = vpow2.f32 %v3926_v53  ;;  %v3928_v55 = vmul.f32 1.442695, %v3913_v15  ;;  %3931 = vadd.xlane.f32.xlu0 %v3930_v60  ;;  %v3936_v4 = vsel %vm3881_vm1, %v7104_v61, 0.0  ;;  %v6960_v53 = vld [vmem:[#allocation8 + $0x108] ss:$16 sps:$4 sm:$0xff]  }
 0x42b   : > { %v6965_v15 = vld [vmem:[#allocation8 + $0x124] ss:$16 sps:$4 sm:$0xff]   ;;  %v6966_v60 = vld [vmem:[#allocation8 + $0x128] ss:$16 sps:$4 sm:$0xff]  }
 0x42c   : > { %v7106_v57 = vpop.eup %7105  ;;  %7115 = vpow2.f32 %v3928_v55  ;;  %v6963_v55 = vld [vmem:[#allocation8 + $0x120] ss:$16 sps:$4 sm:$0xff]  }
 0x42d   : > { %v7108_v58 = vpop.eup %7107  ;;  %v3955_v59 = vpack.c.bf16 %v7106_v57, %v7104_v61  ;;  %v3939_v10 = vsel %vm3881_vm1, %v7106_v57, 0.0  ;;  %v6971_v61 = vld [vmem:[#allocation8 + $0x144] ss:$16 sps:$4 sm:$0xff]   ;;  %v6974_v57 = vld [vmem:[#allocation8 + $0x14c] ss:$16 sps:$4 sm:$0xff]  }
 0x42e   : > { %v3933_v27 = vsel %vm3881_vm1, %v7108_v58, 0.0  ;;  %v3954_v5 = vpack.c.bf16 %v7108_v58, %v7102_v54  ;;  %3937 = vadd.xlane.f32.xlu0 %v3936_v4  ;;  %v6968_v54 = vld [vmem:[#allocation8 + $0x12c] ss:$16 sps:$4 sm:$0xff]   ;;  %v6969_v58 = vld [vmem:[#allocation8 + $0x140] ss:$16 sps:$4 sm:$0xff]  }
 0x42f   : > { %3934 = vadd.xlane.f32.xlu1 %v3933_v27  ;;  %6134 = vmatmul.mubr.msk.bf16.vlgmr.msra.gmra.mrb[20].mxu1 %vm3881_vm1, %v3955_v59  ;;  %v6972_v59 = vld [vmem:[#allocation8 + $0x148] ss:$16 sps:$4 sm:$0xff]   ;;  %v6977_v4 = vld [vmem:[#allocation8 + $0x164] ss:$16 sps:$4 sm:$0xff]   ;;  %v6980_v27 = vld [vmem:[#allocation8 + $0x16c] ss:$16 sps:$4 sm:$0xff]  }
 0x430   : > { %v7110_v6 = vpop.eup %7109  ;;  %6128 = vmatmul.mubr.msk.bf16.vlgmr.msra.gmra.mrb[20].mxu0 %vm3881_vm1, %v3954_v5  ;;  %6144 = vmatpush3.bf16.msra.mxu1 %v3716_v56  ;;  %v6975_v5 = vld [vmem:[#allocation8 + $0x160] ss:$16 sps:$4 sm:$0xff]  }
 0x431   : > { %6138 = vmatpush3.bf16.msra.mxu0 %v3715_v2  ;;  %v3942_v7 = vsel %vm3881_vm1, %v7110_v6, 0.0  ;;  %6139 = vmatprep.mubr.msk.bf16.mxu0 %vm7439_vm0, %v7438_v43 }
 0x432   : > { %v7112_v8 = vpop.eup %7111  ;;  %6145 = vmatprep.mubr.msk.bf16.mxu1 %vm7439_vm0, %v7438_v43  ;;  %3943 = vadd.xlane.f32.xlu0 %v3942_v7  ;;  %v6909_v43 = vld [vmem:[#allocation8] ss:$16 sps:$4 sm:$0xff]   ;;  %v6983_v7 = vld [vmem:[#allocation8 + $0x184] ss:$16 sps:$4 sm:$0xff]  }
 0x433   : > { %3940 = vadd.xlane.f32.xlu1 %v3939_v10  ;;  %v3956_v16 = vpack.c.bf16 %v7112_v8, %v7110_v6  ;;  %v3945_v0 = vsel %vm3881_vm1, %v7112_v8, 0.0  ;;  %5096 = vmatprep.subr.bf16.mxu0 %v6911_v17  ;;  %v6978_v6 = vld [vmem:[#allocation8 + $0x168] ss:$16 sps:$4 sm:$0xff]   ;;  %v6986_v8 = vld [vmem:[#allocation8 + $0x18c] ss:$16 sps:$4 sm:$0xff]  }
 0x434   : > { %v7114_v62 = vpop.eup %7113  ;;  %5182 = vmatprep.subr.bf16.mxu1 %v6914_v12  ;;  %v6981_v10 = vld [vmem:[#allocation8 + $0x180] ss:$16 sps:$4 sm:$0xff]   ;;  %v6996_v17 = vld [vmem:[#allocation8 + $0x1c8] ss:$16 sps:$4 sm:$0xff]   ;;  %v7001_v12 = vld [vmem:[#allocation8 + $0x1e4] ss:$16 sps:$4 sm:$0xff]  }
 0x435   : > { %v3948_v63 = vsel %vm3881_vm1, %v7114_v62, 0.0 }
 0x436   : > { %v7116_v2 = vpop.eup %7115  ;;  %3949 = vadd.xlane.f32.xlu0 %v3948_v63  ;;  %v6992_v63 = vld [vmem:[#allocation8 + $0x1ac] ss:$16 sps:$4 sm:$0xff]  }
 0x437   : > { %3946 = vadd.xlane.f32.xlu1 %v3945_v0  ;;  %v3957_v1 = vpack.c.bf16 %v7116_v2, %v7114_v62  ;;  %v3951_v56 = vsel %vm3881_vm1, %v7116_v2, 0.0  ;;  %v6989_v62 = vld [vmem:[#allocation8 + $0x1a4] ss:$16 sps:$4 sm:$0xff]   ;;  %v6987_v2 = vld [vmem:[#allocation8 + $0x1a0] ss:$16 sps:$4 sm:$0xff]  }
 0x438   : > { %6140 = vmatmul.mubr.msk.bf16.vlgmr.msra.gmra.mrb[24].mxu0 %vm3881_vm1, %v3956_v16  ;;  %v6984_v16 = vld [vmem:[#allocation8 + $0x188] ss:$16 sps:$4 sm:$0xff]  }
 0x439   : > { %6146 = vmatmul.mubr.msk.bf16.vlgmr.msra.gmra.mrb[24].mxu1 %vm3881_vm1, %v3957_v1  ;;  %5097 = vmatpush1.bf16.msra.mxu0 %v6909_v43  ;;  %v6990_v0 = vld [vmem:[#allocation8 + $0x1a8] ss:$16 sps:$4 sm:$0xff]   ;;  %v6995_v1 = vld [vmem:[#allocation8 + $0x1c4] ss:$16 sps:$4 sm:$0xff]   ;;  %v6993_v43 = vld [vmem:[#allocation8 + $0x1c0] ss:$16 sps:$4 sm:$0xff]  }
 0x43a   : > { %5183 = vmatpush1.bf16.msra.mxu1 %v6912_v3  ;;  %5098 = vmatprep.subr.bf16.mxu0 %v6917_v13  ;;  %v6999_v3 = vld [vmem:[#allocation8 + $0x1e0] ss:$16 sps:$4 sm:$0xff]   ;;  %v7002_v13 = vld [vmem:[#allocation8 + $0x1e8] ss:$16 sps:$4 sm:$0xff]  }
 0x43b   : > { %3952 = vadd.xlane.f32.xlu1 %v3951_v56  ;;  %5184 = vmatprep.subr.bf16.mxu1 %v6920_v14  ;;  %v6998_v56 = vld [vmem:[#allocation8 + $0x1cc] ss:$16 sps:$4 sm:$0xff]  }
 0x43c   : > { %v7004_v14 = vld [vmem:[#allocation8 + $0x1ec] ss:$16 sps:$4 sm:$0xff]  }
 0x43d   : > { %5099 = vmatpush1.bf16.msra.mxu0 %v6915_v18  ;;  %v7007_v18 = vld [vmem:[#allocation8 + $0x204] ss:$16 sps:$4 sm:$0xff]  }
 0x43e   : > { %5185 = vmatpush1.bf16.msra.mxu1 %v6918_v19  ;;  %5100 = vmatprep.subr.bf16.mxu0 %v6923_v20  ;;  %v7010_v19 = vld [vmem:[#allocation8 + $0x20c] ss:$16 sps:$4 sm:$0xff]  }
 0x43f   : > { %5186 = vmatprep.subr.bf16.mxu1 %v6926_v21 }
 0x441   : > { %5101 = vmatpush1.bf16.msra.mxu0 %v6921_v22 }
 0x442   : > { %5187 = vmatpush1.bf16.msra.mxu1 %v6924_v23  ;;  %5102 = vmatprep.subr.bf16.mxu0 %v6929_v24 }
 0x443   : > { %5188 = vmatprep.subr.bf16.mxu1 %v6932_v37 }
 0x445   : > { %5103 = vmatpush1.bf16.msra.mxu0 %v6927_v25  ;;  %v7440_v25 = vmov 1935823168  }
 0x446   : > { %5189 = vmatpush1.bf16.msra.mxu1 %v6930_v26  ;;  %5104 = vmatprep.subr.bf16.mxu0 %v6935_v28  ;;  %v4159_v26 = vunpack.c.l.s4 %v7440_v25 }
 0x447   : > { %5190 = vmatprep.subr.bf16.mxu1 %v6938_v29 }
 0x448   : > { %v4160_v29 = vunpack.c.0.s8 %v4159_v26 }
 0x449   : > { %5105 = vmatpush1.bf16.msra.mxu0 %v6933_v30 }
 0x44a   : > { %5191 = vmatpush1.bf16.msra.mxu1 %v6936_v31  ;;  %5106 = vmatprep.subr.bf16.mxu0 %v6941_v32 }
 0x44b   : > { %5192 = vmatprep.subr.bf16.mxu1 %v6944_v33 }
 0x44d   : > { %5107 = vmatpush1.bf16.msra.mxu0 %v6939_v34 }
 0x44e   : > { %5193 = vmatpush1.bf16.msra.mxu1 %v6942_v35  ;;  %5108 = vmatprep.subr.bf16.mxu0 %v6947_v36 }
 0x44f   : > { %5194 = vmatprep.subr.bf16.mxu1 %v6950_v38  ;;  %v4163_v38 = vsub.s32 %v4160_v29, %v7797_v40 }
 0x451   : > { %5109 = vmatpush1.bf16.msra.mxu0 %v6945_v9 }
 0x452   : > { %5195 = vmatpush1.bf16.msra.mxu1 %v6948_v39  ;;  %5110 = vmatprep.subr.bf16.mxu0 %v6953_v41 }
 0x453   : > { %5196 = vmatprep.subr.bf16.mxu1 %v6956_v42 }
 0x455   : > { %5111 = vmatpush1.bf16.msra.mxu0 %v6951_v44 }
 0x456   : > { %5197 = vmatpush1.bf16.msra.mxu1 %v6954_v48  ;;  %5112 = vmatprep.subr.bf16.mxu0 %v6959_v49 }
 0x457   : > { %5198 = vmatprep.subr.bf16.mxu1 %v6962_v51 }
 0x459   : > { %5113 = vmatpush1.bf16.msra.mxu0 %v6957_v52 }
 0x45a   : > { %5199 = vmatpush1.bf16.msra.mxu1 %v6960_v53  ;;  %5114 = vmatprep.subr.bf16.mxu0 %v6965_v15 }
 0x45b   : > { %5200 = vmatprep.subr.bf16.mxu1 %v6968_v54 }
 0x45d   : > { %5115 = vmatpush1.bf16.msra.mxu0 %v6963_v55 }
 0x45e   : > { %5201 = vmatpush1.bf16.msra.mxu1 %v6966_v60  ;;  %5116 = vmatprep.subr.bf16.mxu0 %v6971_v61 }
 0x45f   : > { %5202 = vmatprep.subr.bf16.mxu1 %v6974_v57 }
 0x461   : > { %5117 = vmatpush1.bf16.msra.mxu0 %v6969_v58 }
 0x462   : > { %5203 = vmatpush1.bf16.msra.mxu1 %v6972_v59  ;;  %5118 = vmatprep.subr.bf16.mxu0 %v6977_v4 }
 0x463   : > { %5204 = vmatprep.subr.bf16.mxu1 %v6980_v27 }
 0x465   : > { %5119 = vmatpush1.bf16.msra.mxu0 %v6975_v5 }
 0x466   : > { %5205 = vmatpush1.bf16.msra.mxu1 %v6978_v6  ;;  %5120 = vmatprep.subr.bf16.mxu0 %v6983_v7 }
 0x467   : > { %5206 = vmatprep.subr.bf16.mxu1 %v6986_v8 }
 0x469   : > { %5121 = vmatpush1.bf16.msra.mxu0 %v6981_v10 }
 0x46a   : > { %5207 = vmatpush1.bf16.msra.mxu1 %v6984_v16  ;;  %5122 = vmatprep.subr.bf16.mxu0 %v6989_v62 }
 0x46b   : > { %5208 = vmatprep.subr.bf16.mxu1 %v6992_v63 }
 0x46d   : > { %5123 = vmatpush1.bf16.msra.mxu0 %v6987_v2 }
 0x46e   : > { %5209 = vmatpush1.bf16.msra.mxu1 %v6990_v0  ;;  %5124 = vmatprep.subr.bf16.mxu0 %v6995_v1 }
 0x46f   : > { %5210 = vmatprep.subr.bf16.mxu1 %v6998_v56 }
 0x471   : > { %5125 = vmatpush1.bf16.msra.mxu0 %v6993_v43 }
 0x472   : > { %5211 = vmatpush1.bf16.msra.mxu1 %v6996_v17  ;;  %5126 = vmatprep.subr.bf16.mxu0 %v7001_v12 }
 0x473   : > { %5212 = vmatprep.subr.bf16.mxu1 %v7004_v14 }
 0x475   : > { %5127 = vmatpush1.bf16.msra.mxu0 %v6999_v3 }
 0x476   : > { %5213 = vmatpush1.bf16.msra.mxu1 %v7002_v13  ;;  %5139 = vmatprep.subr.bf16.mxu0 %v7007_v18 }
 0x477   : > { %5225 = vmatprep.subr.bf16.mxu1 %v7010_v19 }
 0x4b7   : > { %v3932_v20 = vpop.xlane.xlu0 %3931 }
 0x4b8   : > { %7117 = vrcp.f32 %v3932_v20 }
 0x4bb   : > { %v3938_v22 = vpop.xlane.xlu0 %3937 }
 0x4bc   : > { %v3935_v21 = vpop.xlane.xlu1 %3934  ;;  %7119 = vrcp.f32 %v3938_v22 }
 0x4bd   : > { %7121 = vrcp.f32 %v3935_v21 }
 0x4bf   : > { %v3944_v24 = vpop.xlane.xlu0 %3943 }
 0x4c0   : > { %v3941_v23 = vpop.xlane.xlu1 %3940 }
 0x4c1   : > { %7123 = vrcp.f32 %v3941_v23 }
 0x4c2   : > { %7125 = vrcp.f32 %v3944_v24  ;;  %v7118_v31 = vpop.eup %7117 }
 0x4c3   : > { %v3950_v28 = vpop.xlane.xlu0 %3949 }
 0x4c4   : > { %v3947_v37 = vpop.xlane.xlu1 %3946  ;;  %7127 = vrcp.f32 %v3950_v28 }
 0x4c5   : > { %7129 = vrcp.f32 %v3947_v37 }
 0x4c6   : > { %v7120_v32 = vpop.eup %7119 }
 0x4c7   : > { %v7122_v35 = vpop.eup %7121 }
 0x4c8   : > { %v3953_v30 = vpop.xlane.xlu1 %3952 }
 0x4c9   : > { %7131 = vrcp.f32 %v3953_v30 }
 0x4cb   : > { %v7124_v42 = vpop.eup %7123 }
 0x4cc   : > { %v7126_v4 = vpop.eup %7125 }
 0x4ce   : > { %v7128_v27 = vpop.eup %7127 }
 0x4cf   : > { %v7130_v62 = vpop.eup %7129 }
 0x4d3   : > { %v7132_v56 = vpop.eup %7131 }
 0x502   : > { %v4039_v34 = vpop.f32.mrb[20].mxu1 }
 0x503   : > { %v3995_v33 = vpop.f32.mrb[20].mxu0  ;;  %v4152_v9 = vmul.f32 %v7120_v32, %v4039_v34  ;;  %v6135_v41 = vpop.f32.mrb[21].mxu1 }
 0x504   : > { %v4150_v36 = vmul.f32 %v7118_v31, %v3995_v33  ;;  %v6129_v39 = vpop.f32.mrb[21].mxu0  ;;  %v4042_v48 = vpop.f32.mrb[22].mxu1  ;;  %v7008_v41 = vld [vmem:[#allocation8 + $0x208] ss:$16 sps:$4 sm:$0xff]  }
 0x505   : > { %v3998_v44 = vpop.f32.mrb[22].mxu0  ;;  %v4153_v51 = vmul.f32 %v7124_v42, %v4042_v48  ;;  %v6136_v53 = vpop.f32.mrb[23].mxu1  ;;  %v4178_v54 = vrot.slane %v4152_v9, %v4163_v38  ;;  %v7005_v39 = vld [vmem:[#allocation8 + $0x200] ss:$16 sps:$4 sm:$0xff]   ;;  %v7013_v48 = vld [vmem:[#allocation8 + $0x224] ss:$16 sps:$4 sm:$0xff]  }
 0x506   : > { %v4151_v49 = vmul.f32 %v7122_v35, %v3998_v44  ;;  %v6130_v52 = vpop.f32.mrb[23].mxu0  ;;  %v4164_v15 = vrot.slane %v4150_v36, %v4163_v38  ;;  %v7022_v53 = vld [vmem:[#allocation8 + $0x24c] ss:$16 sps:$4 sm:$0xff]  }
 0x507   : > { %v4185_v60 = vrot.slane %v4153_v51, %v4163_v38  ;;  %v7014_v51 = vld [vmem:[#allocation8 + $0x228] ss:$16 sps:$4 sm:$0xff]   ;;  %v7019_v52 = vld [vmem:[#allocation8 + $0x244] ss:$16 sps:$4 sm:$0xff]  }
 0x508   : > { %v4171_v55 = vrot.slane %v4151_v49, %v4163_v38  ;;  %v7016_v49 = vld [vmem:[#allocation8 + $0x22c] ss:$16 sps:$4 sm:$0xff]  }
 0x509   : > { %v4224_v58 = vcombine.low %v4178_v54, %v4185_v60  ;;  %v4225_v59 = vcombine.high %v4178_v54, %v4185_v60  ;;  %v7020_v54 = vld [vmem:[#allocation8 + $0x248] ss:$16 sps:$4 sm:$0xff]   ;;  %v7028_v60 = vld [vmem:[#allocation8 + $0x26c] ss:$16 sps:$4 sm:$0xff]  }
 0x50a   : > { %v4222_v61 = vcombine.low %v4164_v15, %v4171_v55  ;;  %v4223_v57 = vcombine.high %v4164_v15, %v4171_v55  ;;  %v7017_v15 = vld [vmem:[#allocation8 + $0x240] ss:$16 sps:$4 sm:$0xff]   ;;  %v7025_v55 = vld [vmem:[#allocation8 + $0x264] ss:$16 sps:$4 sm:$0xff]  }
 0x50b   : > { %v4083_v40 = vpop.f32.mrb[24].mxu0  ;;  %v4246_v7 = vrot.slane %v4224_v58, %v7822_v11  ;;  %v4253_v8 = vrot.slane %v4225_v59, %v7822_v11  ;;  %v7031_v58 = vld [vmem:[#allocation8 + $0x284] ss:$16 sps:$4 sm:$0xff]   ;;  %v7034_v59 = vld [vmem:[#allocation8 + $0x28c] ss:$16 sps:$4 sm:$0xff]  }
 0x50c   : > { %v4232_v5 = vrot.slane %v4222_v61, %v7822_v11  ;;  %v4239_v6 = vrot.slane %v4223_v57, %v7822_v11  ;;  %v6141_v10 = vpop.f32.mrb[25].mxu0  ;;  %v4127_v16 = vpop.f32.mrb[24].mxu1  ;;  %v4154_v63 = vmul.f32 %v7126_v4, %v4083_v40  ;;  %v7023_v61 = vld [vmem:[#allocation8 + $0x260] ss:$16 sps:$4 sm:$0xff]   ;;  %v7026_v57 = vld [vmem:[#allocation8 + $0x268] ss:$16 sps:$4 sm:$0xff]  }
 0x50d   : > { %v4086_v2 = vpop.f32.mrb[26].mxu0  ;;  %v4156_v0 = vmul.f32 %v7128_v27, %v4127_v16  ;;  %v6147_v1 = vpop.f32.mrb[25].mxu1  ;;  %v7029_v4 = vld [vmem:[#allocation8 + $0x280] ss:$16 sps:$4 sm:$0xff]   ;;  %v7032_v40 = vld [vmem:[#allocation8 + $0x288] ss:$16 sps:$4 sm:$0xff]  }
 0x50e   : > { %v4254_v43 = vcombine.low %v4232_v5, %v4246_v7  ;;  %v4256_v17 = vcombine.low %v4239_v6, %v4253_v8  ;;  %v4155_v3 = vmul.f32 %v7130_v62, %v4086_v2  ;;  %v6142_v12 = vpop.f32.mrb[27].mxu0  ;;  %v4130_v13 = vpop.f32.mrb[26].mxu1  ;;  %v4255_v14 = vcombine.high %v4232_v5, %v4246_v7  ;;  %v7037_v27 = vld [vmem:[#allocation8 + $0x2a4] ss:$16 sps:$4 sm:$0xff]   ;;  %v7040_v5 = vld [vmem:[#allocation8 + $0x2ac] ss:$16 sps:$4 sm:$0xff]  }
 0x50f   : > { %v4157_v18 = vmul.f32 %v7132_v56, %v4130_v13  ;;  %v6148_v19 = vpop.f32.mrb[27].mxu1  ;;  %v4257_v20 = vcombine.high %v4239_v6, %v4253_v8  ;;  %v4192_v21 = vrot.slane %v4154_v63, %v4163_v38  ;;  %v4206_v23 = vrot.slane %v4156_v0, %v4163_v38  ;;  %v7035_v6 = vld [vmem:[#allocation8 + $0x2a0] ss:$16 sps:$4 sm:$0xff]   ;;  %v7038_v7 = vld [vmem:[#allocation8 + $0x2a8] ss:$16 sps:$4 sm:$0xff]  }
 0x510   : > { %v4199_v22 = vrot.slane %v4155_v3, %v4163_v38  ;;  %v7043_v8 = vld [vmem:[#allocation8 + $0x2c4] ss:$16 sps:$4 sm:$0xff]   ;;  %v7046_v10 = vld [vmem:[#allocation8 + $0x2cc] ss:$16 sps:$4 sm:$0xff]   ;;  %v7041_v16 = vld [vmem:[#allocation8 + $0x2c0] ss:$16 sps:$4 sm:$0xff]  }
 0x511   : > { %v4213_v24 = vrot.slane %v4157_v18, %v4163_v38  ;;  %v7044_v62 = vld [vmem:[#allocation8 + $0x2c8] ss:$16 sps:$4 sm:$0xff]   ;;  %v7049_v63 = vld [vmem:[#allocation8 + $0x2e4] ss:$16 sps:$4 sm:$0xff]   ;;  %v7052_v2 = vld [vmem:[#allocation8 + $0x2ec] ss:$16 sps:$4 sm:$0xff]  }
 0x512   : > { %v4258_v37 = vcombine.low %v4192_v21, %v4199_v22  ;;  %v4259_v25 = vcombine.high %v4192_v21, %v4199_v22  ;;  %v7047_v0 = vld [vmem:[#allocation8 + $0x2e0] ss:$16 sps:$4 sm:$0xff]   ;;  %v7050_v1 = vld [vmem:[#allocation8 + $0x2e8] ss:$16 sps:$4 sm:$0xff]   ;;  %v7055_v56 = vld [vmem:[#allocation8 + $0x304] ss:$16 sps:$4 sm:$0xff]  }
 0x513   : > { %v4260_v26 = vcombine.low %v4206_v23, %v4213_v24  ;;  %v4261_v28 = vcombine.high %v4206_v23, %v4213_v24  ;;  %v7056_v3 = vld [vmem:[#allocation8 + $0x308] ss:$16 sps:$4 sm:$0xff]   ;;  %v7061_v12 = vld [vmem:[#allocation8 + $0x324] ss:$16 sps:$4 sm:$0xff]   ;;  %v7064_v13 = vld [vmem:[#allocation8 + $0x32c] ss:$16 sps:$4 sm:$0xff]  }
 0x514   : > { %v4268_v29 = vrot.slane %v4258_v37, %v7822_v11  ;;  %v4275_v30 = vrot.slane %v4259_v25, %v7822_v11  ;;  %v7062_v18 = vld [vmem:[#allocation8 + $0x328] ss:$16 sps:$4 sm:$0xff]   ;;  %v7067_v19 = vld [vmem:[#allocation8 + $0x344] ss:$16 sps:$4 sm:$0xff]   ;;  %v7065_v21 = vld [vmem:[#allocation8 + $0x340] ss:$16 sps:$4 sm:$0xff]  }
 0x515   : > { %v4282_v31 = vrot.slane %v4260_v26, %v7822_v11  ;;  %v4289_v32 = vrot.slane %v4261_v28, %v7822_v11  ;;  %v7011_v11 = vld [vmem:[#allocation8 + $0x220] ss:$16 sps:$4 sm:$0xff]   ;;  %v7068_v22 = vld [vmem:[#allocation8 + $0x348] ss:$16 sps:$4 sm:$0xff]   ;;  %v7073_v23 = vld [vmem:[#allocation8 + $0x364] ss:$16 sps:$4 sm:$0xff]  }
 0x516   : > { %v7076_v24 = vld [vmem:[#allocation8 + $0x36c] ss:$16 sps:$4 sm:$0xff]   ;;  %v7071_v37 = vld [vmem:[#allocation8 + $0x360] ss:$16 sps:$4 sm:$0xff]   ;;  %v7074_v25 = vld [vmem:[#allocation8 + $0x368] ss:$16 sps:$4 sm:$0xff]  }
 0x517   : > { %v4290_v33 = vcombine.low %v4268_v29, %v4282_v31  ;;  %v4292_v34 = vcombine.low %v4275_v30, %v4289_v32  ;;  %v4291_v35 = vcombine.high %v4268_v29, %v4282_v31  ;;  %v4293_v36 = vcombine.high %v4275_v30, %v4289_v32  ;;  %v7079_v26 = vld [vmem:[#allocation8 + $0x384] ss:$16 sps:$4 sm:$0xff]   ;;  %v7082_v28 = vld [vmem:[#allocation8 + $0x38c] ss:$16 sps:$4 sm:$0xff]   ;;  %v7077_v29 = vld [vmem:[#allocation8 + $0x380] ss:$16 sps:$4 sm:$0xff]  }
 0x518   : > { %v7080_v30 = vld [vmem:[#allocation8 + $0x388] ss:$16 sps:$4 sm:$0xff]   ;;  %v7085_v31 = vld [vmem:[#allocation8 + $0x3a4] ss:$16 sps:$4 sm:$0xff]   ;;  %v7088_v32 = vld [vmem:[#allocation8 + $0x3ac] ss:$16 sps:$4 sm:$0xff]  }
 0x519   : > { %v4303_v9 = vpack.c.bf16 %v4291_v35, %v4255_v14  ;;  %v4302_v38 = vpack.c.bf16 %v4290_v33, %v4254_v43  ;;  %v4305_v42 = vpack.c.bf16 %v4293_v36, %v4257_v20  ;;  %v7996_v44 = vpack.c.bf16 %v4292_v34, %v4256_v17  ;;  %v7058_v43 = vld [vmem:[#allocation8 + $0x30c] ss:$16 sps:$4 sm:$0xff]   ;;  %v7053_v17 = vld [vmem:[#allocation8 + $0x300] ss:$16 sps:$4 sm:$0xff]   ;;  %v7086_v34 = vld [vmem:[#allocation8 + $0x3a8] ss:$16 sps:$4 sm:$0xff]  }
 0x51a   : > { %v7059_v14 = vld [vmem:[#allocation8 + $0x320] ss:$16 sps:$4 sm:$0xff]   ;;  %v7070_v20 = vld [vmem:[#allocation8 + $0x34c] ss:$16 sps:$4 sm:$0xff]   ;;  %v7091_v35 = vld [vmem:[#allocation8 + $0x3c4] ss:$16 sps:$4 sm:$0xff]  }
 0x51b   : > { %5128 = vmatprep.mubr.bf16.mxu0 %v4303_v9  ;;  %5214 = vmatprep.mubr.bf16.mxu1 %v4303_v9  ;;  %v7083_v33 = vld [vmem:[#allocation8 + $0x3a0] ss:$16 sps:$4 sm:$0xff]   ;;  %v7094_v36 = vld [vmem:[#allocation8 + $0x3cc] ss:$16 sps:$4 sm:$0xff]  }
 0x51c   : > { %5129 = vmatmul.mubr.bf16.vlgmr.msra.gmra.mrb[28].mxu0 %v4302_v38  ;;  %5215 = vmatmul.mubr.bf16.vlgmr.msra.gmra.mrb[28].mxu1 %v4302_v38  ;;  %v7089_v9 = vld [vmem:[#allocation8 + $0x3c0] ss:$16 sps:$4 sm:$0xff]   ;;  %v7100_v38 = vld [vmem:[#allocation8 + $0x3ec] ss:$16 sps:$4 sm:$0xff]  }
 0x51d   : > { %5140 = vmatpush1.bf16.msra.mxu0 %v7005_v39  ;;  %5226 = vmatpush1.bf16.msra.mxu1 %v7008_v41  ;;  %v7092_v39 = vld [vmem:[#allocation8 + $0x3c8] ss:$16 sps:$4 sm:$0xff]   ;;  %v7097_v41 = vld [vmem:[#allocation8 + $0x3e4] ss:$16 sps:$4 sm:$0xff]  }
 0x51e   : > { %5171 = vmatprep.mubr.bf16.mxu0 %v4305_v42  ;;  %5257 = vmatprep.mubr.bf16.mxu1 %v4305_v42  ;;  %v7095_v42 = vld [vmem:[#allocation8 + $0x3e0] ss:$16 sps:$4 sm:$0xff]  }
 0x51f   : > { %5141 = vmatprep.subr.bf16.mxu0 %v7013_v48  ;;  %5227 = vmatprep.subr.bf16.mxu1 %v7016_v49  ;;  %v7098_v48 = vld [vmem:[#allocation8 + $0x3e8] ss:$16 sps:$4 sm:$0xff]   ;;  %v4434_v49 = vld [vmem:[#allocation10] sm:$0xf] }
 0x521   : > { %5142 = vmatpush1.bf16.msra.mxu0 %v7011_v11  ;;  %5228 = vmatpush1.bf16.msra.mxu1 %v7014_v51  ;;  %v4439_v11 = vrot.slane %v4434_v49, %v7802_v50  ;;  %v4447_v51 = vrot.slane %v4434_v49, %v7805_v45 }
 0x522   : > { %5143 = vmatprep.subr.bf16.mxu0 %v7019_v52  ;;  %5229 = vmatprep.subr.bf16.mxu1 %v7022_v53  ;;  %v4443_v52 = vrot.slane %v4434_v49, %v7808_v46 }
 0x525   : > { %5144 = vmatpush1.bf16.msra.mxu0 %v7017_v15  ;;  %5230 = vmatpush1.bf16.msra.mxu1 %v7020_v54  ;;  %v4451_v54 = vrot.slane %v4434_v49, %v7811_v47 }
 0x526   : > { %5145 = vmatprep.subr.bf16.mxu0 %v7025_v55  ;;  %5231 = vmatprep.subr.bf16.mxu1 %v7028_v60 }
 0x529   : > { %5146 = vmatpush1.bf16.msra.mxu0 %v7023_v61  ;;  %5232 = vmatpush1.bf16.msra.mxu1 %v7026_v57 }
 0x52a   : > { %5147 = vmatprep.subr.bf16.mxu0 %v7031_v58  ;;  %5233 = vmatprep.subr.bf16.mxu1 %v7034_v59 }
 0x52d   : > { %5148 = vmatpush1.bf16.msra.mxu0 %v7029_v4  ;;  %5234 = vmatpush1.bf16.msra.mxu1 %v7032_v40  ;;  %v7137_v4 = vld [vmem:[%s7741_s15] sm:$0xff] }
 0x52e   : > { %5149 = vmatprep.subr.bf16.mxu0 %v7037_v27  ;;  %5235 = vmatprep.subr.bf16.mxu1 %v7040_v5 }
 0x531   : > { %5150 = vmatpush1.bf16.msra.mxu0 %v7035_v6  ;;  %5236 = vmatpush1.bf16.msra.mxu1 %v7038_v7  ;;  %v7138_v7 = vld [vmem:[%s7741_s15 + $0x8] sm:$0xff] }
 0x532   : > { %5151 = vmatprep.subr.bf16.mxu0 %v7043_v8  ;;  %5237 = vmatprep.subr.bf16.mxu1 %v7046_v10 }
 0x535   : > { %5152 = vmatpush1.bf16.msra.mxu0 %v7041_v16  ;;  %5238 = vmatpush1.bf16.msra.mxu1 %v7044_v62 }
 0x536   : > { %5153 = vmatprep.subr.bf16.mxu0 %v7049_v63  ;;  %5239 = vmatprep.subr.bf16.mxu1 %v7052_v2  ;;  %v7139_v63 = vld [vmem:[%s7741_s15 + $0x20] sm:$0xff] }
 0x539   : > { %5154 = vmatpush1.bf16.msra.mxu0 %v7047_v0  ;;  %5240 = vmatpush1.bf16.msra.mxu1 %v7050_v1  ;;  %v7140_v0 = vld [vmem:[%s7741_s15 + $0x10] sm:$0xff] }
 0x53a   : > { %5155 = vmatprep.subr.bf16.mxu0 %v7055_v56  ;;  %5241 = vmatprep.subr.bf16.mxu1 %v7058_v43  ;;  %v7141_v43 = vld [vmem:[%s7741_s15 + $0x28] sm:$0xff] }
 0x53d   : > { %5156 = vmatpush1.bf16.msra.mxu0 %v7053_v17  ;;  %5242 = vmatpush1.bf16.msra.mxu1 %v7056_v3 }
 0x53e   : > { %5157 = vmatprep.subr.bf16.mxu0 %v7061_v12  ;;  %5243 = vmatprep.subr.bf16.mxu1 %v7064_v13  ;;  %v7142_v12 = vld [vmem:[%s7741_s15 + $0x18] sm:$0xff] }
 0x541   : > { %5158 = vmatpush1.bf16.msra.mxu0 %v7059_v14  ;;  %5244 = vmatpush1.bf16.msra.mxu1 %v7062_v18  ;;  %v7143_v14 = vld [vmem:[%s7741_s15 + $0x30] sm:$0xff] }
 0x542   : > { %5159 = vmatprep.subr.bf16.mxu0 %v7067_v19  ;;  %5245 = vmatprep.subr.bf16.mxu1 %v7070_v20 }
 0x545   : > { %5160 = vmatpush1.bf16.msra.mxu0 %v7065_v21  ;;  %5246 = vmatpush1.bf16.msra.mxu1 %v7068_v22  ;;  %v7144_v21 = vld [vmem:[%s7741_s15 + $0x38] sm:$0xff] }
 0x546   : > { %5161 = vmatprep.subr.bf16.mxu0 %v7073_v23  ;;  %5247 = vmatprep.subr.bf16.mxu1 %v7076_v24 }
 0x549   : > { %5162 = vmatpush1.bf16.msra.mxu0 %v7071_v37  ;;  %5248 = vmatpush1.bf16.msra.mxu1 %v7074_v25 }
 0x54a   : > { %5163 = vmatprep.subr.bf16.mxu0 %v7079_v26  ;;  %5249 = vmatprep.subr.bf16.mxu1 %v7082_v28 }
 0x54d   : > { %5164 = vmatpush1.bf16.msra.mxu0 %v7077_v29  ;;  %5250 = vmatpush1.bf16.msra.mxu1 %v7080_v30 }
 0x54e   : > { %5165 = vmatprep.subr.bf16.mxu0 %v7085_v31  ;;  %5251 = vmatprep.subr.bf16.mxu1 %v7088_v32 }
 0x551   : > { %5166 = vmatpush1.bf16.msra.mxu0 %v7083_v33  ;;  %5252 = vmatpush1.bf16.msra.mxu1 %v7086_v34 }
 0x552   : > { %5167 = vmatprep.subr.bf16.mxu0 %v7091_v35  ;;  %5253 = vmatprep.subr.bf16.mxu1 %v7094_v36 }
 0x555   : > { %5168 = vmatpush1.bf16.msra.mxu0 %v7089_v9  ;;  %5254 = vmatpush1.bf16.msra.mxu1 %v7092_v39 }
 0x556   : > { %5169 = vmatprep.subr.bf16.mxu0 %v7097_v41  ;;  %5255 = vmatprep.subr.bf16.mxu1 %v7100_v38 }
 0x559   : > { %5170 = vmatpush1.bf16.msra.mxu0 %v7095_v42  ;;  %5256 = vmatpush1.bf16.msra.mxu1 %v7098_v48 }
 0x55c   : > { %5172 = vmatmul.mubr.bf16.vlgmr.msra.gmra.mrb[28].mxu0 %v7996_v44  ;;  %5258 = vmatmul.mubr.bf16.vlgmr.msra.gmra.mrb[28].mxu1 %v7996_v44 }
 0x62f   : > { %v5173_v53 = vpop.f32.mrb[28].mxu0  ;;  %v5259_v15 = vpop.f32.mrb[28].mxu1 }
 0x630   : > { %v6173_v55 = vadd.f32 %v5173_v53, %v4439_v11  ;;  %v5175_v60 = vpop.f32.mrb[29].mxu0  ;;  %v5261_v61 = vpop.f32.mrb[29].mxu1  ;;  %v6177_v57 = vadd.f32 %v5259_v15, %v4447_v51 }
 0x631   : > { %v6174_v58 = vadd.f32 %v5175_v60, %v4443_v52  ;;  %v5177_v44 = vpop.f32.mrb[30].mxu0  ;;  %v5263_v59 = vpop.f32.mrb[30].mxu1  ;;  %v6178_v10 = vadd.f32 %v5261_v61, %v4451_v54 }
 0x632   : > { %v5268_v40 = vadd.f32 %v7137_v4, %v6173_v55  ;;  %v6175_v27 = vadd.f32 %v5177_v44, %v4439_v11  ;;  %v5179_v5 = vpop.f32.mrb[31].mxu0  ;;  %v5265_v6 = vpop.f32.mrb[31].mxu1  ;;  %v6179_v16 = vadd.f32 %v5263_v59, %v4447_v51  ;;  %v5270_v1 = vadd.f32 %v7140_v0, %v6177_v57 }
 0x633   : > { %v5269_v8 = vadd.f32 %v7138_v7, %v6174_v58  ;;  %v6176_v62 = vadd.f32 %v5179_v5, %v4443_v52  ;;  %v6180_v3 = vadd.f32 %v5265_v6, %v4451_v54  ;;  %v5271_v13 = vadd.f32 %v7142_v12, %v6178_v10 }
 0x634   : > { %v5272_v2 = vadd.f32 %v7139_v63, %v6175_v27  ;;  %v5274_v18 = vadd.f32 %v7143_v14, %v6179_v16  ;;  %v5359_v27 = vld [vmem:[#allocation13] sm:$0xf] }
 0x635   : > { %v5276_v56 = vadd.f32 %v5269_v8, %v5268_v40  ;;  %v5273_v17 = vadd.f32 %v7141_v43, %v6176_v62  ;;  %v5275_v22 = vadd.f32 %v7144_v21, %v6180_v3  ;;  %v5364_v16 = vrot.slane %v5359_v27, %v7802_v50 }
 0x636   : > { %v5372_v62 = vrot.slane %v5359_v27, %v7805_v45  ;;  %v5368_v63 = vrot.slane %v5359_v27, %v7808_v46 }
 0x637   : > { %v5281_v19 = vadd.f32 %v5273_v17, %v5272_v2  ;;  %v5277_v20 = vadd.f32 %v5276_v56, %v5270_v1 }
 0x639   : > { %v5278_v23 = vadd.f32 %v5277_v20, %v5271_v13  ;;  %v5282_v24 = vadd.f32 %v5281_v19, %v5274_v18 }
 0x63b   : > { %5279 = vadd.xlane.f32.xlu0 %v5278_v23  ;;  %v5283_v37 = vadd.f32 %v5282_v24, %v5275_v22 }
 0x63d   : > { %5284 = vadd.xlane.f32.xlu1 %v5283_v37 }
 0x6c8   : > { %v5280_v25 = vpop.xlane.xlu0 %5279 }
 0x6c9   : > { %v5287_v26 = vmul.f32 0.001953125, %v5280_v25 }
 0x6ca   : > { %v5285_v28 = vpop.xlane.xlu1 %5284 }
 0x6cb   : > { %v5289_v29 = vsub.f32 %v5268_v40, %v5287_v26  ;;  %v5290_v30 = vsub.f32 %v5269_v8, %v5287_v26  ;;  %v5288_v31 = vmul.f32 0.001953125, %v5285_v28  ;;  %v5291_v32 = vsub.f32 %v5270_v1, %v5287_v26  ;;  %v5329_v40 = vld [vmem:[#allocation11] sm:$0xf] }
 0x6cc   : > { %v5292_v33 = vsub.f32 %v5271_v13, %v5287_v26  ;;  %v5334_v5 = vrot.slane %v5329_v40, %v7802_v50  ;;  %v5342_v6 = vrot.slane %v5329_v40, %v7805_v45  ;;  %v5338_v7 = vrot.slane %v5329_v40, %v7808_v46 }
 0x6cd   : > { %v5293_v34 = vsub.f32 %v5272_v2, %v5288_v31  ;;  %v5294_v35 = vsub.f32 %v5273_v17, %v5288_v31  ;;  %v5297_v36 = vmul.f32 %v5289_v29, %v5289_v29  ;;  %v5298_v9 = vmul.f32 %v5290_v30, %v5290_v30 }
 0x6ce   : > { %v5299_v39 = vmul.f32 %v5291_v32, %v5291_v32  ;;  %v5295_v41 = vsub.f32 %v5274_v18, %v5288_v31  ;;  %v5296_v42 = vsub.f32 %v5275_v22, %v5288_v31  ;;  %v5300_v11 = vmul.f32 %v5292_v33, %v5292_v33 }
 0x6cf   : > { %v5305_v38 = vadd.f32 %v5298_v9, %v5297_v36  ;;  %v5301_v48 = vmul.f32 %v5293_v34, %v5293_v34  ;;  %v5302_v49 = vmul.f32 %v5294_v35, %v5294_v35  ;;  %v5346_v8 = vrot.slane %v5329_v40, %v7811_v47 }
 0x6d0   : > { %v5303_v52 = vmul.f32 %v5295_v41, %v5295_v41  ;;  %v5304_v54 = vmul.f32 %v5296_v42, %v5296_v42  ;;  %v5376_v2 = vrot.slane %v5359_v27, %v7811_v47 }
 0x6d1   : > { %v5306_v51 = vadd.f32 %v5305_v38, %v5299_v39  ;;  %v5310_v53 = vadd.f32 %v5302_v49, %v5301_v48 }
 0x6d3   : > { %v5307_v15 = vadd.f32 %v5306_v51, %v5300_v11  ;;  %v5311_v55 = vadd.f32 %v5310_v53, %v5303_v52 }
 0x6d5   : > { %5308 = vadd.xlane.f32.xlu0 %v5307_v15  ;;  %v5312_v60 = vadd.f32 %v5311_v55, %v5304_v54 }
 0x6d7   : > { %5313 = vadd.xlane.f32.xlu1 %v5312_v60 }
 0x762   : > { %v5309_v61 = vpop.xlane.xlu0 %5308 }
 0x763   : > { %v5315_v57 = vmul.f32 0.001953125, %v5309_v61 }
 0x764   : > { %v5314_v58 = vpop.xlane.xlu1 %5313 }
 0x765   : > { %v5317_v44 = vadd.f32 1e-05, %v5315_v57  ;;  %v5316_v59 = vmul.f32 0.001953125, %v5314_v58 }
 0x767   : > { %7133 = vrsqrt.f32 %v5317_v44  ;;  %v5318_v4 = vadd.f32 1e-05, %v5316_v59 }
 0x769   : > { %7135 = vrsqrt.f32 %v5318_v4 }
 0x771   : > { %v7134_v10 = vpop.eup %7133 }
 0x772   : > { %v5321_v0 = vmul.f32 %v7134_v10, %v5289_v29  ;;  %v5322_v1 = vmul.f32 %v7134_v10, %v5290_v30  ;;  %v5323_v56 = vmul.f32 %v7134_v10, %v5291_v32  ;;  %v5324_v43 = vmul.f32 %v7134_v10, %v5292_v33 }
 0x773   : > { %v7136_v17 = vpop.eup %7135 }
 0x774   : > { %v5351_v3 = vmul.f32 %v5334_v5, %v5321_v0  ;;  %v5352_v12 = vmul.f32 %v5338_v7, %v5322_v1  ;;  %v5353_v13 = vmul.f32 %v5342_v6, %v5323_v56  ;;  %v5354_v14 = vmul.f32 %v5346_v8, %v5324_v43 }
 0x775   : > { %v5325_v18 = vmul.f32 %v7136_v17, %v5293_v34  ;;  %v5326_v19 = vmul.f32 %v7136_v17, %v5294_v35  ;;  %v5327_v50 = vmul.f32 %v7136_v17, %v5295_v41  ;;  %v5328_v20 = vmul.f32 %v7136_v17, %v5296_v42 }
 0x776   : > { %v5381_v45 = vadd.f32 %v5364_v16, %v5351_v3  ;;  %v5382_v46 = vadd.f32 %v5368_v63, %v5352_v12  ;;  %v5383_v47 = vadd.f32 %v5372_v62, %v5353_v13  ;;  %v5384_v21 = vadd.f32 %v5376_v2, %v5354_v14 }
 0x777   : > { %v5355_v22 = vmul.f32 %v5334_v5, %v5325_v18  ;;  %v5356_v23 = vmul.f32 %v5338_v7, %v5326_v19  ;;  %v5357_v24 = vmul.f32 %v5342_v6, %v5327_v50  ;;  %v5358_v37 = vmul.f32 %v5346_v8, %v5328_v20 }
 0x778   : > { %5389 = vst [vmem:[%s375_s13] sm:$0xff] %v5381_v45  ;;  %5390 = vst [vmem:[%s375_s13 + $0x8] sm:$0xff] %v5382_v46 }
 0x779   : > { %5391 = vst [vmem:[%s375_s13 + $0x10] sm:$0xff] %v5383_v47  ;;  %5392 = vst [vmem:[%s375_s13 + $0x18] sm:$0xff] %v5384_v21  ;;  %v5385_v25 = vadd.f32 %v5364_v16, %v5355_v22  ;;  %v5386_v26 = vadd.f32 %v5368_v63, %v5356_v23  ;;  %v5387_v28 = vadd.f32 %v5372_v62, %v5357_v24 }
 0x77a   : > { %v5388_v29 = vadd.f32 %v5376_v2, %v5358_v37 }
 0x77b   : > { %5393 = vst [vmem:[%s375_s13 + $0x20] sm:$0xff] %v5385_v25  ;;  %5394 = vst [vmem:[%s375_s13 + $0x28] sm:$0xff] %v5386_v26 }
 0x77c   : > { %5395 = vst [vmem:[%s375_s13 + $0x30] sm:$0xff] %v5387_v28  ;;  %5396 = vst [vmem:[%s375_s13 + $0x38] sm:$0xff] %v5388_v29 }
 0x77d   : > { %7356 = shalt.err (!%p7353_p8)
}
 0x77e   : > { %s7357_s14 = scalar_lea.hbm %s8026_s30, 1024  ;;  %s7361_s8 = scalar_lea.hbm %s8079_s7, 2048 }
 0x77f   : > { %p7358_p7 = scmp.ne.s32.totalorder %s8026_s30, %s7357_s14  ;;  %p7362_p3 = scmp.lt.u32.totalorder %s8026_s30, %s8079_s7 }
 0x780   : > { %p7363_p0 = scmp.lt.u32.totalorder %s7361_s8, %s7357_s14  ;;  %p7365_p6 = scmp.lt.u32.totalorder %s7357_s14, %s8026_s30 }
 0x781   : > { %p7359_p9 = pnand %p7358_p7, %p8099_p5 }
 0x782   : > { %p7364_p2 = por %p7363_p0, %p7362_p3 }
 0x783   : > { %p7360_p4 = pneg %p7359_p9 }
 0x784   : > { %p7366_p10 = por %p7365_p6, %p7364_p2 }
 0x786   : > { %p7367_p1 = pnand %p7366_p10, %p7360_p4 }
 0x788   : > { %7370 = shalt.err (!%p7367_p1)
}
 0x789   : > { %s7442_s19 = smov 512   ;;  %s7443_s22 = smov 32  }
 0x78a   : > { %6239 = dma.vmem_to_hbm [thread:$0]  (%p8099_p5), %s8028_s9, 1024, %s8026_s30, %s5398_s17, %s7442_s19, %s7442_s19, %s7443_s22  }
 0x78b PF: > { %s5426_s28 = sand.u32 1, %s7409_s24   ;;  %p8100_p11 = scmp.ne.s32.totalorder %s8090_s29, 0 }
 0x78c   : > { %p8101_p12 = scmp.ge.s32.totalorder %s7421_s27, 2  ;;  %s5427_s23 = scalar_lea.sflag [#allocation4], %s5426_s28 }
 0x78e   : > { %p6265_p13 = pnand %p8101_p12, %p8100_p11 }
 0x790   : > { %7404 = dma.done.wait (!%p6265_p13), %s5427_s23, 1024  }
 0x791   : > { %7406 = vsyncadd (!%p6265_p13), %s5427_s23, 4294966272  ;;  %p23_p8 = scmp.ge.s32.totalorder %s7656_s11, 4   ;;  %s8102_s24 = smov %s7413_s25 }
 0x792   : > { %s8103_s25 = smov %s7417_s26  ;;  %s8104_s26 = smov %s7667_s18 }
 0x793   : > { %s8105_s27 = smov %s7656_s11  ;;  %25 = sbr.rel (!%p23_p8) target bundleno = 8 (0x8), region = 117 }
 0x79a   :  { %5432 = vsyncpa [#allocation3], 1 }
 0x79b   :  { %5434 = vsyncpa [#allocation3 + $0x1], 1 }
 0x79c   :  { %5435 = vsyncpa [#allocation6], 1 }
 0x79d   :  { %5436 = vsyncpa [#allocation9], 1 }
 0x79e   :  { %5437 = vsyncpa [#allocation12], 1 }
 0x79f   :  { %5438 = vsyncpa [#allocation4], 1 }
 0x7a0   :  { %5440 = vsyncpa [#allocation4 + $0x1], 1 }

</bundles_post_ra>
